<compile_context>
chip_gen: v7x
topology: tpu7x:2x2x1
jax: 0.10.0
libtpu: 0.0.40
codegen_flags: <defaults>
</compile_context>

<pallas_src>
import functools

import numpy as np
import jax
import jax.numpy as jnp
from jax.experimental import pallas as pl
from jax.experimental.pallas import tpu as pltpu


def _round_up(x, m):
    return ((x + m - 1) // m) * m


def _cdiv(a, b):
    return (a + b - 1) // b


def cnn_kernel(chars_ref, emb_ref, w1_ref, b1_ref, w2_ref, b2_ref, out_ref, *,
               L, Lpad, K1, K2, G):
    """One grid step processes TB = Wg*G words, packed G words per row along lanes.

    chars_ref : (Rg, G)            int32   char ids; row = group*Lpad + t, lane = word slot
    emb_ref   : (G*V, G*E)         float32 block-diagonal embedding table
    w1_ref    : (K1*G*E, G*C1)     float32 conv1 weight, tap-major rows, block-diag per tap
    b1_ref    : (1, G*C1)          float32
    w2_ref    : (K2*G*C1, C2cols)  float32 conv2 weight (columns zero-padded to C2cols)
    b2_ref    : (1, C2cols)        float32
    out_ref   : (Wg, C2cols)       float32 per-group global max over time (G words / row)
    """
    Rg = chars_ref.shape[0]                       # Wg * Lpad
    GV = emb_ref.shape[0]
    V = GV // G
    Wg = out_ref.shape[0]

    # Valid sequence length after each padding=1, stride=1 stage.
    T1 = L + 3 - K1          # conv1 output length
    P1 = T1 + 3 - K1         # maxpool1 output length
    T2 = P1 + 3 - K2         # conv2 output length
    P2 = T2 + 3 - K2         # maxpool2 output length

    # Per-row time position within its word group (hoisted once).
    pos = jax.lax.broadcasted_iota(jnp.int32, (Wg, Lpad, 1), 1).reshape(Rg, 1)

    # Boundary masks are identical across stages when K1 == K2 == 3; cache by (offset, len).
    mask_cache = {}

    def time_mask(j, in_len):
        key = (j - 1, in_len)
        if key not in mask_cache:
            off = pos + (j - 1)
            mask_cache[key] = jnp.logical_and(off >= 0, off < in_len)
        return mask_cache[key]

    # ---- embedding lookup: packed one-hot (Rg, G*V) then one block-diag MXU matmul ----
    lane = jax.lax.broadcasted_iota(jnp.int32, (Rg, GV), 1)
    chars = chars_ref[...]                                        # (Rg, G) int32
    onehot = (chars[:, 0:1] == lane).astype(jnp.float32)
    for i in range(1, G):
        onehot = onehot + (chars[:, i:i + 1] + i * V == lane).astype(jnp.float32)
    x = jnp.dot(onehot, emb_ref[...], preferred_element_type=jnp.float32)   # (Rg, G*E)

    def shifted(v, j, in_len, fill):
        # Rows of v at per-word time (t + j - 1); `fill` outside [0, in_len).
        # The mask also kills rows the cyclic roll wrapped across group boundaries.
        shift = (1 - j) % Rg
        rolled = pltpu.roll(v, shift=shift, axis=0) if shift else v
        return jnp.where(time_mask(j, in_len), rolled, fill)

    def conv_relu(v, in_len, K, w_ref, b_ref):
        # Fused im2col: one (Rg, K*G*Cin) @ (K*G*Cin, G*Cout) matmul; concat offsets are
        # multiples of G*Cin (128-aligned at the default sizes) -> whole-vreg copies.
        slab = jnp.concatenate([shifted(v, j, in_len, 0.0) for j in range(K)], axis=1)
        y = jnp.dot(slab, w_ref[...], preferred_element_type=jnp.float32)
        return jnp.maximum(y + b_ref[...], 0.0)

    def maxpool(v, in_len, K):
        # MaxPool1d(kernel=K, stride=1, padding=1) with PyTorch's -inf padding semantics.
        out = shifted(v, 0, in_len, -jnp.inf)
        for j in range(1, K):
            out = jnp.maximum(out, shifted(v, j, in_len, -jnp.inf))
        return out

    h1 = conv_relu(x, L, K1, w1_ref, b1_ref)        # (Rg, G*C1)
    p1 = maxpool(h1, T1, K1)                        # (Rg, G*C1)
    h2 = conv_relu(p1, P1, K2, w2_ref, b2_ref)      # (Rg, C2cols)
    p2 = maxpool(h2, T2, K2)                        # (Rg, C2cols)

    # ---- global max over time (torch.max(..., dim=2)); lane-dense (Wg, C2cols) store ----
    p2 = jnp.where(pos < P2, p2, -jnp.inf)
    out_ref[...] = jnp.max(p2.reshape(Wg, Lpad, p2.shape[1]), axis=1)


def cnn_forward(chars, emb, w1, b1, w2, b2, *, words_per_step=128):
    """chars: (B, L) int; emb: (V, E); w1: (K1, E, C1); b1: (C1,); w2: (K2, C1, C2); b2: (C2,).

    words_per_step: upper bound on words per grid step.  Default 128 is sized for v7x's
    64 MiB VMEM; on v5e/v6e (128 MiB VMEM, single TensorCore) it can be pushed to 256-512
    to amortize the ~0.35 us/step serial grid overhead.
    """
    B, L = chars.shape
    V, E = emb.shape
    K1, _, C1 = w1.shape
    K2, _, C2 = w2.shape

    T1 = L + 3 - K1
    P1 = T1 + 3 - K1
    T2 = P1 + 3 - K2
    P2 = T2 + 3 - K2

    # Time axis padded to a sublane multiple; G words packed per row along lanes.
    Lpad = _round_up(max(L, T1, P1, T2, P2), 8)
    G = (128 // E) if (E <= 128 and 128 % E == 0) else 1
    gran = 8 * G                                   # keeps Wg (sublanes) a multiple of 8

    # TB: multiple of `gran`, capped by words_per_step, small enough that real batches get
    # >= 2 grid steps ("parallel" -> both v7x TensorCores).  Tiny batches are padded to two
    # steps anyway (negligible extra work).
    tb_cap = max(gran, (words_per_step // gran) * gran)
    TB = max(gran, min(tb_cap, _round_up(_cdiv(B, 2), gran)))
    Bpad = _round_up(B, TB)
    if Bpad // TB < 2:
        Bpad = 2 * TB

    GV, GE, GC1 = G * V, G * E, G * C1
    C2cols = _round_up(G * C2, 128)
    Wg = TB // G                                   # word groups per grid step
    Rg = Wg * Lpad                                 # rows per grid step

    # ---- host-side packing (cheap XLA ops on small arrays) ----
    chars_p = jnp.zeros((Bpad, Lpad), jnp.int32).at[:B, :L].set(chars.astype(jnp.int32))
    chars_packed = (chars_p.reshape(Bpad // G, G, Lpad)
                    .transpose(0, 2, 1)
                    .reshape(Bpad // G * Lpad, G))                 # row = group*Lpad + t

    eye = jnp.eye(G, dtype=jnp.float32)
    emb_packed = jnp.einsum('ve,gh->gvhe', emb.astype(jnp.float32), eye).reshape(GV, GE)
    w1_packed = jnp.einsum('kco,gh->kgcho', w1.astype(jnp.float32), eye).reshape(K1 * GE, GC1)
    b1_packed = jnp.tile(b1.astype(jnp.float32), (G,)).reshape(1, GC1)
    w2_blk = jnp.einsum('kco,gh->kgcho', w2.astype(jnp.float32), eye).reshape(K2 * GC1, G * C2)
    w2_packed = jnp.zeros((K2 * GC1, C2cols), jnp.float32).at[:, :G * C2].set(w2_blk)
    b2_packed = jnp.zeros((1, C2cols), jnp.float32).at[:, :G * C2].set(
        jnp.tile(b2.astype(jnp.float32), (G,))[None, :])

    kernel = functools.partial(cnn_kernel, L=L, Lpad=Lpad, K1=K1, K2=K2, G=G)

    # ---- cost estimate + VMEM budget ----
    weight_elems = GV * GE + K1 * GE * GC1 + K2 * GC1 * C2cols
    rows_total = (Bpad // G) * Lpad
    flops = 2 * rows_total * weight_elems
    bytes_accessed = (chars_packed.size * 4 + (weight_elems + GC1 + C2cols) * 4
                      + (Bpad // G) * C2cols * 4)
    slab_bytes = Rg * 4 * (GV + GE + K1 * GE + 3 * GC1 + K2 * GC1 + 3 * C2cols)
    vmem_limit = int(min(64 * 2**20, max(32 * 2**20, 2 * (slab_bytes + 2 * 4 * weight_elems))))

    out = pl.pallas_call(
        kernel,
        out_shape=jax.ShapeDtypeStruct((Bpad // G, C2cols), jnp.float32),
        grid_spec=pltpu.PrefetchScalarGridSpec(
            num_scalar_prefetch=0,
            grid=(Bpad // TB,),
            in_specs=[
                pl.BlockSpec((Rg, G), lambda b: (b, 0)),            # packed chars
                pl.BlockSpec((GV, GE), lambda b: (0, 0)),           # block-diag embedding
                pl.BlockSpec((K1 * GE, GC1), lambda b: (0, 0)),     # conv1 weight (im2col)
                pl.BlockSpec((1, GC1), lambda b: (0, 0)),           # conv1 bias
                pl.BlockSpec((K2 * GC1, C2cols), lambda b: (0, 0)), # conv2 weight (im2col)
                pl.BlockSpec((1, C2cols), lambda b: (0, 0)),        # conv2 bias
            ],
            out_specs=pl.BlockSpec((Wg, C2cols), lambda b: (b, 0)),
        ),
        compiler_params=pltpu.CompilerParams(
            dimension_semantics=("parallel",),                      # v7x: shard across 2 TCs
            vmem_limit_bytes=vmem_limit),
        cost_estimate=pl.CostEstimate(flops=flops, transcendentals=0,
                                      bytes_accessed=bytes_accessed),
    )(chars_packed, emb_packed, w1_packed, b1_packed, w2_packed, b2_packed)

    # Unpack (Bpad//G, G*C2) -> (Bpad, C2) and drop batch padding.
    out = out[:, :G * C2].reshape(Bpad // G, G, C2).reshape(Bpad, C2)
    return out[:B]


def reference(chars, emb, w1, b1, w2, b2):
    """Pure-JAX reference matching the PyTorch forward (NCW convs, -inf maxpool pads)."""
    x = emb[chars]                              # (B, L, E)
    x = jnp.transpose(x, (0, 2, 1))             # (B, E, L)  == NCW

    def conv(x, w, b):
        w_oih = jnp.transpose(w, (2, 1, 0))     # (Cout, Cin, K)
        y = jax.lax.conv_general_dilated(
            x, w_oih, window_strides=(1,), padding=[(1, 1)],
            dimension_numbers=("NCH", "OIH", "NCH"))
        return y + b[None, :, None]

    def maxpool(x, k):
        return jax.lax.reduce_window(
            x, -jnp.inf, jax.lax.max,
            window_dimensions=(1, 1, k), window_strides=(1, 1, 1),
            padding=[(0, 0), (0, 0), (1, 1)])

    y = jnp.maximum(conv(x, w1, b1), 0.0)
    y = maxpool(y, w1.shape[0])
    y = jnp.maximum(conv(y, w2, b2), 0.0)
    y = maxpool(y, w2.shape[0])
    return jnp.max(y, axis=2)


if __name__ == "__main__":
    # Module hyper-parameters (small, consistent with the PyTorch __init__ signature).
    char_vocab_size = 32
    char_embedding_size = 16
    channel_out1, kernel1 = 32, 3
    channel_out2, kernel2 = 64, 3
    B, L = 2, 12                                # batch of words, chars per word

    key = jax.random.PRNGKey(0)
    k_emb, k_w1, k_b1, k_w2, k_b2, k_chars = jax.random.split(key, 6)

    emb = jax.random.normal(k_emb, (char_vocab_size, char_embedding_size), jnp.float32) * 0.5
    # conv weights stored as (K, Cin, Cout) for the kernel's im2col layout
    w1 = jax.random.normal(k_w1, (kernel1, char_embedding_size, channel_out1), jnp.float32) * 0.2
    b1 = jax.random.normal(k_b1, (channel_out1,), jnp.float32) * 0.1
    w2 = jax.random.normal(k_w2, (kernel2, channel_out1, channel_out2), jnp.float32) * 0.2
    b2 = jax.random.normal(k_b2, (channel_out2,), jnp.float32) * 0.1
    chars = jax.random.randint(k_chars, (B, L), 0, char_vocab_size, jnp.int32)

    out = cnn_forward(chars, emb, w1, b1, w2, b2)
    out = jax.block_until_ready(out)

    ref = jax.block_until_ready(reference(chars, emb, w1, b1, w2, b2))
    np.testing.assert_allclose(np.asarray(out), np.asarray(ref), rtol=1e-4, atol=1e-4)

    print("KERNEL_OK")
</pallas_src>

<mosaic_0001>
module attributes {stable_mosaic.version = 11 : i64} {
  func.func @cnn_kernel(%arg0: i32, %arg1: memref<128x8xi32, #tpu.memory_space<vmem>>, %arg2: memref<256x128xf32, #tpu.memory_space<vmem>>, %arg3: memref<384x256xf32, #tpu.memory_space<vmem>>, %arg4: memref<1x256xf32, #tpu.memory_space<vmem>>, %arg5: memref<768x512xf32, #tpu.memory_space<vmem>>, %arg6: memref<1x512xf32, #tpu.memory_space<vmem>>, %arg7: memref<8x512xf32, #tpu.memory_space<vmem>>) attributes {dimension_semantics = [#tpu.dimension_semantics<parallel>], iteration_bounds = array<i64: 2>, scalar_prefetch = 0 : i64, scratch_operands = 0 : i64, tpu.core_type = #tpu.core_type<tc>, window_params = [{transform_indices = @transform_0, window_bounds = array<i64: 128, 8>}, {pipeline_mode = #tpu.pipeline_mode<synchronous>, transform_indices = @transform_1, window_bounds = array<i64: 256, 128>}, {pipeline_mode = #tpu.pipeline_mode<synchronous>, transform_indices = @transform_2, window_bounds = array<i64: 384, 256>}, {pipeline_mode = #tpu.pipeline_mode<synchronous>, transform_indices = @transform_3, window_bounds = array<i64: 1, 256>}, {pipeline_mode = #tpu.pipeline_mode<synchronous>, transform_indices = @transform_4, window_bounds = array<i64: 768, 512>}, {pipeline_mode = #tpu.pipeline_mode<synchronous>, transform_indices = @transform_5, window_bounds = array<i64: 1, 512>}, {transform_indices = @transform_6, window_bounds = array<i64: 8, 512>}]} {
    %0 = tpu.iota {dimensions = array<i32: 1>} : vector<8x16x1xi32>
    %1 = vector.shape_cast %0 : vector<8x16x1xi32> to vector<128x1xi32>
    %2 = tpu.iota {dimensions = array<i32: 1>} : vector<128x256xi32>
    %c0 = arith.constant 0 : index
    %c0_0 = arith.constant 0 : index
    %3 = vector.load %arg1[%c0, %c0_0] : memref<128x8xi32, #tpu.memory_space<vmem>>, vector<128x8xi32>
    %4 = vector.extract_strided_slice %3 {offsets = [0, 0], sizes = [128, 1], strides = [1, 1]} : vector<128x8xi32> to vector<128x1xi32>
    %5 = vector.broadcast %4 : vector<128x1xi32> to vector<128x256xi32>
    %6 = arith.cmpi eq, %5, %2 : vector<128x256xi32>
    %7 = arith.extui %6 : vector<128x256xi1> to vector<128x256xi32>
    %8 = arith.sitofp %7 : vector<128x256xi32> to vector<128x256xf32>
    %9 = vector.extract_strided_slice %3 {offsets = [0, 1], sizes = [128, 1], strides = [1, 1]} : vector<128x8xi32> to vector<128x1xi32>
    %c32_i32 = arith.constant 32 : i32
    %10 = vector.broadcast %c32_i32 : i32 to vector<128x1xi32>
    %11 = arith.addi %9, %10 : vector<128x1xi32>
    %12 = vector.broadcast %11 : vector<128x1xi32> to vector<128x256xi32>
    %13 = arith.cmpi eq, %12, %2 : vector<128x256xi32>
    %14 = arith.extui %13 : vector<128x256xi1> to vector<128x256xi32>
    %15 = arith.sitofp %14 : vector<128x256xi32> to vector<128x256xf32>
    %16 = arith.addf %8, %15 : vector<128x256xf32>
    %17 = vector.extract_strided_slice %3 {offsets = [0, 2], sizes = [128, 1], strides = [1, 1]} : vector<128x8xi32> to vector<128x1xi32>
    %c64_i32 = arith.constant 64 : i32
    %18 = vector.broadcast %c64_i32 : i32 to vector<128x1xi32>
    %19 = arith.addi %17, %18 : vector<128x1xi32>
    %20 = vector.broadcast %19 : vector<128x1xi32> to vector<128x256xi32>
    %21 = arith.cmpi eq, %20, %2 : vector<128x256xi32>
    %22 = arith.extui %21 : vector<128x256xi1> to vector<128x256xi32>
    %23 = arith.sitofp %22 : vector<128x256xi32> to vector<128x256xf32>
    %24 = arith.addf %16, %23 : vector<128x256xf32>
    %25 = vector.extract_strided_slice %3 {offsets = [0, 3], sizes = [128, 1], strides = [1, 1]} : vector<128x8xi32> to vector<128x1xi32>
    %c96_i32 = arith.constant 96 : i32
    %26 = vector.broadcast %c96_i32 : i32 to vector<128x1xi32>
    %27 = arith.addi %25, %26 : vector<128x1xi32>
    %28 = vector.broadcast %27 : vector<128x1xi32> to vector<128x256xi32>
    %29 = arith.cmpi eq, %28, %2 : vector<128x256xi32>
    %30 = arith.extui %29 : vector<128x256xi1> to vector<128x256xi32>
    %31 = arith.sitofp %30 : vector<128x256xi32> to vector<128x256xf32>
    %32 = arith.addf %24, %31 : vector<128x256xf32>
    %33 = vector.extract_strided_slice %3 {offsets = [0, 4], sizes = [128, 1], strides = [1, 1]} : vector<128x8xi32> to vector<128x1xi32>
    %c128_i32 = arith.constant 128 : i32
    %34 = vector.broadcast %c128_i32 : i32 to vector<128x1xi32>
    %35 = arith.addi %33, %34 : vector<128x1xi32>
    %36 = vector.broadcast %35 : vector<128x1xi32> to vector<128x256xi32>
    %37 = arith.cmpi eq, %36, %2 : vector<128x256xi32>
    %38 = arith.extui %37 : vector<128x256xi1> to vector<128x256xi32>
    %39 = arith.sitofp %38 : vector<128x256xi32> to vector<128x256xf32>
    %40 = arith.addf %32, %39 : vector<128x256xf32>
    %41 = vector.extract_strided_slice %3 {offsets = [0, 5], sizes = [128, 1], strides = [1, 1]} : vector<128x8xi32> to vector<128x1xi32>
    %c160_i32 = arith.constant 160 : i32
    %42 = vector.broadcast %c160_i32 : i32 to vector<128x1xi32>
    %43 = arith.addi %41, %42 : vector<128x1xi32>
    %44 = vector.broadcast %43 : vector<128x1xi32> to vector<128x256xi32>
    %45 = arith.cmpi eq, %44, %2 : vector<128x256xi32>
    %46 = arith.extui %45 : vector<128x256xi1> to vector<128x256xi32>
    %47 = arith.sitofp %46 : vector<128x256xi32> to vector<128x256xf32>
    %48 = arith.addf %40, %47 : vector<128x256xf32>
    %49 = vector.extract_strided_slice %3 {offsets = [0, 6], sizes = [128, 1], strides = [1, 1]} : vector<128x8xi32> to vector<128x1xi32>
    %c192_i32 = arith.constant 192 : i32
    %50 = vector.broadcast %c192_i32 : i32 to vector<128x1xi32>
    %51 = arith.addi %49, %50 : vector<128x1xi32>
    %52 = vector.broadcast %51 : vector<128x1xi32> to vector<128x256xi32>
    %53 = arith.cmpi eq, %52, %2 : vector<128x256xi32>
    %54 = arith.extui %53 : vector<128x256xi1> to vector<128x256xi32>
    %55 = arith.sitofp %54 : vector<128x256xi32> to vector<128x256xf32>
    %56 = arith.addf %48, %55 : vector<128x256xf32>
    %57 = vector.extract_strided_slice %3 {offsets = [0, 7], sizes = [128, 1], strides = [1, 1]} : vector<128x8xi32> to vector<128x1xi32>
    %c224_i32 = arith.constant 224 : i32
    %58 = vector.broadcast %c224_i32 : i32 to vector<128x1xi32>
    %59 = arith.addi %57, %58 : vector<128x1xi32>
    %60 = vector.broadcast %59 : vector<128x1xi32> to vector<128x256xi32>
    %61 = arith.cmpi eq, %60, %2 : vector<128x256xi32>
    %62 = arith.extui %61 : vector<128x256xi1> to vector<128x256xi32>
    %63 = arith.sitofp %62 : vector<128x256xi32> to vector<128x256xf32>
    %64 = arith.addf %56, %63 : vector<128x256xf32>
    %c0_1 = arith.constant 0 : index
    %c0_2 = arith.constant 0 : index
    %65 = vector.load %arg2[%c0_1, %c0_2] : memref<256x128xf32, #tpu.memory_space<vmem>>, vector<256x128xf32>
    %cst = arith.constant dense<0.000000e+00> : vector<128x128xf32>
    %66 = tpu.matmul %64, %65, %cst {dimension_numbers = #tpu.dot_dimension_numbers<[1], [0], [0], [1], [0, 0, 1, 1], [], []>} : vector<128x256xf32>, vector<256x128xf32>, vector<128x128xf32> -> vector<128x128xf32>
    %c1_i32 = arith.constant 1 : i32
    %67 = tpu.dynamic_rotate %66 by %c1_i32 dim 0 : vector<128x128xf32>, i32 -> vector<128x128xf32>
    %c-1_i32 = arith.constant -1 : i32
    %68 = vector.broadcast %c-1_i32 : i32 to vector<128x1xi32>
    %69 = arith.addi %1, %68 : vector<128x1xi32>
    %c0_i32 = arith.constant 0 : i32
    %70 = vector.broadcast %c0_i32 : i32 to vector<128x1xi32>
    %71 = arith.cmpi sge, %69, %70 : vector<128x1xi32>
    %c12_i32 = arith.constant 12 : i32
    %72 = vector.broadcast %c12_i32 : i32 to vector<128x1xi32>
    %73 = arith.cmpi slt, %69, %72 : vector<128x1xi32>
    %74 = arith.andi %71, %73 : vector<128x1xi1>
    %cst_3 = arith.constant 0.000000e+00 : f32
    %75 = vector.shape_cast %74 : vector<128x1xi1> to vector<128x1xi1>
    %76 = vector.broadcast %75 : vector<128x1xi1> to vector<128x128xi1>
    %77 = vector.broadcast %cst_3 : f32 to vector<128x128xf32>
    %78 = arith.select %76, %67, %77 : vector<128x128xi1>, vector<128x128xf32>
    %c0_i32_4 = arith.constant 0 : i32
    %79 = vector.broadcast %c0_i32_4 : i32 to vector<128x1xi32>
    %80 = arith.addi %1, %79 : vector<128x1xi32>
    %c0_i32_5 = arith.constant 0 : i32
    %81 = vector.broadcast %c0_i32_5 : i32 to vector<128x1xi32>
    %82 = arith.cmpi sge, %80, %81 : vector<128x1xi32>
    %c12_i32_6 = arith.constant 12 : i32
    %83 = vector.broadcast %c12_i32_6 : i32 to vector<128x1xi32>
    %84 = arith.cmpi slt, %80, %83 : vector<128x1xi32>
    %85 = arith.andi %82, %84 : vector<128x1xi1>
    %cst_7 = arith.constant 0.000000e+00 : f32
    %86 = vector.shape_cast %85 : vector<128x1xi1> to vector<128x1xi1>
    %87 = vector.broadcast %86 : vector<128x1xi1> to vector<128x128xi1>
    %88 = vector.broadcast %cst_7 : f32 to vector<128x128xf32>
    %89 = arith.select %87, %66, %88 : vector<128x128xi1>, vector<128x128xf32>
    %c127_i32 = arith.constant 127 : i32
    %90 = tpu.dynamic_rotate %66 by %c127_i32 dim 0 : vector<128x128xf32>, i32 -> vector<128x128xf32>
    %c1_i32_8 = arith.constant 1 : i32
    %91 = vector.broadcast %c1_i32_8 : i32 to vector<128x1xi32>
    %92 = arith.addi %1, %91 : vector<128x1xi32>
    %c0_i32_9 = arith.constant 0 : i32
    %93 = vector.broadcast %c0_i32_9 : i32 to vector<128x1xi32>
    %94 = arith.cmpi sge, %92, %93 : vector<128x1xi32>
    %c12_i32_10 = arith.constant 12 : i32
    %95 = vector.broadcast %c12_i32_10 : i32 to vector<128x1xi32>
    %96 = arith.cmpi slt, %92, %95 : vector<128x1xi32>
    %97 = arith.andi %94, %96 : vector<128x1xi1>
    %cst_11 = arith.constant 0.000000e+00 : f32
    %98 = vector.shape_cast %97 : vector<128x1xi1> to vector<128x1xi1>
    %99 = vector.broadcast %98 : vector<128x1xi1> to vector<128x128xi1>
    %100 = vector.broadcast %cst_11 : f32 to vector<128x128xf32>
    %101 = arith.select %99, %90, %100 : vector<128x128xi1>, vector<128x128xf32>
    %102 = tpu.concatenate %78, %89, %101 in 1 : vector<128x128xf32>, vector<128x128xf32>, vector<128x128xf32> -> vector<128x384xf32>
    %c0_12 = arith.constant 0 : index
    %c0_13 = arith.constant 0 : index
    %103 = vector.load %arg3[%c0_12, %c0_13] : memref<384x256xf32, #tpu.memory_space<vmem>>, vector<384x256xf32>
    %cst_14 = arith.constant dense<0.000000e+00> : vector<128x256xf32>
    %104 = tpu.matmul %102, %103, %cst_14 {dimension_numbers = #tpu.dot_dimension_numbers<[1], [0], [0], [1], [0, 0, 1, 1], [], []>} : vector<128x384xf32>, vector<384x256xf32>, vector<128x256xf32> -> vector<128x256xf32>
    %c0_15 = arith.constant 0 : index
    %c0_16 = arith.constant 0 : index
    %105 = vector.load %arg4[%c0_15, %c0_16] : memref<1x256xf32, #tpu.memory_space<vmem>>, vector<1x256xf32>
    %106 = vector.broadcast %105 : vector<1x256xf32> to vector<128x256xf32>
    %107 = arith.addf %104, %106 : vector<128x256xf32>
    %cst_17 = arith.constant 0.000000e+00 : f32
    %108 = vector.broadcast %cst_17 : f32 to vector<128x256xf32>
    %109 = arith.maximumf %107, %108 : vector<128x256xf32>
    %c1_i32_18 = arith.constant 1 : i32
    %110 = tpu.dynamic_rotate %109 by %c1_i32_18 dim 0 : vector<128x256xf32>, i32 -> vector<128x256xf32>
    %cst_19 = arith.constant 0xFF800000 : f32
    %111 = vector.shape_cast %74 : vector<128x1xi1> to vector<128x1xi1>
    %112 = vector.broadcast %111 : vector<128x1xi1> to vector<128x256xi1>
    %113 = vector.broadcast %cst_19 : f32 to vector<128x256xf32>
    %114 = arith.select %112, %110, %113 : vector<128x256xi1>, vector<128x256xf32>
    %cst_20 = arith.constant 0xFF800000 : f32
    %115 = vector.shape_cast %85 : vector<128x1xi1> to vector<128x1xi1>
    %116 = vector.broadcast %115 : vector<128x1xi1> to vector<128x256xi1>
    %117 = vector.broadcast %cst_20 : f32 to vector<128x256xf32>
    %118 = arith.select %116, %109, %117 : vector<128x256xi1>, vector<128x256xf32>
    %119 = arith.maximumf %114, %118 : vector<128x256xf32>
    %c127_i32_21 = arith.constant 127 : i32
    %120 = tpu.dynamic_rotate %109 by %c127_i32_21 dim 0 : vector<128x256xf32>, i32 -> vector<128x256xf32>
    %cst_22 = arith.constant 0xFF800000 : f32
    %121 = vector.shape_cast %97 : vector<128x1xi1> to vector<128x1xi1>
    %122 = vector.broadcast %121 : vector<128x1xi1> to vector<128x256xi1>
    %123 = vector.broadcast %cst_22 : f32 to vector<128x256xf32>
    %124 = arith.select %122, %120, %123 : vector<128x256xi1>, vector<128x256xf32>
    %125 = arith.maximumf %119, %124 : vector<128x256xf32>
    %c1_i32_23 = arith.constant 1 : i32
    %126 = tpu.dynamic_rotate %125 by %c1_i32_23 dim 0 : vector<128x256xf32>, i32 -> vector<128x256xf32>
    %cst_24 = arith.constant 0.000000e+00 : f32
    %127 = vector.shape_cast %74 : vector<128x1xi1> to vector<128x1xi1>
    %128 = vector.broadcast %127 : vector<128x1xi1> to vector<128x256xi1>
    %129 = vector.broadcast %cst_24 : f32 to vector<128x256xf32>
    %130 = arith.select %128, %126, %129 : vector<128x256xi1>, vector<128x256xf32>
    %cst_25 = arith.constant 0.000000e+00 : f32
    %131 = vector.shape_cast %85 : vector<128x1xi1> to vector<128x1xi1>
    %132 = vector.broadcast %131 : vector<128x1xi1> to vector<128x256xi1>
    %133 = vector.broadcast %cst_25 : f32 to vector<128x256xf32>
    %134 = arith.select %132, %125, %133 : vector<128x256xi1>, vector<128x256xf32>
    %c127_i32_26 = arith.constant 127 : i32
    %135 = tpu.dynamic_rotate %125 by %c127_i32_26 dim 0 : vector<128x256xf32>, i32 -> vector<128x256xf32>
    %cst_27 = arith.constant 0.000000e+00 : f32
    %136 = vector.shape_cast %97 : vector<128x1xi1> to vector<128x1xi1>
    %137 = vector.broadcast %136 : vector<128x1xi1> to vector<128x256xi1>
    %138 = vector.broadcast %cst_27 : f32 to vector<128x256xf32>
    %139 = arith.select %137, %135, %138 : vector<128x256xi1>, vector<128x256xf32>
    %140 = tpu.concatenate %130, %134, %139 in 1 : vector<128x256xf32>, vector<128x256xf32>, vector<128x256xf32> -> vector<128x768xf32>
    %c0_28 = arith.constant 0 : index
    %c0_29 = arith.constant 0 : index
    %141 = vector.load %arg5[%c0_28, %c0_29] : memref<768x512xf32, #tpu.memory_space<vmem>>, vector<768x512xf32>
    %cst_30 = arith.constant dense<0.000000e+00> : vector<128x512xf32>
    %142 = tpu.matmul %140, %141, %cst_30 {dimension_numbers = #tpu.dot_dimension_numbers<[1], [0], [0], [1], [0, 0, 1, 1], [], []>} : vector<128x768xf32>, vector<768x512xf32>, vector<128x512xf32> -> vector<128x512xf32>
    %c0_31 = arith.constant 0 : index
    %c0_32 = arith.constant 0 : index
    %143 = vector.load %arg6[%c0_31, %c0_32] : memref<1x512xf32, #tpu.memory_space<vmem>>, vector<1x512xf32>
    %144 = vector.broadcast %143 : vector<1x512xf32> to vector<128x512xf32>
    %145 = arith.addf %142, %144 : vector<128x512xf32>
    %cst_33 = arith.constant 0.000000e+00 : f32
    %146 = vector.broadcast %cst_33 : f32 to vector<128x512xf32>
    %147 = arith.maximumf %145, %146 : vector<128x512xf32>
    %c1_i32_34 = arith.constant 1 : i32
    %148 = tpu.dynamic_rotate %147 by %c1_i32_34 dim 0 : vector<128x512xf32>, i32 -> vector<128x512xf32>
    %cst_35 = arith.constant 0xFF800000 : f32
    %149 = vector.shape_cast %74 : vector<128x1xi1> to vector<128x1xi1>
    %150 = vector.broadcast %149 : vector<128x1xi1> to vector<128x512xi1>
    %151 = vector.broadcast %cst_35 : f32 to vector<128x512xf32>
    %152 = arith.select %150, %148, %151 : vector<128x512xi1>, vector<128x512xf32>
    %cst_36 = arith.constant 0xFF800000 : f32
    %153 = vector.shape_cast %85 : vector<128x1xi1> to vector<128x1xi1>
    %154 = vector.broadcast %153 : vector<128x1xi1> to vector<128x512xi1>
    %155 = vector.broadcast %cst_36 : f32 to vector<128x512xf32>
    %156 = arith.select %154, %147, %155 : vector<128x512xi1>, vector<128x512xf32>
    %157 = arith.maximumf %152, %156 : vector<128x512xf32>
    %c127_i32_37 = arith.constant 127 : i32
    %158 = tpu.dynamic_rotate %147 by %c127_i32_37 dim 0 : vector<128x512xf32>, i32 -> vector<128x512xf32>
    %cst_38 = arith.constant 0xFF800000 : f32
    %159 = vector.shape_cast %97 : vector<128x1xi1> to vector<128x1xi1>
    %160 = vector.broadcast %159 : vector<128x1xi1> to vector<128x512xi1>
    %161 = vector.broadcast %cst_38 : f32 to vector<128x512xf32>
    %162 = arith.select %160, %158, %161 : vector<128x512xi1>, vector<128x512xf32>
    %163 = arith.maximumf %157, %162 : vector<128x512xf32>
    %c12_i32_39 = arith.constant 12 : i32
    %164 = vector.broadcast %c12_i32_39 : i32 to vector<128x1xi32>
    %165 = arith.cmpi slt, %1, %164 : vector<128x1xi32>
    %cst_40 = arith.constant 0xFF800000 : f32
    %166 = vector.shape_cast %165 : vector<128x1xi1> to vector<128x1xi1>
    %167 = vector.broadcast %166 : vector<128x1xi1> to vector<128x512xi1>
    %168 = vector.broadcast %cst_40 : f32 to vector<128x512xf32>
    %169 = arith.select %167, %163, %168 : vector<128x512xi1>, vector<128x512xf32>
    %170 = vector.shape_cast %169 : vector<128x512xf32> to vector<8x16x512xf32>
    %cst_41 = arith.constant dense<0xFF800000> : vector<8x512xf32>
    %171 = vector.multi_reduction <maximumf>, %170, %cst_41 [1] : vector<8x16x512xf32> to vector<8x512xf32>
    %c0_42 = arith.constant 0 : index
    %c0_43 = arith.constant 0 : index
    %172 = vector.load %arg7[%c0_42, %c0_43] : memref<8x512xf32, #tpu.memory_space<vmem>>, vector<8x512xf32>
    tpu.vector_store %arg7[%c0_42, %c0_43], %171 {strides = array<i32>} : memref<8x512xf32, #tpu.memory_space<vmem>>, vector<8x512xf32>,
    return
  }
  func.func @transform_0(%arg0: i32) -> (i32, i32) {
    %c0_i32 = arith.constant 0 : i32
    %c0_i32_0 = arith.constant 0 : i32
    return %arg0, %c0_i32 : i32, i32
  }
  func.func @transform_1(%arg0: i32) -> (i32, i32) {
    %c0_i32 = arith.constant 0 : i32
    %c0_i32_0 = arith.constant 0 : i32
    %c0_i32_1 = arith.constant 0 : i32
    return %c0_i32, %c0_i32_0 : i32, i32
  }
  func.func @transform_2(%arg0: i32) -> (i32, i32) {
    %c0_i32 = arith.constant 0 : i32
    %c0_i32_0 = arith.constant 0 : i32
    %c0_i32_1 = arith.constant 0 : i32
    return %c0_i32, %c0_i32_0 : i32, i32
  }
  func.func @transform_3(%arg0: i32) -> (i32, i32) {
    %c0_i32 = arith.constant 0 : i32
    %c0_i32_0 = arith.constant 0 : i32
    %c0_i32_1 = arith.constant 0 : i32
    return %c0_i32, %c0_i32_0 : i32, i32
  }
  func.func @transform_4(%arg0: i32) -> (i32, i32) {
    %c0_i32 = arith.constant 0 : i32
    %c0_i32_0 = arith.constant 0 : i32
    %c0_i32_1 = arith.constant 0 : i32
    return %c0_i32, %c0_i32_0 : i32, i32
  }
  func.func @transform_5(%arg0: i32) -> (i32, i32) {
    %c0_i32 = arith.constant 0 : i32
    %c0_i32_0 = arith.constant 0 : i32
    %c0_i32_1 = arith.constant 0 : i32
    return %c0_i32, %c0_i32_0 : i32, i32
  }
  func.func @transform_6(%arg0: i32) -> (i32, i32) {
    %c0_i32 = arith.constant 0 : i32
    %c0_i32_0 = arith.constant 0 : i32
    return %arg0, %c0_i32 : i32, i32
  }
}

</mosaic_0001>

<bundles_post_ra>
// kernel: tpu_custom_call.1
= control target key start
LH: loop header
LB: loop body
LE: loop exit
PB: predicated region body
PF: predicated region fallthrough
CT: control target
= control target key end

     0   :  { %s11848_s0 = inlined_call_operand.vmem [shape: s32[256,8], index: 0, kind: input, shape index: {}]   ;;  %s11849_s1 = inlined_call_operand.hbm [shape: f32[256,128], index: 1, kind: input, shape index: {}]   ;;  %s11850_s2 = inlined_call_operand.hbm [shape: f32[384,256], index: 2, kind: input, shape index: {}]   ;;  %s11851_s3 = inlined_call_operand.hbm [shape: f32[1,256], index: 3, kind: input, shape index: {}]   ;;  %s11852_s4 = inlined_call_operand.hbm [shape: f32[768,512], index: 4, kind: input, shape index: {}]   ;;  %s11853_s5 = inlined_call_operand.hbm [shape: f32[1,512], index: 5, kind: input, shape index: {}]   ;;  %s11854_s6 = inlined_call_operand.hbm [shape: f32[16,512], index: 6, kind: output, shape index: {}]  }
   0x1   :  { %11933 = sst [smem:[#allocation67_spill]] %s11850_s2 }
   0x2   :  { %11934 = sst [smem:[#allocation68_spill]] %s11852_s4 }
   0x3   :  { %11 = vsyncpa [#allocation3], 0 }
   0x4   :  { %12 = vsyncpa [#allocation6], 0 }
   0x5   :  { %13 = vsyncpa [#allocation9], 0 }
   0x6   :  { %14 = vsyncpa [#allocation4], 0 }
   0x7   :  { %16 = vsyncpa [#allocation4 + $0x1], 0  ;;  %s7433_s21 = smov 0   ;;  %s7435_s22 = smov 0  }
   0x8   :  { %s7437_s23 = smov 0   ;;  %s7439_s24 = smov 0  }
   0x9 LB: > { %11935 = sst [smem:[#allocation16_spill]] %s7371_s23  ;;  %s7454_s25 = sadd.s32 4294967295, %s7375_s24   ;;  %s7375_s24 = sphi %s7439_s24, %s12152_s24   ;;  %s7371_s23 = sphi %s7437_s23, %s12149_s23   ;;  %s7367_s22 = sphi %s7435_s22, %s12151_s22   ;;  %s7363_s21 = sphi %s7433_s21, %s12150_s21  }
   0xa   : > { %s5633_s26 = sadd.s32 4294967294, %s7375_s24   ;;  %s7458_s27 = sadd.s32 1, %s7375_s24  }
   0xb   : > { %s160_s28 = sadd.s32 1, %s7371_s23  ;;  %s157_s29 = ssub.s32 %s7375_s24, %s7458_s27 }
   0xc   : > { %p170_p0 = scmp.ne.s32.totalorder %s7371_s23, %s7367_s22  ;;  %p158_p1 = scmp.eq.s32.totalorder %s157_s29, 0 }
   0xd   : > { %p171_p2 = scmp.eq.s32.totalorder %s7454_s25, 1  ;;  %p176_p3 = scmp.ne.s32.totalorder %s7367_s22, %s7363_s21 }
   0xe   : > { %p177_p4 = scmp.eq.s32.totalorder %s5633_s26, 1  ;;  %p5634_p7 = scmp.ge.s32.totalorder %s7375_s24, 1 }
   0xf   : > { %s7469_s30 = scalar_select %p158_p1, %s7371_s23, %s160_s28  }
  0x10   : > { %p7471_p5 = por %p171_p2, %p170_p0  ;;  %p7475_p6 = por %p177_p4, %p176_p3 }
  0x11   : > { %11936 = sst [smem:[#allocation17_spill]] %s7469_s30  ;;  %p184_p8 = scmp.lt.s32.totalorder %s7375_s24, 3 }
  0x12   : > { %s11937_s7 = scalar_select %p7471_p5, 1, 0 }
  0x13   : > { %s11938_s8 = scalar_select %p7475_p6, 1, 0 }
  0x14   : > { %p11855_p9 = scmp.eq.s32.totalorder %s7454_s25, 0  ;;  %p7482_p10 = pnand %p5634_p7, %p184_p8 }
  0x15   : > { %s7377_s10 = smov [#allocation5]   ;;  %s7378_s13 = smov [#allocation8]  }
  0x16   : > { %s11939_s9 = scalar_select %p7482_p10, 1, 0 }
  0x17   : > { %s209_s11 = sshll.u32 %s7377_s10, 4  ;;  %p6974_p11 = pneg %p7482_p10  ;;  %s210_s11 = int_to_ptr.vmem [resolvable:$true] %s209_s11 }
  0x18   : > { %s233_s14 = sshll.u32 %s7378_s13, 4  ;;  %s11941_s2 = sld [smem:[#allocation67_spill]]  ;;  %s7494_s14 = int_to_ptr.vmem [resolvable:$true] %s233_s14 }
  0x19   : > { %p7490_p12 = pnand %p11855_p9, %p6974_p11 }
  0x1b   : > { %p7504_p0 = pneg %p7490_p12 }
  0x1e   : > { %s7161_s17 = scalar_lea.hbm %s11941_s2, 12288 }
  0x1f   : > { %p7162_p13 = scmp.ne.s32.totalorder %s11941_s2, %s7161_s17  ;;  %p7168_p3 = scmp.lt.u32.totalorder %s7161_s17, %s11941_s2 }
  0x21   : > { %p7164_p1 = pnand %p7504_p0, %p7162_p13 }
  0x23   : > { %p7165_p2 = pneg %p7164_p1 }
  0x25   : > { %p7170_p4 = pnand %p7168_p3, %p7165_p2 }
  0x27   : > { %7173 = shalt.err (!%p7170_p4)
}
  0x28   : > { %s7174_s29 = scalar_lea.vmem %s210_s11, 12288  ;;  %p7182_p9 = scmp.lt.s32.totalorder %s210_s11, %s210_s11 }
  0x29   : > { %p7175_p7 = scmp.ne.s32.totalorder %s210_s11, %s7174_s29  ;;  %p7183_p6 = scmp.lt.s32.totalorder %s7174_s29, %s7174_s29 }
  0x2b   : > { %p7177_p8 = pnand %p7175_p7, %p7504_p0  ;;  %p7184_p5 = por %p7183_p6, %p7182_p9 }
  0x2d   : > { %p7178_p11 = pneg %p7177_p8 }
  0x2f   : > { %p7185_p10 = pnand %p7184_p5, %p7178_p11 }
  0x31   : > { %7188 = shalt.err (!%p7185_p10)
}
  0x32   : > { %s7379_s10 = smov 256   ;;  %s7380_s13 = smov 16  }
  0x33   : > { %6980 = dma.hbm_to_vmem [thread:$0]  (!%p7490_p12), %s11941_s2, 12288, %s210_s11, [#allocation6], %s7379_s10, %s7379_s10, %s7380_s13  }
  0x34   : > { %s11943_s4 = sld [smem:[#allocation68_spill]] }
  0x3a   : > { %s7189_s19 = scalar_lea.hbm %s11943_s4, 49152 }
  0x3b   : > { %p7190_p13 = scmp.ne.s32.totalorder %s11943_s4, %s7189_s19  ;;  %p7196_p9 = scmp.lt.u32.totalorder %s7189_s19, %s11943_s4 }
  0x3d   : > { %p7192_p5 = pnand %p7190_p13, %p7504_p0 }
  0x3f   : > { %p7193_p6 = pneg %p7192_p5 }
  0x41   : > { %p7198_p10 = pnand %p7196_p9, %p7193_p6 }
  0x43   : > { %7201 = shalt.err (!%p7198_p10)
}
  0x44   : > { %s7202_s11 = scalar_lea.vmem %s7494_s14, 49152  ;;  %p7210_p4 = scmp.lt.s32.totalorder %s7494_s14, %s7494_s14 }
  0x45   : > { %p7203_p1 = scmp.ne.s32.totalorder %s7494_s14, %s7202_s11  ;;  %p7211_p7 = scmp.lt.s32.totalorder %s7202_s11, %s7202_s11 }
  0x47   : > { %p7205_p2 = pnand %p7203_p1, %p7504_p0  ;;  %p7212_p8 = por %p7211_p7, %p7210_p4 }
  0x49   : > { %p7206_p3 = pneg %p7205_p2 }
  0x4b   : > { %p7213_p11 = pnand %p7212_p8, %p7206_p3 }
  0x4d   : > { %7216 = shalt.err (!%p7213_p11)
}
  0x4e   : > { %s7381_s10 = smov 512   ;;  %s7382_s30 = smov 32  }
  0x4f   : > { %6986 = dma.hbm_to_vmem [thread:$0]  (!%p7490_p12), %s11943_s4, 49152, %s7494_s14, [#allocation9], %s7381_s10, %s7381_s10, %s7382_s30  }
  0x50   : > { %s7383_s16 = smov [#allocation2]   ;;  %s7217_s26 = scalar_lea.hbm %s11849_s1, 4096 }
  0x51   : > { %s196_s17 = sshll.u32 %s7383_s16, 4  ;;  %p7218_p13 = scmp.ne.s32.totalorder %s11849_s1, %s7217_s26  ;;  %s197_s17 = int_to_ptr.vmem [resolvable:$true] %s196_s17 }
  0x52   : > { %p7224_p9 = scmp.lt.u32.totalorder %s7217_s26, %s11849_s1 }
  0x53   : > { %p7220_p5 = pnand %p7218_p13, %p7504_p0 }
  0x55   : > { %p7221_p6 = pneg %p7220_p5 }
  0x57   : > { %p7226_p10 = pnand %p7224_p9, %p7221_p6 }
  0x59   : > { %7229 = shalt.err (!%p7226_p10)
}
  0x5a   : > { %s7230_s14 = scalar_lea.vmem %s197_s17, 4096  ;;  %p7238_p4 = scmp.lt.s32.totalorder %s197_s17, %s197_s17 }
  0x5b   : > { %p7231_p1 = scmp.ne.s32.totalorder %s197_s17, %s7230_s14  ;;  %p7239_p7 = scmp.lt.s32.totalorder %s7230_s14, %s7230_s14 }
  0x5d   : > { %p7233_p2 = pnand %p7231_p1, %p7504_p0  ;;  %p7240_p8 = por %p7239_p7, %p7238_p4 }
  0x5f   : > { %p7234_p3 = pneg %p7233_p2 }
  0x61   : > { %p7241_p11 = pnand %p7240_p8, %p7234_p3 }
  0x63   : > { %7244 = shalt.err (!%p7241_p11)
}
  0x64   : > { %s7384_s10 = smov 128   ;;  %s7385_s30 = smov 8  }
  0x65   : > { %6977 = dma.hbm_to_vmem [thread:$0]  (!%p7490_p12), %s11849_s1, 4096, %s197_s17, [#allocation3], %s7384_s10, %s7384_s10, %s7385_s30  }
  0x66   : > { %s7386_s15 = smov [#allocation7]   ;;  %s7387_s18 = smov [#allocation10]  }
  0x67   : > { %s223_s16 = sshll.u32 %s7386_s15, 4  ;;  %s247_s19 = sshll.u32 %s7387_s18, 4  ;;  %s224_s16 = int_to_ptr.vmem [resolvable:$true] %s223_s16  ;;  %s248_s19 = int_to_ptr.vmem [resolvable:$true] %s247_s19 }
  0x68   : > { %s7245_s29 = scalar_lea.hbm %s11851_s3, 32 }
  0x69   : > { %p7246_p13 = scmp.ne.s32.totalorder %s11851_s3, %s7245_s29  ;;  %p7252_p9 = scmp.lt.u32.totalorder %s7245_s29, %s11851_s3 }
  0x6b   : > { %p7248_p5 = pnand %p7246_p13, %p7504_p0 }
  0x6d   : > { %p7249_p6 = pneg %p7248_p5 }
  0x6f   : > { %p7254_p10 = pnand %p7252_p9, %p7249_p6 }
  0x71   : > { %7257 = shalt.err (!%p7254_p10)
}
  0x72   : > { %s7258_s17 = scalar_lea.vmem %s224_s16, 32  ;;  %p7266_p4 = scmp.lt.s32.totalorder %s224_s16, %s224_s16 }
  0x73   : > { %p7259_p1 = scmp.ne.s32.totalorder %s224_s16, %s7258_s17  ;;  %p7267_p7 = scmp.lt.s32.totalorder %s7258_s17, %s7258_s17 }
  0x75   : > { %p7261_p2 = pnand %p7259_p1, %p7504_p0  ;;  %p7268_p8 = por %p7267_p7, %p7266_p4 }
  0x77   : > { %p7262_p3 = pneg %p7261_p2 }
  0x79   : > { %p7269_p11 = pnand %p7268_p8, %p7262_p3 }
  0x7b   : > { %7272 = shalt.err (!%p7269_p11)
}
  0x7c   : > { %6983 = dma.hbm_to_vmem [thread:$0]  (!%p7490_p12), %s11851_s3, 32, %s224_s16, [#allocation6]  }
  0x7d   : > { %s7273_s2 = scalar_lea.hbm %s11853_s5, 64 }
  0x7e   : > { %p7274_p13 = scmp.ne.s32.totalorder %s11853_s5, %s7273_s2  ;;  %p7280_p9 = scmp.lt.u32.totalorder %s7273_s2, %s11853_s5 }
  0x80   : > { %p7276_p5 = pnand %p7274_p13, %p7504_p0 }
  0x82   : > { %p7277_p6 = pneg %p7276_p5 }
  0x84   : > { %p7282_p10 = pnand %p7280_p9, %p7277_p6 }
  0x86   : > { %7285 = shalt.err (!%p7282_p10)
}
  0x87   : > { %s7286_s28 = scalar_lea.vmem %s248_s19, 64  ;;  %p7294_p4 = scmp.lt.s32.totalorder %s248_s19, %s248_s19 }
  0x88   : > { %p7287_p1 = scmp.ne.s32.totalorder %s248_s19, %s7286_s28  ;;  %p7295_p7 = scmp.lt.s32.totalorder %s7286_s28, %s7286_s28 }
  0x8a   : > { %p7289_p2 = pnand %p7287_p1, %p7504_p0  ;;  %p7296_p8 = por %p7295_p7, %p7294_p4 }
  0x8c   : > { %p7290_p3 = pneg %p7289_p2 }
  0x8e   : > { %p7297_p11 = pnand %p7296_p8, %p7290_p3 }
  0x90   : > { %7300 = shalt.err (!%p7297_p11)
}
  0x91   : > { %6989 = dma.hbm_to_vmem [thread:$0]  (!%p7490_p12), %s11853_s5, 64, %s248_s19, [#allocation9]  }
  0x92   : > { %p11944_p13 = scmp.ne.s32.totalorder %s11939_s9, 0 }
  0x94   : > { %269 = sbr.rel (%p11944_p13) target bundleno = 1917 (0x77d), region = 44 }
  0x9b   : > { %p11945_p5 = scmp.eq.s32.totalorder %s7454_s25, 0 }
  0x9d   : > { %7346 = dma.done.wait (%p11945_p5), [#allocation3], 4096   ;;  %p11946_p0 = pmov %p11945_p5 }
  0x9f   : > { %7348 = vsyncadd (%p11946_p0), [#allocation3], 4294963200  ;;  %p11947_p6 = pmov %p11946_p0 }
  0xa0   : > { %p11948_p9 = pmov %p11946_p0 }
  0xa1   : > { %7350 = dma.done.wait (%p11947_p6), [#allocation6], 12320  }
  0xa2   : > { %7352 = vsyncadd (%p11948_p9), [#allocation6], 4294954976  ;;  %p11949_p10 = pmov %p11946_p0 }
  0xa3   : > { %p11950_p12 = pmov %p11946_p0 }
  0xa4   : > { %7354 = dma.done.wait (%p11949_p10), [#allocation9], 49216  }
  0xa5   : > { %7356 = vsyncadd (%p11950_p12), [#allocation9], 4294918080  ;;  %s5648_s9 = sshll.u32 %s7454_s25, 4  ;;  %v11862_v0 = vmov 0   ;;  %v11870_v1 = vmov 2   ;;  %v11866_v9 = vmov 3  }
  0xa6   : > { %7057 = vset.pattern.permute.xlu1 %v11862_v0  ;;  %p316_p1 = scmp.lt.s32.totalorder %s5648_s9, 31  ;;  %7070 = vset.pattern.permute.xlu0 %v11870_v1  ;;  %v11864_v13 = vmov 1   ;;  %v11872_v19 = vmov 4   ;;  %v11860_v30 = vmov 5   ;;  %v11874_v37 = vmov 7   ;;  %v1847_v59 = vld [vmem:[#allocation2 + $0x80] sm:$0xff] }
  0xa7   : > { %v11868_v43 = vmov 6   ;;  %v1848_v60 = vld [vmem:[#allocation2 + $0x88] sm:$0xff]  ;;  %v1831_v62 = vld [vmem:[#allocation2] sm:$0xff]  ;;  %s312_s14 = sand.u32 1, %s7367_s22   ;;  %s6071_s30 = sshll.u32 %s7454_s25, 9 }
  0xa8   : > { %s12154_s9 = smov (!%p316_p1, %s5648_s9), 31  ;;  %v6152_v61 = vpack.c.bf16 %v1848_v60, %v1847_v59  ;;  %v1832_v63 = vld [vmem:[#allocation2 + $0x8] sm:$0xff]  ;;  %s5647_s17 = sshll.u32 %s312_s14, 5 }
  0xa9   : > { %s5649_s12 = sshll.u32 %s12154_s9, 3  ;;  %s11779_s10 = scalar_lea.vmem [#allocation11], %s5647_s17 }
  0xaa   : > { %s7617_s11 = scalar_lea.vmem %s11848_s0, %s5649_s12  ;;  %6153 = vmatprep.subr.bf16.mxu0 %v6152_v61  ;;  %v1859_v61 = vld [vmem:[#allocation2 + $0xe0] sm:$0xff]  ;;  %s5524_s4 = sshll.u32 %s11779_s10, 4  ;;  %s11804_s4 = int_to_ptr.vmem [resolvable:$true] %s5524_s4 }
  0xab   : > { %v7620_v2 = vld [vmem:[%s7617_s11 + $0x8] sm:$0xff]  ;;  %v7623_v3 = vld [vmem:[%s7617_s11 + $0x18] sm:$0xff]  ;;  %v7626_v4 = vld [vmem:[%s7617_s11] sm:$0xff]  ;;  %s11802_s13 = scalar_lea.hbm %s11854_s6, %s6071_s30  ;;  %s5510_s25 = scalar_lea.sflag [#allocation4], %s312_s14 }
  0xac   : > { %347 = vperm.xlu1 %7057, %v7620_v2   ;;  %v682_v5 = vadd.s32 64, %v7623_v3  ;;  %v679_v6 = vadd.s32 64, %v7626_v4  ;;  %v871_v7 = vadd.s32 96, %v7626_v4  ;;  %v7634_v8 = vld [vmem:[%s7617_s11 + $0x10] sm:$0xff]  ;;  %v488_v10 = vadd.s32 32, %v7620_v2  ;;  %v7640_v12 = vld [vmem:[%s7617_s11 + $0x28] sm:$0xff] }
  0xad   : > { %v873_v11 = vadd.s32 96, %v7634_v8  ;;  %v876_v14 = vadd.s32 96, %v7640_v12  ;;  %v680_v15 = vadd.s32 64, %v7620_v2  ;;  %v7646_v16 = vld [vmem:[%s7617_s11 + $0x40] sm:$0xff]  ;;  %v1063_v18 = vadd.s32 128, %v7626_v4  ;;  %v7665_v24 = vld [vmem:[%s7617_s11 + $0x38] sm:$0xff] }
  0xae   : > { %705 = vperm.xlu0 %7070, %v682_v5   ;;  %v879_v17 = vadd.s32 96, %v7646_v16  ;;  %v489_v20 = vadd.s32 32, %v7634_v8  ;;  %v872_v21 = vadd.s32 96, %v7620_v2  ;;  %v7660_v22 = vld [vmem:[%s7617_s11 + $0x20] sm:$0xff]  ;;  %v681_v23 = vadd.s32 64, %v7634_v8  ;;  %v7671_v26 = vld [vmem:[%s7617_s11 + $0x50] sm:$0xff] }
  0xaf   : > { %v1064_v25 = vadd.s32 128, %v7620_v2  ;;  %v340_v27 = vld [vmem:[%s7617_s11 + $0x68] sm:$0xff]  ;;  %v1255_v28 = vadd.s32 160, %v7626_v4  ;;  %v490_v29 = vadd.s32 32, %v7623_v3  ;;  %v1257_v31 = vadd.s32 160, %v7634_v8  ;;  %v7689_v36 = vld [vmem:[%s7617_s11 + $0x58] sm:$0xff] }
  0xb0   : > { %7058 = vset.pattern.permute.xlu1 %v11870_v1  ;;  %v1256_v32 = vadd.s32 160, %v7620_v2  ;;  %v1260_v33 = vadd.s32 160, %v7640_v12  ;;  %v1639_v34 = vadd.s32 224, %v7626_v4  ;;  %v1263_v35 = vadd.s32 160, %v7646_v16  ;;  %v7698_v42 = vld [vmem:[%s7617_s11 + $0x30] sm:$0xff]  ;;  %v7705_v46 = vld [vmem:[%s7617_s11 + $0x48] sm:$0xff] }
  0xb1   : > { %696 = vperm.xlu1 %7058, %v679_v6   ;;  %v1266_v38 = vadd.s32 160, %v7689_v36  ;;  %v1065_v39 = vadd.s32 128, %v7634_v8  ;;  %v1066_v40 = vadd.s32 128, %v7623_v3  ;;  %v1448_v41 = vadd.s32 192, %v7620_v2  ;;  %v7710_v48 = vld [vmem:[%s7617_s11 + $0x60] sm:$0xff]  ;;  %v7727_v58 = vld [vmem:[%s7617_s11 + $0x70] sm:$0xff] }
  0xb2   : > { %7071 = vset.pattern.permute.xlu0 %v11866_v9  ;;  %v1069_v44 = vadd.s32 128, %v7698_v42  ;;  %v491_v45 = vadd.s32 32, %v7660_v22  ;;  %v1072_v47 = vadd.s32 128, %v7705_v46  ;;  %v874_v49 = vadd.s32 96, %v7623_v3  ;;  %s7301_s15 = scalar_lea.vmem %s11804_s4, 512  ;;  %p12146_p3 = scmp.ne.s32.totalorder %s11937_s7, 0 }
  0xb3   : > { %888 = vperm.xlu0 %7071, %v871_v7   ;;  %v1075_v50 = vadd.s32 128, %v7710_v48  ;;  %v1640_v51 = vadd.s32 224, %v7620_v2  ;;  %v487_v52 = vadd.s32 32, %v7626_v4  ;;  %v683_v53 = vadd.s32 64, %v7660_v22  ;;  %v1849_v7 = vld [vmem:[#allocation2 + $0x90] sm:$0xff]  ;;  %p7302_p2 = scmp.ne.s32.totalorder %s11804_s4, %s7301_s15  ;;  %s7397_s18 = smov [#allocation11]  }
  0xb4   : > { %v492_v54 = vadd.s32 32, %v7640_v12  ;;  %v1449_v55 = vadd.s32 192, %v7634_v8  ;;  %v495_v56 = vadd.s32 32, %v7646_v16  ;;  %v498_v57 = vadd.s32 32, %v7689_v36  ;;  %s7305_s26 = sshll.u32 %s7397_s18, 4  ;;  %s7306_s26 = int_to_ptr.vmem [resolvable:$false] %s7305_s26 }
  0xb5   : > { %7059 = vset.pattern.permute.xlu1 %v11864_v13  ;;  %v501_v2 = vadd.s32 32, %v7727_v58  ;;  %v6154_v5 = vpack.c.bf16 %v1832_v63, %v1831_v62  ;;  %v875_v6 = vadd.s32 96, %v7660_v22  ;;  %v1447_v60 = vadd.s32 192, %v7626_v4  ;;  %v1860_v62 = vld [vmem:[#allocation2 + $0xe8] sm:$0xff]  ;;  %p7303_p4 = pnand %p7302_p2, %p12146_p3  ;;  %s7307_s28 = scalar_lea.vmem %s7306_s26, 1024 }
  0xb6   : > { %507 = vperm.xlu1 %7059, %v488_v10   ;;  %v1850_v10 = vld [vmem:[#allocation2 + $0x98] sm:$0xff]  ;;  %v6176_v63 = vpack.c.bf16 %v1860_v62, %v1859_v61  ;;  %v11881_v61 = vmov 0.0   ;;  %p7308_p8 = scmp.lt.s32.totalorder %s11804_s4, %s7306_s26  ;;  %p7309_p11 = scmp.lt.s32.totalorder %s7307_s28, %s7301_s15 }
  0xb7   : > { %894 = vperm.xlu0 %7071, %v873_v11   ;;  %6155 = vmatpush3.bf16.msra.mxu0 %v6154_v5  ;;  %v6156_v11 = vpack.c.bf16 %v1850_v10, %v1849_v7  ;;  %v1844_v5 = vld [vmem:[#allocation2 + $0x68] sm:$0xff]  ;;  %v493_v10 = vadd.s32 32, %v7698_v42  ;;  %p7304_p7 = pneg %p7303_p4 }
  0xb8   : > { %p7310_p13 = por %p7309_p11, %p7308_p8 }
  0xb9   : > { %6157 = vmatprep.subr.bf16.mxu0 %v6156_v11  ;;  %v1861_v11 = vld [vmem:[#allocation2 + $0xf0] sm:$0xff] }
  0xba   : > { %7060 = vset.pattern.permute.xlu1 %v11870_v1  ;;  %p7311_p5 = pnand %p7310_p13, %p7304_p7 }
  0xbb   : > { %903 = vperm.xlu0 %7071, %v876_v14   ;;  %699 = vperm.xlu1 %7060, %v680_v15   ;;  %v1833_v14 = vld [vmem:[#allocation2 + $0x10] sm:$0xff]  ;;  %v1834_v15 = vld [vmem:[#allocation2 + $0x18] sm:$0xff] }
  0xbf   : > { %912 = vperm.xlu0 %7071, %v879_v17   ;;  %7061 = vset.pattern.permute.xlu1 %v11872_v19  ;;  %v6158_v17 = vpack.c.bf16 %v1834_v15, %v1833_v14  ;;  %v1862_v14 = vld [vmem:[#allocation2 + $0xf8] sm:$0xff] }
  0xc0   : > { %1080 = vperm.xlu1 %7061, %v1063_v18   ;;  %v1641_v18 = vadd.s32 224, %v7634_v8  ;;  %v6180_v15 = vpack.c.bf16 %v1862_v14, %v1861_v11 }
  0xc1   : > { %6159 = vmatpush3.bf16.msra.mxu0 %v6158_v17  ;;  %v1845_v17 = vld [vmem:[#allocation2 + $0x70] sm:$0xff] }
  0xc3   : > { %7102 = vset.pattern.permute.xlu0 %v11862_v0 }
  0xc4   : > { %344 = vperm.xlu0 %7102, %v7626_v4   ;;  %7062 = vset.pattern.permute.xlu1 %v11864_v13 }
  0xc5   : > { %510 = vperm.xlu1 %7062, %v489_v20   ;;  %v1851_v20 = vld [vmem:[#allocation2 + $0xa0] sm:$0xff] }
  0xc8   : > { %350 = vperm.xlu0 %7102, %v7634_v8   ;;  %v1853_v8 = vld [vmem:[#allocation2 + $0xb0] sm:$0xff] }
  0xc9   : > { %7063 = vset.pattern.permute.xlu1 %v11866_v9 }
  0xca   : > { %891 = vperm.xlu1 %7063, %v872_v21   ;;  %v1852_v21 = vld [vmem:[#allocation2 + $0xa8] sm:$0xff] }
  0xcc   : > { %356 = vperm.xlu0 %7102, %v7660_v22  }
  0xce   : > { %7064 = vset.pattern.permute.xlu1 %v11870_v1 }
  0xcf   : > { %702 = vperm.xlu1 %7064, %v681_v23   ;;  %v1258_v23 = vadd.s32 160, %v7623_v3 }
  0xd0   : > { %365 = vperm.xlu0 %7102, %v7665_v24  }
  0xd3   : > { %7065 = vset.pattern.permute.xlu1 %v11872_v19 }
  0xd4   : > { %374 = vperm.xlu0 %7102, %v7671_v26   ;;  %1083 = vperm.xlu1 %7065, %v1064_v25   ;;  %v6160_v25 = vpack.c.bf16 %v1852_v21, %v1851_v20  ;;  %v1453_v21 = vadd.s32 192, %v7698_v42 }
  0xd6   : > { %6161 = vmatprep.subr.bf16.mxu0 %v6160_v25  ;;  %v1259_v25 = vadd.s32 160, %v7660_v22 }
  0xd8   : > { %383 = vperm.xlu0 %7102, %v340_v27   ;;  %7066 = vset.pattern.permute.xlu1 %v11862_v0  ;;  %v1835_v27 = vld [vmem:[#allocation2 + $0x20] sm:$0xff] }
  0xd9   : > { %353 = vperm.xlu1 %7066, %v7623_v3  }
  0xdc   : > { %7123 = vset.pattern.permute.xlu0 %v11860_v30 }
  0xdd   : > { %1272 = vperm.xlu0 %7123, %v1255_v28   ;;  %7067 = vset.pattern.permute.xlu1 %v11864_v13  ;;  %v1836_v28 = vld [vmem:[#allocation2 + $0x28] sm:$0xff] }
  0xde   : > { %513 = vperm.xlu1 %7067, %v490_v29   ;;  %v6162_v29 = vpack.c.bf16 %v1836_v28, %v1835_v27  ;;  %v1456_v28 = vadd.s32 192, %v7705_v46 }
  0xe0   : > { %6163 = vmatpush3.bf16.msra.mxu0 %v6162_v29 }
  0xe1   : > { %1278 = vperm.xlu0 %7123, %v1257_v31   ;;  %v1644_v31 = vadd.s32 224, %v7640_v12 }
  0xe2   : > { %7068 = vset.pattern.permute.xlu1 %v11860_v30 }
  0xe3   : > { %1275 = vperm.xlu1 %7068, %v1256_v32   ;;  %v1854_v32 = vld [vmem:[#allocation2 + $0xb8] sm:$0xff] }
  0xe5   : > { %1287 = vperm.xlu0 %7123, %v1260_v33   ;;  %v6164_v33 = vpack.c.bf16 %v1854_v32, %v1853_v8  ;;  %v1459_v32 = vadd.s32 192, %v7710_v48 }
  0xe7   : > { %7069 = vset.pattern.permute.xlu1 %v11874_v37  ;;  %6165 = vmatprep.subr.bf16.mxu0 %v6164_v33 }
  0xe8   : > { %1656 = vperm.xlu1 %7069, %v1639_v34   ;;  %v1837_v34 = vld [vmem:[#allocation2 + $0x30] sm:$0xff] }
  0xe9   : > { %1296 = vperm.xlu0 %7123, %v1263_v35   ;;  %v1838_v35 = vld [vmem:[#allocation2 + $0x38] sm:$0xff] }
  0xec   : > { %7072 = vset.pattern.permute.xlu1 %v11872_v19 }
  0xed   : > { %1305 = vperm.xlu0 %7123, %v1266_v38   ;;  %1086 = vperm.xlu1 %7072, %v1065_v39   ;;  %v684_v38 = vadd.s32 64, %v7640_v12  ;;  %v6166_v39 = vpack.c.bf16 %v1838_v35, %v1837_v34  ;;  %v1068_v34 = vadd.s32 128, %v7640_v12 }
  0xef   : > { %6167 = vmatpush3.bf16.msra.mxu0 %v6166_v39  ;;  %v685_v39 = vadd.s32 64, %v7698_v42 }
  0xf1   : > { %7126 = vset.pattern.permute.xlu0 %v11872_v19  ;;  %7073 = vset.pattern.permute.xlu1 %v11868_v43 }
  0xf2   : > { %1089 = vperm.xlu0 %7126, %v1066_v40   ;;  %1467 = vperm.xlu1 %7073, %v1448_v41   ;;  %v1647_v40 = vadd.s32 224, %v7646_v16  ;;  %v1855_v41 = vld [vmem:[#allocation2 + $0xc0] sm:$0xff] }
  0xf6   : > { %1098 = vperm.xlu0 %7126, %v1069_v44   ;;  %7074 = vset.pattern.permute.xlu1 %v11864_v13  ;;  %v1856_v44 = vld [vmem:[#allocation2 + $0xc8] sm:$0xff] }
  0xf7   : > { %516 = vperm.xlu1 %7074, %v491_v45   ;;  %v6168_v45 = vpack.c.bf16 %v1856_v44, %v1855_v41  ;;  %v688_v41 = vadd.s32 64, %v7705_v46  ;;  %v11859_v44 = vlaneseq }
  0xf9   : > { %6169 = vmatprep.subr.bf16.mxu0 %v6168_v45 }
  0xfa   : > { %1107 = vperm.xlu0 %7126, %v1072_v47   ;;  %v1839_v47 = vld [vmem:[#allocation2 + $0x40] sm:$0xff] }
  0xfb   : > { %7075 = vset.pattern.permute.xlu1 %v11866_v9 }
  0xfc   : > { %897 = vperm.xlu1 %7075, %v874_v49   ;;  %v1840_v49 = vld [vmem:[#allocation2 + $0x48] sm:$0xff] }
  0xfe   : > { %1116 = vperm.xlu0 %7126, %v1075_v50   ;;  %v6170_v50 = vpack.c.bf16 %v1840_v49, %v1839_v47  ;;  %v691_v47 = vadd.s32 64, %v7710_v48  ;;  %v7786_v49 = vand.u32 127, %v11859_v44  ;;  %v877_v48 = vadd.s32 96, %v7698_v42 }
 0x100   : > { %7076 = vset.pattern.permute.xlu1 %v11874_v37  ;;  %6171 = vmatpush3.bf16.msra.mxu0 %v6170_v50 }
 0x101   : > { %1659 = vperm.xlu1 %7076, %v1640_v51   ;;  %v1067_v51 = vadd.s32 128, %v7660_v22 }
 0x102   : > { %7129 = vset.pattern.permute.xlu0 %v11864_v13 }
 0x103   : > { %504 = vperm.xlu0 %7129, %v487_v52   ;;  %v1650_v52 = vadd.s32 224, %v7689_v36 }
 0x105   : > { %7077 = vset.pattern.permute.xlu1 %v11870_v1 }
 0x106   : > { %708 = vperm.xlu1 %7077, %v683_v53   ;;  %v1857_v53 = vld [vmem:[#allocation2 + $0xd0] sm:$0xff] }
 0x107   : > { %519 = vperm.xlu0 %7129, %v492_v54   ;;  %v1858_v54 = vld [vmem:[#allocation2 + $0xd8] sm:$0xff] }
 0x10a   : > { %7078 = vset.pattern.permute.xlu1 %v11868_v43 }
 0x10b   : > { %1470 = vperm.xlu1 %7078, %v1449_v55   ;;  %528 = vperm.xlu0 %7129, %v495_v56   ;;  %v6172_v55 = vpack.c.bf16 %v1858_v54, %v1857_v53  ;;  %v1841_v56 = vld [vmem:[#allocation2 + $0x50] sm:$0xff] }
 0x10d   : > { %6173 = vmatprep.subr.bf16.mxu0 %v6172_v55  ;;  %v7797_v55 = vadd.s32 128, %v7786_v49 }
 0x10f   : > { %7079 = vset.pattern.permute.xlu1 %v11862_v0  ;;  %537 = vperm.xlu0 %7129, %v498_v57   ;;  %v1842_v57 = vld [vmem:[#allocation2 + $0x58] sm:$0xff] }
 0x110   : > { %359 = vperm.xlu1 %7079, %v7640_v12   ;;  %v6174_v59 = vpack.c.bf16 %v1842_v57, %v1841_v56 }
 0x112   : > { %6175 = vmatpush3.bf16.msra.mxu0 %v6174_v59 }
 0x113   : > { %546 = vperm.xlu0 %7129, %v501_v2   ;;  %v1843_v2 = vld [vmem:[#allocation2 + $0x60] sm:$0xff]  ;;  %6177 = vmatprep.subr.bf16.mxu0 %v6176_v63 }
 0x114   : > { %7080 = vset.pattern.permute.xlu1 %v11866_v9  ;;  %v6178_v7 = vpack.c.bf16 %v1844_v5, %v1843_v2  ;;  %v1643_v2 = vadd.s32 224, %v7660_v22 }
 0x115   : > { %900 = vperm.xlu1 %7080, %v875_v6   ;;  %v1450_v6 = vadd.s32 192, %v7623_v3 }
 0x116   : > { %6179 = vmatpush3.bf16.msra.mxu0 %v6178_v7 }
 0x117   : > { %7132 = vset.pattern.permute.xlu0 %v11874_v37  ;;  %6181 = vmatprep.subr.bf16.mxu0 %v6180_v15 }
 0x118   : > { %1662 = vperm.xlu0 %7132, %v1641_v18   ;;  %v1846_v18 = vld [vmem:[#allocation2 + $0x78] sm:$0xff] }
 0x119   : > { %7081 = vset.pattern.permute.xlu1 %v11860_v30 }
 0x11a   : > { %1281 = vperm.xlu1 %7081, %v1258_v23   ;;  %v6182_v23 = vpack.c.bf16 %v1846_v18, %v1845_v17 }
 0x11c   : > { %1671 = vperm.xlu0 %7132, %v1644_v31   ;;  %6183 = vmatpush3.bf16.msra.mxu0 %v6182_v23  ;;  %v1642_v31 = vadd.s32 224, %v7623_v3 }
 0x11e   : > { %7082 = vset.pattern.permute.xlu1 %v11870_v1 }
 0x11f   : > { %711 = vperm.xlu1 %7082, %v684_v38  }
 0x120   : > { %1680 = vperm.xlu0 %7132, %v1647_v40   ;;  %v1451_v40 = vadd.s32 192, %v7660_v22 }
 0x123   : > { %7083 = vset.pattern.permute.xlu1 %v11872_v19 }
 0x124   : > { %1092 = vperm.xlu1 %7083, %v1067_v51   ;;  %1689 = vperm.xlu0 %7132, %v1650_v52   ;;  %v494_v51 = vadd.s32 32, %v7665_v24  ;;  %v7792_v52 = vld [vmem:[%s7617_s11 + $0x78] sm:$0xff] }
 0x125   : > { %v694_v54 = vadd.s32 64, %v7792_v52 }
 0x128   : > { %7084 = vset.pattern.permute.xlu1 %v11862_v0  ;;  %7135 = vset.pattern.permute.xlu0 %v11868_v43 }
 0x129   : > { %362 = vperm.xlu1 %7084, %v7698_v42   ;;  %1464 = vperm.xlu0 %7135, %v1447_v60   ;;  %v882_v60 = vadd.s32 96, %v7689_v36 }
 0x12b   : > { %v7751_v4 = vpop.permute.xlu1 %347 }
 0x12d   : > { %7085 = vset.pattern.permute.xlu1 %v11864_v13  ;;  %1473 = vperm.xlu0 %7135, %v1450_v6   ;;  %v7754_v20 = vpop.permute.xlu0 %705 }
 0x12e   : > { %522 = vperm.xlu1 %7085, %v493_v10  }
 0x130   : > { %v7758_v27 = vpop.permute.xlu1 %696 }
 0x131   : > { %1482 = vperm.xlu0 %7135, %v1453_v21   ;;  %vm743_vm14 = vcmp.eq.s32.totalorder %v7758_v27, %v7786_v49  ;;  %vm744_vm15 = vcmp.eq.s32.totalorder %v7758_v27, %v7797_v55  ;;  %v1071_v27 = vadd.s32 128, %v7646_v16 }
 0x132   : > { %7086 = vset.pattern.permute.xlu1 %v11860_v30  ;;  %v7762_v29 = vpop.permute.xlu0 %888 }
 0x133   : > { %1284 = vperm.xlu1 %7086, %v1259_v25   ;;  %v686_v25 = vadd.s32 64, %v7665_v24 }
 0x135   : > { %v7765_v8 = vpop.permute.xlu1 %507  ;;  %1491 = vperm.xlu0 %7135, %v1456_v28  }
 0x136   : > { %v895_v33 = vpop.permute.xlu0 %894 }
 0x137   : > { %7087 = vset.pattern.permute.xlu1 %v11874_v37  ;;  %vm939_vm4 = vcmp.eq.s32.totalorder %v895_v33, %v7786_v49  ;;  %vm940_vm5 = vcmp.eq.s32.totalorder %v895_v33, %v7797_v55 }
 0x138   : > { %1665 = vperm.xlu1 %7087, %v1642_v31   ;;  %v5750_v15 = vsel %vm939_vm4, 1.0, %v11881_v61  ;;  %v5751_v22 = vsel %vm940_vm5, 1.0, %v11881_v61 }
 0x139   : > { %1500 = vperm.xlu0 %7135, %v1459_v32  }
 0x13a   : > { %v7770_v35 = vpop.permute.xlu1 %699  ;;  %v7772_v38 = vpop.permute.xlu0 %903 }
 0x13c   : > { %7088 = vset.pattern.permute.xlu1 %v11872_v19 }
 0x13d   : > { %1095 = vperm.xlu1 %7088, %v1068_v34   ;;  %7138 = vset.pattern.permute.xlu0 %v11870_v1 }
 0x13e   : > { %714 = vperm.xlu0 %7138, %v685_v39   ;;  %v7777_v3 = vpop.permute.xlu0 %912  ;;  %v1452_v39 = vadd.s32 192, %v7640_v12 }
 0x13f   : > { %v7781_v45 = vpop.permute.xlu1 %1080 }
 0x140   : > { %vm1127_vm4 = vcmp.eq.s32.totalorder %v7781_v45, %v7786_v49  ;;  %vm1128_vm5 = vcmp.eq.s32.totalorder %v7781_v45, %v7797_v55 }
 0x141   : > { %7089 = vset.pattern.permute.xlu1 %v11868_v43 }
 0x142   : > { %1476 = vperm.xlu1 %7089, %v1451_v40   ;;  %723 = vperm.xlu0 %7138, %v688_v41  }
 0x143   : > { %v7788_v50 = vpop.permute.xlu0 %344 }
 0x144   : > { %v511_v53 = vpop.permute.xlu1 %510  ;;  %vm391_vm12 = vcmp.eq.s32.totalorder %v7788_v50, %v7786_v49  ;;  %vm392_vm13 = vcmp.eq.s32.totalorder %v7788_v50, %v7797_v55 }
 0x145   : > { %vm555_vm2 = vcmp.eq.s32.totalorder %v511_v53, %v7786_v49  ;;  %vm556_vm3 = vcmp.eq.s32.totalorder %v511_v53, %v7797_v55  ;;  %v878_v53 = vadd.s32 96, %v7665_v24 }
 0x146   : > { %7090 = vset.pattern.permute.xlu1 %v11864_v13  ;;  %732 = vperm.xlu0 %7138, %v691_v47   ;;  %v5686_v5 = vsel %vm555_vm2, 1.0, %v11881_v61  ;;  %v5687_v6 = vsel %vm556_vm3, 1.0, %v11881_v61 }
 0x147   : > { %v351_v56 = vpop.permute.xlu0 %350  ;;  %525 = vperm.xlu1 %7090, %v494_v51  }
 0x148   : > { %vm395_vm0 = vcmp.eq.s32.totalorder %v351_v56, %v7786_v49  ;;  %vm396_vm1 = vcmp.eq.s32.totalorder %v351_v56, %v7797_v55  ;;  %v1261_v56 = vadd.s32 160, %v7698_v42 }
 0x149   : > { %v7802_v57 = vpop.permute.xlu1 %891  ;;  %v5654_v62 = vsel %vm395_vm0, 1.0, %v11881_v61  ;;  %v5655_v63 = vsel %vm396_vm1, 1.0, %v11881_v61  ;;  %vm935_vm0 = vcmp.eq.s32.totalorder %v7762_v29, %v7786_v49  ;;  %vm936_vm1 = vcmp.eq.s32.totalorder %v7762_v29, %v7797_v55 }
 0x14a   : > { %741 = vperm.xlu0 %7138, %v694_v54   ;;  %v651_v10 = vadd.f32 %v5686_v5, %v5654_v62  ;;  %v652_v11 = vadd.f32 %v5687_v6, %v5655_v63  ;;  %v687_v62 = vadd.s32 64, %v7646_v16  ;;  %v5714_v29 = vsel %vm743_vm14, 1.0, %v11881_v61 }
 0x14b   : > { %7091 = vset.pattern.permute.xlu1 %v11866_v9  ;;  %v7807_v59 = vpop.permute.xlu0 %356  ;;  %vm746_vm14 = vcmp.eq.s32.totalorder %v7770_v35, %v7797_v55 }
 0x14c   : > { %906 = vperm.xlu1 %7091, %v877_v48  }
 0x14e   : > { %v703_v7 = vpop.permute.xlu1 %702  ;;  %7143 = vset.pattern.permute.xlu0 %v11866_v9 }
 0x14f   : > { %vm747_vm6 = vcmp.eq.s32.totalorder %v703_v7, %v7786_v49  ;;  %vm748_vm7 = vcmp.eq.s32.totalorder %v703_v7, %v7797_v55  ;;  %v7820_v14 = vpop.permute.xlu0 %365  ;;  %921 = vperm.xlu0 %7143, %v882_v60  }
 0x150   : > { %v5718_v17 = vsel %vm747_vm6, 1.0, %v11881_v61  ;;  %v5719_v18 = vsel %vm748_vm7, 1.0, %v11881_v61  ;;  %7092 = vset.pattern.permute.xlu1 %v11874_v37 }
 0x151   : > { %v843_v21 = vadd.f32 %v5718_v17, %v651_v10  ;;  %v844_v23 = vadd.f32 %v5719_v18, %v652_v11  ;;  %1668 = vperm.xlu1 %7092, %v1643_v2  }
 0x153   : > { %v7828_v28 = vpop.permute.xlu1 %1083  ;;  %v7830_v31 = vpop.permute.xlu0 %374  ;;  %v1035_v32 = vadd.f32 %v5750_v15, %v843_v21  ;;  %v1036_v33 = vadd.f32 %v5751_v22, %v844_v23  ;;  %v1070_v22 = vadd.s32 128, %v7665_v24 }
 0x155   : > { %7093 = vset.pattern.permute.xlu1 %v11870_v1 }
 0x156   : > { %717 = vperm.xlu1 %7093, %v686_v25  }
 0x157   : > { %v7833_v34 = vpop.permute.xlu0 %383 }
 0x158   : > { %11951 = vst [vmem:[#allocation18_spill] sm:$0xff] %v7833_v34  ;;  %v7836_v40 = vpop.permute.xlu1 %353 }
 0x15a   : > { %7094 = vset.pattern.permute.xlu1 %v11868_v43 }
 0x15b   : > { %1479 = vperm.xlu1 %7094, %v1452_v39  }
 0x15c   : > { %v7839_v41 = vpop.permute.xlu0 %1272 }
 0x15d   : > { %v7841_v47 = vpop.permute.xlu1 %513  ;;  %vm1319_vm6 = vcmp.eq.s32.totalorder %v7839_v41, %v7786_v49  ;;  %vm1320_vm7 = vcmp.eq.s32.totalorder %v7839_v41, %v7797_v55 }
 0x15e   : > { %v5810_v45 = vsel %vm1319_vm6, 1.0, %v11881_v61 }
 0x15f   : > { %7095 = vset.pattern.permute.xlu1 %v11862_v0 }
 0x160   : > { %368 = vperm.xlu1 %7095, %v7646_v16   ;;  %v1279_v51 = vpop.permute.xlu0 %1278 }
 0x161   : > { %vm1323_vm8 = vcmp.eq.s32.totalorder %v1279_v51, %v7786_v49  ;;  %vm1324_vm9 = vcmp.eq.s32.totalorder %v1279_v51, %v7797_v55 }
 0x162   : > { %v7846_v54 = vpop.permute.xlu1 %1275  ;;  %v5814_v5 = vsel %vm1323_vm8, 1.0, %v11881_v61  ;;  %v5815_v6 = vsel %vm1324_vm9, 1.0, %v11881_v61  ;;  %vm553_vm8 = vcmp.eq.s32.totalorder %v7765_v8, %v7786_v49  ;;  %vm554_vm9 = vcmp.eq.s32.totalorder %v7765_v8, %v7797_v55 }
 0x163   : > { %v880_v8 = vadd.s32 96, %v7705_v46 }
 0x164   : > { %7096 = vset.pattern.permute.xlu1 %v11866_v9  ;;  %v7849_v12 = vpop.permute.xlu0 %1287 }
 0x165   : > { %909 = vperm.xlu1 %7096, %v878_v53  }
 0x167   : > { %v7852_v48 = vpop.permute.xlu1 %1656 }
 0x168   : > { %v7854_v60 = vpop.permute.xlu0 %1296 }
 0x169   : > { %7097 = vset.pattern.permute.xlu1 %v11860_v30 }
 0x16a   : > { %1290 = vperm.xlu1 %7097, %v1261_v56   ;;  %v1262_v56 = vadd.s32 160, %v7665_v24 }
 0x16c   : > { %v1087_v63 = vpop.permute.xlu1 %1086  ;;  %v7860_v2 = vpop.permute.xlu0 %1305 }
 0x16d   : > { %11952 = vst [vmem:[#allocation19_spill] sm:$0xff] %v7860_v2  ;;  %vm1131_vm10 = vcmp.eq.s32.totalorder %v1087_v63, %v7786_v49  ;;  %vm1132_vm11 = vcmp.eq.s32.totalorder %v1087_v63, %v7797_v55  ;;  %v5650_v63 = vsel %vm391_vm12, 1.0, %v11881_v61  ;;  %vm749_vm12 = vcmp.eq.s32.totalorder %v7754_v20, %v7786_v49 }
 0x16e   : > { %v5782_v7 = vsel %vm1131_vm10, 1.0, %v11881_v61  ;;  %v5783_v10 = vsel %vm1132_vm11, 1.0, %v11881_v61  ;;  %7098 = vset.pattern.permute.xlu1 %v11870_v1  ;;  %vm393_vm10 = vcmp.eq.s32.totalorder %v7751_v4, %v7786_v49  ;;  %vm394_vm11 = vcmp.eq.s32.totalorder %v7751_v4, %v7797_v55 }
 0x16f   : > { %v1227_v11 = vadd.f32 %v5782_v7, %v1035_v32  ;;  %v1228_v15 = vadd.f32 %v5783_v10, %v1036_v33  ;;  %720 = vperm.xlu1 %7098, %v687_v62   ;;  %v496_v33 = vadd.s32 32, %v7705_v46  ;;  %v1645_v10 = vadd.s32 224, %v7698_v42 }
 0x170   : > { %v1646_v4 = vadd.s32 224, %v7665_v24 }
 0x171   : > { %v7870_v17 = vpop.permute.xlu1 %1467  ;;  %v7872_v18 = vpop.permute.xlu0 %1089  ;;  %v7874_v21 = vadd.f32 %v5814_v5, %v1227_v11  ;;  %v7876_v23 = vadd.f32 %v5815_v6, %v1228_v15  ;;  %v5651_v5 = vsel %vm392_vm13, 1.0, %v11881_v61  ;;  %vm745_vm13 = vcmp.eq.s32.totalorder %v7770_v35, %v7786_v49 }
 0x173   : > { %7099 = vset.pattern.permute.xlu1 %v11872_v19 }
 0x174   : > { %1101 = vperm.xlu1 %7099, %v1070_v22  }
 0x175   : > { %v7879_v25 = vpop.permute.xlu0 %1098 }
 0x176   : > { %v7881_v39 = vpop.permute.xlu1 %516 }
 0x178   : > { %7100 = vset.pattern.permute.xlu1 %v11862_v0  ;;  %v885_v0 = vadd.s32 96, %v7727_v58 }
 0x179   : > { %371 = vperm.xlu1 %7100, %v7705_v46   ;;  %v7885_v32 = vpop.permute.xlu0 %1107 }
 0x17a   : > { %930 = vperm.xlu0 %7143, %v885_v0   ;;  %v5653_v0 = vsel %vm394_vm11, 1.0, %v11881_v61  ;;  %vm397_vm11 = vcmp.eq.s32.totalorder %v7836_v40, %v7786_v49 }
 0x17b   : > { %v7888_v51 = vpop.permute.xlu1 %897 }
 0x17d   : > { %7101 = vset.pattern.permute.xlu1 %v11864_v13  ;;  %v7891_v53 = vpop.permute.xlu0 %1116 }
 0x17e   : > { %11953 = vst [vmem:[#allocation20_spill] sm:$0xff] %v7891_v53  ;;  %531 = vperm.xlu1 %7101, %v496_v33   ;;  %v5715_v33 = vsel %vm744_vm15, 1.0, %v11881_v61  ;;  %vm945_vm15 = vcmp.eq.s32.totalorder %v7772_v38, %v7786_v49  ;;  %v11956_v53 = vmov 7  }
 0x180   : > { %v7898_v62 = vpop.permute.xlu1 %1659 }
 0x182   : > { %7103 = vset.pattern.permute.xlu1 %v11860_v30  ;;  %v505_v6 = vpop.permute.xlu0 %504 }
 0x183   : > { %vm551_vm2 = vcmp.eq.s32.totalorder %v505_v6, %v7786_v49  ;;  %vm552_vm3 = vcmp.eq.s32.totalorder %v505_v6, %v7797_v55  ;;  %1293 = vperm.xlu1 %7103, %v1262_v56   ;;  %v5746_v56 = vsel %vm935_vm0, 1.0, %v11881_v61  ;;  %v5747_v6 = vsel %vm936_vm1, 1.0, %v11881_v61 }
 0x184   : > { %v5682_v50 = vsel %vm551_vm2, 1.0, %v11881_v61  ;;  %v5683_v7 = vsel %vm552_vm3, 1.0, %v11881_v61  ;;  %vm946_vm0 = vcmp.eq.s32.totalorder %v7772_v38, %v7797_v55  ;;  %vm937_vm1 = vcmp.eq.s32.totalorder %v7802_v57, %v7786_v49 }
 0x185   : > { %v647_v11 = vadd.f32 %v5682_v50, %v5650_v63  ;;  %v648_v15 = vadd.f32 %v5683_v7, %v5651_v5  ;;  %v7916_v22 = vpop.permute.xlu1 %708  ;;  %vm938_vm2 = vcmp.eq.s32.totalorder %v7802_v57, %v7797_v55  ;;  %vm750_vm3 = vcmp.eq.s32.totalorder %v7754_v20, %v7797_v55 }
 0x186   : > { %v7928_v44 = vpop.permute.xlu0 %519  ;;  %v1455_v20 = vadd.s32 192, %v7646_v16 }
 0x187   : > { %v839_v42 = vadd.f32 %v5714_v29, %v647_v11  ;;  %v840_v63 = vadd.f32 %v5715_v33, %v648_v15  ;;  %7104 = vset.pattern.permute.xlu1 %v11874_v37  ;;  %v5778_v15 = vsel %vm1127_vm4, 1.0, %v11881_v61  ;;  %v5779_v29 = vsel %vm1128_vm5, 1.0, %v11881_v61 }
 0x188   : > { %1674 = vperm.xlu1 %7104, %v1645_v10   ;;  %v5811_v10 = vsel %vm1320_vm7, 1.0, %v11881_v61  ;;  %vm561_vm4 = vcmp.eq.s32.totalorder %v7928_v44, %v7786_v49  ;;  %vm562_vm5 = vcmp.eq.s32.totalorder %v7928_v44, %v7797_v55  ;;  %v5748_v44 = vsel %vm937_vm1, 1.0, %v11881_v61 }
 0x189   : > { %v1031_v5 = vadd.f32 %v5746_v56, %v839_v42  ;;  %v1032_v50 = vadd.f32 %v5747_v6, %v840_v63  ;;  %v1454_v56 = vadd.s32 192, %v7665_v24  ;;  %v5692_v38 = vsel %vm561_vm4, 1.0, %v11881_v61 }
 0x18a   : > { %v7940_v7 = vpop.permute.xlu1 %1470  ;;  %v7942_v11 = vpop.permute.xlu0 %528  ;;  %vm1322_vm1 = vcmp.eq.s32.totalorder %v7846_v54, %v7797_v55  ;;  %vm1514_vm4 = vcmp.eq.s32.totalorder %v7870_v17, %v7797_v55 }
 0x18b   : > { %v1223_v33 = vadd.f32 %v5778_v15, %v1031_v5  ;;  %v1224_v30 = vadd.f32 %v5779_v29, %v1032_v50  ;;  %v5684_v5 = vsel %vm553_vm8, 1.0, %v11881_v61  ;;  %v5685_v50 = vsel %vm554_vm9, 1.0, %v11881_v61 }
 0x18c   : > { %7105 = vset.pattern.permute.xlu1 %v11872_v19  ;;  %v5652_v15 = vsel %vm393_vm10, 1.0, %v11881_v61  ;;  %v7984_v29 = vsel %vm749_vm12, 1.0, %v11881_v61  ;;  %vm1129_vm8 = vcmp.eq.s32.totalorder %v7828_v28, %v7786_v49  ;;  %vm557_vm9 = vcmp.eq.s32.totalorder %v7841_v47, %v7786_v49 }
 0x18d   : > { %1104 = vperm.xlu1 %7105, %v1071_v27   ;;  %v7952_v42 = vadd.f32 %v5810_v45, %v1223_v33  ;;  %v7954_v63 = vadd.f32 %v5811_v10, %v1224_v30  ;;  %v497_v30 = vadd.s32 32, %v7671_v26  ;;  %v7988_v45 = vadd.s32 64, %v7671_v26 }
 0x18e   : > { %v7949_v41 = vpop.permute.xlu0 %537  ;;  %v5716_v10 = vsel %vm745_vm13, 1.0, %v11881_v61  ;;  %v649_v35 = vadd.f32 %v5684_v5, %v5652_v15  ;;  %v650_v33 = vadd.f32 %v5685_v50, %v5653_v0  ;;  %v5756_v50 = vsel %vm945_vm15, 1.0, %v11881_v61 }
 0x18f   : > { %11954 = vst [vmem:[#allocation21_spill] sm:$0xff] %v7949_v41  ;;  %v360_v6 = vpop.permute.xlu1 %359  ;;  %v5757_v15 = vsel %vm946_vm0, 1.0, %v11881_v61  ;;  %vm1130_vm10 = vcmp.eq.s32.totalorder %v7828_v28, %v7797_v55  ;;  %vm558_vm12 = vcmp.eq.s32.totalorder %v7841_v47, %v7797_v55  ;;  %vm398_vm13 = vcmp.eq.s32.totalorder %v7836_v40, %v7797_v55 }
 0x190   : > { %vm401_vm6 = vcmp.eq.s32.totalorder %v360_v6, %v7786_v49  ;;  %vm402_vm7 = vcmp.eq.s32.totalorder %v360_v6, %v7797_v55  ;;  %v841_v5 = vadd.f32 %v5716_v10, %v649_v35  ;;  %v5749_v6 = vsel %vm938_vm2, 1.0, %v11881_v61 }
 0x191   : > { %7106 = vset.pattern.permute.xlu1 %v11868_v43  ;;  %v5693_v35 = vsel %vm562_vm5, 1.0, %v11881_v61  ;;  %v5660_v57 = vsel %vm401_vm6, 1.0, %v11881_v61  ;;  %v5656_v47 = vsel %vm397_vm11, 1.0, %v11881_v61  ;;  %v5689_v19 = vsel %vm558_vm12, 1.0, %v11881_v61 }
 0x192   : > { %1485 = vperm.xlu1 %7106, %v1454_v56   ;;  %v7962_v27 = vpop.permute.xlu0 %546  ;;  %v5717_v56 = vsel %vm746_vm14, 1.0, %v11881_v61  ;;  %vm1321_vm0 = vcmp.eq.s32.totalorder %v7846_v54, %v7786_v49  ;;  %v5721_v28 = vsel %vm750_vm3, 1.0, %v11881_v61  ;;  %v11957_v40 = vmov 4  }
 0x193   : > { %11955 = vst [vmem:[#allocation22_spill] sm:$0xff] %v7962_v27  ;;  %v842_v0 = vadd.f32 %v5717_v56, %v650_v33  ;;  %v5661_v33 = vsel %vm402_vm7, 1.0, %v11881_v61  ;;  %v1033_v56 = vadd.f32 %v5748_v44, %v841_v5  ;;  %v657_v5 = vadd.f32 %v5692_v38, %v5660_v57 }
 0x194   : > { %v7973_v58 = vpop.permute.xlu1 %900  ;;  %v658_v44 = vadd.f32 %v5693_v35, %v5661_v33  ;;  %v5781_v57 = vsel %vm1130_vm10, 1.0, %v11881_v61  ;;  %v5657_v33 = vsel %vm398_vm13, 1.0, %v11881_v61  ;;  %vm1703_vm2 = vcmp.eq.s32.totalorder %v7852_v48, %v7786_v49 }
 0x195   : > { %v1034_v35 = vadd.f32 %v5749_v6, %v842_v0  ;;  %v654_v34 = vadd.f32 %v5689_v19, %v5657_v33  ;;  %v5813_v19 = vsel %vm1322_vm1, 1.0, %v11881_v61  ;;  %vm1704_vm3 = vcmp.eq.s32.totalorder %v7852_v48, %v7797_v55 }
 0x196   : > { %7107 = vset.pattern.permute.xlu1 %v11864_v13  ;;  %v5780_v13 = vsel %vm1129_vm8, 1.0, %v11881_v61  ;;  %v8099_v54 = vadd.s32 96, %v7671_v26  ;;  %vm1513_vm5 = vcmp.eq.s32.totalorder %v7870_v17, %v7786_v49  ;;  %vm941_vm6 = vcmp.eq.s32.totalorder %v7888_v51, %v7786_v49 }
 0x197   : > { %534 = vperm.xlu1 %7107, %v497_v30   ;;  %v7997_v24 = vpop.permute.xlu0 %1662  ;;  %v1225_v0 = vadd.f32 %v5780_v13, %v1033_v56  ;;  %v846_v56 = vadd.f32 %v5721_v28, %v654_v34  ;;  %v5875_v26 = vsel %vm1704_vm3, 1.0, %v11881_v61  ;;  %vm942_vm7 = vcmp.eq.s32.totalorder %v7888_v51, %v7797_v55 }
 0x198   : > { %vm1706_vm8 = vcmp.eq.s32.totalorder %v7898_v62, %v7797_v55  ;;  %v5845_v34 = vsel %vm1514_vm4, 1.0, %v11881_v61  ;;  %vm1133_vm11 = vcmp.eq.s32.totalorder %v7872_v18, %v7786_v49  ;;  %vm1516_vm12 = vcmp.eq.s32.totalorder %v7940_v7, %v7797_v55 }
 0x199   : > { %v8010_v30 = vpop.permute.xlu1 %1281  ;;  %vm1705_vm13 = vcmp.eq.s32.totalorder %v7898_v62, %v7786_v49  ;;  %v5847_v51 = vsel %vm1516_vm12, 1.0, %v11881_v61  ;;  %vm1707_vm1 = vcmp.eq.s32.totalorder %v7997_v24, %v7786_v49  ;;  %vm399_vm12 = vcmp.eq.s32.totalorder %v7807_v59, %v7786_v49 }
 0x19a   : > { %vm1326_vm3 = vcmp.eq.s32.totalorder %v8010_v30, %v7797_v55 }
 0x19b   : > { %7108 = vset.pattern.permute.xlu1 %v11866_v9  ;;  %v8030_v10 = vpop.permute.xlu0 %1671  ;;  %v5688_v9 = vsel %vm557_vm9, 1.0, %v11881_v61 }
 0x19c   : > { %915 = vperm.xlu1 %7108, %v880_v8   ;;  %v886_v8 = vadd.s32 96, %v7792_v52 }
 0x19e   : > { %v712_v43 = vpop.permute.xlu1 %711  ;;  %933 = vperm.xlu0 %7143, %v886_v8   ;;  %v653_v8 = vadd.f32 %v5688_v9, %v5656_v47  ;;  %v5812_v9 = vsel %vm1321_vm0, 1.0, %v11881_v61  ;;  %vm1515_vm0 = vcmp.eq.s32.totalorder %v7940_v7, %v7786_v49 }
 0x19f   : > { %vm753_vm14 = vcmp.eq.s32.totalorder %v712_v43, %v7786_v49  ;;  %vm754_vm15 = vcmp.eq.s32.totalorder %v712_v43, %v7797_v55  ;;  %v8049_v1 = vpop.permute.xlu0 %1680 }
 0x1a0   : > { %v5724_v37 = vsel %vm753_vm14, 1.0, %v11881_v61  ;;  %v5725_v27 = vsel %vm754_vm15, 1.0, %v11881_v61  ;;  %7109 = vset.pattern.permute.xlu1 %v11956_v53  ;;  %v845_v13 = vadd.f32 %v7984_v29, %v653_v8  ;;  %vm1708_vm14 = vcmp.eq.s32.totalorder %v7997_v24, %v7797_v55 }
 0x1a1   : > { %v849_v43 = vadd.f32 %v5724_v37, %v657_v5  ;;  %v850_v38 = vadd.f32 %v5725_v27, %v658_v44  ;;  %1677 = vperm.xlu1 %7109, %v1646_v4   ;;  %v1078_v4 = vadd.s32 128, %v7792_v52  ;;  %v11958_v52 = vmov 2  }
 0x1a2   : > { %7148 = vset.pattern.permute.xlu0 %v11957_v40  ;;  %v5874_v5 = vsel %vm1703_vm2, 1.0, %v11881_v61  ;;  %v5844_v44 = vsel %vm1513_vm5, 1.0, %v11881_v61  ;;  %vm1134_vm15 = vcmp.eq.s32.totalorder %v7872_v18, %v7797_v55  ;;  %vm1325_vm2 = vcmp.eq.s32.totalorder %v8010_v30, %v7786_v49 }
 0x1a3   : > { %v8068_v2 = vpop.permute.xlu1 %1092  ;;  %v8070_v41 = vpop.permute.xlu0 %1689  ;;  %v8072_v37 = vadd.f32 %v5756_v50, %v849_v43  ;;  %v8074_v27 = vadd.f32 %v5757_v15, %v850_v38  ;;  %v1226_v50 = vadd.f32 %v5781_v57, %v1034_v35  ;;  %1125 = vperm.xlu0 %7148, %v1078_v4   ;;  %v1417_v15 = vadd.f32 %v5812_v9, %v1225_v0 }
 0x1a4   : > { %v5752_v38 = vsel %vm941_vm6, 1.0, %v11881_v61  ;;  %v5753_v35 = vsel %vm942_vm7, 1.0, %v11881_v61  ;;  %v5876_v0 = vsel %vm1705_vm13, 1.0, %v11881_v61  ;;  %v5785_v24 = vsel %vm1134_vm15, 1.0, %v11881_v61 }
 0x1a5   : > { %7110 = vset.pattern.permute.xlu1 %v11958_v52  ;;  %v1418_v6 = vadd.f32 %v5813_v19, %v1226_v50  ;;  %v1609_v4 = vadd.f32 %v5844_v44, %v1417_v15  ;;  %v1037_v62 = vadd.f32 %v5752_v38, %v845_v13  ;;  %v1038_v28 = vadd.f32 %v5753_v35, %v846_v56 }
 0x1a6   : > { %726 = vperm.xlu1 %7110, %v7988_v45   ;;  %v11959_v45 = vmov 6   ;;  %v11960_v19 = vmov 0   ;;  %v5784_v13 = vsel %vm1133_vm11, 1.0, %v11881_v61  ;;  %v5846_v15 = vsel %vm1515_vm0, 1.0, %v11881_v61 }
 0x1a7   : > { %7151 = vset.pattern.permute.xlu0 %v11956_v53  ;;  %v1610_v57 = vadd.f32 %v5845_v34, %v1418_v6  ;;  %v1612_v30 = vadd.f32 %v5847_v51, %v7876_v23  ;;  %v1801_v6 = vadd.f32 %v5876_v0, %v1609_v4  ;;  %v5878_v56 = vsel %vm1707_vm1, 1.0, %v11881_v61 }
 0x1a8   : > { %v8108_v48 = vpop.permute.xlu1 %362  ;;  %v1465_v16 = vpop.permute.xlu0 %1464  ;;  %v5816_v18 = vsel %vm1325_vm2, 1.0, %v11881_v61  ;;  %v1611_v7 = vadd.f32 %v5846_v15, %v7874_v21  ;;  %v1230_v34 = vadd.f32 %v5785_v24, %v1038_v28  ;;  %v11961_v23 = vmov 3  }
 0x1a9   : > { %vm1511_vm9 = vcmp.eq.s32.totalorder %v1465_v16, %v7786_v49  ;;  %vm1512_vm10 = vcmp.eq.s32.totalorder %v1465_v16, %v7797_v55  ;;  %v5817_v16 = vsel %vm1326_vm3, 1.0, %v11881_v61  ;;  %v1264_v38 = vadd.s32 160, %v7705_v46  ;;  %v8204_v46 = vld [vmem:[%s7617_s11 + $0x58] sm:$0xff] }
 0x1aa   : > { %v5842_v17 = vsel %vm1511_vm9, 1.0, %v11881_v61  ;;  %v5843_v29 = vsel %vm1512_vm10, 1.0, %v11881_v61  ;;  %7111 = vset.pattern.permute.xlu1 %v11959_v45  ;;  %v1803_v44 = vadd.f32 %v5878_v56, %v1611_v7  ;;  %vm1330_vm9 = vcmp.eq.s32.totalorder %v7849_v12, %v7797_v55  ;;  %v8242_v56 = vld [vmem:[%s7617_s11 + $0x70] sm:$0xff] }
 0x1ab   : > { %v1607_v47 = vadd.f32 %v5842_v17, %v7952_v42  ;;  %1488 = vperm.xlu1 %7111, %v1455_v20   ;;  %v1608_v43 = vadd.f32 %v5843_v29, %v7954_v63  ;;  %v5877_v42 = vsel %vm1706_vm8, 1.0, %v11881_v61  ;;  %v5879_v20 = vsel %vm1708_vm14, 1.0, %v11881_v61 }
 0x1ac   : > { %v1474_v9 = vpop.permute.xlu0 %1473  ;;  %v1802_v50 = vadd.f32 %v5877_v42, %v1610_v57  ;;  %vm1329_vm8 = vcmp.eq.s32.totalorder %v7849_v12, %v7786_v49  ;;  %v690_v51 = vadd.s32 64, %v8204_v46  ;;  %v5821_v0 = vsel %vm1330_vm9, 1.0, %v11881_v61 }
 0x1ad   : > { %v8145_v63 = vpop.permute.xlu1 %522  ;;  %v1800_v33 = vadd.f32 %v5875_v26, %v1608_v43  ;;  %v1799_v8 = vadd.f32 %v5874_v5, %v1607_v47  ;;  %vm1517_vm4 = vcmp.eq.s32.totalorder %v1474_v9, %v7786_v49  ;;  %vm1518_vm5 = vcmp.eq.s32.totalorder %v1474_v9, %v7797_v55 }
 0x1ae   : > { %v1804_v5 = vadd.f32 %v5879_v20, %v1612_v30  ;;  %v1229_v26 = vadd.f32 %v5784_v13, %v1037_v62  ;;  %v5848_v17 = vsel %vm1517_vm4, 1.0, %v11881_v61  ;;  %v5849_v29 = vsel %vm1518_vm5, 1.0, %v11881_v61  ;;  %v8221_v13 = vld [vmem:[%s7617_s11 + $0x50] sm:$0xff] }
 0x1af   : > { %7112 = vset.pattern.permute.xlu1 %v11960_v19  ;;  %1927 = vmatprep.mubr.f32.mxu0 %v1800_v33  ;;  %v1422_v43 = vadd.f32 %v5817_v16, %v1230_v34  ;;  %v5820_v28 = vsel %vm1329_vm8, 1.0, %v11881_v61  ;;  %vm400_vm13 = vcmp.eq.s32.totalorder %v7807_v59, %v7797_v55  ;;  %v1073_v24 = vadd.s32 128, %v8221_v13 }
 0x1b0   : > { %377 = vperm.xlu1 %7112, %v7689_v36   ;;  %1928 = vmatmul.mubr.f32.vlgmr.msra.gmra.mrb[0].mxu0 %v1799_v8  ;;  %v1421_v47 = vadd.f32 %v5816_v18, %v1229_v26  ;;  %vm559_vm14 = vcmp.eq.s32.totalorder %v7881_v39, %v7786_v49  ;;  %vm560_vm15 = vcmp.eq.s32.totalorder %v7881_v39, %v7797_v55  ;;  %v5658_v30 = vsel %vm399_vm12, 1.0, %v11881_v61 }
 0x1b1   : > { %1932 = vmatprep.mubr.f32.mxu0 %v1802_v50  ;;  %v1614_v42 = vadd.f32 %v5849_v29, %v1422_v43  ;;  %vm751_vm0 = vcmp.eq.s32.totalorder %v7916_v22, %v7786_v49  ;;  %vm752_vm1 = vcmp.eq.s32.totalorder %v7916_v22, %v7797_v55  ;;  %v5659_v59 = vsel %vm400_vm13, 1.0, %v11881_v61 }
 0x1b2   : > { %v8183_v36 = vpop.permute.xlu1 %1284  ;;  %v1613_v21 = vadd.f32 %v5848_v17, %v1421_v47  ;;  %v5691_v39 = vsel %vm560_vm15, 1.0, %v11881_v61  ;;  %vm943_vm2 = vcmp.eq.s32.totalorder %v7973_v58, %v7786_v49  ;;  %vm944_vm3 = vcmp.eq.s32.totalorder %v7973_v58, %v7797_v55 }
 0x1b3   : > { %v5722_v22 = vsel %vm751_vm0, 1.0, %v11881_v61  ;;  %v5723_v18 = vsel %vm752_vm1, 1.0, %v11881_v61  ;;  %v656_v26 = vadd.f32 %v5691_v39, %v5659_v59  ;;  %vm1135_vm4 = vcmp.eq.s32.totalorder %v8068_v2, %v7786_v49  ;;  %v7158_v59 = vld [vmem:[%s7617_s11 + $0x48] sm:$0xff] }
 0x1b4   : > { %7113 = vset.pattern.permute.xlu1 %v11961_v23  ;;  %1933 = vmatmul.mubr.f32.gmra.mrb[2].mxu0 %v1801_v6  ;;  %v5690_v6 = vsel %vm559_vm14, 1.0, %v11881_v61  ;;  %vm1136_vm5 = vcmp.eq.s32.totalorder %v8068_v2, %v7797_v55  ;;  %v5754_v34 = vsel %vm943_vm2, 1.0, %v11881_v61  ;;  %v5755_v58 = vsel %vm944_vm3, 1.0, %v11881_v61 }
 0x1b5   : > { %918 = vperm.xlu1 %7113, %v8099_v54   ;;  %1937 = vmatprep.mubr.f32.mxu0 %v1804_v5  ;;  %v11962_v54 = vmov 5   ;;  %v1653_v5 = vadd.s32 224, %v8242_v56  ;;  %v655_v7 = vadd.f32 %v5690_v6, %v5658_v30  ;;  %v848_v29 = vadd.f32 %v5723_v18, %v656_v26 }
 0x1b6   : > { %v5786_v2 = vsel %vm1135_vm4, 1.0, %v11881_v61  ;;  %v5787_v47 = vsel %vm1136_vm5, 1.0, %v11881_v61  ;;  %v1648_v6 = vadd.s32 224, %v7158_v59  ;;  %vm1713_vm12 = vcmp.eq.s32.totalorder %v8030_v10, %v7786_v49 }
 0x1b7   : > { %v1666_v35 = vpop.permute.xlu1 %1665  ;;  %1698 = vperm.xlu0 %7151, %v1653_v5   ;;  %v847_v17 = vadd.f32 %v5722_v22, %v655_v7  ;;  %vm1714_vm13 = vcmp.eq.s32.totalorder %v8030_v10, %v7797_v55  ;;  %v1074_v5 = vadd.s32 128, %v8204_v46  ;;  %v5884_v18 = vsel %vm1713_vm12, 1.0, %v11881_v61 }
 0x1b8   : > { %vm1709_vm6 = vcmp.eq.s32.totalorder %v1666_v35, %v7786_v49  ;;  %vm1710_vm7 = vcmp.eq.s32.totalorder %v1666_v35, %v7797_v55  ;;  %1938 = vmatmul.mubr.f32.gmra.mrb[4].mxu0 %v1803_v44  ;;  %v8265_v44 = vld [vmem:[%s7617_s11 + $0x60] sm:$0xff]  ;;  %v1040_v35 = vadd.f32 %v5755_v58, %v848_v29  ;;  %v5885_v7 = vsel %vm1714_vm13, 1.0, %v11881_v61 }
 0x1b9   : > { %v5880_v57 = vsel %vm1709_vm6, 1.0, %v11881_v61  ;;  %v5881_v33 = vsel %vm1710_vm7, 1.0, %v11881_v61  ;;  %7114 = vset.pattern.permute.xlu1 %v11962_v54  ;;  %vm1327_vm6 = vcmp.eq.s32.totalorder %v8183_v36, %v7786_v49  ;;  %vm1328_vm7 = vcmp.eq.s32.totalorder %v8183_v36, %v7797_v55 }
 0x1ba   : > { %1299 = vperm.xlu1 %7114, %v1264_v38   ;;  %v1806_v8 = vadd.f32 %v5881_v33, %v1614_v42  ;;  %v1805_v4 = vadd.f32 %v5880_v57, %v1613_v21  ;;  %v499_v43 = vadd.s32 32, %v8265_v44  ;;  %v1039_v38 = vadd.f32 %v5754_v34, %v847_v17 }
 0x1bb   : > { %v5818_v36 = vsel %vm1327_vm6, 1.0, %v11881_v61  ;;  %v5819_v42 = vsel %vm1328_vm7, 1.0, %v11881_v61  ;;  %v1232_v33 = vadd.f32 %v5787_v47, %v1040_v35  ;;  %v1457_v17 = vadd.s32 192, %v8221_v13 }
 0x1bc   : > { %v1096_v62 = vpop.permute.xlu1 %1095  ;;  %1942 = vmatprep.mubr.f32.mxu0 %v1806_v8  ;;  %v1231_v57 = vadd.f32 %v5786_v2, %v1039_v38  ;;  %v11963_v8 = vmov 1   ;;  %v8309_v38 = vld [vmem:[%s7617_s11 + $0x68] sm:$0xff]  ;;  %vm567_vm0 = vcmp.eq.s32.totalorder %v7942_v11, %v7786_v49  ;;  %vm568_vm1 = vcmp.eq.s32.totalorder %v7942_v11, %v7797_v55 }
 0x1bd   : > { %vm1137_vm10 = vcmp.eq.s32.totalorder %v1096_v62, %v7786_v49  ;;  %vm1138_vm11 = vcmp.eq.s32.totalorder %v1096_v62, %v7797_v55  ;;  %1943 = vmatmul.mubr.f32.gmra.mrb[6].mxu0 %v1805_v4  ;;  %v500_v35 = vadd.s32 32, %v8309_v38  ;;  %vm951_vm4 = vcmp.eq.s32.totalorder %v7777_v3, %v7786_v49 }
 0x1be   : > { %v5788_v9 = vsel %vm1137_vm10, 1.0, %v11881_v61  ;;  %v5789_v12 = vsel %vm1138_vm11, 1.0, %v11881_v61  ;;  %7115 = vset.pattern.permute.xlu1 %v11958_v52  ;;  %v1423_v62 = vadd.f32 %v5818_v36, %v1231_v57  ;;  %v883_v36 = vadd.s32 96, %v8265_v44 }
 0x1bf   : > { %v1233_v50 = vadd.f32 %v5788_v9, %v8072_v37  ;;  %v1234_v20 = vadd.f32 %v5789_v12, %v8074_v27  ;;  %729 = vperm.xlu1 %7115, %v690_v51   ;;  %v5698_v57 = vsel %vm567_vm0, 1.0, %v11881_v61  ;;  %vm952_vm5 = vcmp.eq.s32.totalorder %v7777_v3, %v7797_v55 }
 0x1c0   : > { %v1649_v11 = vadd.s32 224, %v8221_v13  ;;  %vm1139_vm0 = vcmp.eq.s32.totalorder %v7879_v25, %v7786_v49 }
 0x1c1   : > { %v1477_v37 = vpop.permute.xlu1 %1476  ;;  %v8228_v27 = vadd.f32 %v5820_v28, %v1233_v50  ;;  %v8230_v15 = vadd.f32 %v5821_v0, %v1234_v20  ;;  %v1424_v28 = vadd.f32 %v5819_v42, %v1232_v33  ;;  %v1265_v0 = vadd.s32 160, %v8221_v13 }
 0x1c2   : > { %vm1519_vm8 = vcmp.eq.s32.totalorder %v1477_v37, %v7786_v49  ;;  %vm1520_vm9 = vcmp.eq.s32.totalorder %v1477_v37, %v7797_v55  ;;  %v5699_v33 = vsel %vm568_vm1, 1.0, %v11881_v61  ;;  %vm1140_vm1 = vcmp.eq.s32.totalorder %v7879_v25, %v7797_v55 }
 0x1c3   : > { %7116 = vset.pattern.permute.xlu1 %v11957_v40  ;;  %v5850_v4 = vsel %vm1519_vm8, 1.0, %v11881_v61  ;;  %v5851_v51 = vsel %vm1520_vm9, 1.0, %v11881_v61  ;;  %vm563_vm8 = vcmp.eq.s32.totalorder %v8145_v63, %v7786_v49  ;;  %vm564_vm9 = vcmp.eq.s32.totalorder %v8145_v63, %v7797_v55 }
 0x1c4   : > { %1110 = vperm.xlu1 %7116, %v1073_v24   ;;  %v1615_v12 = vadd.f32 %v5850_v4, %v1423_v62  ;;  %v1616_v50 = vadd.f32 %v5851_v51, %v1424_v28  ;;  %v5694_v63 = vsel %vm563_vm8, 1.0, %v11881_v61 }
 0x1c6   : > { %v8251_v16 = vpop.permute.xlu1 %525 }
 0x1c8   : > { %7117 = vset.pattern.permute.xlu1 %v11960_v19 }
 0x1c9   : > { %380 = vperm.xlu1 %7117, %v8265_v44  }
 0x1cb   : > { %v8273_v21 = vpop.permute.xlu1 %906 }
 0x1cd   : > { %7118 = vset.pattern.permute.xlu1 %v11963_v8 }
 0x1ce   : > { %540 = vperm.xlu1 %7118, %v499_v43   ;;  %v8305_v43 = vpop.permute.xlu0 %1482 }
 0x1cf   : > { %vm1523_vm8 = vcmp.eq.s32.totalorder %v8305_v43, %v7786_v49 }
 0x1d0   : > { %v1669_v9 = vpop.permute.xlu1 %1668 }
 0x1d1   : > { %vm1711_vm10 = vcmp.eq.s32.totalorder %v1669_v9, %v7786_v49  ;;  %vm1712_vm11 = vcmp.eq.s32.totalorder %v1669_v9, %v7797_v55 }
 0x1d2   : > { %v5882_v20 = vsel %vm1711_vm10, 1.0, %v11881_v61  ;;  %v5883_v24 = vsel %vm1712_vm11, 1.0, %v11881_v61  ;;  %7119 = vset.pattern.permute.xlu1 %v11962_v54  ;;  %vm403_vm10 = vcmp.eq.s32.totalorder %v8108_v48, %v7786_v49  ;;  %vm404_vm11 = vcmp.eq.s32.totalorder %v8108_v48, %v7797_v55 }
 0x1d3   : > { %1302 = vperm.xlu1 %7119, %v1265_v0   ;;  %v1808_v37 = vadd.f32 %v5883_v24, %v1616_v50  ;;  %v1807_v30 = vadd.f32 %v5882_v20, %v1615_v12  ;;  %v5762_v12 = vsel %vm951_vm4, 1.0, %v11881_v61  ;;  %v5763_v50 = vsel %vm952_vm5, 1.0, %v11881_v61 }
 0x1d4   : > { %v5662_v48 = vsel %vm403_vm10, 1.0, %v11881_v61 }
 0x1d5   : > { %v8287_v39 = vpop.permute.xlu1 %717  ;;  %1947 = vmatprep.mubr.f32.mxu0 %v1808_v37 }
 0x1d6   : > { %1948 = vmatmul.mubr.f32.gmra.mrb[8].mxu0 %v1807_v30  ;;  %v692_v30 = vadd.s32 64, %v8309_v38 }
 0x1d7   : > { %7120 = vset.pattern.permute.xlu1 %v11956_v53 }
 0x1d8   : > { %1683 = vperm.xlu1 %7120, %v1648_v6  }
 0x1da   : > { %v1480_v22 = vpop.permute.xlu1 %1479 }
 0x1db   : > { %vm1521_vm14 = vcmp.eq.s32.totalorder %v1480_v22, %v7786_v49  ;;  %vm1522_vm15 = vcmp.eq.s32.totalorder %v1480_v22, %v7797_v55  ;;  %v5695_v22 = vsel %vm564_vm9, 1.0, %v11881_v61  ;;  %vm1524_vm9 = vcmp.eq.s32.totalorder %v8305_v43, %v7797_v55 }
 0x1dc   : > { %v5852_v26 = vsel %vm1521_vm14, 1.0, %v11881_v61  ;;  %v5853_v34 = vsel %vm1522_vm15, 1.0, %v11881_v61  ;;  %7121 = vset.pattern.permute.xlu1 %v11957_v40  ;;  %vm947_vm14 = vcmp.eq.s32.totalorder %v8273_v21, %v7786_v49  ;;  %vm948_vm15 = vcmp.eq.s32.totalorder %v8273_v21, %v7797_v55 }
 0x1dd   : > { %v1617_v10 = vadd.f32 %v5852_v26, %v8228_v27  ;;  %v1618_v58 = vadd.f32 %v5853_v34, %v8230_v15  ;;  %1113 = vperm.xlu1 %7121, %v1074_v5   ;;  %v8314_v15 = vpop.permute.xlu0 %1491  ;;  %v5758_v21 = vsel %vm947_vm14, 1.0, %v11881_v61  ;;  %vm1336_vm14 = vcmp.eq.s32.totalorder %v7854_v60, %v7797_v55 }
 0x1df   : > { %v369_v29 = vpop.permute.xlu1 %368  ;;  %v1810_v2 = vadd.f32 %v5885_v7, %v1618_v58  ;;  %v1809_v47 = vadd.f32 %v5884_v18, %v1617_v10  ;;  %v1458_v18 = vadd.s32 192, %v8204_v46  ;;  %v5663_v7 = vsel %vm404_vm11, 1.0, %v11881_v61 }
 0x1e0   : > { %vm407_vm2 = vcmp.eq.s32.totalorder %v369_v29, %v7786_v49  ;;  %vm408_vm3 = vcmp.eq.s32.totalorder %v369_v29, %v7797_v55  ;;  %v659_v58 = vadd.f32 %v5694_v63, %v5662_v48  ;;  %v5759_v46 = vsel %vm948_vm15, 1.0, %v11881_v61 }
 0x1e1   : > { %7122 = vset.pattern.permute.xlu1 %v11959_v45  ;;  %1952 = vmatprep.mubr.f32.mxu0 %v1810_v2  ;;  %v8329_v4 = vpop.permute.xlu0 %1500  ;;  %v5666_v51 = vsel %vm407_vm2, 1.0, %v11881_v61  ;;  %v5667_v62 = vsel %vm408_vm3, 1.0, %v11881_v61  ;;  %v1267_v63 = vadd.s32 160, %v8265_v44  ;;  %vm406_vm15 = vcmp.eq.s32.totalorder %v7820_v14, %v7797_v55 }
 0x1e2   : > { %1494 = vperm.xlu1 %7122, %v1457_v17   ;;  %1953 = vmatmul.mubr.f32.gmra.mrb[10].mxu0 %v1809_v47  ;;  %v663_v0 = vadd.f32 %v5698_v57, %v5666_v51  ;;  %v664_v9 = vadd.f32 %v5699_v33, %v5667_v62  ;;  %v660_v17 = vadd.f32 %v5695_v22, %v5663_v7  ;;  %v5790_v47 = vsel %vm1139_vm0, 1.0, %v11881_v61 }
 0x1e3   : > { %vm411_vm0 = vcmp.eq.s32.totalorder %v7830_v31, %v7786_v49 }
 0x1e4   : > { %v8312_v27 = vpop.permute.xlu1 %909 }
 0x1e5   : > { %v715_v13 = vpop.permute.xlu0 %714 }
 0x1e6   : > { %7124 = vset.pattern.permute.xlu1 %v11963_v8  ;;  %vm755_vm12 = vcmp.eq.s32.totalorder %v715_v13, %v7786_v49  ;;  %vm756_vm13 = vcmp.eq.s32.totalorder %v715_v13, %v7797_v55  ;;  %v5854_v13 = vsel %vm1523_vm8, 1.0, %v11881_v61  ;;  %vm757_vm8 = vcmp.eq.s32.totalorder %v8287_v39, %v7786_v49 }
 0x1e7   : > { %543 = vperm.xlu1 %7124, %v500_v35   ;;  %v5726_v26 = vsel %vm755_vm12, 1.0, %v11881_v61  ;;  %v5727_v34 = vsel %vm756_vm13, 1.0, %v11881_v61  ;;  %v5791_v35 = vsel %vm1140_vm1, 1.0, %v11881_v61  ;;  %vm405_vm12 = vcmp.eq.s32.totalorder %v7820_v14, %v7786_v49 }
 0x1e8   : > { %v851_v29 = vadd.f32 %v5726_v26, %v659_v58  ;;  %v852_v2 = vadd.f32 %v5727_v34, %v660_v17  ;;  %vm1335_vm13 = vcmp.eq.s32.totalorder %v7854_v60, %v7786_v49  ;;  %v693_v34 = vadd.s32 64, %v8242_v56 }
 0x1e9   : > { %v8324_v42 = vpop.permute.xlu1 %1290  ;;  %v5664_v58 = vsel %vm405_vm12, 1.0, %v11881_v61  ;;  %v5826_v17 = vsel %vm1335_vm13, 1.0, %v11881_v61  ;;  %v5827_v60 = vsel %vm1336_vm14, 1.0, %v11881_v61  ;;  %vm949_vm12 = vcmp.eq.s32.totalorder %v8312_v27, %v7786_v49 }
 0x1ea   : > { %v1044_v57 = vadd.f32 %v5759_v46, %v852_v2  ;;  %vm1331_vm4 = vcmp.eq.s32.totalorder %v8324_v42, %v7786_v49  ;;  %vm1332_vm5 = vcmp.eq.s32.totalorder %v8324_v42, %v7797_v55  ;;  %v5665_v46 = vsel %vm406_vm15, 1.0, %v11881_v61 }
 0x1eb   : > { %7125 = vset.pattern.permute.xlu1 %v11961_v23  ;;  %v5822_v42 = vsel %vm1331_vm4, 1.0, %v11881_v61  ;;  %vm565_vm4 = vcmp.eq.s32.totalorder %v8251_v16, %v7786_v49  ;;  %vm950_vm13 = vcmp.eq.s32.totalorder %v8312_v27, %v7797_v55 }
 0x1ec   : > { %924 = vperm.xlu1 %7125, %v883_v36   ;;  %v1043_v36 = vadd.f32 %v5758_v21, %v851_v29  ;;  %v724_v29 = vpop.permute.xlu0 %723 }
 0x1ee   : > { %v721_v28 = vpop.permute.xlu1 %720 }
 0x1ef   : > { %vm759_vm6 = vcmp.eq.s32.totalorder %v721_v28, %v7786_v49  ;;  %vm760_vm7 = vcmp.eq.s32.totalorder %v721_v28, %v7797_v55 }
 0x1f0   : > { %v5730_v20 = vsel %vm759_vm6, 1.0, %v11881_v61  ;;  %v5731_v24 = vsel %vm760_vm7, 1.0, %v11881_v61  ;;  %7127 = vset.pattern.permute.xlu1 %v11956_v53 }
 0x1f1   : > { %v855_v3 = vadd.f32 %v5730_v20, %v663_v0  ;;  %v856_v37 = vadd.f32 %v5731_v24, %v664_v9  ;;  %1686 = vperm.xlu1 %7127, %v1649_v11   ;;  %v5823_v9 = vsel %vm1332_vm5, 1.0, %v11881_v61  ;;  %v1236_v20 = vadd.f32 %v5791_v35, %v1044_v57 }
 0x1f2   : > { %v5670_v35 = vsel %vm411_vm0, 1.0, %v11881_v61  ;;  %vm566_vm5 = vcmp.eq.s32.totalorder %v8251_v16, %v7797_v55  ;;  %v5696_v16 = vsel %vm565_vm4, 1.0, %v11881_v61 }
 0x1f3   : > { %v8350_v59 = vpop.permute.xlu1 %1101  ;;  %v8352_v6 = vadd.f32 %v5762_v12, %v855_v3  ;;  %v8354_v5 = vadd.f32 %v5763_v50, %v856_v37  ;;  %v884_v12 = vadd.s32 96, %v8309_v38  ;;  %v1235_v50 = vadd.f32 %v5790_v47, %v1043_v36 }
 0x1f4   : > { %v1428_v37 = vadd.f32 %v5823_v9, %v1236_v20  ;;  %v661_v9 = vadd.f32 %v5696_v16, %v5664_v58  ;;  %vm1141_vm14 = vcmp.eq.s32.totalorder %v8350_v59, %v7786_v49  ;;  %vm1142_vm15 = vcmp.eq.s32.totalorder %v8350_v59, %v7797_v55 }
 0x1f5   : > { %7128 = vset.pattern.permute.xlu1 %v11958_v52  ;;  %v1427_v3 = vadd.f32 %v5822_v42, %v1235_v50  ;;  %v5761_v50 = vsel %vm950_vm13, 1.0, %v11881_v61  ;;  %vm1720_vm13 = vcmp.eq.s32.totalorder %v8049_v1, %v7797_v55 }
 0x1f6   : > { %735 = vperm.xlu1 %7128, %v692_v30   ;;  %v5855_v30 = vsel %vm1524_vm9, 1.0, %v11881_v61  ;;  %vm758_vm9 = vcmp.eq.s32.totalorder %v8287_v39, %v7797_v55 }
 0x1f7   : > { %v1620_v48 = vadd.f32 %v5855_v30, %v1428_v37  ;;  %v5729_v27 = vsel %vm758_vm9, 1.0, %v11881_v61 }
 0x1f8   : > { %v372_v10 = vpop.permute.xlu1 %371 }
 0x1f9   : > { %vm409_vm2 = vcmp.eq.s32.totalorder %v372_v10, %v7786_v49  ;;  %vm410_vm3 = vcmp.eq.s32.totalorder %v372_v10, %v7797_v55 }
 0x1fa   : > { %7130 = vset.pattern.permute.xlu1 %v11959_v45  ;;  %v5668_v33 = vsel %vm409_vm2, 1.0, %v11881_v61  ;;  %v5669_v51 = vsel %vm410_vm3, 1.0, %v11881_v61  ;;  %vm412_vm3 = vcmp.eq.s32.totalorder %v7830_v31, %v7797_v55 }
 0x1fb   : > { %1497 = vperm.xlu1 %7130, %v1458_v18   ;;  %v1619_v18 = vadd.f32 %v5854_v13, %v1427_v3  ;;  %v5671_v39 = vsel %vm412_vm3, 1.0, %v11881_v61 }
 0x1fd   : > { %v532_v25 = vpop.permute.xlu1 %531 }
 0x1fe   : > { %vm569_vm6 = vcmp.eq.s32.totalorder %v532_v25, %v7786_v49  ;;  %vm570_vm7 = vcmp.eq.s32.totalorder %v532_v25, %v7797_v55 }
 0x1ff   : > { %v5700_v62 = vsel %vm569_vm6, 1.0, %v11881_v61  ;;  %v5701_v11 = vsel %vm570_vm7, 1.0, %v11881_v61  ;;  %7131 = vset.pattern.permute.xlu1 %v11960_v19  ;;  %vm1145_vm6 = vcmp.eq.s32.totalorder %v7885_v32, %v7786_v49  ;;  %vm1146_vm7 = vcmp.eq.s32.totalorder %v7885_v32, %v7797_v55 }
 0x200   : > { %v8396_v28 = vadd.f32 %v5700_v62, %v5668_v33  ;;  %v8398_v0 = vadd.f32 %v5701_v11, %v5669_v51  ;;  %386 = vperm.xlu1 %7131, %v8242_v56   ;;  %v5697_v32 = vsel %vm566_vm5, 1.0, %v11881_v61  ;;  %v5796_v57 = vsel %vm1145_vm6, 1.0, %v11881_v61  ;;  %v8477_v33 = vld [vmem:[%s7617_s11 + $0x78] sm:$0xff] }
 0x201   : > { %v5797_v25 = vsel %vm1146_vm7, 1.0, %v11881_v61  ;;  %v502_v51 = vadd.s32 32, %v8477_v33  ;;  %v5728_v62 = vsel %vm757_vm8, 1.0, %v11881_v61  ;;  %v662_v31 = vadd.f32 %v5697_v32, %v5665_v46 }
 0x202   : > { %v8408_v24 = vpop.permute.xlu1 %1293  ;;  %v853_v3 = vadd.f32 %v5728_v62, %v661_v9 }
 0x203   : > { %v854_v37 = vadd.f32 %v5729_v27, %v662_v31  ;;  %vm1334_vm3 = vcmp.eq.s32.totalorder %v8408_v24, %v7797_v55  ;;  %v5891_v31 = vsel %vm1720_vm13, 1.0, %v11881_v61 }
 0x204   : > { %7133 = vset.pattern.permute.xlu1 %v11961_v23 }
 0x205   : > { %927 = vperm.xlu1 %7133, %v884_v12   ;;  %v5760_v12 = vsel %vm949_vm12, 1.0, %v11881_v61  ;;  %vm1719_vm12 = vcmp.eq.s32.totalorder %v8049_v1, %v7786_v49 }
 0x206   : > { %v5890_v9 = vsel %vm1719_vm12, 1.0, %v11881_v61 }
 0x207   : > { %v1675_v22 = vpop.permute.xlu1 %1674 }
 0x208   : > { %vm1715_vm10 = vcmp.eq.s32.totalorder %v1675_v22, %v7786_v49  ;;  %vm1716_vm11 = vcmp.eq.s32.totalorder %v1675_v22, %v7797_v55 }
 0x209   : > { %v5886_v43 = vsel %vm1715_vm10, 1.0, %v11881_v61  ;;  %v5887_v7 = vsel %vm1716_vm11, 1.0, %v11881_v61  ;;  %7134 = vset.pattern.permute.xlu1 %v11962_v54  ;;  %vm761_vm10 = vcmp.eq.s32.totalorder %v724_v29, %v7786_v49  ;;  %vm762_vm11 = vcmp.eq.s32.totalorder %v724_v29, %v7797_v55 }
 0x20a   : > { %v1811_v23 = vadd.f32 %v5886_v43, %v1619_v18  ;;  %v1812_v26 = vadd.f32 %v5887_v7, %v1620_v48  ;;  %1308 = vperm.xlu1 %7134, %v1267_v63   ;;  %v5732_v11 = vsel %vm761_vm10, 1.0, %v11881_v61  ;;  %v5733_v42 = vsel %vm762_vm11, 1.0, %v11881_v61 }
 0x20b   : > { %v1045_v18 = vadd.f32 %v5760_v12, %v853_v3  ;;  %v1046_v48 = vadd.f32 %v5761_v50, %v854_v37  ;;  %v5792_v43 = vsel %vm1141_vm14, 1.0, %v11881_v61  ;;  %v857_v7 = vadd.f32 %v5732_v11, %v8396_v28 }
 0x20c   : > { %v1105_v10 = vpop.permute.xlu1 %1104  ;;  %1957 = vmatprep.mubr.f32.mxu0 %v1812_v26  ;;  %v1268_v29 = vadd.s32 160, %v8309_v38  ;;  %v1460_v3 = vadd.s32 192, %v8309_v38 }
 0x20d   : > { %vm1143_vm1 = vcmp.eq.s32.totalorder %v1105_v10, %v7786_v49  ;;  %vm1144_vm2 = vcmp.eq.s32.totalorder %v1105_v10, %v7797_v55  ;;  %1958 = vmatmul.mubr.f32.gmra.mrb[12].mxu0 %v1811_v23  ;;  %v1237_v10 = vadd.f32 %v5792_v43, %v1045_v18 }
 0x20e   : > { %v5794_v21 = vsel %vm1143_vm1, 1.0, %v11881_v61  ;;  %v5795_v14 = vsel %vm1144_vm2, 1.0, %v11881_v61  ;;  %7136 = vset.pattern.permute.xlu1 %v11958_v52  ;;  %v1076_v52 = vadd.s32 128, %v8309_v38  ;;  %vm1333_vm2 = vcmp.eq.s32.totalorder %v8408_v24, %v7786_v49 }
 0x20f   : > { %v1239_v2 = vadd.f32 %v5794_v21, %v8352_v6  ;;  %v1240_v47 = vadd.f32 %v5795_v14, %v8354_v5  ;;  %738 = vperm.xlu1 %7136, %v693_v34   ;;  %v858_v24 = vadd.f32 %v5733_v42, %v8398_v0  ;;  %v5824_v26 = vsel %vm1333_vm2, 1.0, %v11881_v61 }
 0x210   : > { %v5825_v34 = vsel %vm1334_vm3, 1.0, %v11881_v61  ;;  %v1429_v14 = vadd.f32 %v5824_v26, %v1237_v10  ;;  %v1270_v26 = vadd.s32 160, %v8477_v33  ;;  %v1462_v10 = vadd.s32 192, %v8477_v33 }
 0x211   : > { %v1486_v6 = vpop.permute.xlu1 %1485  ;;  %v8453_v5 = vadd.f32 %v5826_v17, %v1239_v2  ;;  %v8455_v36 = vadd.f32 %v5827_v60, %v1240_v47 }
 0x212   : > { %vm1525_vm4 = vcmp.eq.s32.totalorder %v1486_v6, %v7786_v49  ;;  %vm1526_vm5 = vcmp.eq.s32.totalorder %v1486_v6, %v7797_v55 }
 0x213   : > { %7137 = vset.pattern.permute.xlu1 %v11957_v40  ;;  %v5856_v0 = vsel %vm1525_vm4, 1.0, %v11881_v61  ;;  %v5857_v17 = vsel %vm1526_vm5, 1.0, %v11881_v61 }
 0x214   : > { %1119 = vperm.xlu1 %7137, %v1076_v52   ;;  %v1621_v52 = vadd.f32 %v5856_v0, %v1429_v14  ;;  %v11964_v14 = vld [vmem:[#allocation21_spill] sm:$0xff] }
 0x216   : > { %v535_v20 = vpop.permute.xlu1 %534 }
 0x217   : > { %vm571_vm0 = vcmp.eq.s32.totalorder %v535_v20, %v7786_v49  ;;  %vm572_vm1 = vcmp.eq.s32.totalorder %v535_v20, %v7797_v55 }
 0x218   : > { %v5702_v13 = vsel %vm571_vm0, 1.0, %v11881_v61  ;;  %v5703_v30 = vsel %vm572_vm1, 1.0, %v11881_v61  ;;  %7139 = vset.pattern.permute.xlu1 %v11960_v19  ;;  %v5793_v19 = vsel %vm1142_vm15, 1.0, %v11881_v61  ;;  %vm1529_vm0 = vcmp.eq.s32.totalorder %v8314_v15, %v7786_v49 }
 0x219   : > { %v667_v63 = vadd.f32 %v5702_v13, %v5670_v35  ;;  %v668_v22 = vadd.f32 %v5703_v30, %v5671_v39  ;;  %389 = vperm.xlu1 %7139, %v8477_v33   ;;  %v1238_v59 = vadd.f32 %v5793_v19, %v1046_v48  ;;  %vm1530_vm1 = vcmp.eq.s32.totalorder %v8314_v15, %v7797_v55 }
 0x21a   : > { %v5861_v18 = vsel %vm1530_vm1, 1.0, %v11881_v61 }
 0x21b   : > { %v916_v23 = vpop.permute.xlu1 %915  ;;  %v1430_v46 = vadd.f32 %v5825_v34, %v1238_v59  ;;  %v8578_v59 = vpop.permute.xlu0 %732 }
 0x21c   : > { %vm953_vm6 = vcmp.eq.s32.totalorder %v916_v23, %v7786_v49  ;;  %vm954_vm7 = vcmp.eq.s32.totalorder %v916_v23, %v7797_v55 }
 0x21d   : > { %v5764_v58 = vsel %vm953_vm6, 1.0, %v11881_v61  ;;  %v5765_v28 = vsel %vm954_vm7, 1.0, %v11881_v61  ;;  %7140 = vset.pattern.permute.xlu1 %v11963_v8  ;;  %v1622_v6 = vadd.f32 %v5857_v17, %v1430_v46 }
 0x21e   : > { %v1049_v60 = vadd.f32 %v5764_v58, %v857_v7  ;;  %v1050_v21 = vadd.f32 %v5765_v28, %v858_v24  ;;  %549 = vperm.xlu1 %7140, %v502_v51   ;;  %v1651_v51 = vadd.s32 224, %v8265_v44  ;;  %v1077_v44 = vadd.s32 128, %v8242_v56 }
 0x21f   : > { %v8584_v0 = vpop.permute.xlu0 %741 }
 0x220   : > { %v1678_v2 = vpop.permute.xlu1 %1677  ;;  %v1241_v47 = vadd.f32 %v5796_v57, %v1049_v60  ;;  %v1242_v35 = vadd.f32 %v5797_v25, %v1050_v21 }
 0x221   : > { %vm1717_vm8 = vcmp.eq.s32.totalorder %v1678_v2, %v7786_v49  ;;  %vm1718_vm9 = vcmp.eq.s32.totalorder %v1678_v2, %v7797_v55 }
 0x222   : > { %v5888_v8 = vsel %vm1717_vm8, 1.0, %v11881_v61  ;;  %v5889_v16 = vsel %vm1718_vm9, 1.0, %v11881_v61  ;;  %7141 = vset.pattern.permute.xlu1 %v11962_v54  ;;  %vm573_vm8 = vcmp.eq.s32.totalorder %v11964_v14, %v7786_v49  ;;  %vm574_vm9 = vcmp.eq.s32.totalorder %v11964_v14, %v7797_v55 }
 0x223   : > { %v1813_v32 = vadd.f32 %v5888_v8, %v1621_v52  ;;  %v1814_v39 = vadd.f32 %v5889_v16, %v1622_v6  ;;  %1311 = vperm.xlu1 %7141, %v1268_v29   ;;  %v5705_v29 = vsel %vm574_vm9, 1.0, %v11881_v61 }
 0x225   : > { %v727_v62 = vpop.permute.xlu1 %726  ;;  %1962 = vmatprep.mubr.f32.mxu0 %v1814_v39 }
 0x226   : > { %vm763_vm10 = vcmp.eq.s32.totalorder %v727_v62, %v7786_v49  ;;  %vm764_vm11 = vcmp.eq.s32.totalorder %v727_v62, %v7797_v55  ;;  %1963 = vmatmul.mubr.f32.gmra.mrb[14].mxu0 %v1813_v32 }
 0x227   : > { %v5734_v57 = vsel %vm763_vm10, 1.0, %v11881_v61  ;;  %v5735_v25 = vsel %vm764_vm11, 1.0, %v11881_v61  ;;  %7142 = vset.pattern.permute.xlu1 %v11956_v53 }
 0x228   : > { %v8533_v27 = vadd.f32 %v5734_v57, %v667_v63  ;;  %v8535_v11 = vadd.f32 %v5735_v25, %v668_v22  ;;  %1692 = vperm.xlu1 %7142, %v1651_v51   ;;  %v1269_v63 = vadd.s32 160, %v8242_v56 }
 0x22a   : > { %v1489_v42 = vpop.permute.xlu1 %1488 }
 0x22b   : > { %vm1527_vm14 = vcmp.eq.s32.totalorder %v1489_v42, %v7786_v49  ;;  %vm1528_vm15 = vcmp.eq.s32.totalorder %v1489_v42, %v7797_v55 }
 0x22c   : > { %v5858_v12 = vsel %vm1527_vm14, 1.0, %v11881_v61  ;;  %v5859_v50 = vsel %vm1528_vm15, 1.0, %v11881_v61  ;;  %7144 = vset.pattern.permute.xlu1 %v11957_v40  ;;  %v1652_v40 = vadd.s32 224, %v8309_v38  ;;  %v1461_v38 = vadd.s32 192, %v8242_v56 }
 0x22d   : > { %v1623_v20 = vadd.f32 %v5858_v12, %v8453_v5  ;;  %v1624_v1 = vadd.f32 %v5859_v50, %v8455_v36  ;;  %1122 = vperm.xlu1 %7144, %v1077_v44   ;;  %v5860_v36 = vsel %vm1529_vm0, 1.0, %v11881_v61  ;;  %v1654_v56 = vadd.s32 224, %v8477_v33 }
 0x22f   : > { %v8552_v37 = vpop.permute.xlu1 %377  ;;  %v1816_v13 = vadd.f32 %v5891_v31, %v1624_v1  ;;  %v1815_v30 = vadd.f32 %v5890_v9, %v1623_v20  ;;  %v11965_v31 = vld [vmem:[#allocation19_spill] sm:$0xff] }
 0x230   : > { %vm413_vm10 = vcmp.eq.s32.totalorder %v8552_v37, %v7786_v49  ;;  %vm414_vm11 = vcmp.eq.s32.totalorder %v8552_v37, %v7797_v55 }
 0x231   : > { %7145 = vset.pattern.permute.xlu1 %v11959_v45  ;;  %1967 = vmatprep.mubr.f32.mxu0 %v1816_v13  ;;  %v5672_v2 = vsel %vm413_vm10, 1.0, %v11881_v61  ;;  %vm767_vm10 = vcmp.eq.s32.totalorder %v8578_v59, %v7786_v49 }
 0x232   : > { %1503 = vperm.xlu1 %7145, %v1460_v3   ;;  %1968 = vmatmul.mubr.f32.gmra.mrb[16].mxu0 %v1815_v30 }
 0x234   : > { %v8556_v22 = vpop.permute.xlu1 %918 }
 0x235   : > { %vm956_vm9 = vcmp.eq.s32.totalorder %v8556_v22, %v7797_v55 }
 0x236   : > { %7146 = vset.pattern.permute.xlu1 %v11962_v54 }
 0x237   : > { %1314 = vperm.xlu1 %7146, %v1269_v63  }
 0x239   : > { %v1300_v5 = vpop.permute.xlu1 %1299 }
 0x23a   : > { %vm1337_vm2 = vcmp.eq.s32.totalorder %v1300_v5, %v7786_v49  ;;  %vm1338_vm3 = vcmp.eq.s32.totalorder %v1300_v5, %v7797_v55 }
 0x23b   : > { %v5828_v48 = vsel %vm1337_vm2, 1.0, %v11881_v61  ;;  %v5829_v43 = vsel %vm1338_vm3, 1.0, %v11881_v61  ;;  %7147 = vset.pattern.permute.xlu1 %v11956_v53  ;;  %vm1341_vm2 = vcmp.eq.s32.totalorder %v11965_v31, %v7786_v49  ;;  %vm1342_vm3 = vcmp.eq.s32.totalorder %v11965_v31, %v7797_v55 }
 0x23c   : > { %v1433_v19 = vadd.f32 %v5828_v48, %v1241_v47  ;;  %v1434_v7 = vadd.f32 %v5829_v43, %v1242_v35  ;;  %1695 = vperm.xlu1 %7147, %v1652_v40   ;;  %v5673_v47 = vsel %vm414_vm11, 1.0, %v11881_v61  ;;  %v922_v35 = vpop.permute.xlu0 %921  ;;  %v5832_v30 = vsel %vm1341_vm2, 1.0, %v11881_v61 }
 0x23d   : > { %v670_v16 = vadd.f32 %v5705_v29, %v5673_v47  ;;  %vm957_vm14 = vcmp.eq.s32.totalorder %v922_v35, %v7786_v49  ;;  %vm958_vm15 = vcmp.eq.s32.totalorder %v922_v35, %v7797_v55  ;;  %v5833_v63 = vsel %vm1342_vm3, 1.0, %v11881_v61 }
 0x23e   : > { %v730_v15 = vpop.permute.xlu1 %729  ;;  %v1625_v24 = vadd.f32 %v5860_v36, %v1433_v19  ;;  %v1626_v23 = vadd.f32 %v5861_v18, %v1434_v7  ;;  %v5768_v25 = vsel %vm957_vm14, 1.0, %v11881_v61  ;;  %v5769_v44 = vsel %vm958_vm15, 1.0, %v11881_v61  ;;  %v11966_v18 = vld [vmem:[#allocation18_spill] sm:$0xff]  ;;  %v11967_v19 = vld [vmem:[#allocation20_spill] sm:$0xff] }
 0x23f   : > { %vm765_vm12 = vcmp.eq.s32.totalorder %v730_v15, %v7786_v49  ;;  %vm766_vm13 = vcmp.eq.s32.totalorder %v730_v15, %v7797_v55  ;;  %vm768_vm11 = vcmp.eq.s32.totalorder %v8578_v59, %v7797_v55  ;;  %v5738_v15 = vsel %vm767_vm10, 1.0, %v11881_v61 }
 0x240   : > { %7149 = vset.pattern.permute.xlu1 %v11959_v45  ;;  %v5736_v52 = vsel %vm765_vm12, 1.0, %v11881_v61  ;;  %v5737_v6 = vsel %vm766_vm13, 1.0, %v11881_v61  ;;  %vm1151_vm12 = vcmp.eq.s32.totalorder %v11967_v19, %v7786_v49  ;;  %vm1152_vm13 = vcmp.eq.s32.totalorder %v11967_v19, %v7797_v55 }
 0x241   : > { %1506 = vperm.xlu1 %7149, %v1461_v38   ;;  %v862_v51 = vadd.f32 %v5737_v6, %v670_v16  ;;  %v5802_v47 = vsel %vm1151_vm12, 1.0, %v11881_v61  ;;  %v5803_v35 = vsel %vm1152_vm13, 1.0, %v11881_v61  ;;  %vm1725_vm10 = vcmp.eq.s32.totalorder %v8070_v41, %v7786_v49 }
 0x242   : > { %v5896_v31 = vsel %vm1725_vm10, 1.0, %v11881_v61 }
 0x243   : > { %v8574_v34 = vpop.permute.xlu1 %1110  ;;  %v1054_v20 = vadd.f32 %v5769_v44, %v862_v51 }
 0x244   : > { %vm1147_vm14 = vcmp.eq.s32.totalorder %v8574_v34, %v7786_v49  ;;  %vm1148_vm15 = vcmp.eq.s32.totalorder %v8574_v34, %v7797_v55 }
 0x245   : > { %7150 = vset.pattern.permute.xlu1 %v11962_v54 }
 0x246   : > { %1317 = vperm.xlu1 %7150, %v1270_v26  }
 0x248   : > { %v381_v58 = vpop.permute.xlu1 %380 }
 0x249   : > { %vm415_vm4 = vcmp.eq.s32.totalorder %v381_v58, %v7786_v49  ;;  %vm416_vm5 = vcmp.eq.s32.totalorder %v381_v58, %v7797_v55 }
 0x24a   : > { %7152 = vset.pattern.permute.xlu1 %v11959_v45  ;;  %v5674_v54 = vsel %vm415_vm4, 1.0, %v11881_v61  ;;  %v5675_v17 = vsel %vm416_vm5, 1.0, %v11881_v61 }
 0x24b   : > { %1509 = vperm.xlu1 %7152, %v1462_v10  }
 0x24d   : > { %v541_v28 = vpop.permute.xlu1 %540 }
 0x24e   : > { %vm575_vm6 = vcmp.eq.s32.totalorder %v541_v28, %v7786_v49  ;;  %vm576_vm7 = vcmp.eq.s32.totalorder %v541_v28, %v7797_v55  ;;  %v5799_v28 = vsel %vm1148_vm15, 1.0, %v11881_v61  ;;  %vm1536_vm15 = vcmp.eq.s32.totalorder %v8329_v4, %v7797_v55 }
 0x24f   : > { %v5706_v45 = vsel %vm575_vm6, 1.0, %v11881_v61  ;;  %v5707_v60 = vsel %vm576_vm7, 1.0, %v11881_v61  ;;  %7153 = vset.pattern.permute.xlu1 %v11956_v53  ;;  %v5704_v53 = vsel %vm573_vm8, 1.0, %v11881_v61  ;;  %vm417_vm6 = vcmp.eq.s32.totalorder %v11966_v18, %v7786_v49 }
 0x250   : > { %v8593_v21 = vadd.f32 %v5706_v45, %v5674_v54  ;;  %v8595_v33 = vadd.f32 %v5707_v60, %v5675_v17  ;;  %1701 = vperm.xlu1 %7153, %v1654_v56   ;;  %v669_v8 = vadd.f32 %v5704_v53, %v5672_v2  ;;  %vm418_vm7 = vcmp.eq.s32.totalorder %v11966_v18, %v7797_v55 }
 0x251   : > { %vm955_vm8 = vcmp.eq.s32.totalorder %v8556_v22, %v7786_v49  ;;  %v5676_v48 = vsel %vm417_vm6, 1.0, %v11881_v61  ;;  %v5677_v43 = vsel %vm418_vm7, 1.0, %v11881_v61  ;;  %v5767_v22 = vsel %vm956_vm9, 1.0, %v11881_v61 }
 0x252   : > { %v8605_v46 = vpop.permute.xlu1 %1302  ;;  %v861_v39 = vadd.f32 %v5736_v52, %v669_v8  ;;  %v5766_v7 = vsel %vm955_vm8, 1.0, %v11881_v61  ;;  %v1052_v58 = vadd.f32 %v5767_v22, %v8535_v11  ;;  %v5798_v56 = vsel %vm1147_vm14, 1.0, %v11881_v61 }
 0x253   : > { %vm1339_vm2 = vcmp.eq.s32.totalorder %v8605_v46, %v7786_v49  ;;  %vm1340_vm3 = vcmp.eq.s32.totalorder %v8605_v46, %v7797_v55  ;;  %v1051_v59 = vadd.f32 %v5766_v7, %v8533_v27  ;;  %v863_v17 = vadd.f32 %v5738_v15, %v8593_v21 }
 0x254   : > { %v1053_v50 = vadd.f32 %v5768_v25, %v861_v39  ;;  %v5830_v60 = vsel %vm1339_vm2, 1.0, %v11881_v61  ;;  %v5831_v14 = vsel %vm1340_vm3, 1.0, %v11881_v61  ;;  %v1244_v11 = vadd.f32 %v5799_v28, %v1052_v58 }
 0x255   : > { %v1243_v27 = vadd.f32 %v5798_v56, %v1051_v59  ;;  %vm1535_vm14 = vcmp.eq.s32.totalorder %v8329_v4, %v7786_v49  ;;  %v5867_v7 = vsel %vm1536_vm15, 1.0, %v11881_v61 }
 0x256   : > { %v1436_v6 = vadd.f32 %v5831_v14, %v1244_v11 }
 0x257   : > { %v1684_v32 = vpop.permute.xlu1 %1683  ;;  %v1435_v52 = vadd.f32 %v5830_v60, %v1243_v27 }
 0x258   : > { %vm1721_vm0 = vcmp.eq.s32.totalorder %v1684_v32, %v7786_v49  ;;  %vm1722_vm1 = vcmp.eq.s32.totalorder %v1684_v32, %v7797_v55 }
 0x259   : > { %v5892_v62 = vsel %vm1721_vm0, 1.0, %v11881_v61  ;;  %v5893_v57 = vsel %vm1722_vm1, 1.0, %v11881_v61 }
 0x25a   : > { %v1817_v42 = vadd.f32 %v5892_v62, %v1625_v24  ;;  %v1818_v9 = vadd.f32 %v5893_v57, %v1626_v23  ;;  %v5739_v24 = vsel %vm768_vm11, 1.0, %v11881_v61  ;;  %vm1726_vm11 = vcmp.eq.s32.totalorder %v8070_v41, %v7797_v55 }
 0x25b   : > { %v864_v45 = vadd.f32 %v5739_v24, %v8595_v33 }
 0x25c   : > { %v1114_v12 = vpop.permute.xlu1 %1113  ;;  %1972 = vmatprep.mubr.f32.mxu0 %v1818_v9 }
 0x25d   : > { %vm1149_vm4 = vcmp.eq.s32.totalorder %v1114_v12, %v7786_v49  ;;  %vm1150_vm5 = vcmp.eq.s32.totalorder %v1114_v12, %v7797_v55  ;;  %1973 = vmatmul.mubr.f32.gmra.mrb[18].mxu0 %v1817_v42  ;;  %v5897_v12 = vsel %vm1726_vm11, 1.0, %v11881_v61 }
 0x25e   : > { %v5800_v1 = vsel %vm1149_vm4, 1.0, %v11881_v61  ;;  %v5801_v3 = vsel %vm1150_vm5, 1.0, %v11881_v61 }
 0x25f   : > { %v1245_v37 = vadd.f32 %v5800_v1, %v1053_v50  ;;  %v1246_v13 = vadd.f32 %v5801_v3, %v1054_v20 }
 0x261   : > { %v1495_v40 = vpop.permute.xlu1 %1494  ;;  %v8633_v5 = vadd.f32 %v5832_v30, %v1245_v37  ;;  %v8635_v36 = vadd.f32 %v5833_v63, %v1246_v13 }
 0x262   : > { %vm1531_vm4 = vcmp.eq.s32.totalorder %v1495_v40, %v7786_v49  ;;  %vm1532_vm5 = vcmp.eq.s32.totalorder %v1495_v40, %v7797_v55 }
 0x263   : > { %v5862_v29 = vsel %vm1531_vm4, 1.0, %v11881_v61  ;;  %v5863_v21 = vsel %vm1532_vm5, 1.0, %v11881_v61 }
 0x264   : > { %v1627_v39 = vadd.f32 %v5862_v29, %v1435_v52  ;;  %v1628_v51 = vadd.f32 %v5863_v21, %v1436_v6 }
 0x266   : > { %v544_v38 = vpop.permute.xlu1 %543 }
 0x267   : > { %vm577_vm0 = vcmp.eq.s32.totalorder %v544_v38, %v7786_v49  ;;  %vm578_vm1 = vcmp.eq.s32.totalorder %v544_v38, %v7797_v55 }
 0x268   : > { %v5708_v23 = vsel %vm577_vm0, 1.0, %v11881_v61  ;;  %v5709_v26 = vsel %vm578_vm1, 1.0, %v11881_v61 }
 0x269   : > { %v8671_v10 = vadd.f32 %v5708_v23, %v5676_v48  ;;  %v8673_v34 = vadd.f32 %v5709_v26, %v5677_v43  ;;  %v11968_v48 = vlaneseq }
 0x26b   : > { %v925_v54 = vpop.permute.xlu1 %924  ;;  %v8726_v43 = vshrl.u32 %v11968_v48, 7 }
 0x26c   : > { %vm959_vm6 = vcmp.eq.s32.totalorder %v925_v54, %v7786_v49  ;;  %vm960_vm7 = vcmp.eq.s32.totalorder %v925_v54, %v7797_v55 }
 0x26d   : > { %v5770_v46 = vsel %vm959_vm6, 1.0, %v11881_v61  ;;  %v5771_v53 = vsel %vm960_vm7, 1.0, %v11881_v61  ;;  %vm2024_vm0 = vcmp.lt.s32.totalorder %v8726_v43, 1  ;;  %vm2111_vm1 = vcmp.lt.s32.totalorder %v8726_v43, 7 }
 0x26e   : > { %v1055_v2 = vadd.f32 %v5770_v46, %v863_v17  ;;  %v1056_v33 = vadd.f32 %v5771_v53, %v864_v45 }
 0x270   : > { %v1687_v8 = vpop.permute.xlu1 %1686  ;;  %v1247_v16 = vadd.f32 %v5802_v47, %v1055_v2  ;;  %v1248_v32 = vadd.f32 %v5803_v35, %v1056_v33 }
 0x271   : > { %vm1723_vm8 = vcmp.eq.s32.totalorder %v1687_v8, %v7786_v49  ;;  %vm1724_vm9 = vcmp.eq.s32.totalorder %v1687_v8, %v7797_v55 }
 0x272   : > { %v5894_v62 = vsel %vm1723_vm8, 1.0, %v11881_v61  ;;  %v5895_v57 = vsel %vm1724_vm9, 1.0, %v11881_v61 }
 0x273   : > { %v1819_v25 = vadd.f32 %v5894_v62, %v1627_v39  ;;  %v1820_v44 = vadd.f32 %v5895_v57, %v1628_v51  ;;  %v11969_v62 = vld [vmem:[#allocation22_spill] sm:$0xff]  ;;  %v931_v57 = vpop.permute.xlu0 %930 }
 0x274   : > { %vm579_vm4 = vcmp.eq.s32.totalorder %v11969_v62, %v7786_v49  ;;  %vm580_vm5 = vcmp.eq.s32.totalorder %v11969_v62, %v7797_v55  ;;  %vm964_vm15 = vcmp.eq.s32.totalorder %v931_v57, %v7797_v55 }
 0x275   : > { %v8703_v42 = vpop.permute.xlu1 %735  ;;  %1977 = vmatprep.mubr.f32.mxu0 %v1820_v44  ;;  %v5710_v44 = vsel %vm579_vm4, 1.0, %v11881_v61 }
 0x276   : > { %1978 = vmatmul.mubr.f32.gmra.mrb[20].mxu0 %v1819_v25  ;;  %vm769_vm9 = vcmp.eq.s32.totalorder %v8703_v42, %v7786_v49  ;;  %vm770_vm11 = vcmp.eq.s32.totalorder %v8703_v42, %v7797_v55 }
 0x277   : > { %v5741_v48 = vsel %vm770_vm11, 1.0, %v11881_v61 }
 0x27a   : > { %v1498_v9 = vpop.permute.xlu1 %1497 }
 0x27b   : > { %vm1533_vm12 = vcmp.eq.s32.totalorder %v1498_v9, %v7786_v49  ;;  %vm1534_vm13 = vcmp.eq.s32.totalorder %v1498_v9, %v7797_v55 }
 0x27c   : > { %v5864_v50 = vsel %vm1533_vm12, 1.0, %v11881_v61  ;;  %v5865_v20 = vsel %vm1534_vm13, 1.0, %v11881_v61 }
 0x27d   : > { %v1629_v1 = vadd.f32 %v5864_v50, %v8633_v5  ;;  %v1630_v3 = vadd.f32 %v5865_v20, %v8635_v36  ;;  %v5866_v36 = vsel %vm1535_vm14, 1.0, %v11881_v61  ;;  %v5711_v50 = vsel %vm580_vm5, 1.0, %v11881_v61  ;;  %v8807_v20 = vpop.permute.xlu0 %933 }
 0x27e   : > { %vm963_vm14 = vcmp.eq.s32.totalorder %v931_v57, %v7786_v49  ;;  %vm773_vm5 = vcmp.eq.s32.totalorder %v8584_v0, %v7786_v49 }
 0x27f   : > { %v8717_v37 = vpop.permute.xlu1 %386  ;;  %v1822_v41 = vadd.f32 %v5897_v12, %v1630_v3  ;;  %v1821_v13 = vadd.f32 %v5896_v31, %v1629_v1 }
 0x280   : > { %vm419_vm6 = vcmp.eq.s32.totalorder %v8717_v37, %v7786_v49  ;;  %vm420_vm10 = vcmp.eq.s32.totalorder %v8717_v37, %v7797_v55 }
 0x281   : > { %1982 = vmatprep.mubr.f32.mxu0 %v1822_v41 }
 0x282   : > { %1983 = vmatmul.mubr.f32.gmra.mrb[22].mxu0 %v1821_v13  ;;  %v5678_v13 = vsel %vm419_vm6, 1.0, %v11881_v61  ;;  %vm774_vm6 = vcmp.eq.s32.totalorder %v8584_v0, %v7797_v55 }
 0x283   : > { %v6104_v30 = vpop.f32.mrb[0].mxu0 }
 0x284   : > { %v8719_v63 = vpop.permute.xlu1 %927  ;;  %v6105_v40 = vpop.f32.mrb[1].mxu0 }
 0x285   : > { %v8723_v18 = vadd.f32 %v6105_v40, %v6104_v30  ;;  %v5740_v30 = vsel %vm769_vm9, 1.0, %v11881_v61  ;;  %v5679_v40 = vsel %vm420_vm10, 1.0, %v11881_v61 }
 0x287   : > { %v6107_v5 = vpop.f32.mrb[2].mxu0  ;;  %2328 = vmatprep.mubr.f32.mxu1 %v8723_v18  ;;  %v2008_v15 = vrot.slane %v8723_v18, 7  ;;  %v11883_v24 = vrot.slane %v8723_v18, 1 }
 0x288   : > { %v6108_v19 = vpop.f32.mrb[3].mxu0 }
 0x289   : > { %v8733_v22 = vadd.f32 %v6108_v19, %v6107_v5  ;;  %v1309_v38 = vpop.permute.xlu1 %1308  ;;  %v675_v19 = vadd.f32 %v5710_v44, %v5678_v13 }
 0x28a   : > { %vm1343_vm2 = vcmp.eq.s32.totalorder %v1309_v38, %v7786_v49  ;;  %vm1344_vm3 = vcmp.eq.s32.totalorder %v1309_v38, %v7797_v55 }
 0x28b   : > { %v2009_v4 = vrot.slane %v8733_v22, 7  ;;  %v2096_v23 = vrot.slane %v8733_v22, 1  ;;  %v5834_v26 = vsel %vm1343_vm2, 1.0, %v11881_v61  ;;  %v5835_v59 = vsel %vm1344_vm3, 1.0, %v11881_v61  ;;  %v6110_v58 = vpop.f32.mrb[4].mxu0 }
 0x28c   : > { %v1439_v56 = vadd.f32 %v5834_v26, %v1247_v16  ;;  %v1440_v28 = vadd.f32 %v5835_v59, %v1248_v32  ;;  %v6111_v54 = vpop.f32.mrb[5].mxu0  ;;  %vm961_vm2 = vcmp.eq.s32.totalorder %v8719_v63, %v7786_v49  ;;  %vm962_vm3 = vcmp.eq.s32.totalorder %v8719_v63, %v7797_v55  ;;  %v8854_v59 = vpop.permute.xlu0 %1125 }
 0x28d   : > { %v8745_v17 = vadd.f32 %v6111_v54, %v6110_v58  ;;  %v8751_v45 = vsel %vm2024_vm0, %v2008_v15, %v2009_v4  ;;  %v8757_v60 = vsel %vm2111_vm1, %v11883_v24, %v2096_v23  ;;  %v5772_v26 = vsel %vm961_vm2, 1.0, %v11881_v61  ;;  %v2231_v24 = vld [vmem:[#allocation5 + $0x258] sm:$0xff] }
 0x28e   : > { %v739_v14 = vpop.permute.xlu1 %738  ;;  %v1631_v27 = vadd.f32 %v5866_v36, %v1439_v56  ;;  %v1632_v11 = vadd.f32 %v5867_v7, %v1440_v28  ;;  %v865_v58 = vadd.f32 %v5740_v30, %v8671_v10  ;;  %v5773_v56 = vsel %vm962_vm3, 1.0, %v11881_v61 }
 0x28f   : > { %v2010_v46 = vrot.slane %v8745_v17, 7  ;;  %v2097_v53 = vrot.slane %v8745_v17, 1  ;;  %vm771_vm12 = vcmp.eq.s32.totalorder %v739_v14, %v7786_v49  ;;  %vm772_vm13 = vcmp.eq.s32.totalorder %v739_v14, %v7797_v55 }
 0x290   : > { %v6113_v29 = vpop.f32.mrb[6].mxu0  ;;  %v5742_v7 = vsel %vm771_vm12, 1.0, %v11881_v61  ;;  %v5743_v38 = vsel %vm772_vm13, 1.0, %v11881_v61 }
 0x291   : > { %v6114_v21 = vpop.f32.mrb[7].mxu0  ;;  %v8763_v2 = vsel %vm2024_vm0, %v2009_v4, %v2010_v46  ;;  %v8767_v33 = vsel %vm2111_vm1, %v2096_v23, %v2097_v53  ;;  %v676_v4 = vadd.f32 %v5711_v50, %v5679_v40  ;;  %v867_v28 = vadd.f32 %v5742_v7, %v675_v19 }
 0x292   : > { %v8769_v47 = vadd.f32 %v6114_v21, %v6113_v29 }
 0x293   : > { %v8771_v35 = vpop.permute.xlu1 %1119  ;;  %v868_v54 = vadd.f32 %v5743_v38, %v676_v4 }
 0x294   : > { %v2011_v52 = vrot.slane %v8769_v47, 7  ;;  %v2098_v6 = vrot.slane %v8769_v47, 1  ;;  %vm1153_vm4 = vcmp.eq.s32.totalorder %v8771_v35, %v7786_v49 }
 0x295   : > { %v5804_v10 = vsel %vm1153_vm4, 1.0, %v11881_v61 }
 0x296   : > { %v8777_v8 = vsel %vm2024_vm0, %v2010_v46, %v2011_v52  ;;  %v8781_v16 = vsel %vm2111_vm1, %v2097_v53, %v2098_v6  ;;  %v5775_v46 = vsel %vm964_vm15, 1.0, %v11881_v61  ;;  %v1057_v53 = vadd.f32 %v5772_v26, %v865_v58 }
 0x297   : > { %v1060_v62 = vadd.f32 %v5775_v46, %v868_v54 }
 0x298   : > { %v8783_v32 = vpop.permute.xlu1 %389  ;;  %v1249_v57 = vadd.f32 %v5804_v10, %v1057_v53 }
 0x299   : > { %vm421_vm2 = vcmp.eq.s32.totalorder %v8783_v32, %v7786_v49  ;;  %vm422_vm3 = vcmp.eq.s32.totalorder %v8783_v32, %v7797_v55 }
 0x29d   : > { %v8785_v39 = vpop.permute.xlu1 %549 }
 0x29e   : > { %vm581_vm4 = vcmp.eq.s32.totalorder %v8785_v39, %v7786_v49 }
 0x2a2   : > { %v8787_v51 = vpop.permute.xlu1 %1311 }
 0x2a3   : > { %vm1346_vm9 = vcmp.eq.s32.totalorder %v8787_v51, %v7797_v55 }
 0x2a7   : > { %v1693_v25 = vpop.permute.xlu1 %1692 }
 0x2a8   : > { %vm1727_vm7 = vcmp.eq.s32.totalorder %v1693_v25, %v7786_v49  ;;  %vm1728_vm8 = vcmp.eq.s32.totalorder %v1693_v25, %v7797_v55 }
 0x2a9   : > { %v5898_v9 = vsel %vm1727_vm7, 1.0, %v11881_v61  ;;  %v5899_v31 = vsel %vm1728_vm8, 1.0, %v11881_v61  ;;  %v6116_v12 = vpop.f32.mrb[8].mxu0  ;;  %vm1154_vm7 = vcmp.eq.s32.totalorder %v8771_v35, %v7797_v55  ;;  %vm1345_vm8 = vcmp.eq.s32.totalorder %v8787_v51, %v7786_v49 }
 0x2aa   : > { %v1823_v1 = vadd.f32 %v5898_v9, %v1631_v27  ;;  %v1824_v3 = vadd.f32 %v5899_v31, %v1632_v11  ;;  %v6117_v41 = vpop.f32.mrb[9].mxu0  ;;  %v866_v27 = vadd.f32 %v5741_v48, %v8673_v34  ;;  %v5774_v11 = vsel %vm963_vm14, 1.0, %v11881_v61 }
 0x2ab   : > { %v8812_v37 = vadd.f32 %v6117_v41, %v6116_v12  ;;  %v5805_v29 = vsel %vm1154_vm7, 1.0, %v11881_v61  ;;  %v8876_v34 = vsel %vm773_vm5, 1.0, %v11881_v61  ;;  %v8886_v35 = vsel %vm774_vm6, 1.0, %v11881_v61 }
 0x2ac   : > { %v8818_v42 = vpop.permute.xlu1 %1122  ;;  %1987 = vmatprep.mubr.f32.mxu0 %v1824_v3  ;;  %v1058_v21 = vadd.f32 %v5773_v56, %v866_v27  ;;  %v5836_v9 = vsel %vm1345_vm8, 1.0, %v11881_v61  ;;  %v5837_v12 = vsel %vm1346_vm9, 1.0, %v11881_v61  ;;  %vm582_vm5 = vcmp.eq.s32.totalorder %v8785_v39, %v7797_v55 }
 0x2ad   : > { %v2012_v5 = vrot.slane %v8812_v37, 7  ;;  %v2099_v36 = vrot.slane %v8812_v37, 1  ;;  %1988 = vmatmul.mubr.f32.gmra.mrb[24].mxu0 %v1823_v1  ;;  %vm1155_vm12 = vcmp.eq.s32.totalorder %v8818_v42, %v7786_v49  ;;  %vm1156_vm13 = vcmp.eq.s32.totalorder %v8818_v42, %v7797_v55 }
 0x2ae   : > { %v1250_v44 = vadd.f32 %v5805_v29, %v1058_v21  ;;  %v1441_v13 = vadd.f32 %v5836_v9, %v1249_v57  ;;  %v5806_v40 = vsel %vm1155_vm12, 1.0, %v11881_v61  ;;  %v5807_v42 = vsel %vm1156_vm13, 1.0, %v11881_v61 }
 0x2af   : > { %v8839_v23 = vsel %vm2024_vm0, %v2011_v52, %v2012_v5  ;;  %v8845_v63 = vsel %vm2111_vm1, %v2098_v6, %v2099_v36  ;;  %v8880_v52 = vpop.permute.xlu0 %1698  ;;  %v1059_v6 = vadd.f32 %v5774_v11, %v867_v28  ;;  %v5713_v26 = vsel %vm582_vm5, 1.0, %v11881_v61 }
 0x2b0   : > { %vm1731_vm14 = vcmp.eq.s32.totalorder %v8880_v52, %v7786_v49  ;;  %vm1732_vm15 = vcmp.eq.s32.totalorder %v8880_v52, %v7797_v55  ;;  %v1442_v30 = vadd.f32 %v5837_v12, %v1250_v44  ;;  %v5680_v27 = vsel %vm421_vm2, 1.0, %v11881_v61 }
 0x2b1   : > { %v1504_v14 = vpop.permute.xlu1 %1503  ;;  %v5681_v39 = vsel %vm422_vm3, 1.0, %v11881_v61  ;;  %v1251_v11 = vadd.f32 %v5806_v40, %v1059_v6  ;;  %v1252_v46 = vadd.f32 %v5807_v42, %v1060_v62  ;;  %v5902_v62 = vsel %vm1731_vm14, 1.0, %v11881_v61 }
 0x2b2   : > { %vm1537_vm10 = vcmp.eq.s32.totalorder %v1504_v14, %v7786_v49  ;;  %vm1538_vm11 = vcmp.eq.s32.totalorder %v1504_v14, %v7797_v55  ;;  %v678_v53 = vadd.f32 %v5713_v26, %v5681_v39  ;;  %vm1157_vm14 = vcmp.eq.s32.totalorder %v8854_v59, %v7786_v49 }
 0x2b3   : > { %v5868_v50 = vsel %vm1537_vm10, 1.0, %v11881_v61  ;;  %v5869_v1 = vsel %vm1538_vm11, 1.0, %v11881_v61  ;;  %vm965_vm10 = vcmp.eq.s32.totalorder %v8807_v20, %v7786_v49  ;;  %vm966_vm11 = vcmp.eq.s32.totalorder %v8807_v20, %v7797_v55 }
 0x2b4   : > { %v1633_v38 = vadd.f32 %v5868_v50, %v1441_v13  ;;  %v1634_v4 = vadd.f32 %v5869_v1, %v1442_v30  ;;  %v5776_v12 = vsel %vm965_vm10, 1.0, %v11881_v61  ;;  %v5777_v50 = vsel %vm966_vm11, 1.0, %v11881_v61 }
 0x2b5   : > { %v6119_v25 = vpop.f32.mrb[10].mxu0  ;;  %v5808_v20 = vsel %vm1157_vm14, 1.0, %v11881_v61  ;;  %vm5470_vm14 = vcmask 1043459  }
 0x2b6   : > { %v1315_v51 = vpop.permute.xlu1 %1314  ;;  %v6120_v31 = vpop.f32.mrb[11].mxu0 }
 0x2b7   : > { %v8896_v0 = vadd.f32 %v6120_v31, %v6119_v25  ;;  %vm1347_vm6 = vcmp.eq.s32.totalorder %v1315_v51, %v7786_v49  ;;  %vm1348_vm7 = vcmp.eq.s32.totalorder %v1315_v51, %v7797_v55  ;;  %v5903_v25 = vsel %vm1732_vm15, 1.0, %v11881_v61 }
 0x2b8   : > { %v5838_v56 = vsel %vm1347_vm6, 1.0, %v11881_v61  ;;  %v5839_v28 = vsel %vm1348_vm7, 1.0, %v11881_v61  ;;  %v870_v31 = vadd.f32 %v8886_v35, %v678_v53  ;;  %vm1158_vm15 = vcmp.eq.s32.totalorder %v8854_v59, %v7797_v55 }
 0x2b9   : > { %v2013_v3 = vrot.slane %v8896_v0, 7  ;;  %v2100_v41 = vrot.slane %v8896_v0, 1  ;;  %v1443_v21 = vadd.f32 %v5838_v56, %v1251_v11  ;;  %v1444_v57 = vadd.f32 %v5839_v28, %v1252_v46  ;;  %v2157_v11 = vld [vmem:[#allocation5 + $0x8] sm:$0xff]  ;;  %v2159_v46 = vld [vmem:[#allocation5 + $0x18] sm:$0xff] }
 0x2ba   : > { %v1062_v35 = vadd.f32 %v5777_v50, %v870_v31  ;;  %v5809_v30 = vsel %vm1158_vm15, 1.0, %v11881_v61  ;;  %v6184_v53 = vpack.c.bf16 %v2159_v46, %v2157_v11  ;;  %v2166_v31 = vld [vmem:[#allocation5 + $0x50] sm:$0xff]  ;;  %v2171_v50 = vld [vmem:[#allocation5 + $0x78] sm:$0xff]  ;;  %v2177_v11 = vld [vmem:[#allocation5 + $0xa8] sm:$0xff]  ;;  %vm5472_vm15 = vcmask 1044484  }
 0x2bb   : > { %v1696_v48 = vpop.permute.xlu1 %1695  ;;  %v8924_v19 = vsel %vm2024_vm0, %v2012_v5, %v2013_v3  ;;  %v8932_v7 = vsel %vm2111_vm1, %v2099_v36, %v2100_v41  ;;  %v5712_v5 = vsel %vm581_vm4, 1.0, %v11881_v61  ;;  %v2179_v46 = vld [vmem:[#allocation5 + $0xb8] sm:$0xff] }
 0x2bc   : > { %vm1729_vm8 = vcmp.eq.s32.totalorder %v1696_v48, %v7786_v49  ;;  %vm1730_vm9 = vcmp.eq.s32.totalorder %v1696_v48, %v7797_v55  ;;  %v677_v10 = vadd.f32 %v5712_v5, %v5680_v27  ;;  %6185 = vmatprep.subr.bf16.mxu1 %v6184_v53  ;;  %v2176_v53 = vld [vmem:[#allocation5 + $0xa0] sm:$0xff] }
 0x2bd   : > { %v5900_v58 = vsel %vm1729_vm8, 1.0, %v11881_v61  ;;  %v5901_v36 = vsel %vm1730_vm9, 1.0, %v11881_v61 }
 0x2be   : > { %v1825_v54 = vadd.f32 %v5900_v58, %v1633_v38  ;;  %v1826_v14 = vadd.f32 %v5901_v36, %v1634_v4  ;;  %v869_v51 = vadd.f32 %v8876_v34, %v677_v10  ;;  %v1254_v38 = vadd.f32 %v5809_v30, %v1062_v35  ;;  %v2156_v10 = vld [vmem:[#allocation5] sm:$0xff]  ;;  %v2170_v30 = vld [vmem:[#allocation5 + $0x70] sm:$0xff] }
 0x2c0   : > { %v1507_v29 = vpop.permute.xlu1 %1506  ;;  %1992 = vmatprep.mubr.f32.mxu0 %v1826_v14  ;;  %v1061_v34 = vadd.f32 %v5776_v12, %v869_v51  ;;  %v2164_v51 = vld [vmem:[#allocation5 + $0x40] sm:$0xff]  ;;  %v2169_v12 = vld [vmem:[#allocation5 + $0x68] sm:$0xff] }
 0x2c1   : > { %vm1539_vm12 = vcmp.eq.s32.totalorder %v1507_v29, %v7786_v49  ;;  %vm1540_vm13 = vcmp.eq.s32.totalorder %v1507_v29, %v7797_v55  ;;  %1993 = vmatmul.mubr.f32.gmra.mrb[26].mxu0 %v1825_v54  ;;  %v2158_v29 = vld [vmem:[#allocation5 + $0x10] sm:$0xff]  ;;  %v6196_v35 = vpack.c.bf16 %v2171_v50, %v2169_v12  ;;  %v2184_v50 = vld [vmem:[#allocation5 + $0xe0] sm:$0xff] }
 0x2c2   : > { %v5870_v32 = vsel %vm1539_vm12, 1.0, %v11881_v61  ;;  %v5871_v6 = vsel %vm1540_vm13, 1.0, %v11881_v61  ;;  %v1253_v59 = vadd.f32 %v5808_v20, %v1061_v34  ;;  %v2168_v20 = vld [vmem:[#allocation5 + $0x60] sm:$0xff]  ;;  %vm5466_vm12 = vcmask 1041409  }
 0x2c3   : > { %v1635_v44 = vadd.f32 %v5870_v32, %v1443_v21  ;;  %v1636_v9 = vadd.f32 %v5871_v6, %v1444_v57  ;;  %v2161_v21 = vld [vmem:[#allocation5 + $0x28] sm:$0xff]  ;;  %v2163_v57 = vld [vmem:[#allocation5 + $0x38] sm:$0xff]  ;;  %v6186_v32 = vpack.c.bf16 %v2158_v29, %v2156_v10  ;;  %v6204_v10 = vpack.c.bf16 %v2179_v46, %v2177_v11  ;;  %v2178_v29 = vld [vmem:[#allocation5 + $0xb0] sm:$0xff] }
 0x2c4   : > { %v6188_v6 = vpack.c.bf16 %v2163_v57, %v2161_v21  ;;  %v6206_v21 = vpack.c.bf16 %v2178_v29, %v2176_v53  ;;  %v2181_v57 = vld [vmem:[#allocation5 + $0xc8] sm:$0xff]  ;;  %v2199_v46 = vld [vmem:[#allocation5 + $0x158] sm:$0xff]  ;;  %v2196_v53 = vld [vmem:[#allocation5 + $0x140] sm:$0xff]  ;;  %vm5468_vm13 = vcmask 1042434  }
 0x2c5   : > { %v1827_v1 = vadd.f32 %v5902_v62, %v1635_v44  ;;  %v1828_v13 = vadd.f32 %v5903_v25, %v1636_v9  ;;  %v1318_v52 = vpop.permute.xlu1 %1317  ;;  %v2162_v62 = vld [vmem:[#allocation5 + $0x30] sm:$0xff]  ;;  %v2167_v25 = vld [vmem:[#allocation5 + $0x58] sm:$0xff]  ;;  %6187 = vmatpush1.bf16.msra.mxu1 %v6186_v32 }
 0x2c6   : > { %vm1349_vm2 = vcmp.eq.s32.totalorder %v1318_v52, %v7786_v49  ;;  %vm1350_vm3 = vcmp.eq.s32.totalorder %v1318_v52, %v7797_v55  ;;  %6189 = vmatprep.subr.bf16.mxu1 %v6188_v6  ;;  %v6194_v52 = vpack.c.bf16 %v2166_v31, %v2164_v51  ;;  %v2183_v32 = vld [vmem:[#allocation5 + $0xd8] sm:$0xff]  ;;  %v2180_v6 = vld [vmem:[#allocation5 + $0xc0] sm:$0xff]  ;;  %v2198_v29 = vld [vmem:[#allocation5 + $0x150] sm:$0xff] }
 0x2c7   : > { %1997 = vmatprep.mubr.f32.mxu0 %v1828_v13  ;;  %v5840_v42 = vsel %vm1349_vm2, 1.0, %v11881_v61  ;;  %v5841_v48 = vsel %vm1350_vm3, 1.0, %v11881_v61  ;;  %vm5474_vm2 = vcmask 1045509  }
 0x2c8   : > { %1998 = vmatmul.mubr.f32.gmra.mrb[28].mxu0 %v1827_v1  ;;  %v1445_v26 = vadd.f32 %v5840_v42, %v1253_v59  ;;  %v1446_v58 = vadd.f32 %v5841_v48, %v1254_v38  ;;  %v2175_v42 = vld [vmem:[#allocation5 + $0x98] sm:$0xff]  ;;  %v6198_v38 = vpack.c.bf16 %v2170_v30, %v2168_v20 }
 0x2ca   : > { %v1510_v40 = vpop.permute.xlu1 %1509 }
 0x2cb   : > { %vm1541_vm4 = vcmp.eq.s32.totalorder %v1510_v40, %v7786_v49  ;;  %vm1542_vm5 = vcmp.eq.s32.totalorder %v1510_v40, %v7797_v55  ;;  %v2173_v40 = vld [vmem:[#allocation5 + $0x88] sm:$0xff] }
 0x2cc   : > { %v5872_v4 = vsel %vm1541_vm4, 1.0, %v11881_v61  ;;  %v5873_v5 = vsel %vm1542_vm5, 1.0, %v11881_v61 }
 0x2cd   : > { %v1637_v56 = vadd.f32 %v5872_v4, %v1445_v26  ;;  %v1638_v28 = vadd.f32 %v5873_v5, %v1446_v58  ;;  %v6200_v4 = vpack.c.bf16 %v2175_v42, %v2173_v40  ;;  %v2172_v5 = vld [vmem:[#allocation5 + $0x80] sm:$0xff]  ;;  %v2174_v26 = vld [vmem:[#allocation5 + $0x90] sm:$0xff] }
 0x2ce   : > { %v2188_v42 = vld [vmem:[#allocation5 + $0x100] sm:$0xff] }
 0x2cf   : > { %v1702_v36 = vpop.permute.xlu1 %1701 }
 0x2d0   : > { %vm1733_vm6 = vcmp.eq.s32.totalorder %v1702_v36, %v7786_v49  ;;  %vm1734_vm7 = vcmp.eq.s32.totalorder %v1702_v36, %v7797_v55  ;;  %v2160_v49 = vld [vmem:[#allocation5 + $0x20] sm:$0xff]  ;;  %v2165_v55 = vld [vmem:[#allocation5 + $0x48] sm:$0xff] }
 0x2d1   : > { %v5904_v54 = vsel %vm1733_vm6, 1.0, %v11881_v61  ;;  %v5905_v14 = vsel %vm1734_vm7, 1.0, %v11881_v61  ;;  %v6190_v44 = vpack.c.bf16 %v2162_v62, %v2160_v49  ;;  %v6192_v9 = vpack.c.bf16 %v2167_v25, %v2165_v55  ;;  %v2182_v55 = vld [vmem:[#allocation5 + $0xd0] sm:$0xff]  ;;  %v2185_v25 = vld [vmem:[#allocation5 + $0xe8] sm:$0xff] }
 0x2d2   : > { %v1829_v27 = vadd.f32 %v5904_v54, %v1637_v56  ;;  %v1830_v39 = vadd.f32 %v5905_v14, %v1638_v28  ;;  %v6202_v56 = vpack.c.bf16 %v2174_v26, %v2172_v5  ;;  %v6208_v62 = vpack.c.bf16 %v2183_v32, %v2181_v57  ;;  %v2195_v5 = vld [vmem:[#allocation5 + $0x138] sm:$0xff]  ;;  %v2226_v61 = vld [vmem:[#allocation5 + $0x230] sm:$0xff] }
 0x2d3   : > { %6191 = vmatpush1.bf16.msra.mxu1 %v6190_v44  ;;  %v2187_v44 = vld [vmem:[#allocation5 + $0xf8] sm:$0xff]  ;;  %v6210_v51 = vpack.c.bf16 %v2182_v55, %v2180_v6  ;;  %v2200_v6 = vld [vmem:[#allocation5 + $0x160] sm:$0xff]  ;;  %v2205_v55 = vld [vmem:[#allocation5 + $0x188] sm:$0xff] }
 0x2d4   : > { %2002 = vmatprep.mubr.f32.mxu0 %v1830_v39  ;;  %6193 = vmatprep.subr.bf16.mxu1 %v6192_v9  ;;  %v6212_v12 = vpack.c.bf16 %v2187_v44, %v2185_v25  ;;  %v2203_v57 = vld [vmem:[#allocation5 + $0x178] sm:$0xff] }
 0x2d5   : > { %2003 = vmatmul.mubr.f32.gmra.mrb[30].mxu0 %v1829_v27  ;;  %v2207_v25 = vld [vmem:[#allocation5 + $0x198] sm:$0xff] }
 0x2d6   : > { %v6232_v44 = vpack.c.bf16 %v2207_v25, %v2205_v55 }
 0x2d7   : > { %6195 = vmatpush1.bf16.msra.mxu1 %v6194_v52  ;;  %v2191_v52 = vld [vmem:[#allocation5 + $0x118] sm:$0xff] }
 0x2d8   : > { %6197 = vmatprep.subr.bf16.mxu1 %v6196_v35 }
 0x2db   : > { %6199 = vmatpush1.bf16.msra.mxu1 %v6198_v38 }
 0x2dc   : > { %6201 = vmatprep.subr.bf16.mxu1 %v6200_v4  ;;  %v2193_v4 = vld [vmem:[#allocation5 + $0x128] sm:$0xff] }
 0x2df   : > { %6203 = vmatpush1.bf16.msra.mxu1 %v6202_v56  ;;  %v6220_v56 = vpack.c.bf16 %v2195_v5, %v2193_v4  ;;  %v2212_v5 = vld [vmem:[#allocation5 + $0x1c0] sm:$0xff] }
 0x2e0   : > { %v6122_v1 = vpop.f32.mrb[12].mxu0  ;;  %6205 = vmatprep.subr.bf16.mxu1 %v6204_v10 }
 0x2e1   : > { %v6123_v13 = vpop.f32.mrb[13].mxu0 }
 0x2e2   : > { %v9000_v34 = vadd.f32 %v6123_v13, %v6122_v1  ;;  %v2186_v1 = vld [vmem:[#allocation5 + $0xf0] sm:$0xff]  ;;  %v2189_v13 = vld [vmem:[#allocation5 + $0x108] sm:$0xff] }
 0x2e3   : > { %6207 = vmatpush1.bf16.msra.mxu1 %v6206_v21  ;;  %v6214_v30 = vpack.c.bf16 %v2186_v1, %v2184_v50  ;;  %v6216_v40 = vpack.c.bf16 %v2191_v52, %v2189_v13  ;;  %v6226_v21 = vpack.c.bf16 %v2198_v29, %v2196_v53  ;;  %v2211_v1 = vld [vmem:[#allocation5 + $0x1b8] sm:$0xff]  ;;  %v2208_v13 = vld [vmem:[#allocation5 + $0x1a0] sm:$0xff]  ;;  %v2210_v52 = vld [vmem:[#allocation5 + $0x1b0] sm:$0xff] }
 0x2e4   : > { %v2014_v48 = vrot.slane %v9000_v34, 7  ;;  %v2101_v59 = vrot.slane %v9000_v34, 1  ;;  %6209 = vmatprep.subr.bf16.mxu1 %v6208_v62  ;;  %v2221_v53 = vld [vmem:[#allocation5 + $0x208] sm:$0xff]  ;;  %v2223_v29 = vld [vmem:[#allocation5 + $0x218] sm:$0xff] }
 0x2e6   : > { %v9008_v58 = vsel %vm2024_vm0, %v2013_v3, %v2014_v48  ;;  %v9014_v36 = vsel %vm2111_vm1, %v2100_v41, %v2101_v59 }
 0x2e7   : > { %6211 = vmatpush1.bf16.msra.mxu1 %v6210_v51  ;;  %v2206_v51 = vld [vmem:[#allocation5 + $0x190] sm:$0xff] }
 0x2e8   : > { %6213 = vmatprep.subr.bf16.mxu1 %v6212_v12  ;;  %v2209_v12 = vld [vmem:[#allocation5 + $0x1a8] sm:$0xff] }
 0x2eb   : > { %6215 = vmatpush1.bf16.msra.mxu1 %v6214_v30  ;;  %v6236_v30 = vpack.c.bf16 %v2211_v1, %v2209_v12 }
 0x2ec   : > { %6217 = vmatprep.subr.bf16.mxu1 %v6216_v40  ;;  %v2213_v40 = vld [vmem:[#allocation5 + $0x1c8] sm:$0xff] }
 0x2f9   : > { %v6125_v28 = vpop.f32.mrb[14].mxu0 }
 0x2fa   : > { %v6126_v54 = vpop.f32.mrb[15].mxu0 }
 0x2fb   : > { %v9016_v14 = vadd.f32 %v6126_v54, %v6125_v28  ;;  %v2192_v28 = vld [vmem:[#allocation5 + $0x120] sm:$0xff]  ;;  %v2194_v54 = vld [vmem:[#allocation5 + $0x130] sm:$0xff] }
 0x2fc   : > { %v6222_v11 = vpack.c.bf16 %v2194_v54, %v2192_v28  ;;  %v2217_v28 = vld [vmem:[#allocation5 + $0x1e8] sm:$0xff]  ;;  %v2219_v54 = vld [vmem:[#allocation5 + $0x1f8] sm:$0xff] }
 0x2fd   : > { %v2015_v27 = vrot.slane %v9016_v14, 7  ;;  %v2102_v39 = vrot.slane %v9016_v14, 1 }
 0x2ff   : > { %v9022_v3 = vsel %vm2024_vm0, %v2014_v48, %v2015_v27  ;;  %v9026_v41 = vsel %vm2111_vm1, %v2101_v59, %v2102_v39  ;;  %v2190_v48 = vld [vmem:[#allocation5 + $0x110] sm:$0xff] }
 0x300   : > { %v6218_v26 = vpack.c.bf16 %v2190_v48, %v2188_v42  ;;  %v2215_v42 = vld [vmem:[#allocation5 + $0x1d8] sm:$0xff]  ;;  %v6238_v48 = vpack.c.bf16 %v2210_v52, %v2208_v13 }
 0x301   : > { %v6240_v4 = vpack.c.bf16 %v2215_v42, %v2213_v40 }
 0x302   : > { %6219 = vmatpush1.bf16.msra.mxu1 %v6218_v26  ;;  %v2214_v26 = vld [vmem:[#allocation5 + $0x1d0] sm:$0xff] }
 0x303   : > { %6221 = vmatprep.subr.bf16.mxu1 %v6220_v56  ;;  %v6242_v56 = vpack.c.bf16 %v2214_v26, %v2212_v5 }
 0x305   : > { %v6128_v49 = vpop.f32.mrb[16].mxu0 }
 0x306   : > { %v6129_v9 = vpop.f32.mrb[17].mxu0  ;;  %6223 = vmatpush1.bf16.msra.mxu1 %v6222_v11  ;;  %v6244_v11 = vpack.c.bf16 %v2219_v54, %v2217_v28 }
 0x307   : > { %v9028_v31 = vadd.f32 %v6129_v9, %v6128_v49  ;;  %v2202_v49 = vld [vmem:[#allocation5 + $0x170] sm:$0xff]  ;;  %v2204_v9 = vld [vmem:[#allocation5 + $0x180] sm:$0xff] }
 0x308   : > { %v6230_v62 = vpack.c.bf16 %v2202_v49, %v2200_v6  ;;  %v6234_v50 = vpack.c.bf16 %v2206_v51, %v2204_v9 }
 0x309   : > { %v2016_v35 = vrot.slane %v9028_v31, 7  ;;  %v2103_v20 = vrot.slane %v9028_v31, 1 }
 0x30b   : > { %v9036_v59 = vsel %vm2024_vm0, %v2015_v27, %v2016_v35  ;;  %v9042_v38 = vsel %vm2111_vm1, %v2102_v39, %v2103_v20  ;;  %v2197_v27 = vld [vmem:[#allocation5 + $0x148] sm:$0xff] }
 0x30c   : > { %v6224_v10 = vpack.c.bf16 %v2199_v46, %v2197_v27  ;;  %v2201_v39 = vld [vmem:[#allocation5 + $0x168] sm:$0xff]  ;;  %v2216_v27 = vld [vmem:[#allocation5 + $0x1e0] sm:$0xff]  ;;  %v2218_v46 = vld [vmem:[#allocation5 + $0x1f0] sm:$0xff] }
 0x30d   : > { %v6228_v32 = vpack.c.bf16 %v2203_v57, %v2201_v39 }
 0x30e   : > { %6225 = vmatprep.subr.bf16.mxu1 %v6224_v10  ;;  %v6246_v10 = vpack.c.bf16 %v2218_v46, %v2216_v27 }
 0x30f   : > { %6227 = vmatpush1.bf16.msra.mxu1 %v6226_v21  ;;  %v6248_v21 = vpack.c.bf16 %v2223_v29, %v2221_v53 }
 0x310   : > { %6229 = vmatprep.subr.bf16.mxu1 %v6228_v32 }
 0x313   : > { %6231 = vmatpush1.bf16.msra.mxu1 %v6230_v62 }
 0x314   : > { %6233 = vmatprep.subr.bf16.mxu1 %v6232_v44 }
 0x317   : > { %6235 = vmatpush1.bf16.msra.mxu1 %v6234_v50 }
 0x318   : > { %6237 = vmatprep.subr.bf16.mxu1 %v6236_v30 }
 0x31b   : > { %6239 = vmatpush1.bf16.msra.mxu1 %v6238_v48 }
 0x31c   : > { %6241 = vmatprep.subr.bf16.mxu1 %v6240_v4 }
 0x31f   : > { %6243 = vmatpush1.bf16.msra.mxu1 %v6242_v56 }
 0x320   : > { %6245 = vmatprep.subr.bf16.mxu1 %v6244_v11 }
 0x323   : > { %6247 = vmatpush1.bf16.msra.mxu1 %v6246_v10 }
 0x324   : > { %6249 = vmatprep.subr.bf16.mxu1 %v6248_v21 }
 0x330   : > { %v6131_v39 = vpop.f32.mrb[18].mxu0 }
 0x331   : > { %v6132_v57 = vpop.f32.mrb[19].mxu0 }
 0x332   : > { %v9044_v32 = vadd.f32 %v6132_v57, %v6131_v39 }
 0x334   : > { %v2017_v6 = vrot.slane %v9044_v32, 7  ;;  %v2104_v49 = vrot.slane %v9044_v32, 1 }
 0x336   : > { %v9052_v62 = vsel %vm2024_vm0, %v2016_v35, %v2017_v6  ;;  %v9058_v55 = vsel %vm2111_vm1, %v2103_v20, %v2104_v49 }
 0x349   : > { %v6134_v25 = vpop.f32.mrb[20].mxu0 }
 0x34a   : > { %v6135_v44 = vpop.f32.mrb[21].mxu0 }
 0x34b   : > { %v9060_v9 = vadd.f32 %v6135_v44, %v6134_v25 }
 0x34d   : > { %v2018_v51 = vrot.slane %v9060_v9, 7  ;;  %v2105_v12 = vrot.slane %v9060_v9, 1 }
 0x34f   : > { %v9066_v50 = vsel %vm2024_vm0, %v2017_v6, %v2018_v51  ;;  %v9070_v35 = vsel %vm2111_vm1, %v2104_v49, %v2105_v12 }
 0x355   : > { %v6137_v1 = vpop.f32.mrb[22].mxu0 }
 0x356   : > { %v6138_v13 = vpop.f32.mrb[23].mxu0 }
 0x357   : > { %v9072_v20 = vadd.f32 %v6138_v13, %v6137_v1  ;;  %v9124_v13 = vadd.s32 8, %v8726_v43 }
 0x359   : > { %v2019_v52 = vrot.slane %v9072_v20, 7  ;;  %v2106_v30 = vrot.slane %v9072_v20, 1  ;;  %vm2072_vm9 = vcmp.lt.s32.totalorder %v9124_v13, 12 }
 0x35b   : > { %v9078_v40 = vsel %vm2024_vm0, %v2018_v51, %v2019_v52  ;;  %v9082_v42 = vsel %vm2111_vm1, %v2105_v12, %v2106_v30  ;;  %v9121_v12 = vadd.s32 4294967295, %v8726_v43 }
 0x35d   : > { %11971 = vst [vmem:[#allocation19_spill] sm:$0xff] %v9121_v12  ;;  %vm2043_vm8 = vcmp.ge.s32.totalorder %v9121_v12, 0  ;;  %v3437_v12 = vld [vmem:[#allocation8 + $0x998] sm:$0xff] }
 0x380   : > { %v6140_v48 = vpop.f32.mrb[24].mxu0 }
 0x381   : > { %v6141_v4 = vpop.f32.mrb[25].mxu0 }
 0x382   : > { %v9084_v5 = vadd.f32 %v6141_v4, %v6140_v48  ;;  %v2222_v48 = vld [vmem:[#allocation5 + $0x210] sm:$0xff] }
 0x384   : > { %v2020_v26 = vrot.slane %v9084_v5, 7  ;;  %v2107_v56 = vrot.slane %v9084_v5, 1 }
 0x386   : > { %v9090_v28 = vsel %vm2024_vm0, %v2019_v52, %v2020_v26  ;;  %v9094_v54 = vsel %vm2111_vm1, %v2106_v30, %v2107_v56  ;;  %v2220_v30 = vld [vmem:[#allocation5 + $0x200] sm:$0xff] }
 0x394   : > { %v6143_v11 = vpop.f32.mrb[26].mxu0 }
 0x395   : > { %v6144_v27 = vpop.f32.mrb[27].mxu0 }
 0x396   : > { %v9096_v46 = vadd.f32 %v6144_v27, %v6143_v11 }
 0x398   : > { %v2021_v10 = vrot.slane %v9096_v46, 7  ;;  %v2108_v53 = vrot.slane %v9096_v46, 1 }
 0x39a   : > { %v9102_v29 = vsel %vm2024_vm0, %v2020_v26, %v2021_v10  ;;  %v9106_v21 = vsel %vm2111_vm1, %v2107_v56, %v2108_v53  ;;  %v2225_v26 = vld [vmem:[#allocation5 + $0x228] sm:$0xff]  ;;  %v2227_v56 = vld [vmem:[#allocation5 + $0x238] sm:$0xff] }
 0x39b   : > { %v6146_v39 = vpop.f32.mrb[28].mxu0 }
 0x39c   : > { %v6147_v57 = vpop.f32.mrb[29].mxu0 }
 0x39d   : > { %v9108_v6 = vadd.f32 %v6147_v57, %v6146_v39  ;;  %v6252_v39 = vpack.c.bf16 %v2227_v56, %v2225_v26  ;;  %v2224_v57 = vld [vmem:[#allocation5 + $0x220] sm:$0xff]  ;;  %v2230_v56 = vld [vmem:[#allocation5 + $0x250] sm:$0xff] }
 0x39f   : > { %v2022_v49 = vrot.slane %v9108_v6, 7  ;;  %v2109_v25 = vrot.slane %v9108_v6, 1 }
 0x3a1   : > { %v9114_v44 = vsel %vm2024_vm0, %v2021_v10, %v2022_v49  ;;  %v9118_v51 = vsel %vm2111_vm1, %v2108_v53, %v2109_v25  ;;  %v6250_v10 = vpack.c.bf16 %v2222_v48, %v2220_v30  ;;  %v9132_v53 = vadd.s32 4294967295, %v9124_v13 }
 0x3a2   : > { %11970 = vst [vmem:[#allocation21_spill] sm:$0xff] %v9118_v51  ;;  %v11973_v48 = vrot.slane %v8723_v18, 1  ;;  %v2233_v18 = vld [vmem:[#allocation5 + $0x268] sm:$0xff] }
 0x3a3   : > { %11972 = vst [vmem:[#allocation18_spill] sm:$0xff] %v9132_v53  ;;  %vm2046_vm10 = vcmp.lt.s32.totalorder %v9132_v53, 12  ;;  %v3441_v53 = vld [vmem:[#allocation8 + $0x9b8] sm:$0xff] }
 0x3a8   : > { %v6149_v1 = vpop.f32.mrb[30].mxu0 }
 0x3a9   : > { %v6150_v52 = vpop.f32.mrb[31].mxu0 }
 0x3aa   : > { %v9126_v4 = vadd.f32 %v6150_v52, %v6149_v1  ;;  %v2229_v52 = vld [vmem:[#allocation5 + $0x248] sm:$0xff] }
 0x3ac   : > { %v2023_v11 = vrot.slane %v9126_v4, 7  ;;  %v2110_v27 = vrot.slane %v9126_v4, 1 }
 0x3ae   : > { %v2040_v1 = vsel %vm2024_vm0, %v2023_v11, %v2008_v15  ;;  %v9141_v51 = vsel %vm2024_vm0, %v2022_v49, %v2023_v11  ;;  %v9145_v30 = vsel %vm2111_vm1, %v2109_v25, %v2110_v27  ;;  %v9151_v26 = vsel %vm2111_vm1, %v2110_v27, %v11973_v48  ;;  %v2228_v25 = vld [vmem:[#allocation5 + $0x240] sm:$0xff]  ;;  %v2235_v11 = vld [vmem:[#allocation5 + $0x278] sm:$0xff]  ;;  %v2237_v48 = vld [vmem:[#allocation5 + $0x288] sm:$0xff] }
 0x3af   : > { %5906 = vmatmul.mubr.msk.f32.vlgmr.msra.gmra.mrb[0].mxu1 %vm2043_vm8, %v2040_v1  ;;  %v6254_v15 = vpack.c.bf16 %v2226_v61, %v2224_v57  ;;  %v6256_v49 = vpack.c.bf16 %v2231_v24, %v2229_v52  ;;  %v6258_v27 = vpack.c.bf16 %v2230_v56, %v2228_v25  ;;  %v2234_v1 = vld [vmem:[#allocation5 + $0x270] sm:$0xff]  ;;  %v2239_v61 = vld [vmem:[#allocation5 + $0x298] sm:$0xff]  ;;  %v2241_v57 = vld [vmem:[#allocation5 + $0x2a8] sm:$0xff] }
 0x3b0   : > { %6251 = vmatpush1.bf16.msra.mxu1 %v6250_v10  ;;  %5907 = vmatprep.mubr.msk.f32.mxu1 %vm2072_vm9, %v8733_v22  ;;  %v6260_v10 = vpack.c.bf16 %v2235_v11, %v2233_v18  ;;  %v2232_v22 = vld [vmem:[#allocation5 + $0x260] sm:$0xff]  ;;  %v2243_v52 = vld [vmem:[#allocation5 + $0x2b8] sm:$0xff]  ;;  %v2245_v25 = vld [vmem:[#allocation5 + $0x2c8] sm:$0xff] }
 0x3b1   : > { %6253 = vmatprep.subr.bf16.mxu1 %v6252_v39  ;;  %v6262_v24 = vpack.c.bf16 %v2234_v1, %v2232_v22  ;;  %v2238_v39 = vld [vmem:[#allocation5 + $0x290] sm:$0xff]  ;;  %v2247_v56 = vld [vmem:[#allocation5 + $0x2d8] sm:$0xff]  ;;  %v2244_v18 = vld [vmem:[#allocation5 + $0x2c0] sm:$0xff] }
 0x3b2   : > { %v2246_v11 = vld [vmem:[#allocation5 + $0x2d0] sm:$0xff]  ;;  %v2248_v1 = vld [vmem:[#allocation5 + $0x2e0] sm:$0xff] }
 0x3b3   : > { %5908 = vmatmul.mubr.msk.f32.gmra.mrb[2].mxu1 %vm2046_vm10, %v8751_v45  ;;  %v2236_v45 = vld [vmem:[#allocation5 + $0x280] sm:$0xff] }
 0x3b4   : > { %2340 = vmatprep.mubr.f32.mxu1 %v8745_v17  ;;  %6255 = vmatpush1.bf16.msra.mxu1 %v6254_v15  ;;  %v6264_v17 = vpack.c.bf16 %v2239_v61, %v2237_v48  ;;  %v6268_v15 = vpack.c.bf16 %v2243_v52, %v2241_v57  ;;  %v3148_v61 = vld [vmem:[#allocation8 + $0x90] sm:$0xff]  ;;  %v3157_v57 = vld [vmem:[#allocation8 + $0xd8] sm:$0xff] }
 0x3b5   : > { %6257 = vmatprep.subr.bf16.mxu1 %v6256_v49  ;;  %v2240_v49 = vld [vmem:[#allocation5 + $0x2a0] sm:$0xff] }
 0x3b7   : > { %5909 = vmatmul.mubr.msk.f32.gmra.mrb[4].mxu1 %vm2043_vm8, %v8763_v2  ;;  %v6266_v2 = vpack.c.bf16 %v2238_v39, %v2236_v45  ;;  %v3155_v45 = vld [vmem:[#allocation8 + $0xc8] sm:$0xff] }
 0x3b8   : > { %5910 = vmatprep.mubr.msk.f32.mxu1 %vm2072_vm9, %v8769_v47  ;;  %6259 = vmatpush1.bf16.msra.mxu1 %v6258_v27  ;;  %v2242_v47 = vld [vmem:[#allocation5 + $0x2b0] sm:$0xff]  ;;  %v2249_v27 = vld [vmem:[#allocation5 + $0x2e8] sm:$0xff] }
 0x3b9   : > { %6261 = vmatprep.subr.bf16.mxu1 %v6260_v10  ;;  %v2251_v10 = vld [vmem:[#allocation5 + $0x2f8] sm:$0xff]  ;;  %v3159_v39 = vld [vmem:[#allocation8 + $0xe8] sm:$0xff] }
 0x3ba   : > { %v6276_v22 = vpack.c.bf16 %v2251_v10, %v2249_v27  ;;  %v6292_v52 = vpack.c.bf16 %v3159_v39, %v3155_v45  ;;  %v3165_v27 = vld [vmem:[#allocation8 + $0x118] sm:$0xff]  ;;  %v3195_v39 = vld [vmem:[#allocation8 + $0x208] sm:$0xff] }
 0x3bb   : > { %5911 = vmatmul.mubr.msk.f32.gmra.mrb[6].mxu1 %vm2046_vm10, %v8777_v8  ;;  %v6270_v8 = vpack.c.bf16 %v2242_v47, %v2240_v49  ;;  %v3161_v49 = vld [vmem:[#allocation8 + $0xf8] sm:$0xff] }
 0x3bc   : > { %2352 = vmatprep.mubr.f32.mxu1 %v8812_v37  ;;  %6263 = vmatpush1.bf16.msra.mxu1 %v6262_v24  ;;  %v6272_v37 = vpack.c.bf16 %v2247_v56, %v2245_v25  ;;  %v3152_v24 = vld [vmem:[#allocation8 + $0xb0] sm:$0xff]  ;;  %v6484_v25 = vpack.c.bf16 %v3161_v49, %v3157_v57  ;;  %v3199_v57 = vld [vmem:[#allocation8 + $0x228] sm:$0xff]  ;;  %v3198_v49 = vld [vmem:[#allocation8 + $0x220] sm:$0xff] }
 0x3bd   : > { %6265 = vmatprep.subr.bf16.mxu1 %v6264_v17  ;;  %v6482_v17 = vpack.c.bf16 %v3152_v24, %v3148_v61  ;;  %v3156_v56 = vld [vmem:[#allocation8 + $0xd0] sm:$0xff] }
 0x3be   : > { %v3188_v24 = vld [vmem:[#allocation8 + $0x1d0] sm:$0xff] }
 0x3bf   : > { %5912 = vmatmul.mubr.msk.f32.gmra.mrb[8].mxu1 %vm2043_vm8, %v8839_v23  ;;  %v6274_v23 = vpack.c.bf16 %v2246_v11, %v2244_v18  ;;  %v3163_v18 = vld [vmem:[#allocation8 + $0x108] sm:$0xff] }
 0x3c0   : > { %5913 = vmatprep.mubr.msk.f32.mxu1 %vm2072_vm9, %v8896_v0  ;;  %6267 = vmatpush1.bf16.msra.mxu1 %v6266_v2  ;;  %v2250_v0 = vld [vmem:[#allocation5 + $0x2f0] sm:$0xff]  ;;  %v3154_v2 = vld [vmem:[#allocation8 + $0xc0] sm:$0xff] }
 0x3c1   : > { %6269 = vmatprep.subr.bf16.mxu1 %v6268_v15  ;;  %v6278_v48 = vpack.c.bf16 %v2250_v0, %v2248_v1  ;;  %v3158_v15 = vld [vmem:[#allocation8 + $0xe0] sm:$0xff]  ;;  %v3167_v11 = vld [vmem:[#allocation8 + $0x128] sm:$0xff]  ;;  %v3169_v1 = vld [vmem:[#allocation8 + $0x138] sm:$0xff] }
 0x3c2   : > { %v6294_v47 = vpack.c.bf16 %v3158_v15, %v3154_v2  ;;  %v6296_v10 = vpack.c.bf16 %v3167_v11, %v3163_v18  ;;  %v6312_v2 = vpack.c.bf16 %v3199_v57, %v3195_v39  ;;  %v3194_v15 = vld [vmem:[#allocation8 + $0x200] sm:$0xff]  ;;  %v3203_v11 = vld [vmem:[#allocation8 + $0x248] sm:$0xff] }
 0x3c3   : > { %5914 = vmatmul.mubr.msk.f32.gmra.mrb[10].mxu1 %vm2046_vm10, %v8924_v19  ;;  %v11974_v19 = vmov 0.0   ;;  %v3235_v57 = vld [vmem:[#allocation8 + $0x348] sm:$0xff] }
 0x3c4   : > { %2364 = vmatprep.mubr.f32.mxu1 %v9000_v34  ;;  %6271 = vmatpush1.bf16.msra.mxu1 %v6270_v8  ;;  %v9234_v34 = vadd.s32 1, %v9124_v13  ;;  %v3160_v8 = vld [vmem:[#allocation8 + $0xf0] sm:$0xff] }
 0x3c5   : > { %6273 = vmatprep.subr.bf16.mxu1 %v6272_v37  ;;  %v6486_v37 = vpack.c.bf16 %v3160_v8, %v3156_v56  ;;  %v3196_v8 = vld [vmem:[#allocation8 + $0x210] sm:$0xff] }
 0x3c6   : > { %vm2133_vm11 = vcmp.lt.s32.totalorder %v9234_v34, 12 }
 0x3c7   : > { %5915 = vmatmul.mubr.msk.f32.gmra.mrb[12].mxu1 %vm2043_vm8, %v9008_v58  ;;  %v3130_v58 = vld [vmem:[#allocation8] sm:$0xff] }
 0x3c8   : > { %5916 = vmatprep.mubr.msk.f32.mxu1 %vm2072_vm9, %v9016_v14  ;;  %6275 = vmatpush1.bf16.msra.mxu1 %v6274_v23  ;;  %v3137_v14 = vld [vmem:[#allocation8 + $0x38] sm:$0xff]  ;;  %v3162_v23 = vld [vmem:[#allocation8 + $0x100] sm:$0xff] }
 0x3c9   : > { %6277 = vmatprep.subr.bf16.mxu1 %v6276_v22  ;;  %v3166_v22 = vld [vmem:[#allocation8 + $0x120] sm:$0xff] }
 0x3ca   : > { %v6298_v0 = vpack.c.bf16 %v3166_v22, %v3162_v23  ;;  %v3202_v22 = vld [vmem:[#allocation8 + $0x240] sm:$0xff] }
 0x3cb   : > { %5917 = vmatmul.mubr.msk.f32.gmra.mrb[14].mxu1 %vm2046_vm10, %v9022_v3 }
 0x3cc   : > { %2376 = vmatprep.mubr.f32.mxu1 %v9028_v31  ;;  %6279 = vmatpush1.bf16.msra.mxu1 %v6278_v48  ;;  %v3132_v31 = vld [vmem:[#allocation8 + $0x10] sm:$0xff]  ;;  %v6488_v48 = vpack.c.bf16 %v3169_v1, %v3165_v27  ;;  %v3207_v27 = vld [vmem:[#allocation8 + $0x268] sm:$0xff]  ;;  %v3206_v1 = vld [vmem:[#allocation8 + $0x260] sm:$0xff] }
 0x3cd   : > { %v6316_v23 = vpack.c.bf16 %v3207_v27, %v3203_v11  ;;  %v3243_v27 = vld [vmem:[#allocation8 + $0x388] sm:$0xff] }
 0x3cf   : > { %5918 = vmatmul.mubr.msk.f32.gmra.mrb[16].mxu1 %vm2043_vm8, %v9036_v59  ;;  %v3136_v59 = vld [vmem:[#allocation8 + $0x30] sm:$0xff] }
 0x3d0   : > { %5919 = vmatprep.mubr.msk.f32.mxu1 %vm2072_vm9, %v9044_v32  ;;  %v3139_v32 = vld [vmem:[#allocation8 + $0x48] sm:$0xff] }
 0x3d3   : > { %5920 = vmatmul.mubr.msk.f32.gmra.mrb[18].mxu1 %vm2046_vm10, %v9052_v62  ;;  %v3143_v62 = vld [vmem:[#allocation8 + $0x68] sm:$0xff] }
 0x3d4   : > { %2388 = vmatprep.mubr.f32.mxu1 %v9060_v9  ;;  %v6284_v9 = vpack.c.bf16 %v3143_v62, %v3139_v32  ;;  %v3179_v62 = vld [vmem:[#allocation8 + $0x188] sm:$0xff] }
 0x3d7   : > { %5921 = vmatmul.mubr.msk.f32.gmra.mrb[20].mxu1 %vm2043_vm8, %v9066_v50  ;;  %v3138_v50 = vld [vmem:[#allocation8 + $0x40] sm:$0xff] }
 0x3d8   : > { %5922 = vmatprep.mubr.msk.f32.mxu1 %vm2072_vm9, %v9072_v20  ;;  %v3145_v20 = vld [vmem:[#allocation8 + $0x78] sm:$0xff] }
 0x3db   : > { %5923 = vmatmul.mubr.msk.f32.gmra.mrb[22].mxu1 %vm2046_vm10, %v9078_v40 }
 0x3dc   : > { %2400 = vmatprep.mubr.f32.mxu1 %v9084_v5  ;;  %v3140_v5 = vld [vmem:[#allocation8 + $0x50] sm:$0xff] }
 0x3df   : > { %5924 = vmatmul.mubr.msk.f32.gmra.mrb[24].mxu1 %vm2043_vm8, %v9090_v28  ;;  %v3144_v28 = vld [vmem:[#allocation8 + $0x70] sm:$0xff] }
 0x3e0   : > { %5925 = vmatprep.mubr.msk.f32.mxu1 %vm2072_vm9, %v9096_v46  ;;  %v3147_v46 = vld [vmem:[#allocation8 + $0x88] sm:$0xff] }
 0x3e3   : > { %5926 = vmatmul.mubr.msk.f32.gmra.mrb[26].mxu1 %vm2046_vm10, %v9102_v29  ;;  %v3151_v29 = vld [vmem:[#allocation8 + $0xa8] sm:$0xff] }
 0x3e4   : > { %2412 = vmatprep.mubr.f32.mxu1 %v9108_v6  ;;  %v6288_v6 = vpack.c.bf16 %v3151_v29, %v3147_v46  ;;  %v3187_v29 = vld [vmem:[#allocation8 + $0x1c8] sm:$0xff] }
 0x3e7   : > { %5927 = vmatmul.mubr.msk.f32.gmra.mrb[28].mxu1 %vm2043_vm8, %v9114_v44  ;;  %v3146_v44 = vld [vmem:[#allocation8 + $0x80] sm:$0xff] }
 0x3e8   : > { %5928 = vmatprep.mubr.msk.f32.mxu1 %vm2072_vm9, %v9126_v4  ;;  %v3153_v4 = vld [vmem:[#allocation8 + $0xb8] sm:$0xff] }
 0x3eb   : > { %5929 = vmatmul.mubr.msk.f32.gmra.mrb[30].mxu1 %vm2046_vm10, %v9141_v51  ;;  %v3150_v51 = vld [vmem:[#allocation8 + $0xa0] sm:$0xff] }
 0x3ec   : > { %2489 = vmatprep.mubr.f32.mxu1 %v11974_v19 }
 0x3ef   : > { %2490 = vmatmul.mubr.f32.vlgmr.msra.gmra.mrb[0].mxu1 %v8757_v60  ;;  %v11975_v60 = vld [vmem:[#allocation21_spill] sm:$0xff] }
 0x3f0   : > { %2495 = vmatprep.mubr.f32.mxu1 %v11974_v19 }
 0x3f3   : > { %5930 = vmatmul.mubr.msk.f32.gmra.mrb[2].mxu1 %vm2133_vm11, %v8767_v33  ;;  %v3131_v33 = vld [vmem:[#allocation8 + $0x8] sm:$0xff] }
 0x3f4   : > { %2501 = vmatprep.mubr.f32.mxu1 %v11974_v19 }
 0x3f7   : > { %2502 = vmatmul.mubr.f32.gmra.mrb[4].mxu1 %v8781_v16  ;;  %v3135_v16 = vld [vmem:[#allocation8 + $0x28] sm:$0xff] }
 0x3f8   : > { %2507 = vmatprep.mubr.f32.mxu1 %v11974_v19 }
 0x3fb   : > { %5931 = vmatmul.mubr.msk.f32.gmra.mrb[6].mxu1 %vm2133_vm11, %v8845_v63  ;;  %v3133_v63 = vld [vmem:[#allocation8 + $0x18] sm:$0xff] }
 0x3fc   : > { %2513 = vmatprep.mubr.f32.mxu1 %v11974_v19 }
 0x3ff   : > { %2514 = vmatmul.mubr.f32.gmra.mrb[8].mxu1 %v8932_v7  ;;  %v6280_v7 = vpack.c.bf16 %v3135_v16, %v3131_v33  ;;  %v3171_v16 = vld [vmem:[#allocation8 + $0x148] sm:$0xff] }
 0x400   : > { %2519 = vmatprep.mubr.f32.mxu1 %v11974_v19 }
 0x401   : > { %6281 = vmatprep.subr.bf16.mxu0 %v6280_v7  ;;  %v3173_v7 = vld [vmem:[#allocation8 + $0x158] sm:$0xff] }
 0x403   : > { %5932 = vmatmul.mubr.msk.f32.gmra.mrb[10].mxu1 %vm2133_vm11, %v9014_v36  ;;  %v3134_v36 = vld [vmem:[#allocation8 + $0x20] sm:$0xff] }
 0x404   : > { %2525 = vmatprep.mubr.f32.mxu1 %v11974_v19  ;;  %v6282_v3 = vpack.c.bf16 %v3134_v36, %v3130_v58  ;;  %v3170_v36 = vld [vmem:[#allocation8 + $0x140] sm:$0xff] }
 0x406   : > { %6283 = vmatpush1.bf16.msra.mxu0 %v6282_v3  ;;  %v3177_v3 = vld [vmem:[#allocation8 + $0x178] sm:$0xff] }
 0x407   : > { %2526 = vmatmul.mubr.f32.gmra.mrb[12].mxu1 %v9026_v41  ;;  %v6472_v41 = vpack.c.bf16 %v3137_v14, %v3133_v63  ;;  %6285 = vmatprep.subr.bf16.mxu0 %v6284_v9  ;;  %v3175_v63 = vld [vmem:[#allocation8 + $0x168] sm:$0xff]  ;;  %v3174_v14 = vld [vmem:[#allocation8 + $0x160] sm:$0xff]  ;;  %v3181_v9 = vld [vmem:[#allocation8 + $0x198] sm:$0xff] }
 0x408   : > { %2531 = vmatprep.mubr.f32.mxu1 %v11974_v19  ;;  %v6300_v58 = vpack.c.bf16 %v3175_v63, %v3171_v16  ;;  %v3211_v63 = vld [vmem:[#allocation8 + $0x288] sm:$0xff] }
 0x409   : > { %6473 = vmatprep.subr.bf16.mxu1 %v6472_v41  ;;  %v6302_v41 = vpack.c.bf16 %v3174_v14, %v3170_v36  ;;  %v3210_v14 = vld [vmem:[#allocation8 + $0x280] sm:$0xff] }
 0x40b   : > { %5933 = vmatmul.mubr.msk.f32.gmra.mrb[14].mxu1 %vm2133_vm11, %v9042_v38  ;;  %v6474_v38 = vpack.c.bf16 %v3136_v59, %v3132_v31  ;;  %v6492_v31 = vpack.c.bf16 %v3177_v3, %v3173_v7  ;;  %v3172_v59 = vld [vmem:[#allocation8 + $0x150] sm:$0xff]  ;;  %v3215_v7 = vld [vmem:[#allocation8 + $0x2a8] sm:$0xff]  ;;  %v3214_v3 = vld [vmem:[#allocation8 + $0x2a0] sm:$0xff] }
 0x40c   : > { %2537 = vmatprep.mubr.f32.mxu1 %v11974_v19  ;;  %v6320_v36 = vpack.c.bf16 %v3215_v7, %v3211_v63  ;;  %v3251_v7 = vld [vmem:[#allocation8 + $0x3c8] sm:$0xff] }
 0x40d   : > { %6475 = vmatpush1.bf16.msra.mxu1 %v6474_v38  ;;  %v3176_v38 = vld [vmem:[#allocation8 + $0x170] sm:$0xff] }
 0x40e   : > { %v6494_v32 = vpack.c.bf16 %v3176_v38, %v3172_v59  ;;  %v3212_v38 = vld [vmem:[#allocation8 + $0x290] sm:$0xff] }
 0x40f   : > { %2538 = vmatmul.mubr.f32.gmra.mrb[16].mxu1 %v9058_v55  ;;  %v3141_v55 = vld [vmem:[#allocation8 + $0x58] sm:$0xff] }
 0x410   : > { %2543 = vmatprep.mubr.f32.mxu1 %v11974_v19 }
 0x413   : > { %5934 = vmatmul.mubr.msk.f32.gmra.mrb[18].mxu1 %vm2133_vm11, %v9070_v35  ;;  %v3142_v35 = vld [vmem:[#allocation8 + $0x60] sm:$0xff] }
 0x414   : > { %2549 = vmatprep.mubr.f32.mxu1 %v11974_v19  ;;  %v6286_v40 = vpack.c.bf16 %v3142_v35, %v3138_v50  ;;  %v3178_v35 = vld [vmem:[#allocation8 + $0x180] sm:$0xff] }
 0x416   : > { %6287 = vmatpush1.bf16.msra.mxu0 %v6286_v40  ;;  %v3185_v40 = vld [vmem:[#allocation8 + $0x1b8] sm:$0xff] }
 0x417   : > { %2550 = vmatmul.mubr.f32.gmra.mrb[20].mxu1 %v9082_v42  ;;  %v6476_v42 = vpack.c.bf16 %v3145_v20, %v3141_v55  ;;  %6289 = vmatprep.subr.bf16.mxu0 %v6288_v6  ;;  %v3183_v55 = vld [vmem:[#allocation8 + $0x1a8] sm:$0xff]  ;;  %v3182_v20 = vld [vmem:[#allocation8 + $0x1a0] sm:$0xff]  ;;  %v3189_v6 = vld [vmem:[#allocation8 + $0x1d8] sm:$0xff] }
 0x418   : > { %2555 = vmatprep.mubr.f32.mxu1 %v11974_v19  ;;  %v6304_v50 = vpack.c.bf16 %v3183_v55, %v3179_v62  ;;  %v3219_v55 = vld [vmem:[#allocation8 + $0x2c8] sm:$0xff] }
 0x419   : > { %6477 = vmatprep.subr.bf16.mxu1 %v6476_v42  ;;  %v6306_v42 = vpack.c.bf16 %v3182_v20, %v3178_v35  ;;  %v3218_v20 = vld [vmem:[#allocation8 + $0x2c0] sm:$0xff] }
 0x41b   : > { %5935 = vmatmul.mubr.msk.f32.gmra.mrb[22].mxu1 %vm2133_vm11, %v9094_v54  ;;  %v6478_v54 = vpack.c.bf16 %v3144_v28, %v3140_v5  ;;  %v6496_v5 = vpack.c.bf16 %v3185_v40, %v3181_v9  ;;  %v3180_v28 = vld [vmem:[#allocation8 + $0x190] sm:$0xff]  ;;  %v3223_v9 = vld [vmem:[#allocation8 + $0x2e8] sm:$0xff]  ;;  %v3222_v40 = vld [vmem:[#allocation8 + $0x2e0] sm:$0xff] }
 0x41c   : > { %2561 = vmatprep.mubr.f32.mxu1 %v11974_v19  ;;  %v6324_v35 = vpack.c.bf16 %v3223_v9, %v3219_v55  ;;  %v3259_v9 = vld [vmem:[#allocation8 + $0x408] sm:$0xff] }
 0x41d   : > { %6479 = vmatpush1.bf16.msra.mxu1 %v6478_v54  ;;  %v3184_v54 = vld [vmem:[#allocation8 + $0x1b0] sm:$0xff] }
 0x41e   : > { %v6498_v46 = vpack.c.bf16 %v3184_v54, %v3180_v28  ;;  %v3220_v54 = vld [vmem:[#allocation8 + $0x2d0] sm:$0xff] }
 0x41f   : > { %2562 = vmatmul.mubr.f32.gmra.mrb[24].mxu1 %v9106_v21  ;;  %v3149_v21 = vld [vmem:[#allocation8 + $0x98] sm:$0xff] }
 0x420   : > { %2567 = vmatprep.mubr.f32.mxu1 %v11974_v19 }
 0x423   : > { %5936 = vmatmul.mubr.msk.f32.gmra.mrb[26].mxu1 %vm2133_vm11, %v11975_v60  ;;  %v3168_v60 = vld [vmem:[#allocation8 + $0x130] sm:$0xff] }
 0x424   : > { %2573 = vmatprep.mubr.f32.mxu1 %v11974_v19 }
 0x427   : > { %2574 = vmatmul.mubr.f32.gmra.mrb[28].mxu1 %v9145_v30  ;;  %v6290_v30 = vpack.c.bf16 %v3150_v51, %v3146_v44  ;;  %v3186_v51 = vld [vmem:[#allocation8 + $0x1c0] sm:$0xff] }
 0x428   : > { %2579 = vmatprep.mubr.f32.mxu1 %v11974_v19  ;;  %v3164_v19 = vld [vmem:[#allocation8 + $0x110] sm:$0xff] }
 0x429   : > { %6291 = vmatpush1.bf16.msra.mxu0 %v6290_v30  ;;  %v6490_v33 = vpack.c.bf16 %v3168_v60, %v3164_v19  ;;  %v3193_v30 = vld [vmem:[#allocation8 + $0x1f8] sm:$0xff]  ;;  %v3204_v60 = vld [vmem:[#allocation8 + $0x250] sm:$0xff] }
 0x42a   : > { %6293 = vmatprep.subr.bf16.mxu0 %v6292_v52  ;;  %v6500_v61 = vpack.c.bf16 %v3193_v30, %v3189_v6  ;;  %v3197_v52 = vld [vmem:[#allocation8 + $0x218] sm:$0xff]  ;;  %v3231_v6 = vld [vmem:[#allocation8 + $0x328] sm:$0xff]  ;;  %v3230_v30 = vld [vmem:[#allocation8 + $0x320] sm:$0xff] }
 0x42b   : > { %5937 = vmatmul.mubr.msk.f32.gmra.mrb[30].mxu1 %vm2133_vm11, %v9151_v26  ;;  %v6480_v26 = vpack.c.bf16 %v3153_v4, %v3149_v21  ;;  %v3191_v21 = vld [vmem:[#allocation8 + $0x1e8] sm:$0xff]  ;;  %v3190_v4 = vld [vmem:[#allocation8 + $0x1e0] sm:$0xff] }
 0x42c   : > { %v6308_v44 = vpack.c.bf16 %v3191_v21, %v3187_v29  ;;  %v3227_v21 = vld [vmem:[#allocation8 + $0x308] sm:$0xff] }
 0x42d   : > { %6481 = vmatprep.subr.bf16.mxu1 %v6480_v26  ;;  %6295 = vmatpush1.bf16.msra.mxu0 %v6294_v47  ;;  %v6310_v26 = vpack.c.bf16 %v3190_v4, %v3186_v51  ;;  %v3201_v47 = vld [vmem:[#allocation8 + $0x238] sm:$0xff]  ;;  %v6328_v51 = vpack.c.bf16 %v3231_v6, %v3227_v21  ;;  %v3226_v4 = vld [vmem:[#allocation8 + $0x300] sm:$0xff] }
 0x42e   : > { %6483 = vmatpush1.bf16.msra.mxu1 %v6482_v17  ;;  %6297 = vmatprep.subr.bf16.mxu0 %v6296_v10  ;;  %v3192_v17 = vld [vmem:[#allocation8 + $0x1f0] sm:$0xff]  ;;  %v6504_v56 = vpack.c.bf16 %v3201_v47, %v3197_v52  ;;  %v3205_v10 = vld [vmem:[#allocation8 + $0x258] sm:$0xff]  ;;  %v3239_v52 = vld [vmem:[#allocation8 + $0x368] sm:$0xff] }
 0x42f   : > { %6485 = vmatprep.subr.bf16.mxu1 %v6484_v25  ;;  %v6502_v45 = vpack.c.bf16 %v3192_v17, %v3188_v24  ;;  %v6314_v25 = vpack.c.bf16 %v3198_v49, %v3194_v15  ;;  %v3228_v17 = vld [vmem:[#allocation8 + $0x310] sm:$0xff]  ;;  %v6332_v15 = vpack.c.bf16 %v3239_v52, %v3235_v57  ;;  %v3234_v49 = vld [vmem:[#allocation8 + $0x340] sm:$0xff] }
 0x430   : > { %v3238_v47 = vld [vmem:[#allocation8 + $0x360] sm:$0xff] }
 0x431   : > { %6299 = vmatpush1.bf16.msra.mxu0 %v6298_v0  ;;  %v3209_v0 = vld [vmem:[#allocation8 + $0x278] sm:$0xff] }
 0x432   : > { %6487 = vmatpush1.bf16.msra.mxu1 %v6486_v37  ;;  %6301 = vmatprep.subr.bf16.mxu0 %v6300_v58  ;;  %v3200_v37 = vld [vmem:[#allocation8 + $0x230] sm:$0xff]  ;;  %v6508_v19 = vpack.c.bf16 %v3209_v0, %v3205_v10  ;;  %v3213_v58 = vld [vmem:[#allocation8 + $0x298] sm:$0xff]  ;;  %v3247_v10 = vld [vmem:[#allocation8 + $0x3a8] sm:$0xff] }
 0x433   : > { %6489 = vmatprep.subr.bf16.mxu1 %v6488_v48  ;;  %v6506_v18 = vpack.c.bf16 %v3200_v37, %v3196_v8  ;;  %v6318_v48 = vpack.c.bf16 %v3206_v1, %v3202_v22  ;;  %v3236_v37 = vld [vmem:[#allocation8 + $0x350] sm:$0xff]  ;;  %v6336_v22 = vpack.c.bf16 %v3247_v10, %v3243_v27  ;;  %v3242_v1 = vld [vmem:[#allocation8 + $0x380] sm:$0xff] }
 0x434   : > { %v3246_v0 = vld [vmem:[#allocation8 + $0x3a0] sm:$0xff] }
 0x435   : > { %6303 = vmatpush1.bf16.msra.mxu0 %v6302_v41  ;;  %v3217_v41 = vld [vmem:[#allocation8 + $0x2b8] sm:$0xff] }
 0x436   : > { %6491 = vmatpush1.bf16.msra.mxu1 %v6490_v33  ;;  %6305 = vmatprep.subr.bf16.mxu0 %v6304_v50  ;;  %v3208_v33 = vld [vmem:[#allocation8 + $0x270] sm:$0xff]  ;;  %v6512_v59 = vpack.c.bf16 %v3217_v41, %v3213_v58  ;;  %v3221_v50 = vld [vmem:[#allocation8 + $0x2d8] sm:$0xff]  ;;  %v3255_v58 = vld [vmem:[#allocation8 + $0x3e8] sm:$0xff] }
 0x437   : > { %6493 = vmatprep.subr.bf16.mxu1 %v6492_v31  ;;  %v6510_v16 = vpack.c.bf16 %v3208_v33, %v3204_v60  ;;  %v6322_v31 = vpack.c.bf16 %v3214_v3, %v3210_v14  ;;  %v3244_v33 = vld [vmem:[#allocation8 + $0x390] sm:$0xff]  ;;  %v6340_v14 = vpack.c.bf16 %v3255_v58, %v3251_v7  ;;  %v3254_v3 = vld [vmem:[#allocation8 + $0x3e0] sm:$0xff]  ;;  %v3253_v41 = vld [vmem:[#allocation8 + $0x3d8] sm:$0xff] }
 0x439   : > { %6307 = vmatpush1.bf16.msra.mxu0 %v6306_v42  ;;  %v3225_v42 = vld [vmem:[#allocation8 + $0x2f8] sm:$0xff] }
 0x43a   : > { %6495 = vmatpush1.bf16.msra.mxu1 %v6494_v32  ;;  %6309 = vmatprep.subr.bf16.mxu0 %v6308_v44  ;;  %v3216_v32 = vld [vmem:[#allocation8 + $0x2b0] sm:$0xff]  ;;  %v6516_v28 = vpack.c.bf16 %v3225_v42, %v3221_v50  ;;  %v3229_v44 = vld [vmem:[#allocation8 + $0x318] sm:$0xff]  ;;  %v3263_v50 = vld [vmem:[#allocation8 + $0x428] sm:$0xff] }
 0x43b   : > { %6497 = vmatprep.subr.bf16.mxu1 %v6496_v5  ;;  %v6514_v62 = vpack.c.bf16 %v3216_v32, %v3212_v38  ;;  %v6326_v5 = vpack.c.bf16 %v3222_v40, %v3218_v20  ;;  %v3252_v32 = vld [vmem:[#allocation8 + $0x3d0] sm:$0xff]  ;;  %v6344_v20 = vpack.c.bf16 %v3263_v50, %v3259_v9  ;;  %v3265_v40 = vld [vmem:[#allocation8 + $0x438] sm:$0xff] }
 0x43d   : > { %6311 = vmatpush1.bf16.msra.mxu0 %v6310_v26  ;;  %v3233_v26 = vld [vmem:[#allocation8 + $0x338] sm:$0xff] }
 0x43e   : > { %6499 = vmatpush1.bf16.msra.mxu1 %v6498_v46  ;;  %6313 = vmatprep.subr.bf16.mxu0 %v6312_v2  ;;  %v3224_v46 = vld [vmem:[#allocation8 + $0x2f0] sm:$0xff]  ;;  %v6520_v24 = vpack.c.bf16 %v3233_v26, %v3229_v44  ;;  %v3237_v2 = vld [vmem:[#allocation8 + $0x358] sm:$0xff] }
 0x43f   : > { %6501 = vmatprep.subr.bf16.mxu1 %v6500_v61  ;;  %v6518_v29 = vpack.c.bf16 %v3224_v46, %v3220_v54  ;;  %v6330_v61 = vpack.c.bf16 %v3230_v30, %v3226_v4  ;;  %v11884_v54 = vsub.s32 1, %v8726_v43 }
 0x441   : > { %6315 = vmatpush1.bf16.msra.mxu0 %v6314_v25  ;;  %v3241_v25 = vld [vmem:[#allocation8 + $0x378] sm:$0xff] }
 0x442   : > { %6503 = vmatpush1.bf16.msra.mxu1 %v6502_v45  ;;  %6317 = vmatprep.subr.bf16.mxu0 %v6316_v23  ;;  %v3232_v45 = vld [vmem:[#allocation8 + $0x330] sm:$0xff]  ;;  %v6524_v8 = vpack.c.bf16 %v3241_v25, %v3237_v2  ;;  %v3245_v23 = vld [vmem:[#allocation8 + $0x398] sm:$0xff] }
 0x443   : > { %6505 = vmatprep.subr.bf16.mxu1 %v6504_v56  ;;  %v6522_v39 = vpack.c.bf16 %v3232_v45, %v3228_v17  ;;  %v6334_v56 = vpack.c.bf16 %v3238_v47, %v3234_v49 }
 0x445   : > { %6319 = vmatpush1.bf16.msra.mxu0 %v6318_v48  ;;  %v3249_v48 = vld [vmem:[#allocation8 + $0x3b8] sm:$0xff] }
 0x446   : > { %6507 = vmatpush1.bf16.msra.mxu1 %v6506_v18  ;;  %6321 = vmatprep.subr.bf16.mxu0 %v6320_v36  ;;  %v3240_v18 = vld [vmem:[#allocation8 + $0x370] sm:$0xff]  ;;  %v6528_v60 = vpack.c.bf16 %v3249_v48, %v3245_v23  ;;  %v3250_v36 = vld [vmem:[#allocation8 + $0x3c0] sm:$0xff] }
 0x447   : > { %6509 = vmatprep.subr.bf16.mxu1 %v6508_v19  ;;  %v6526_v11 = vpack.c.bf16 %v3240_v18, %v3236_v37  ;;  %v6338_v19 = vpack.c.bf16 %v3246_v0, %v3242_v1 }
 0x449   : > { %6323 = vmatpush1.bf16.msra.mxu0 %v6322_v31  ;;  %v3257_v31 = vld [vmem:[#allocation8 + $0x3f8] sm:$0xff] }
 0x44a   : > { %6511 = vmatpush1.bf16.msra.mxu1 %v6510_v16  ;;  %6325 = vmatprep.subr.bf16.mxu0 %v6324_v35  ;;  %v3248_v16 = vld [vmem:[#allocation8 + $0x3b0] sm:$0xff]  ;;  %v6532_v38 = vpack.c.bf16 %v3257_v31, %v3253_v41  ;;  %v3261_v35 = vld [vmem:[#allocation8 + $0x418] sm:$0xff] }
 0x44b   : > { %6513 = vmatprep.subr.bf16.mxu1 %v6512_v59  ;;  %v6530_v63 = vpack.c.bf16 %v3248_v16, %v3244_v33  ;;  %v6342_v59 = vpack.c.bf16 %v3254_v3, %v3250_v36  ;;  %v6536_v42 = vpack.c.bf16 %v3265_v40, %v3261_v35 }
 0x44d   : > { %6327 = vmatpush1.bf16.msra.mxu0 %v6326_v5  ;;  %v11885_v5 = vsub.s32 0, %v8726_v43 }
 0x44e   : > { %6515 = vmatpush1.bf16.msra.mxu1 %v6514_v62  ;;  %6329 = vmatprep.subr.bf16.mxu0 %v6328_v51  ;;  %v3256_v62 = vld [vmem:[#allocation8 + $0x3f0] sm:$0xff] }
 0x44f   : > { %6517 = vmatprep.subr.bf16.mxu1 %v6516_v28  ;;  %v6534_v55 = vpack.c.bf16 %v3256_v62, %v3252_v32  ;;  %v2252_v28 = vld [vmem:[#allocation7] sm:$0x3] }
 0x450   : > { %v9288_v46 = vrot.slane %v2252_v28, %v11885_v5 }
 0x451   : > { %6331 = vmatpush1.bf16.msra.mxu0 %v6330_v61 }
 0x452   : > { %6519 = vmatpush1.bf16.msra.mxu1 %v6518_v29  ;;  %6333 = vmatprep.subr.bf16.mxu0 %v6332_v15  ;;  %v9292_v29 = vrot.slane %v2252_v28, %v11884_v54 }
 0x453   : > { %6521 = vmatprep.subr.bf16.mxu1 %v6520_v24 }
 0x455   : > { %6335 = vmatpush1.bf16.msra.mxu0 %v6334_v56 }
 0x456   : > { %6523 = vmatpush1.bf16.msra.mxu1 %v6522_v39  ;;  %6337 = vmatprep.subr.bf16.mxu0 %v6336_v22 }
 0x457   : > { %6525 = vmatprep.subr.bf16.mxu1 %v6524_v8 }
 0x459   : > { %6339 = vmatpush1.bf16.msra.mxu0 %v6338_v19 }
 0x45a   : > { %6527 = vmatpush1.bf16.msra.mxu1 %v6526_v11  ;;  %6341 = vmatprep.subr.bf16.mxu0 %v6340_v14 }
 0x45b   : > { %6529 = vmatprep.subr.bf16.mxu1 %v6528_v60 }
 0x45d   : > { %6343 = vmatpush1.bf16.msra.mxu0 %v6342_v59 }
 0x45e   : > { %6531 = vmatpush1.bf16.msra.mxu1 %v6530_v63  ;;  %6345 = vmatprep.subr.bf16.mxu0 %v6344_v20 }
 0x45f   : > { %6533 = vmatprep.subr.bf16.mxu1 %v6532_v38 }
 0x462   : > { %6535 = vmatpush1.bf16.msra.mxu1 %v6534_v55 }
 0x463   : > { %6537 = vmatprep.subr.bf16.mxu1 %v6536_v42 }
 0x4c2   : > { %v2491_v21 = vpop.f32.mrb[0].mxu1 }
 0x4c3   : > { %v6696_v6 = vadd.f32 %v2491_v21, %v9288_v46  ;;  %v2493_v44 = vpop.f32.mrb[1].mxu1 }
 0x4c4   : > { %v6697_v51 = vadd.f32 %v2493_v44, %v9292_v29 }
 0x4c5   : > { %v9296_v4 = vmax.f32 %v6696_v6, 0.0 }
 0x4c6   : > { %v9298_v30 = vmax.f32 %v6697_v51, 0.0  ;;  %v2497_v26 = vpop.f32.mrb[2].mxu1 }
 0x4c7   : > { %v6698_v61 = vadd.f32 %v2497_v26, %v9288_v46  ;;  %v2499_v24 = vpop.f32.mrb[3].mxu1  ;;  %v2618_v39 = vrot.slane %v9296_v4, 7  ;;  %v2778_v57 = vrot.slane %v9296_v4, 1 }
 0x4c8   : > { %v6699_v17 = vadd.f32 %v2499_v24, %v9292_v29  ;;  %v2619_v52 = vrot.slane %v9298_v30, 7  ;;  %v11886_v49 = vrot.slane %v9298_v30, 1 }
 0x4c9   : > { %v2588_v45 = vmax.f32 %v6698_v61, 0.0 }
 0x4ca   : > { %v2589_v2 = vmax.f32 %v6699_v17, 0.0  ;;  %v2503_v15 = vpop.f32.mrb[4].mxu1 }
 0x4cb   : > { %v2620_v47 = vrot.slane %v2588_v45, 7  ;;  %v2780_v25 = vrot.slane %v2588_v45, 1  ;;  %v6700_v56 = vadd.f32 %v2503_v15, %v9288_v46  ;;  %v2505_v8 = vpop.f32.mrb[5].mxu1  ;;  %v2716_v37 = vsel %vm2072_vm9, %v2588_v45, -inf }
 0x4cc   : > { %v2621_v18 = vrot.slane %v2589_v2, 7  ;;  %v2781_v11 = vrot.slane %v2589_v2, 1  ;;  %v6701_v27 = vadd.f32 %v2505_v8, %v9292_v29  ;;  %v2717_v22 = vsel %vm2072_vm9, %v2589_v2, -inf }
 0x4cd   : > { %v2678_v10 = vsel %vm2024_vm0, %v2618_v39, %v2620_v47  ;;  %v9318_v23 = vsel %vm2111_vm1, %v2778_v57, %v2780_v25  ;;  %v2590_v1 = vmax.f32 %v6700_v56, 0.0 }
 0x4ce   : > { %v2684_v0 = vsel %vm2046_vm10, %v2678_v10, -inf  ;;  %v2679_v48 = vsel %vm2024_vm0, %v2619_v52, %v2621_v18  ;;  %v9332_v19 = vsel %vm2111_vm1, %v11886_v49, %v2781_v11  ;;  %v2591_v60 = vmax.f32 %v6701_v27, 0.0  ;;  %v2509_v33 = vpop.f32.mrb[6].mxu1 }
 0x4cf   : > { %v2748_v16 = vmax.f32 %v2684_v0, %v2716_v37  ;;  %v2685_v63 = vsel %vm2046_vm10, %v2679_v48, -inf  ;;  %v2622_v7 = vrot.slane %v2590_v1, 7  ;;  %v2782_v58 = vrot.slane %v2590_v1, 1  ;;  %v2511_v36 = vpop.f32.mrb[7].mxu1 }
 0x4d0   : > { %v2749_v14 = vmax.f32 %v2685_v63, %v2717_v22  ;;  %v2623_v3 = vrot.slane %v2591_v60, 7  ;;  %v2783_v41 = vrot.slane %v2591_v60, 1  ;;  %v6702_v31 = vadd.f32 %v2509_v33, %v9288_v46 }
 0x4d1   : > { %v2676_v59 = vsel %vm2024_vm0, %v2620_v47, %v2622_v7  ;;  %v2836_v38 = vsel %vm2111_vm1, %v2780_v25, %v2782_v58  ;;  %v6703_v32 = vadd.f32 %v2511_v36, %v9292_v29 }
 0x4d2   : > { %v2686_v62 = vsel %vm2043_vm8, %v2676_v59, -inf  ;;  %v2844_v55 = vsel %vm2133_vm11, %v2836_v38, -inf  ;;  %v2677_v9 = vsel %vm2024_vm0, %v2621_v18, %v2623_v3  ;;  %v2837_v50 = vsel %vm2111_vm1, %v2781_v11, %v2783_v41  ;;  %v2515_v35 = vpop.f32.mrb[8].mxu1 }
 0x4d3   : > { %v2750_v20 = vmax.f32 %v2686_v62, %v2590_v1  ;;  %v9350_v40 = vmax.f32 %v2748_v16, %v2844_v55  ;;  %v2687_v42 = vsel %vm2043_vm8, %v2677_v9, -inf  ;;  %v2845_v28 = vsel %vm2133_vm11, %v2837_v50, -inf  ;;  %v2517_v21 = vpop.f32.mrb[9].mxu1 }
 0x4d4   : > { %v2751_v6 = vmax.f32 %v2687_v42, %v2591_v60  ;;  %v9356_v44 = vmax.f32 %v2749_v14, %v2845_v28  ;;  %v2592_v51 = vmax.f32 %v6702_v31, 0.0  ;;  %v2593_v26 = vmax.f32 %v6703_v32, 0.0 }
 0x4d5   : > { %v6704_v61 = vadd.f32 %v2515_v35, %v9288_v46  ;;  %v6705_v24 = vadd.f32 %v2517_v21, %v9292_v29 }
 0x4d6   : > { %v2624_v17 = vrot.slane %v2592_v51, 7  ;;  %v2720_v45 = vsel %vm2072_vm9, %v2592_v51, -inf  ;;  %v2784_v2 = vrot.slane %v2592_v51, 1  ;;  %v2625_v15 = vrot.slane %v2593_v26, 7  ;;  %v2521_v47 = vpop.f32.mrb[10].mxu1 }
 0x4d7   : > { %v2721_v25 = vsel %vm2072_vm9, %v2593_v26, -inf  ;;  %v2785_v56 = vrot.slane %v2593_v26, 1  ;;  %v2594_v8 = vmax.f32 %v6704_v61, 0.0  ;;  %v9364_v37 = vmax.f32 %v6705_v24, 0.0  ;;  %v2523_v18 = vpop.f32.mrb[11].mxu1 }
 0x4d8   : > { %v2674_v11 = vsel %vm2024_vm0, %v2622_v7, %v2624_v17  ;;  %v2834_v27 = vsel %vm2111_vm1, %v2782_v58, %v2784_v2  ;;  %v2675_v10 = vsel %vm2024_vm0, %v2623_v3, %v2625_v15  ;;  %v6706_v22 = vadd.f32 %v2521_v47, %v9288_v46 }
 0x4d9   : > { %v2688_v1 = vsel %vm2046_vm10, %v2674_v11, -inf  ;;  %v9375_v0 = vmax.f32 %v2750_v20, %v2834_v27  ;;  %v2689_v48 = vsel %vm2046_vm10, %v2675_v10, -inf  ;;  %v2835_v60 = vsel %vm2111_vm1, %v2783_v41, %v2785_v56 }
 0x4da   : > { %v2752_v33 = vmax.f32 %v2688_v1, %v2720_v45  ;;  %v2753_v16 = vmax.f32 %v2689_v48, %v2721_v25  ;;  %v9381_v63 = vmax.f32 %v2751_v6, %v2835_v60  ;;  %v2626_v7 = vrot.slane %v2594_v8, 7  ;;  %v2527_v58 = vpop.f32.mrb[12].mxu1 }
 0x4db   : > { %v2786_v36 = vrot.slane %v2594_v8, 1  ;;  %v2627_v14 = vrot.slane %v9364_v37, 7  ;;  %v2787_v3 = vrot.slane %v9364_v37, 1  ;;  %v2596_v31 = vmax.f32 %v6706_v22, 0.0  ;;  %v2529_v59 = vpop.f32.mrb[13].mxu1 }
 0x4dc   : > { %v2672_v38 = vsel %vm2024_vm0, %v2624_v17, %v2626_v7  ;;  %v6707_v32 = vadd.f32 %v2523_v18, %v9292_v29  ;;  %v6708_v41 = vadd.f32 %v2527_v58, %v9288_v46  ;;  %v6709_v62 = vadd.f32 %v2529_v59, %v9292_v29 }
 0x4dd   : > { %v2690_v55 = vsel %vm2043_vm8, %v2672_v38, -inf  ;;  %v2832_v9 = vsel %vm2111_vm1, %v2784_v2, %v2786_v36  ;;  %v2673_v50 = vsel %vm2024_vm0, %v2625_v15, %v2627_v14  ;;  %v2833_v35 = vsel %vm2111_vm1, %v2785_v56, %v2787_v3 }
 0x4de   : > { %v2754_v20 = vmax.f32 %v2690_v55, %v2594_v8  ;;  %v2848_v42 = vsel %vm2133_vm11, %v2832_v9, -inf  ;;  %v2691_v28 = vsel %vm2043_vm8, %v2673_v50, -inf  ;;  %v2849_v21 = vsel %vm2133_vm11, %v2833_v35, -inf  ;;  %v2533_v6 = vpop.f32.mrb[14].mxu1 }
 0x4df   : > { %v9404_v51 = vmax.f32 %v2752_v33, %v2848_v42  ;;  %v2755_v26 = vmax.f32 %v2691_v28, %v9364_v37  ;;  %v9407_v61 = vmax.f32 %v2753_v16, %v2849_v21  ;;  %v2628_v24 = vrot.slane %v2596_v31, 7  ;;  %v2535_v17 = vpop.f32.mrb[15].mxu1 }
 0x4e0   : > { %v2724_v45 = vsel %vm2072_vm9, %v2596_v31, -inf  ;;  %v2788_v2 = vrot.slane %v2596_v31, 1  ;;  %v2597_v15 = vmax.f32 %v6707_v32, 0.0  ;;  %v2598_v47 = vmax.f32 %v6708_v41, 0.0 }
 0x4e1   : > { %v2670_v25 = vsel %vm2024_vm0, %v2626_v7, %v2628_v24  ;;  %v9413_v56 = vmax.f32 %v6709_v62, 0.0  ;;  %v6710_v8 = vadd.f32 %v2533_v6, %v9288_v46  ;;  %v6711_v18 = vadd.f32 %v2535_v17, %v9292_v29 }
 0x4e2   : > { %v2692_v37 = vsel %vm2046_vm10, %v2670_v25, -inf  ;;  %v2830_v11 = vsel %vm2111_vm1, %v2786_v36, %v2788_v2  ;;  %v2629_v27 = vrot.slane %v2597_v15, 7  ;;  %v2725_v10 = vsel %vm2072_vm9, %v2597_v15, -inf  ;;  %v2539_v22 = vpop.f32.mrb[16].mxu1 }
 0x4e3   : > { %v2756_v1 = vmax.f32 %v2692_v37, %v2724_v45  ;;  %v9423_v48 = vmax.f32 %v2754_v20, %v2830_v11  ;;  %v2789_v60 = vrot.slane %v2597_v15, 1  ;;  %v2630_v33 = vrot.slane %v2598_v47, 7  ;;  %v2541_v16 = vpop.f32.mrb[17].mxu1 }
 0x4e4   : > { %v2671_v7 = vsel %vm2024_vm0, %v2627_v14, %v2629_v27  ;;  %v2790_v58 = vrot.slane %v2598_v47, 1  ;;  %v2631_v31 = vrot.slane %v9413_v56, 7  ;;  %v2791_v59 = vrot.slane %v9413_v56, 1 }
 0x4e5   : > { %v2693_v36 = vsel %vm2046_vm10, %v2671_v7, -inf  ;;  %v2831_v38 = vsel %vm2111_vm1, %v2787_v3, %v2789_v60  ;;  %v2668_v32 = vsel %vm2024_vm0, %v2628_v24, %v2630_v33  ;;  %v2600_v41 = vmax.f32 %v6710_v8, 0.0 }
 0x4e6   : > { %v2757_v62 = vmax.f32 %v2693_v36, %v2725_v10  ;;  %v9435_v55 = vmax.f32 %v2755_v26, %v2831_v38  ;;  %v2694_v14 = vsel %vm2043_vm8, %v2668_v32, -inf  ;;  %v2828_v9 = vsel %vm2111_vm1, %v2788_v2, %v2790_v58  ;;  %v2545_v50 = vpop.f32.mrb[18].mxu1 }
 0x4e7   : > { %v2758_v35 = vmax.f32 %v2694_v14, %v2598_v47  ;;  %v2852_v20 = vsel %vm2133_vm11, %v2828_v9, -inf  ;;  %v2669_v3 = vsel %vm2024_vm0, %v2629_v27, %v2631_v31  ;;  %v2829_v42 = vsel %vm2111_vm1, %v2789_v60, %v2791_v59  ;;  %v2547_v28 = vpop.f32.mrb[19].mxu1 }
 0x4e8   : > { %v9447_v21 = vmax.f32 %v2756_v1, %v2852_v20  ;;  %v2695_v6 = vsel %vm2043_vm8, %v2669_v3, -inf  ;;  %v2853_v26 = vsel %vm2133_vm11, %v2829_v42, -inf  ;;  %v2632_v24 = vrot.slane %v2600_v41, 7 }
 0x4e9   : > { %v2759_v17 = vmax.f32 %v2695_v6, %v9413_v56  ;;  %v9454_v45 = vmax.f32 %v2757_v62, %v2853_v26  ;;  %v2728_v2 = vsel %vm2072_vm9, %v2600_v41, -inf  ;;  %v2792_v15 = vrot.slane %v2600_v41, 1 }
 0x4ea   : > { %v2666_v47 = vsel %vm2024_vm0, %v2630_v33, %v2632_v24  ;;  %v2601_v25 = vmax.f32 %v6711_v18, 0.0  ;;  %v6712_v8 = vadd.f32 %v2539_v22, %v9288_v46  ;;  %v6713_v37 = vadd.f32 %v2541_v16, %v9292_v29  ;;  %v2551_v11 = vpop.f32.mrb[20].mxu1 }
 0x4eb   : > { %v2696_v27 = vsel %vm2046_vm10, %v2666_v47, -inf  ;;  %v2826_v56 = vsel %vm2111_vm1, %v2790_v58, %v2792_v15  ;;  %v6714_v10 = vadd.f32 %v2545_v50, %v9288_v46  ;;  %v6715_v1 = vadd.f32 %v2547_v28, %v9292_v29  ;;  %v2553_v60 = vpop.f32.mrb[21].mxu1 }
 0x4ec   : > { %v2760_v7 = vmax.f32 %v2696_v27, %v2728_v2  ;;  %v9468_v36 = vmax.f32 %v2758_v35, %v2826_v56  ;;  %v2633_v18 = vrot.slane %v2601_v25, 7  ;;  %v2729_v22 = vsel %vm2072_vm9, %v2601_v25, -inf }
 0x4ed   : > { %v2793_v33 = vrot.slane %v2601_v25, 1  ;;  %v2602_v16 = vmax.f32 %v6712_v8, 0.0  ;;  %v2603_v38 = vmax.f32 %v6713_v37, 0.0  ;;  %v2604_v32 = vmax.f32 %v6714_v10, 0.0 }
 0x4ee   : > { %v2667_v41 = vsel %vm2024_vm0, %v2631_v31, %v2633_v18  ;;  %v9474_v58 = vmax.f32 %v6715_v1, 0.0  ;;  %v6716_v62 = vadd.f32 %v2551_v11, %v9288_v46  ;;  %v6717_v14 = vadd.f32 %v2553_v60, %v9292_v29  ;;  %v2557_v9 = vpop.f32.mrb[22].mxu1 }
 0x4ef   : > { %v2697_v50 = vsel %vm2046_vm10, %v2667_v41, -inf  ;;  %v2827_v35 = vsel %vm2111_vm1, %v2791_v59, %v2793_v33  ;;  %v2634_v20 = vrot.slane %v2602_v16, 7  ;;  %v2794_v3 = vrot.slane %v2602_v16, 1  ;;  %v2559_v42 = vpop.f32.mrb[23].mxu1 }
 0x4f0   : > { %v2761_v28 = vmax.f32 %v2697_v50, %v2729_v22  ;;  %v9482_v6 = vmax.f32 %v2759_v17, %v2827_v35  ;;  %v2635_v31 = vrot.slane %v2603_v38, 7  ;;  %v2795_v26 = vrot.slane %v2603_v38, 1 }
 0x4f1   : > { %v2664_v2 = vsel %vm2024_vm0, %v2632_v24, %v2634_v20  ;;  %v2824_v47 = vsel %vm2111_vm1, %v2792_v15, %v2794_v3  ;;  %v2636_v25 = vrot.slane %v2604_v32, 7  ;;  %v2732_v8 = vsel %vm2072_vm9, %v2604_v32, -inf }
 0x4f2   : > { %v2698_v59 = vsel %vm2043_vm8, %v2664_v2, -inf  ;;  %v2856_v37 = vsel %vm2133_vm11, %v2824_v47, -inf  ;;  %v2665_v17 = vsel %vm2024_vm0, %v2633_v18, %v2635_v31  ;;  %v2825_v11 = vsel %vm2111_vm1, %v2793_v33, %v2795_v26  ;;  %v2563_v24 = vpop.f32.mrb[24].mxu1 }
 0x4f3   : > { %v2762_v27 = vmax.f32 %v2698_v59, %v2602_v16  ;;  %v9498_v56 = vmax.f32 %v2760_v7, %v2856_v37  ;;  %v2699_v15 = vsel %vm2043_vm8, %v2665_v17, -inf  ;;  %v2857_v10 = vsel %vm2133_vm11, %v2825_v11, -inf  ;;  %v2565_v1 = vpop.f32.mrb[25].mxu1 }
 0x4f4   : > { %v2763_v60 = vmax.f32 %v2699_v15, %v2603_v38  ;;  %v9504_v22 = vmax.f32 %v2761_v28, %v2857_v10  ;;  %v2662_v18 = vsel %vm2024_vm0, %v2634_v20, %v2636_v25  ;;  %v2796_v41 = vrot.slane %v2604_v32, 1 }
 0x4f5   : > { %v2700_v33 = vsel %vm2046_vm10, %v2662_v18, -inf  ;;  %v2637_v7 = vrot.slane %v9474_v58, 7  ;;  %v2733_v16 = vsel %vm2072_vm9, %v9474_v58, -inf  ;;  %v2797_v50 = vrot.slane %v9474_v58, 1 }
 0x4f6   : > { %v2764_v35 = vmax.f32 %v2700_v33, %v2732_v8  ;;  %v2822_v38 = vsel %vm2111_vm1, %v2794_v3, %v2796_v41  ;;  %v2606_v28 = vmax.f32 %v6716_v62, 0.0  ;;  %v2607_v2 = vmax.f32 %v6717_v14, 0.0  ;;  %v2569_v47 = vpop.f32.mrb[26].mxu1 }
 0x4f7   : > { %v9517_v20 = vmax.f32 %v2762_v27, %v2822_v38  ;;  %v2663_v32 = vsel %vm2024_vm0, %v2635_v31, %v2637_v7  ;;  %v2823_v59 = vsel %vm2111_vm1, %v2795_v26, %v2797_v50  ;;  %v6718_v37 = vadd.f32 %v2557_v9, %v9288_v46  ;;  %v2571_v17 = vpop.f32.mrb[27].mxu1 }
 0x4f8   : > { %v2701_v58 = vsel %vm2046_vm10, %v2663_v32, -inf  ;;  %v9526_v8 = vmax.f32 %v2763_v60, %v2823_v59  ;;  %v2638_v3 = vrot.slane %v2606_v28, 7  ;;  %v2798_v62 = vrot.slane %v2606_v28, 1 }
 0x4f9   : > { %v2765_v14 = vmax.f32 %v2701_v58, %v2733_v16  ;;  %v2639_v11 = vrot.slane %v2607_v2, 7  ;;  %v2799_v27 = vrot.slane %v2607_v2, 1  ;;  %v2608_v15 = vmax.f32 %v6718_v37, 0.0 }
 0x4fa   : > { %v2660_v31 = vsel %vm2024_vm0, %v2636_v25, %v2638_v3  ;;  %v2820_v26 = vsel %vm2111_vm1, %v2796_v41, %v2798_v62  ;;  %v6719_v9 = vadd.f32 %v2559_v42, %v9292_v29  ;;  %v6720_v10 = vadd.f32 %v2563_v24, %v9288_v46  ;;  %v2575_v18 = vpop.f32.mrb[28].mxu1 }
 0x4fb   : > { %v2702_v60 = vsel %vm2043_vm8, %v2660_v31, -inf  ;;  %v2860_v33 = vsel %vm2133_vm11, %v2820_v26, -inf  ;;  %v2661_v16 = vsel %vm2024_vm0, %v2637_v7, %v2639_v11  ;;  %v2821_v25 = vsel %vm2111_vm1, %v2797_v50, %v2799_v27  ;;  %v9542_v38 = vpop.f32.mrb[29].mxu1 }
 0x4fc   : > { %v2766_v41 = vmax.f32 %v2702_v60, %v2606_v28  ;;  %v9544_v32 = vmax.f32 %v2764_v35, %v2860_v33  ;;  %v2703_v42 = vsel %vm2043_vm8, %v2661_v16, -inf  ;;  %v2861_v24 = vsel %vm2133_vm11, %v2821_v25, -inf }
 0x4fd   : > { %v2767_v59 = vmax.f32 %v2703_v42, %v2607_v2  ;;  %v9550_v37 = vmax.f32 %v2765_v14, %v2861_v24  ;;  %v2640_v58 = vrot.slane %v2608_v15, 7  ;;  %v2736_v7 = vsel %vm2072_vm9, %v2608_v15, -inf }
 0x4fe   : > { %v2800_v31 = vrot.slane %v2608_v15, 1  ;;  %v2609_v50 = vmax.f32 %v6719_v9, 0.0  ;;  %v2610_v26 = vmax.f32 %v6720_v10, 0.0  ;;  %v6721_v28 = vadd.f32 %v2565_v1, %v9292_v29  ;;  %v2581_v35 = vpop.f32.mrb[30].mxu1 }
 0x4ff   : > { %v2658_v60 = vsel %vm2024_vm0, %v2638_v3, %v2640_v58  ;;  %v6722_v33 = vadd.f32 %v2569_v47, %v9288_v46  ;;  %v6723_v16 = vadd.f32 %v2571_v17, %v9292_v29  ;;  %v6724_v2 = vadd.f32 %v2575_v18, %v9288_v46  ;;  %v2583_v14 = vpop.f32.mrb[31].mxu1 }
 0x500   : > { %v2704_v25 = vsel %vm2046_vm10, %v2658_v60, -inf  ;;  %v2818_v15 = vsel %vm2111_vm1, %v2798_v62, %v2800_v31  ;;  %v2641_v9 = vrot.slane %v2609_v50, 7  ;;  %v2737_v1 = vsel %vm2072_vm9, %v2609_v50, -inf }
 0x501   : > { %v2768_v10 = vmax.f32 %v2704_v25, %v2736_v7  ;;  %v9566_v42 = vmax.f32 %v2766_v41, %v2818_v15  ;;  %v2801_v3 = vrot.slane %v2609_v50, 1  ;;  %v2642_v47 = vrot.slane %v2610_v26, 7 }
 0x502   : > { %v2659_v17 = vsel %vm2024_vm0, %v2639_v11, %v2641_v9  ;;  %v2802_v18 = vrot.slane %v2610_v26, 1  ;;  %v2611_v24 = vmax.f32 %v6721_v28, 0.0  ;;  %v2612_v54 = vmax.f32 %v6722_v33, 0.0 }
 0x503   : > { %v2705_v60 = vsel %vm2046_vm10, %v2659_v17, -inf  ;;  %v2819_v62 = vsel %vm2111_vm1, %v2799_v27, %v2801_v3  ;;  %v2656_v5 = vsel %vm2024_vm0, %v2640_v58, %v2642_v47  ;;  %v2613_v7 = vmax.f32 %v6723_v16, 0.0 }
 0x504   : > { %v2769_v41 = vmax.f32 %v2705_v60, %v2737_v1  ;;  %v9576_v25 = vmax.f32 %v2767_v59, %v2819_v62  ;;  %v2706_v50 = vsel %vm2043_vm8, %v2656_v5, -inf  ;;  %v2816_v11 = vsel %vm2111_vm1, %v2800_v31, %v2802_v18 }
 0x505   : > { %v2770_v28 = vmax.f32 %v2706_v50, %v2610_v26  ;;  %v2864_v33 = vsel %vm2133_vm11, %v2816_v11, -inf  ;;  %v2643_v15 = vrot.slane %v2611_v24, 7  ;;  %v2803_v17 = vrot.slane %v2611_v24, 1 }
 0x506   : > { %v9584_v27 = vmax.f32 %v2768_v10, %v2864_v33  ;;  %v2644_v49 = vrot.slane %v2612_v54, 7  ;;  %v2740_v58 = vsel %vm2072_vm9, %v2612_v54, -inf  ;;  %v2804_v59 = vrot.slane %v2612_v54, 1 }
 0x507   : > { %v2657_v16 = vsel %vm2024_vm0, %v2641_v9, %v2643_v15  ;;  %v2817_v5 = vsel %vm2111_vm1, %v2801_v3, %v2803_v17  ;;  %v2645_v31 = vrot.slane %v2613_v7, 7  ;;  %v2741_v26 = vsel %vm2072_vm9, %v2613_v7, -inf }
 0x508   : > { %v2707_v1 = vsel %vm2043_vm8, %v2657_v16, -inf  ;;  %v2865_v10 = vsel %vm2133_vm11, %v2817_v5, -inf  ;;  %v2654_v60 = vsel %vm2024_vm0, %v2642_v47, %v2644_v49  ;;  %v2814_v54 = vsel %vm2111_vm1, %v2802_v18, %v2804_v59 }
 0x509   : > { %v2771_v9 = vmax.f32 %v2707_v1, %v2611_v24  ;;  %v9602_v62 = vmax.f32 %v2769_v41, %v2865_v10  ;;  %v2708_v3 = vsel %vm2046_vm10, %v2654_v60, -inf  ;;  %v9606_v50 = vmax.f32 %v2770_v28, %v2814_v54 }
 0x50a   : > { %v2772_v11 = vmax.f32 %v2708_v3, %v2740_v58  ;;  %v2655_v33 = vsel %vm2024_vm0, %v2643_v15, %v2645_v31  ;;  %v2805_v16 = vrot.slane %v2613_v7, 1  ;;  %v2614_v5 = vmax.f32 %v6724_v2, 0.0 }
 0x50b   : > { %v2709_v47 = vsel %vm2046_vm10, %v2655_v33, -inf  ;;  %v6725_v18 = vadd.f32 %v9542_v38, %v9292_v29  ;;  %v6726_v24 = vadd.f32 %v2581_v35, %v9288_v46  ;;  %v6727_v41 = vadd.f32 %v2583_v14, %v9292_v29 }
 0x50c   : > { %v2773_v1 = vmax.f32 %v2709_v47, %v2741_v26  ;;  %v2815_v28 = vsel %vm2111_vm1, %v2803_v17, %v2805_v16  ;;  %v2646_v58 = vrot.slane %v2614_v5, 7  ;;  %v2806_v10 = vrot.slane %v2614_v5, 1 }
 0x50d   : > { %v9618_v60 = vmax.f32 %v2771_v9, %v2815_v28  ;;  %v2615_v7 = vmax.f32 %v6725_v18, 0.0  ;;  %v2616_v2 = vmax.f32 %v6726_v24, 0.0  ;;  %v2617_v15 = vmax.f32 %v6727_v41, 0.0 }
 0x50e   : > { %v2652_v54 = vsel %vm2024_vm0, %v2644_v49, %v2646_v58  ;;  %v2812_v38 = vsel %vm2111_vm1, %v2804_v59, %v2806_v10 }
 0x50f   : > { %v2710_v46 = vsel %vm2043_vm8, %v2652_v54, -inf  ;;  %v2868_v29 = vsel %vm2133_vm11, %v2812_v38, -inf  ;;  %v2647_v35 = vrot.slane %v2615_v7, 7  ;;  %v2807_v14 = vrot.slane %v2615_v7, 1 }
 0x510   : > { %v2774_v17 = vmax.f32 %v2710_v46, %v2614_v5  ;;  %v9628_v26 = vmax.f32 %v2772_v11, %v2868_v29  ;;  %v2648_v9 = vrot.slane %v2616_v2, 7  ;;  %v2744_v3 = vsel %vm2072_vm9, %v2616_v2, -inf }
 0x511   : > { %v2653_v49 = vsel %vm2024_vm0, %v2645_v31, %v2647_v35  ;;  %v2813_v59 = vsel %vm2111_vm1, %v2805_v16, %v2807_v14  ;;  %v2808_v33 = vrot.slane %v2616_v2, 1  ;;  %v2649_v47 = vrot.slane %v2617_v15, 7 }
 0x512   : > { %v2711_v18 = vsel %vm2043_vm8, %v2653_v49, -inf  ;;  %v2869_v5 = vsel %vm2133_vm11, %v2813_v59, -inf  ;;  %v2650_v11 = vsel %vm2024_vm0, %v2646_v58, %v2648_v9  ;;  %v2680_v24 = vsel %vm2024_vm0, %v2648_v9, %v2618_v39 }
 0x513   : > { %v2775_v31 = vmax.f32 %v2711_v18, %v2615_v7  ;;  %v9646_v41 = vmax.f32 %v2773_v1, %v2869_v5  ;;  %v2682_v16 = vsel %vm2043_vm8, %v2680_v24, -inf  ;;  %v2712_v28 = vsel %vm2046_vm10, %v2650_v11, -inf  ;;  %v3258_v5 = vld [vmem:[#allocation8 + $0x400] sm:$0xff]  ;;  %v3260_v24 = vld [vmem:[#allocation8 + $0x410] sm:$0xff] }
 0x514   : > { %v2746_v2 = vmax.f32 %v2682_v16, %v9296_v4  ;;  %v2776_v54 = vmax.f32 %v2712_v28, %v2744_v3  ;;  %v2810_v58 = vsel %vm2111_vm1, %v2806_v10, %v2808_v33  ;;  %v2840_v39 = vsel %vm2111_vm1, %v2808_v33, %v2778_v57  ;;  %v3262_v11 = vld [vmem:[#allocation8 + $0x420] sm:$0xff]  ;;  %v3264_v16 = vld [vmem:[#allocation8 + $0x430] sm:$0xff]  ;;  %v3267_v28 = vld [vmem:[#allocation8 + $0x448] sm:$0xff] }
 0x515   : > { %v2872_v1 = vsel %vm2133_vm11, %v2840_v39, -inf  ;;  %v9661_v7 = vmax.f32 %v2774_v17, %v2810_v58  ;;  %v2651_v38 = vsel %vm2024_vm0, %v2647_v35, %v2649_v47  ;;  %v2681_v46 = vsel %vm2024_vm0, %v2649_v47, %v2619_v52  ;;  %v3273_v58 = vld [vmem:[#allocation8 + $0x478] sm:$0xff] }
 0x516   : > { %v9670_v10 = vmax.f32 %v2746_v2, %v9318_v23  ;;  %v9672_v4 = vmax.f32 %v2776_v54, %v2872_v1  ;;  %v2683_v57 = vsel %vm2043_vm8, %v2681_v46, -inf  ;;  %v2713_v29 = vsel %vm2046_vm10, %v2651_v38, -inf  ;;  %v3271_v2 = vld [vmem:[#allocation8 + $0x468] sm:$0xff]  ;;  %v3269_v54 = vld [vmem:[#allocation8 + $0x458] sm:$0xff]  ;;  %v3266_v46 = vld [vmem:[#allocation8 + $0x440] sm:$0xff] }
 0x517   : > { %v2745_v17 = vsel %vm2072_vm9, %v2617_v15, -inf  ;;  %v2747_v35 = vmax.f32 %v2683_v57, %v9298_v30  ;;  %v2809_v9 = vrot.slane %v2617_v15, 1  ;;  %v11976_v23 = vrot.slane %v9298_v30, 1  ;;  %v3270_v57 = vld [vmem:[#allocation8 + $0x460] sm:$0xff] }
 0x518   : > { %v2777_v3 = vmax.f32 %v2713_v29, %v2745_v17  ;;  %v11887_v30 = vrot.slane %v9672_v4, 7  ;;  %v2909_v1 = vrot.slane %v9356_v44, 7  ;;  %v6538_v38 = vpack.c.bf16 %v3264_v16, %v3260_v24 }
 0x519   : > { %v2811_v52 = vsel %vm2111_vm1, %v2807_v14, %v2809_v9  ;;  %v2841_v49 = vsel %vm2111_vm1, %v2809_v9, %v11976_v23  ;;  %v9688_v59 = vmax.f32 %v2747_v35, %v9332_v19  ;;  %v2906_v14 = vrot.slane %v9670_v10, 7  ;;  %v3268_v9 = vld [vmem:[#allocation8 + $0x450] sm:$0xff] }
 0x51a   : > { %v2873_v33 = vsel %vm2133_vm11, %v2841_v49, -inf  ;;  %v9692_v47 = vmax.f32 %v2775_v31, %v2811_v52  ;;  %v6346_v31 = vpack.c.bf16 %v3262_v11, %v3258_v5  ;;  %v6348_v17 = vpack.c.bf16 %v3271_v2, %v3267_v28  ;;  %v3275_v52 = vld [vmem:[#allocation8 + $0x488] sm:$0xff]  ;;  %v3277_v5 = vld [vmem:[#allocation8 + $0x498] sm:$0xff]  ;;  %v3274_v2 = vld [vmem:[#allocation8 + $0x480] sm:$0xff] }
 0x51b   : > { %v9694_v18 = vmax.f32 %v2777_v3, %v2873_v33  ;;  %v2907_v15 = vrot.slane %v9688_v59, 7  ;;  %v2968_v29 = vsel %vm2024_vm0, %v11887_v30, %v2906_v14  ;;  %v6540_v35 = vpack.c.bf16 %v3273_v58, %v3269_v54  ;;  %v3272_v3 = vld [vmem:[#allocation8 + $0x470] sm:$0xff]  ;;  %v3279_v33 = vld [vmem:[#allocation8 + $0x4a8] sm:$0xff]  ;;  %v3281_v11 = vld [vmem:[#allocation8 + $0x4b8] sm:$0xff] }
 0x51c   : > { %v2911_v49 = vrot.slane %v9381_v63, 7  ;;  %v2908_v24 = vrot.slane %v9350_v40, 7  ;;  %v6350_v16 = vpack.c.bf16 %v3270_v57, %v3266_v46  ;;  %v6542_v28 = vpack.c.bf16 %v3272_v3, %v3268_v9  ;;  %v3278_v54 = vld [vmem:[#allocation8 + $0x4a0] sm:$0xff]  ;;  %v3280_v30 = vld [vmem:[#allocation8 + $0x4b0] sm:$0xff]  ;;  %v3285_v57 = vld [vmem:[#allocation8 + $0x4d8] sm:$0xff] }
 0x51d   : > { %v11888_v19 = vrot.slane %v9694_v18, 7  ;;  %v2967_v23 = vsel %vm2024_vm0, %v2907_v15, %v2909_v1  ;;  %v6352_v58 = vpack.c.bf16 %v3279_v33, %v3275_v52  ;;  %v2913_v46 = vrot.slane %v9407_v61, 7  ;;  %v3282_v3 = vld [vmem:[#allocation8 + $0x4c0] sm:$0xff] }
 0x51e   : > { %v3286_v52 = vld [vmem:[#allocation8 + $0x4e0] sm:$0xff]  ;;  %v2912_v33 = vrot.slane %v9404_v51, 7 }
 0x51f   : > { %v2969_v39 = vsel %vm2024_vm0, %v11888_v19, %v2907_v15  ;;  %v2966_v15 = vsel %vm2024_vm0, %v2906_v14, %v2908_v24  ;;  %v3283_v19 = vld [vmem:[#allocation8 + $0x4c8] sm:$0xff] }
 0x520   : > { %5938 = vmatprep.mubr.msk.f32.mxu0 %vm2043_vm8, %v2969_v39  ;;  %6002 = vmatprep.mubr.msk.f32.mxu1 %vm2043_vm8, %v2969_v39  ;;  %v6544_v39 = vpack.c.bf16 %v3281_v11, %v3277_v5  ;;  %v3287_v14 = vld [vmem:[#allocation8 + $0x4e8] sm:$0xff]  ;;  %v3284_v11 = vld [vmem:[#allocation8 + $0x4d0] sm:$0xff] }
 0x521   : > { %5939 = vmatmul.mubr.msk.f32.vlgmr.msra.gmra.mrb[32].mxu0 %vm2043_vm8, %v2968_v29  ;;  %6003 = vmatmul.mubr.msk.f32.vlgmr.msra.gmra.mrb[32].mxu1 %vm2043_vm8, %v2968_v29  ;;  %v3276_v29 = vld [vmem:[#allocation8 + $0x490] sm:$0xff] }
 0x522   : > { %6347 = vmatpush1.bf16.msra.mxu0 %v6346_v31  ;;  %5940 = vmatprep.mubr.msk.f32.mxu0 %vm2046_vm10, %v2967_v23  ;;  %v2910_v31 = vrot.slane %v9375_v0, 7  ;;  %v6546_v9 = vpack.c.bf16 %v3280_v30, %v3276_v29  ;;  %v2963_v30 = vsel %vm2024_vm0, %v2911_v49, %v2913_v46  ;;  %v3294_v29 = vld [vmem:[#allocation8 + $0x520] sm:$0xff] }
 0x523   : > { %6004 = vmatprep.mubr.msk.f32.mxu1 %vm2046_vm10, %v2967_v23  ;;  %6539 = vmatpush1.bf16.msra.mxu1 %v6538_v38  ;;  %v2965_v38 = vsel %vm2024_vm0, %v2909_v1, %v2911_v49  ;;  %v6356_v23 = vpack.c.bf16 %v3287_v14, %v3283_v19  ;;  %v3297_v19 = vld [vmem:[#allocation8 + $0x538] sm:$0xff]  ;;  %v2914_v14 = vrot.slane %v9423_v48, 7 }
 0x524   : > { %6349 = vmatprep.subr.bf16.mxu0 %v6348_v17  ;;  %6541 = vmatprep.subr.bf16.mxu1 %v6540_v35  ;;  %v3289_v17 = vld [vmem:[#allocation8 + $0x4f8] sm:$0xff]  ;;  %v6354_v35 = vpack.c.bf16 %v3278_v54, %v3274_v2  ;;  %v2964_v1 = vsel %vm2024_vm0, %v2908_v24, %v2910_v31  ;;  %v3295_v24 = vld [vmem:[#allocation8 + $0x528] sm:$0xff]  ;;  %v6358_v54 = vpack.c.bf16 %v3286_v52, %v3282_v3  ;;  %v2917_v3 = vrot.slane %v9454_v45, 7 }
 0x525   : > { %5941 = vmatmul.mubr.msk.f32.gmra.mrb[34].mxu0 %vm2046_vm10, %v2966_v15  ;;  %6005 = vmatmul.mubr.msk.f32.gmra.mrb[34].mxu1 %vm2046_vm10, %v2966_v15  ;;  %v6548_v5 = vpack.c.bf16 %v3289_v17, %v3285_v57  ;;  %v3291_v15 = vld [vmem:[#allocation8 + $0x508] sm:$0xff]  ;;  %v3293_v2 = vld [vmem:[#allocation8 + $0x518] sm:$0xff]  ;;  %v2962_v49 = vsel %vm2024_vm0, %v2910_v31, %v2912_v33  ;;  %v3292_v17 = vld [vmem:[#allocation8 + $0x510] sm:$0xff] }
 0x526   : > { %6351 = vmatpush1.bf16.msra.mxu0 %v6350_v16  ;;  %5942 = vmatprep.mubr.msk.f32.mxu0 %vm2043_vm8, %v2965_v38  ;;  %v3288_v16 = vld [vmem:[#allocation8 + $0x4f0] sm:$0xff]  ;;  %v6552_v57 = vpack.c.bf16 %v3297_v19, %v3293_v2  ;;  %v3303_v31 = vld [vmem:[#allocation8 + $0x568] sm:$0xff]  ;;  %v3301_v52 = vld [vmem:[#allocation8 + $0x558] sm:$0xff] }
 0x527   : > { %6006 = vmatprep.mubr.msk.f32.mxu1 %vm2043_vm8, %v2965_v38  ;;  %6543 = vmatpush1.bf16.msra.mxu1 %v6542_v28  ;;  %v2915_v28 = vrot.slane %v9435_v55, 7  ;;  %v6360_v38 = vpack.c.bf16 %v3295_v24, %v3291_v15  ;;  %v3302_v15 = vld [vmem:[#allocation8 + $0x560] sm:$0xff]  ;;  %v2916_v24 = vrot.slane %v9447_v21, 7  ;;  %v3300_v19 = vld [vmem:[#allocation8 + $0x550] sm:$0xff] }
 0x528   : > { %6353 = vmatprep.subr.bf16.mxu0 %v6352_v58  ;;  %6545 = vmatprep.subr.bf16.mxu1 %v6544_v39  ;;  %v6550_v58 = vpack.c.bf16 %v3288_v16, %v3284_v11  ;;  %v3290_v39 = vld [vmem:[#allocation8 + $0x500] sm:$0xff] }
 0x529   : > { %5943 = vmatmul.mubr.msk.f32.gmra.mrb[36].mxu0 %vm2043_vm8, %v2964_v1  ;;  %6007 = vmatmul.mubr.msk.f32.gmra.mrb[36].mxu1 %vm2043_vm8, %v2964_v1  ;;  %v3299_v1 = vld [vmem:[#allocation8 + $0x548] sm:$0xff]  ;;  %v3298_v16 = vld [vmem:[#allocation8 + $0x540] sm:$0xff] }
 0x52a   : > { %6355 = vmatpush1.bf16.msra.mxu0 %v6354_v35  ;;  %5944 = vmatprep.mubr.msk.f32.mxu0 %vm2046_vm10, %v2963_v30  ;;  %v3296_v35 = vld [vmem:[#allocation8 + $0x530] sm:$0xff] }
 0x52b   : > { %6008 = vmatprep.mubr.msk.f32.mxu1 %vm2046_vm10, %v2963_v30  ;;  %6547 = vmatpush1.bf16.msra.mxu1 %v6546_v9  ;;  %v2961_v9 = vsel %vm2024_vm0, %v2913_v46, %v2915_v28  ;;  %v6554_v11 = vpack.c.bf16 %v3296_v35, %v3292_v17  ;;  %v2960_v46 = vsel %vm2024_vm0, %v2912_v33, %v2914_v14  ;;  %v3311_v33 = vld [vmem:[#allocation8 + $0x5a8] sm:$0xff]  ;;  %v3306_v35 = vld [vmem:[#allocation8 + $0x580] sm:$0xff] }
 0x52c   : > { %6357 = vmatprep.subr.bf16.mxu0 %v6356_v23  ;;  %6549 = vmatprep.subr.bf16.mxu1 %v6548_v5  ;;  %v3305_v23 = vld [vmem:[#allocation8 + $0x578] sm:$0xff]  ;;  %v6362_v5 = vpack.c.bf16 %v3294_v29, %v3290_v39  ;;  %v6364_v30 = vpack.c.bf16 %v3303_v31, %v3299_v1  ;;  %v2919_v39 = vrot.slane %v9482_v6, 7  ;;  %v3310_v1 = vld [vmem:[#allocation8 + $0x5a0] sm:$0xff]  ;;  %v2918_v31 = vrot.slane %v9468_v36, 7 }
 0x52d   : > { %5945 = vmatmul.mubr.msk.f32.gmra.mrb[38].mxu0 %vm2046_vm10, %v2962_v49  ;;  %6009 = vmatmul.mubr.msk.f32.gmra.mrb[38].mxu1 %vm2046_vm10, %v2962_v49  ;;  %v6556_v2 = vpack.c.bf16 %v3305_v23, %v3301_v52  ;;  %v3307_v49 = vld [vmem:[#allocation8 + $0x588] sm:$0xff]  ;;  %v3309_v29 = vld [vmem:[#allocation8 + $0x598] sm:$0xff]  ;;  %v3308_v23 = vld [vmem:[#allocation8 + $0x590] sm:$0xff] }
 0x52e   : > { %6359 = vmatpush1.bf16.msra.mxu0 %v6358_v54  ;;  %5946 = vmatprep.mubr.msk.f32.mxu0 %vm2043_vm8, %v2961_v9  ;;  %v3304_v54 = vld [vmem:[#allocation8 + $0x570] sm:$0xff] }
 0x52f   : > { %6010 = vmatprep.mubr.msk.f32.mxu1 %vm2043_vm8, %v2961_v9  ;;  %6551 = vmatpush1.bf16.msra.mxu1 %v6550_v58  ;;  %v2959_v58 = vsel %vm2024_vm0, %v2915_v28, %v2917_v3  ;;  %v6558_v17 = vpack.c.bf16 %v3304_v54, %v3300_v19  ;;  %v2958_v28 = vsel %vm2024_vm0, %v2914_v14, %v2916_v24  ;;  %v3319_v14 = vld [vmem:[#allocation8 + $0x5e8] sm:$0xff]  ;;  %v3314_v54 = vld [vmem:[#allocation8 + $0x5c0] sm:$0xff] }
 0x530   : > { %6361 = vmatprep.subr.bf16.mxu0 %v6360_v38  ;;  %6553 = vmatprep.subr.bf16.mxu1 %v6552_v57  ;;  %v3313_v38 = vld [vmem:[#allocation8 + $0x5b8] sm:$0xff]  ;;  %v6366_v57 = vpack.c.bf16 %v3302_v15, %v3298_v16  ;;  %v6368_v9 = vpack.c.bf16 %v3311_v33, %v3307_v49  ;;  %v2921_v16 = vrot.slane %v9504_v22, 7  ;;  %v3318_v49 = vld [vmem:[#allocation8 + $0x5e0] sm:$0xff]  ;;  %v2920_v33 = vrot.slane %v9498_v56, 7 }
 0x531   : > { %5947 = vmatmul.mubr.msk.f32.gmra.mrb[40].mxu0 %vm2043_vm8, %v2960_v46  ;;  %6011 = vmatmul.mubr.msk.f32.gmra.mrb[40].mxu1 %vm2043_vm8, %v2960_v46  ;;  %v6560_v52 = vpack.c.bf16 %v3313_v38, %v3309_v29  ;;  %v3315_v46 = vld [vmem:[#allocation8 + $0x5c8] sm:$0xff]  ;;  %v3317_v15 = vld [vmem:[#allocation8 + $0x5d8] sm:$0xff]  ;;  %v3316_v38 = vld [vmem:[#allocation8 + $0x5d0] sm:$0xff] }
 0x532   : > { %6363 = vmatpush1.bf16.msra.mxu0 %v6362_v5  ;;  %5948 = vmatprep.mubr.msk.f32.mxu0 %vm2046_vm10, %v2959_v58  ;;  %v3312_v5 = vld [vmem:[#allocation8 + $0x5b0] sm:$0xff] }
 0x533   : > { %6012 = vmatprep.mubr.msk.f32.mxu1 %vm2046_vm10, %v2959_v58  ;;  %6555 = vmatpush1.bf16.msra.mxu1 %v6554_v11  ;;  %v2957_v11 = vsel %vm2024_vm0, %v2917_v3, %v2919_v39  ;;  %v6562_v19 = vpack.c.bf16 %v3312_v5, %v3308_v23  ;;  %v2956_v3 = vsel %vm2024_vm0, %v2916_v24, %v2918_v31  ;;  %v3327_v24 = vld [vmem:[#allocation8 + $0x628] sm:$0xff]  ;;  %v3322_v5 = vld [vmem:[#allocation8 + $0x600] sm:$0xff] }
 0x534   : > { %6365 = vmatprep.subr.bf16.mxu0 %v6364_v30  ;;  %6557 = vmatprep.subr.bf16.mxu1 %v6556_v2  ;;  %v3321_v30 = vld [vmem:[#allocation8 + $0x5f8] sm:$0xff]  ;;  %v6370_v2 = vpack.c.bf16 %v3310_v1, %v3306_v35  ;;  %v6372_v58 = vpack.c.bf16 %v3319_v14, %v3315_v46  ;;  %v2923_v35 = vrot.slane %v9526_v8, 7  ;;  %v3326_v46 = vld [vmem:[#allocation8 + $0x620] sm:$0xff]  ;;  %v2922_v14 = vrot.slane %v9517_v20, 7 }
 0x535   : > { %5949 = vmatmul.mubr.msk.f32.gmra.mrb[42].mxu0 %vm2046_vm10, %v2958_v28  ;;  %6013 = vmatmul.mubr.msk.f32.gmra.mrb[42].mxu1 %vm2046_vm10, %v2958_v28  ;;  %v6564_v29 = vpack.c.bf16 %v3321_v30, %v3317_v15  ;;  %v3323_v28 = vld [vmem:[#allocation8 + $0x608] sm:$0xff]  ;;  %v3325_v1 = vld [vmem:[#allocation8 + $0x618] sm:$0xff]  ;;  %v3324_v30 = vld [vmem:[#allocation8 + $0x610] sm:$0xff] }
 0x536   : > { %6367 = vmatpush1.bf16.msra.mxu0 %v6366_v57  ;;  %5950 = vmatprep.mubr.msk.f32.mxu0 %vm2043_vm8, %v2957_v11  ;;  %v3320_v57 = vld [vmem:[#allocation8 + $0x5f0] sm:$0xff] }
 0x537   : > { %6014 = vmatprep.mubr.msk.f32.mxu1 %vm2043_vm8, %v2957_v11  ;;  %6559 = vmatpush1.bf16.msra.mxu1 %v6558_v17  ;;  %v2955_v17 = vsel %vm2024_vm0, %v2919_v39, %v2921_v16  ;;  %v6566_v23 = vpack.c.bf16 %v3320_v57, %v3316_v38  ;;  %v2954_v39 = vsel %vm2024_vm0, %v2918_v31, %v2920_v33  ;;  %v3335_v31 = vld [vmem:[#allocation8 + $0x668] sm:$0xff]  ;;  %v3330_v57 = vld [vmem:[#allocation8 + $0x640] sm:$0xff] }
 0x538   : > { %6369 = vmatprep.subr.bf16.mxu0 %v6368_v9  ;;  %6561 = vmatprep.subr.bf16.mxu1 %v6560_v52  ;;  %v3329_v9 = vld [vmem:[#allocation8 + $0x638] sm:$0xff]  ;;  %v6374_v52 = vpack.c.bf16 %v3318_v49, %v3314_v54  ;;  %v6376_v11 = vpack.c.bf16 %v3327_v24, %v3323_v28  ;;  %v2925_v54 = vrot.slane %v9550_v37, 7  ;;  %v3334_v28 = vld [vmem:[#allocation8 + $0x660] sm:$0xff]  ;;  %v2924_v24 = vrot.slane %v9544_v32, 7 }
 0x539   : > { %5951 = vmatmul.mubr.msk.f32.gmra.mrb[44].mxu0 %vm2043_vm8, %v2956_v3  ;;  %6015 = vmatmul.mubr.msk.f32.gmra.mrb[44].mxu1 %vm2043_vm8, %v2956_v3  ;;  %v6568_v15 = vpack.c.bf16 %v3329_v9, %v3325_v1  ;;  %v3331_v3 = vld [vmem:[#allocation8 + $0x648] sm:$0xff]  ;;  %v3333_v49 = vld [vmem:[#allocation8 + $0x658] sm:$0xff]  ;;  %v3332_v9 = vld [vmem:[#allocation8 + $0x650] sm:$0xff] }
 0x53a   : > { %6371 = vmatpush1.bf16.msra.mxu0 %v6370_v2  ;;  %5952 = vmatprep.mubr.msk.f32.mxu0 %vm2046_vm10, %v2955_v17  ;;  %v3328_v2 = vld [vmem:[#allocation8 + $0x630] sm:$0xff] }
 0x53b   : > { %6016 = vmatprep.mubr.msk.f32.mxu1 %vm2046_vm10, %v2955_v17  ;;  %6563 = vmatpush1.bf16.msra.mxu1 %v6562_v19  ;;  %v2953_v19 = vsel %vm2024_vm0, %v2921_v16, %v2923_v35  ;;  %v6570_v38 = vpack.c.bf16 %v3328_v2, %v3324_v30  ;;  %v2952_v16 = vsel %vm2024_vm0, %v2920_v33, %v2922_v14  ;;  %v3343_v33 = vld [vmem:[#allocation8 + $0x6a8] sm:$0xff]  ;;  %v3338_v2 = vld [vmem:[#allocation8 + $0x680] sm:$0xff] }
 0x53c   : > { %6373 = vmatprep.subr.bf16.mxu0 %v6372_v58  ;;  %6565 = vmatprep.subr.bf16.mxu1 %v6564_v29  ;;  %v3337_v58 = vld [vmem:[#allocation8 + $0x678] sm:$0xff]  ;;  %v6378_v29 = vpack.c.bf16 %v3326_v46, %v3322_v5  ;;  %v6380_v17 = vpack.c.bf16 %v3335_v31, %v3331_v3  ;;  %v2927_v5 = vrot.slane %v9576_v25, 7  ;;  %v3342_v3 = vld [vmem:[#allocation8 + $0x6a0] sm:$0xff]  ;;  %v2926_v31 = vrot.slane %v9566_v42, 7 }
 0x53d   : > { %5953 = vmatmul.mubr.msk.f32.gmra.mrb[46].mxu0 %vm2046_vm10, %v2954_v39  ;;  %6017 = vmatmul.mubr.msk.f32.gmra.mrb[46].mxu1 %vm2046_vm10, %v2954_v39  ;;  %v6572_v1 = vpack.c.bf16 %v3337_v58, %v3333_v49  ;;  %v3339_v39 = vld [vmem:[#allocation8 + $0x688] sm:$0xff]  ;;  %v3341_v46 = vld [vmem:[#allocation8 + $0x698] sm:$0xff]  ;;  %v3340_v58 = vld [vmem:[#allocation8 + $0x690] sm:$0xff] }
 0x53e   : > { %6375 = vmatpush1.bf16.msra.mxu0 %v6374_v52  ;;  %5954 = vmatprep.mubr.msk.f32.mxu0 %vm2043_vm8, %v2953_v19  ;;  %v3336_v52 = vld [vmem:[#allocation8 + $0x670] sm:$0xff] }
 0x53f   : > { %6018 = vmatprep.mubr.msk.f32.mxu1 %vm2043_vm8, %v2953_v19  ;;  %6567 = vmatpush1.bf16.msra.mxu1 %v6566_v23  ;;  %v2951_v23 = vsel %vm2024_vm0, %v2923_v35, %v2925_v54  ;;  %v6574_v30 = vpack.c.bf16 %v3336_v52, %v3332_v9  ;;  %v2950_v35 = vsel %vm2024_vm0, %v2922_v14, %v2924_v24  ;;  %v3351_v14 = vld [vmem:[#allocation8 + $0x6e8] sm:$0xff]  ;;  %v3346_v52 = vld [vmem:[#allocation8 + $0x6c0] sm:$0xff] }
 0x540   : > { %6377 = vmatprep.subr.bf16.mxu0 %v6376_v11  ;;  %6569 = vmatprep.subr.bf16.mxu1 %v6568_v15  ;;  %v3345_v11 = vld [vmem:[#allocation8 + $0x6b8] sm:$0xff]  ;;  %v6382_v15 = vpack.c.bf16 %v3334_v28, %v3330_v57  ;;  %v6384_v19 = vpack.c.bf16 %v3343_v33, %v3339_v39  ;;  %v2929_v57 = vrot.slane %v9602_v62, 7  ;;  %v3350_v39 = vld [vmem:[#allocation8 + $0x6e0] sm:$0xff]  ;;  %v2928_v33 = vrot.slane %v9584_v27, 7 }
 0x541   : > { %5955 = vmatmul.mubr.msk.f32.gmra.mrb[48].mxu0 %vm2043_vm8, %v2952_v16  ;;  %6019 = vmatmul.mubr.msk.f32.gmra.mrb[48].mxu1 %vm2043_vm8, %v2952_v16  ;;  %v6576_v49 = vpack.c.bf16 %v3345_v11, %v3341_v46  ;;  %v3347_v16 = vld [vmem:[#allocation8 + $0x6c8] sm:$0xff]  ;;  %v3349_v28 = vld [vmem:[#allocation8 + $0x6d8] sm:$0xff]  ;;  %v3348_v11 = vld [vmem:[#allocation8 + $0x6d0] sm:$0xff] }
 0x542   : > { %6379 = vmatpush1.bf16.msra.mxu0 %v6378_v29  ;;  %5956 = vmatprep.mubr.msk.f32.mxu0 %vm2046_vm10, %v2951_v23  ;;  %v3344_v29 = vld [vmem:[#allocation8 + $0x6b0] sm:$0xff] }
 0x543   : > { %6020 = vmatprep.mubr.msk.f32.mxu1 %vm2046_vm10, %v2951_v23  ;;  %6571 = vmatpush1.bf16.msra.mxu1 %v6570_v38  ;;  %v2949_v38 = vsel %vm2024_vm0, %v2925_v54, %v2927_v5  ;;  %v6578_v9 = vpack.c.bf16 %v3344_v29, %v3340_v58  ;;  %v2948_v54 = vsel %vm2024_vm0, %v2924_v24, %v2926_v31  ;;  %v3359_v24 = vld [vmem:[#allocation8 + $0x728] sm:$0xff]  ;;  %v3354_v29 = vld [vmem:[#allocation8 + $0x700] sm:$0xff] }
 0x544   : > { %6381 = vmatprep.subr.bf16.mxu0 %v6380_v17  ;;  %6573 = vmatprep.subr.bf16.mxu1 %v6572_v1  ;;  %v3353_v17 = vld [vmem:[#allocation8 + $0x6f8] sm:$0xff]  ;;  %v6386_v1 = vpack.c.bf16 %v3342_v3, %v3338_v2  ;;  %v6388_v23 = vpack.c.bf16 %v3351_v14, %v3347_v16  ;;  %v2931_v2 = vrot.slane %v9618_v60, 7  ;;  %v3358_v16 = vld [vmem:[#allocation8 + $0x720] sm:$0xff]  ;;  %v2930_v14 = vrot.slane %v9606_v50, 7 }
 0x545   : > { %5957 = vmatmul.mubr.msk.f32.gmra.mrb[50].mxu0 %vm2046_vm10, %v2950_v35  ;;  %6021 = vmatmul.mubr.msk.f32.gmra.mrb[50].mxu1 %vm2046_vm10, %v2950_v35  ;;  %v6580_v46 = vpack.c.bf16 %v3353_v17, %v3349_v28  ;;  %v3355_v35 = vld [vmem:[#allocation8 + $0x708] sm:$0xff]  ;;  %v3357_v3 = vld [vmem:[#allocation8 + $0x718] sm:$0xff]  ;;  %v3356_v17 = vld [vmem:[#allocation8 + $0x710] sm:$0xff] }
 0x546   : > { %6383 = vmatpush1.bf16.msra.mxu0 %v6382_v15  ;;  %5958 = vmatprep.mubr.msk.f32.mxu0 %vm2043_vm8, %v2949_v38  ;;  %v3352_v15 = vld [vmem:[#allocation8 + $0x6f0] sm:$0xff] }
 0x547   : > { %6022 = vmatprep.mubr.msk.f32.mxu1 %vm2043_vm8, %v2949_v38  ;;  %6575 = vmatpush1.bf16.msra.mxu1 %v6574_v30  ;;  %v2947_v30 = vsel %vm2024_vm0, %v2927_v5, %v2929_v57  ;;  %v6582_v58 = vpack.c.bf16 %v3352_v15, %v3348_v11  ;;  %v2946_v5 = vsel %vm2024_vm0, %v2926_v31, %v2928_v33  ;;  %v3367_v31 = vld [vmem:[#allocation8 + $0x768] sm:$0xff]  ;;  %v3362_v15 = vld [vmem:[#allocation8 + $0x740] sm:$0xff] }
 0x548   : > { %6385 = vmatprep.subr.bf16.mxu0 %v6384_v19  ;;  %6577 = vmatprep.subr.bf16.mxu1 %v6576_v49  ;;  %v3361_v19 = vld [vmem:[#allocation8 + $0x738] sm:$0xff]  ;;  %v6390_v49 = vpack.c.bf16 %v3350_v39, %v3346_v52  ;;  %v6392_v38 = vpack.c.bf16 %v3359_v24, %v3355_v35  ;;  %v2933_v52 = vrot.slane %v9646_v41, 7  ;;  %v3366_v35 = vld [vmem:[#allocation8 + $0x760] sm:$0xff]  ;;  %v2932_v24 = vrot.slane %v9628_v26, 7 }
 0x549   : > { %5959 = vmatmul.mubr.msk.f32.gmra.mrb[52].mxu0 %vm2043_vm8, %v2948_v54  ;;  %6023 = vmatmul.mubr.msk.f32.gmra.mrb[52].mxu1 %vm2043_vm8, %v2948_v54  ;;  %v6584_v28 = vpack.c.bf16 %v3361_v19, %v3357_v3  ;;  %v3363_v54 = vld [vmem:[#allocation8 + $0x748] sm:$0xff]  ;;  %v3365_v39 = vld [vmem:[#allocation8 + $0x758] sm:$0xff]  ;;  %v3364_v19 = vld [vmem:[#allocation8 + $0x750] sm:$0xff] }
 0x54a   : > { %6387 = vmatpush1.bf16.msra.mxu0 %v6386_v1  ;;  %5960 = vmatprep.mubr.msk.f32.mxu0 %vm2046_vm10, %v2947_v30  ;;  %v3360_v1 = vld [vmem:[#allocation8 + $0x730] sm:$0xff] }
 0x54b   : > { %6024 = vmatprep.mubr.msk.f32.mxu1 %vm2046_vm10, %v2947_v30  ;;  %6579 = vmatpush1.bf16.msra.mxu1 %v6578_v9  ;;  %v2945_v9 = vsel %vm2024_vm0, %v2929_v57, %v2931_v2  ;;  %v6586_v11 = vpack.c.bf16 %v3360_v1, %v3356_v17  ;;  %v2944_v57 = vsel %vm2024_vm0, %v2928_v33, %v2930_v14  ;;  %v3375_v33 = vld [vmem:[#allocation8 + $0x7a8] sm:$0xff]  ;;  %v3370_v1 = vld [vmem:[#allocation8 + $0x780] sm:$0xff] }
 0x54c   : > { %6389 = vmatprep.subr.bf16.mxu0 %v6388_v23  ;;  %6581 = vmatprep.subr.bf16.mxu1 %v6580_v46  ;;  %v3369_v23 = vld [vmem:[#allocation8 + $0x778] sm:$0xff]  ;;  %v6394_v46 = vpack.c.bf16 %v3358_v16, %v3354_v29  ;;  %v6396_v30 = vpack.c.bf16 %v3367_v31, %v3363_v54  ;;  %v2935_v29 = vrot.slane %v9692_v47, 7  ;;  %v3374_v54 = vld [vmem:[#allocation8 + $0x7a0] sm:$0xff]  ;;  %v2934_v31 = vrot.slane %v9661_v7, 7 }
 0x54d   : > { %5961 = vmatmul.mubr.msk.f32.gmra.mrb[54].mxu0 %vm2046_vm10, %v2946_v5  ;;  %6025 = vmatmul.mubr.msk.f32.gmra.mrb[54].mxu1 %vm2046_vm10, %v2946_v5  ;;  %v6588_v3 = vpack.c.bf16 %v3369_v23, %v3365_v39  ;;  %v3371_v5 = vld [vmem:[#allocation8 + $0x788] sm:$0xff]  ;;  %v3373_v16 = vld [vmem:[#allocation8 + $0x798] sm:$0xff]  ;;  %v3372_v23 = vld [vmem:[#allocation8 + $0x790] sm:$0xff] }
 0x54e   : > { %6391 = vmatpush1.bf16.msra.mxu0 %v6390_v49  ;;  %5962 = vmatprep.mubr.msk.f32.mxu0 %vm2043_vm8, %v2945_v9  ;;  %v3368_v49 = vld [vmem:[#allocation8 + $0x770] sm:$0xff] }
 0x54f   : > { %6026 = vmatprep.mubr.msk.f32.mxu1 %vm2043_vm8, %v2945_v9  ;;  %6583 = vmatpush1.bf16.msra.mxu1 %v6582_v58  ;;  %v2943_v58 = vsel %vm2024_vm0, %v2931_v2, %v2933_v52  ;;  %v6590_v17 = vpack.c.bf16 %v3368_v49, %v3364_v19  ;;  %v2942_v2 = vsel %vm2024_vm0, %v2930_v14, %v2932_v24  ;;  %v3385_v14 = vld [vmem:[#allocation8 + $0x7f8] sm:$0xff]  ;;  %v3378_v19 = vld [vmem:[#allocation8 + $0x7c0] sm:$0xff] }
 0x550   : > { %6393 = vmatprep.subr.bf16.mxu0 %v6392_v38  ;;  %6585 = vmatprep.subr.bf16.mxu1 %v6584_v28  ;;  %v3377_v38 = vld [vmem:[#allocation8 + $0x7b8] sm:$0xff]  ;;  %v6398_v28 = vpack.c.bf16 %v3366_v35, %v3362_v15  ;;  %v6400_v9 = vpack.c.bf16 %v3375_v33, %v3371_v5  ;;  %v3383_v15 = vld [vmem:[#allocation8 + $0x7e8] sm:$0xff]  ;;  %v3382_v49 = vld [vmem:[#allocation8 + $0x7e0] sm:$0xff]  ;;  %v2940_v5 = vsel %vm2024_vm0, %v2932_v24, %v2934_v31 }
 0x551   : > { %5963 = vmatmul.mubr.msk.f32.gmra.mrb[56].mxu0 %vm2043_vm8, %v2944_v57  ;;  %6027 = vmatmul.mubr.msk.f32.gmra.mrb[56].mxu1 %vm2043_vm8, %v2944_v57  ;;  %v6592_v39 = vpack.c.bf16 %v3377_v38, %v3373_v16  ;;  %v3379_v57 = vld [vmem:[#allocation8 + $0x7c8] sm:$0xff]  ;;  %v3381_v35 = vld [vmem:[#allocation8 + $0x7d8] sm:$0xff]  ;;  %v3380_v33 = vld [vmem:[#allocation8 + $0x7d0] sm:$0xff] }
 0x552   : > { %6395 = vmatpush1.bf16.msra.mxu0 %v6394_v46  ;;  %5964 = vmatprep.mubr.msk.f32.mxu0 %vm2046_vm10, %v2943_v58  ;;  %v3376_v46 = vld [vmem:[#allocation8 + $0x7b0] sm:$0xff]  ;;  %v3387_v38 = vld [vmem:[#allocation8 + $0x808] sm:$0xff]  ;;  %v3393_v24 = vld [vmem:[#allocation8 + $0x838] sm:$0xff] }
 0x553   : > { %6028 = vmatprep.mubr.msk.f32.mxu1 %vm2046_vm10, %v2943_v58  ;;  %6587 = vmatpush1.bf16.msra.mxu1 %v6586_v11  ;;  %v2941_v11 = vsel %vm2024_vm0, %v2933_v52, %v2935_v29  ;;  %v6404_v52 = vpack.c.bf16 %v3383_v15, %v3379_v57  ;;  %v6596_v58 = vpack.c.bf16 %v3385_v14, %v3381_v35  ;;  %v3384_v16 = vld [vmem:[#allocation8 + $0x7f0] sm:$0xff]  ;;  %v3395_v14 = vld [vmem:[#allocation8 + $0x848] sm:$0xff] }
 0x554   : > { %6397 = vmatprep.subr.bf16.mxu0 %v6396_v30  ;;  %6589 = vmatprep.subr.bf16.mxu1 %v6588_v3  ;;  %v6402_v30 = vpack.c.bf16 %v3374_v54, %v3370_v1  ;;  %v6594_v3 = vpack.c.bf16 %v3376_v46, %v3372_v23  ;;  %v3391_v1 = vld [vmem:[#allocation8 + $0x828] sm:$0xff]  ;;  %v3389_v54 = vld [vmem:[#allocation8 + $0x818] sm:$0xff]  ;;  %v3390_v23 = vld [vmem:[#allocation8 + $0x820] sm:$0xff]  ;;  %v11978_v46 = vrot.slane %v9672_v4, 7 }
 0x555   : > { %5965 = vmatmul.mubr.msk.f32.gmra.mrb[58].mxu0 %vm2046_vm10, %v2942_v2  ;;  %6029 = vmatmul.mubr.msk.f32.gmra.mrb[58].mxu1 %vm2046_vm10, %v2942_v2  ;;  %v6406_v2 = vpack.c.bf16 %v3382_v49, %v3378_v19  ;;  %v6408_v57 = vpack.c.bf16 %v3391_v1, %v3387_v38  ;;  %v3388_v15 = vld [vmem:[#allocation8 + $0x810] sm:$0xff]  ;;  %v3397_v19 = vld [vmem:[#allocation8 + $0x858] sm:$0xff]  ;;  %v3394_v49 = vld [vmem:[#allocation8 + $0x840] sm:$0xff] }
 0x556   : > { %6399 = vmatpush1.bf16.msra.mxu0 %v6398_v28  ;;  %5966 = vmatprep.mubr.msk.f32.mxu0 %vm2043_vm8, %v2941_v11  ;;  %v11977_v28 = vrot.slane %v9694_v18, 7  ;;  %v3392_v35 = vld [vmem:[#allocation8 + $0x830] sm:$0xff] }
 0x557   : > { %6030 = vmatprep.mubr.msk.f32.mxu1 %vm2043_vm8, %v2941_v11  ;;  %6591 = vmatpush1.bf16.msra.mxu1 %v6590_v17  ;;  %v9924_v11 = vpack.c.bf16 %v3393_v24, %v3389_v54  ;;  %v3400_v38 = vld [vmem:[#allocation8 + $0x870] sm:$0xff]  ;;  %v3405_v54 = vld [vmem:[#allocation8 + $0x898] sm:$0xff] }
 0x558   : > { %6401 = vmatprep.subr.bf16.mxu0 %v6400_v9  ;;  %6593 = vmatprep.subr.bf16.mxu1 %v6592_v39  ;;  %v2939_v17 = vsel %vm2024_vm0, %v2935_v29, %v11977_v28  ;;  %v6598_v9 = vpack.c.bf16 %v3384_v16, %v3380_v33  ;;  %v3386_v39 = vld [vmem:[#allocation8 + $0x800] sm:$0xff]  ;;  %v2938_v29 = vsel %vm2024_vm0, %v2934_v31, %v11978_v46  ;;  %v3401_v31 = vld [vmem:[#allocation8 + $0x878] sm:$0xff]  ;;  %v3396_v33 = vld [vmem:[#allocation8 + $0x850] sm:$0xff] }
 0x559   : > { %5967 = vmatmul.mubr.msk.f32.gmra.mrb[60].mxu0 %vm2043_vm8, %v2940_v5  ;;  %6031 = vmatmul.mubr.msk.f32.gmra.mrb[60].mxu1 %vm2043_vm8, %v2940_v5  ;;  %v3398_v5 = vld [vmem:[#allocation8 + $0x860] sm:$0xff]  ;;  %v9936_v16 = vpack.c.bf16 %v3401_v31, %v3397_v19  ;;  %v3403_v28 = vld [vmem:[#allocation8 + $0x888] sm:$0xff]  ;;  %v3409_v24 = vld [vmem:[#allocation8 + $0x8b8] sm:$0xff] }
 0x55a   : > { %6403 = vmatpush1.bf16.msra.mxu0 %v6402_v30  ;;  %5968 = vmatprep.mubr.msk.f32.mxu0 %vm2046_vm10, %v2939_v17  ;;  %v3399_v30 = vld [vmem:[#allocation8 + $0x868] sm:$0xff]  ;;  %v6414_v1 = vpack.c.bf16 %v3398_v5, %v3394_v49  ;;  %v3404_v46 = vld [vmem:[#allocation8 + $0x890] sm:$0xff]  ;;  %v3410_v19 = vld [vmem:[#allocation8 + $0x8c0] sm:$0xff] }
 0x55b   : > { %6032 = vmatprep.mubr.msk.f32.mxu1 %vm2046_vm10, %v2939_v17  ;;  %6595 = vmatpush1.bf16.msra.mxu1 %v6594_v3  ;;  %v6410_v3 = vpack.c.bf16 %v3390_v23, %v3386_v39  ;;  %v3407_v17 = vld [vmem:[#allocation8 + $0x8a8] sm:$0xff]  ;;  %v9946_v39 = vpack.c.bf16 %v3400_v38, %v3396_v33  ;;  %v3414_v31 = vld [vmem:[#allocation8 + $0x8e0] sm:$0xff]  ;;  %v3416_v38 = vld [vmem:[#allocation8 + $0x8f0] sm:$0xff] }
 0x55c   : > { %6405 = vmatprep.subr.bf16.mxu0 %v6404_v52  ;;  %6597 = vmatprep.subr.bf16.mxu1 %v6596_v58  ;;  %v9933_v52 = vpack.c.bf16 %v3392_v35, %v3388_v15  ;;  %v6412_v58 = vpack.c.bf16 %v3399_v30, %v3395_v14  ;;  %v6416_v23 = vpack.c.bf16 %v3407_v17, %v3403_v28  ;;  %v3411_v15 = vld [vmem:[#allocation8 + $0x8c8] sm:$0xff]  ;;  %v3413_v30 = vld [vmem:[#allocation8 + $0x8d8] sm:$0xff] }
 0x55d   : > { %5969 = vmatmul.mubr.msk.f32.gmra.mrb[62].mxu0 %vm2046_vm10, %v2938_v29  ;;  %6033 = vmatmul.mubr.msk.f32.gmra.mrb[62].mxu1 %vm2046_vm10, %v2938_v29  ;;  %v9952_v29 = vpack.c.bf16 %v3409_v24, %v3405_v54  ;;  %v3415_v35 = vld [vmem:[#allocation8 + $0x8e8] sm:$0xff]  ;;  %v3421_v54 = vld [vmem:[#allocation8 + $0x918] sm:$0xff] }
 0x55e   : > { %6407 = vmatpush1.bf16.msra.mxu0 %v6406_v2  ;;  %3761 = vmatprep.mubr.f32.mxu0 %v9688_v59  ;;  %v3402_v2 = vld [vmem:[#allocation8 + $0x880] sm:$0xff]  ;;  %v6420_v5 = vpack.c.bf16 %v3415_v35, %v3411_v15  ;;  %v3419_v28 = vld [vmem:[#allocation8 + $0x908] sm:$0xff]  ;;  %v3425_v24 = vld [vmem:[#allocation8 + $0x938] sm:$0xff] }
 0x55f   : > { %6599 = vmatpush1.bf16.msra.mxu1 %v6598_v9  ;;  %4244 = vmatprep.mubr.f32.mxu1 %v9688_v59  ;;  %v3406_v9 = vld [vmem:[#allocation8 + $0x8a0] sm:$0xff]  ;;  %v3423_v17 = vld [vmem:[#allocation8 + $0x928] sm:$0xff]  ;;  %v9980_v15 = vpack.c.bf16 %v3425_v24, %v3421_v54  ;;  %v3424_v35 = vld [vmem:[#allocation8 + $0x930] sm:$0xff] }
 0x560   : > { %6409 = vmatprep.subr.bf16.mxu0 %v6408_v57  ;;  %6664 = vmatprep.subr.bf16.mxu1 %v9924_v11  ;;  %v3408_v57 = vld [vmem:[#allocation8 + $0x8b0] sm:$0xff]  ;;  %v6418_v14 = vpack.c.bf16 %v3406_v9, %v3402_v2  ;;  %v3418_v2 = vld [vmem:[#allocation8 + $0x900] sm:$0xff]  ;;  %v3435_v24 = vld [vmem:[#allocation8 + $0x988] sm:$0xff] }
 0x561   : > { %3762 = vmatmul.mubr.f32.vlgmr.msra.gmra.mrb[32].mxu0 %v9670_v10  ;;  %v9960_v49 = vpack.c.bf16 %v3408_v57, %v3404_v46  ;;  %v3422_v9 = vld [vmem:[#allocation8 + $0x920] sm:$0xff]  ;;  %v6424_v46 = vpack.c.bf16 %v3423_v17, %v3419_v28  ;;  %v3420_v57 = vld [vmem:[#allocation8 + $0x910] sm:$0xff]  ;;  %11979 = vst [vmem:[#allocation20_spill] sm:$0xff] %v9980_v15 }
 0x562   : > { %6411 = vmatpush1.bf16.msra.mxu0 %v6410_v3  ;;  %4245 = vmatmul.mubr.f32.vlgmr.msra.gmra.mrb[32].mxu1 %v9670_v10  ;;  %v3417_v3 = vld [vmem:[#allocation8 + $0x8f8] sm:$0xff]  ;;  %v3428_v17 = vld [vmem:[#allocation8 + $0x950] sm:$0xff] }
 0x563   : > { %5970 = vmatprep.mubr.msk.f32.mxu0 %vm2072_vm9, %v9356_v44  ;;  %6034 = vmatprep.mubr.msk.f32.mxu1 %vm2072_vm9, %v9356_v44  ;;  %v9964_v33 = vpack.c.bf16 %v3417_v3, %v3413_v30  ;;  %v3431_v30 = vld [vmem:[#allocation8 + $0x968] sm:$0xff]  ;;  %v6426_v3 = vpack.c.bf16 %v3422_v9, %v3418_v2  ;;  %v3432_v54 = vld [vmem:[#allocation8 + $0x970] sm:$0xff] }
 0x564   : > { %6680 = vmatpush1.bf16.msra.mxu1 %v9933_v52  ;;  %6413 = vmatprep.subr.bf16.mxu0 %v6412_v58  ;;  %v3412_v58 = vld [vmem:[#allocation8 + $0x8d0] sm:$0xff]  ;;  %v3439_v2 = vld [vmem:[#allocation8 + $0x9a8] sm:$0xff] }
 0x565   : > { %5971 = vmatmul.mubr.msk.f32.gmra.mrb[34].mxu0 %vm2072_vm9, %v9350_v40  ;;  %6665 = vmatprep.subr.bf16.mxu1 %v9936_v16 }
 0x566   : > { %6415 = vmatpush1.bf16.msra.mxu0 %v6414_v1  ;;  %6035 = vmatmul.mubr.msk.f32.gmra.mrb[34].mxu1 %vm2072_vm9, %v9350_v40  ;;  %v6422_v1 = vpack.c.bf16 %v3414_v31, %v3410_v19  ;;  %v3429_v19 = vld [vmem:[#allocation8 + $0x958] sm:$0xff] }
 0x567   : > { %3773 = vmatprep.mubr.f32.mxu0 %v9381_v63  ;;  %4256 = vmatprep.mubr.f32.mxu1 %v9381_v63  ;;  %v3433_v31 = vld [vmem:[#allocation8 + $0x978] sm:$0xff] }
 0x568   : > { %6681 = vmatpush1.bf16.msra.mxu1 %v9946_v39  ;;  %6417 = vmatprep.subr.bf16.mxu0 %v6416_v23  ;;  %v9974_v23 = vpack.c.bf16 %v3416_v38, %v3412_v58  ;;  %v3430_v58 = vld [vmem:[#allocation8 + $0x960] sm:$0xff]  ;;  %v9988_v38 = vpack.c.bf16 %v3424_v35, %v3420_v57  ;;  %v10002_v35 = vpack.c.bf16 %v3432_v54, %v3428_v17  ;;  %v3449_v17 = vld [vmem:[#allocation8 + $0x9f8] sm:$0xff] }
 0x569   : > { %3774 = vmatmul.mubr.f32.gmra.mrb[36].mxu0 %v9375_v0  ;;  %6666 = vmatprep.subr.bf16.mxu1 %v9952_v29  ;;  %v3438_v57 = vld [vmem:[#allocation8 + $0x9a0] sm:$0xff] }
 0x56a   : > { %6419 = vmatpush1.bf16.msra.mxu0 %v6418_v14  ;;  %4257 = vmatmul.mubr.f32.gmra.mrb[36].mxu1 %v9375_v0  ;;  %v3427_v14 = vld [vmem:[#allocation8 + $0x948] sm:$0xff]  ;;  %11980 = vst [vmem:[#allocation22_spill] sm:$0xff] %v9988_v38  ;;  %11982 = vst [vmem:[#allocation23_spill] sm:$0xff] %v10002_v35  ;;  %v3442_v54 = vld [vmem:[#allocation8 + $0x9c0] sm:$0xff] }
 0x56b   : > { %5972 = vmatprep.mubr.msk.f32.mxu0 %vm2072_vm9, %v9407_v61  ;;  %6036 = vmatprep.mubr.msk.f32.mxu1 %vm2072_vm9, %v9407_v61  ;;  %v6428_v28 = vpack.c.bf16 %v3431_v30, %v3427_v14  ;;  %v6432_v14 = vpack.c.bf16 %v3439_v2, %v3435_v24  ;;  %v3436_v30 = vld [vmem:[#allocation8 + $0x990] sm:$0xff]  ;;  %v3446_v24 = vld [vmem:[#allocation8 + $0x9e0] sm:$0xff] }
 0x56c   : > { %6682 = vmatpush1.bf16.msra.mxu1 %v9960_v49  ;;  %6421 = vmatprep.subr.bf16.mxu0 %v6420_v5  ;;  %v3426_v5 = vld [vmem:[#allocation8 + $0x940] sm:$0xff]  ;;  %v3444_v2 = vld [vmem:[#allocation8 + $0x9d0] sm:$0xff] }
 0x56d   : > { %5973 = vmatmul.mubr.msk.f32.gmra.mrb[38].mxu0 %vm2072_vm9, %v9404_v51  ;;  %6667 = vmatprep.subr.bf16.mxu1 %v9964_v33  ;;  %v6430_v9 = vpack.c.bf16 %v3430_v58, %v3426_v5  ;;  %v3447_v5 = vld [vmem:[#allocation8 + $0x9e8] sm:$0xff] }
 0x56e   : > { %6423 = vmatpush1.bf16.msra.mxu0 %v6422_v1  ;;  %6037 = vmatmul.mubr.msk.f32.gmra.mrb[38].mxu1 %vm2072_vm9, %v9404_v51  ;;  %v9992_v1 = vpack.c.bf16 %v3433_v31, %v3429_v19  ;;  %v3440_v19 = vld [vmem:[#allocation8 + $0x9b0] sm:$0xff]  ;;  %v3443_v31 = vld [vmem:[#allocation8 + $0x9c8] sm:$0xff] }
 0x56f   : > { %3785 = vmatprep.mubr.f32.mxu0 %v9435_v55  ;;  %4268 = vmatprep.mubr.f32.mxu1 %v9435_v55 }
 0x570   : > { %6683 = vmatpush1.bf16.msra.mxu1 %v9974_v23  ;;  %6425 = vmatprep.subr.bf16.mxu0 %v6424_v46  ;;  %11981 = vst [vmem:[#allocation21_spill] sm:$0xff] %v9992_v1  ;;  %v3434_v46 = vld [vmem:[#allocation8 + $0x980] sm:$0xff] }
 0x571   : > { %3786 = vmatmul.mubr.f32.gmra.mrb[40].mxu0 %v9423_v48  ;;  %6668 = vmatprep.subr.bf16.mxu1 %v9980_v15  ;;  %v6434_v58 = vpack.c.bf16 %v3438_v57, %v3434_v46  ;;  %v3448_v46 = vld [vmem:[#allocation8 + $0x9f0] sm:$0xff]  ;;  %v3451_v57 = vld [vmem:[#allocation8 + $0xa08] sm:$0xff]  ;;  %v3453_v15 = vld [vmem:[#allocation8 + $0xa18] sm:$0xff] }
 0x572   : > { %6427 = vmatpush1.bf16.msra.mxu0 %v6426_v3  ;;  %4269 = vmatmul.mubr.f32.gmra.mrb[40].mxu1 %v9423_v48  ;;  %v10008_v3 = vpack.c.bf16 %v3441_v53, %v3437_v12  ;;  %v10016_v12 = vpack.c.bf16 %v3440_v19, %v3436_v30  ;;  %v6436_v53 = vpack.c.bf16 %v3447_v5, %v3443_v31  ;;  %v3454_v30 = vld [vmem:[#allocation8 + $0xa20] sm:$0xff]  ;;  %v3452_v5 = vld [vmem:[#allocation8 + $0xa10] sm:$0xff] }
 0x573   : > { %5974 = vmatprep.mubr.msk.f32.mxu0 %vm2072_vm9, %v9454_v45  ;;  %6038 = vmatprep.mubr.msk.f32.mxu1 %vm2072_vm9, %v9454_v45  ;;  %v10030_v19 = vpack.c.bf16 %v3448_v46, %v3444_v2  ;;  %v3458_v2 = vld [vmem:[#allocation8 + $0xa40] sm:$0xff] }
 0x574   : > { %6684 = vmatpush1.bf16.msra.mxu1 %v9988_v38  ;;  %6429 = vmatprep.subr.bf16.mxu0 %v6428_v28  ;;  %11983 = vst [vmem:[#allocation24_spill] sm:$0xff] %v10008_v3  ;;  %v3445_v28 = vld [vmem:[#allocation8 + $0x9d8] sm:$0xff]  ;;  %11984 = vst [vmem:[#allocation25_spill] sm:$0xff] %v10016_v12  ;;  %v6438_v38 = vpack.c.bf16 %v3446_v24, %v3442_v54  ;;  %v3463_v54 = vld [vmem:[#allocation8 + $0xa68] sm:$0xff] }
 0x575   : > { %5975 = vmatmul.mubr.msk.f32.gmra.mrb[42].mxu0 %vm2072_vm9, %v9447_v21  ;;  %6669 = vmatprep.subr.bf16.mxu1 %v9992_v1  ;;  %v3455_v1 = vld [vmem:[#allocation8 + $0xa28] sm:$0xff]  ;;  %11986 = vst [vmem:[#allocation27_spill] sm:$0xff] %v10030_v19  ;;  %v3462_v46 = vld [vmem:[#allocation8 + $0xa60] sm:$0xff] }
 0x576   : > { %6431 = vmatpush1.bf16.msra.mxu0 %v6430_v9  ;;  %6039 = vmatmul.mubr.msk.f32.gmra.mrb[42].mxu1 %vm2072_vm9, %v9447_v21  ;;  %v10020_v9 = vpack.c.bf16 %v3449_v17, %v3445_v28  ;;  %v6440_v31 = vpack.c.bf16 %v3455_v1, %v3451_v57  ;;  %v3456_v28 = vld [vmem:[#allocation8 + $0xa30] sm:$0xff]  ;;  %v3459_v17 = vld [vmem:[#allocation8 + $0xa48] sm:$0xff]  ;;  %v3465_v1 = vld [vmem:[#allocation8 + $0xa78] sm:$0xff] }
 0x577   : > { %3797 = vmatprep.mubr.f32.mxu0 %v9482_v6  ;;  %4280 = vmatprep.mubr.f32.mxu1 %v9482_v6 }
 0x578   : > { %6685 = vmatpush1.bf16.msra.mxu1 %v10002_v35  ;;  %6433 = vmatprep.subr.bf16.mxu0 %v6432_v14  ;;  %11985 = vst [vmem:[#allocation26_spill] sm:$0xff] %v10020_v9  ;;  %v3457_v35 = vld [vmem:[#allocation8 + $0xa38] sm:$0xff]  ;;  %v3450_v14 = vld [vmem:[#allocation8 + $0xa00] sm:$0xff] }
 0x579   : > { %3798 = vmatmul.mubr.f32.gmra.mrb[44].mxu0 %v9468_v36  ;;  %6670 = vmatprep.subr.bf16.mxu1 %v10008_v3  ;;  %v6442_v24 = vpack.c.bf16 %v3454_v30, %v3450_v14  ;;  %v3464_v14 = vld [vmem:[#allocation8 + $0xa70] sm:$0xff]  ;;  %v3467_v30 = vld [vmem:[#allocation8 + $0xa88] sm:$0xff]  ;;  %v3469_v3 = vld [vmem:[#allocation8 + $0xa98] sm:$0xff] }
 0x57a   : > { %6435 = vmatpush1.bf16.msra.mxu0 %v6434_v58  ;;  %4281 = vmatmul.mubr.f32.gmra.mrb[44].mxu1 %v9468_v36  ;;  %v10036_v58 = vpack.c.bf16 %v3457_v35, %v3453_v15  ;;  %v10044_v15 = vpack.c.bf16 %v3456_v28, %v3452_v5  ;;  %v6444_v35 = vpack.c.bf16 %v3463_v54, %v3459_v17  ;;  %v3470_v5 = vld [vmem:[#allocation8 + $0xaa0] sm:$0xff]  ;;  %v3468_v54 = vld [vmem:[#allocation8 + $0xa90] sm:$0xff] }
 0x57b   : > { %5976 = vmatprep.mubr.msk.f32.mxu0 %vm2072_vm9, %v9504_v22  ;;  %6040 = vmatprep.mubr.msk.f32.mxu1 %vm2072_vm9, %v9504_v22 }
 0x57c   : > { %6686 = vmatpush1.bf16.msra.mxu1 %v10016_v12  ;;  %6437 = vmatprep.subr.bf16.mxu0 %v6436_v53  ;;  %11987 = vst [vmem:[#allocation28_spill] sm:$0xff] %v10036_v58  ;;  %v3461_v53 = vld [vmem:[#allocation8 + $0xa58] sm:$0xff]  ;;  %11988 = vst [vmem:[#allocation29_spill] sm:$0xff] %v10044_v15  ;;  %v6446_v12 = vpack.c.bf16 %v3462_v46, %v3458_v2  ;;  %v3479_v2 = vld [vmem:[#allocation8 + $0xae8] sm:$0xff] }
 0x57d   : > { %5977 = vmatmul.mubr.msk.f32.gmra.mrb[46].mxu0 %vm2072_vm9, %v9498_v56  ;;  %6671 = vmatprep.subr.bf16.mxu1 %v10020_v9  ;;  %v10048_v57 = vpack.c.bf16 %v3465_v1, %v3461_v53  ;;  %v3471_v9 = vld [vmem:[#allocation8 + $0xaa8] sm:$0xff]  ;;  %v3472_v53 = vld [vmem:[#allocation8 + $0xab0] sm:$0xff] }
 0x57e   : > { %6439 = vmatpush1.bf16.msra.mxu0 %v6438_v38  ;;  %6041 = vmatmul.mubr.msk.f32.gmra.mrb[46].mxu1 %vm2072_vm9, %v9498_v56  ;;  %v3460_v38 = vld [vmem:[#allocation8 + $0xa50] sm:$0xff]  ;;  %v6448_v17 = vpack.c.bf16 %v3471_v9, %v3467_v30  ;;  %v3475_v1 = vld [vmem:[#allocation8 + $0xac8] sm:$0xff]  ;;  %v3481_v9 = vld [vmem:[#allocation8 + $0xaf8] sm:$0xff] }
 0x57f   : > { %3809 = vmatprep.mubr.f32.mxu0 %v9526_v8  ;;  %4292 = vmatprep.mubr.f32.mxu1 %v9526_v8  ;;  %11989 = vst [vmem:[#allocation30_spill] sm:$0xff] %v10048_v57  ;;  %v10058_v28 = vpack.c.bf16 %v3464_v14, %v3460_v38  ;;  %v3474_v38 = vld [vmem:[#allocation8 + $0xac0] sm:$0xff] }
 0x580   : > { %6687 = vmatpush1.bf16.msra.mxu1 %v10030_v19  ;;  %6441 = vmatprep.subr.bf16.mxu0 %v6440_v31  ;;  %v3473_v19 = vld [vmem:[#allocation8 + $0xab8] sm:$0xff]  ;;  %v3466_v31 = vld [vmem:[#allocation8 + $0xa80] sm:$0xff] }
 0x581   : > { %3810 = vmatmul.mubr.f32.gmra.mrb[48].mxu0 %v9517_v20  ;;  %6672 = vmatprep.subr.bf16.mxu1 %v10036_v58  ;;  %11990 = vst [vmem:[#allocation31_spill] sm:$0xff] %v10058_v28  ;;  %v6450_v46 = vpack.c.bf16 %v3470_v5, %v3466_v31  ;;  %v3478_v14 = vld [vmem:[#allocation8 + $0xae0] sm:$0xff]  ;;  %v3480_v31 = vld [vmem:[#allocation8 + $0xaf0] sm:$0xff]  ;;  %v3483_v5 = vld [vmem:[#allocation8 + $0xb08] sm:$0xff] }
 0x582   : > { %6443 = vmatpush1.bf16.msra.mxu0 %v6442_v24  ;;  %4293 = vmatmul.mubr.f32.gmra.mrb[48].mxu1 %v9517_v20  ;;  %v10064_v24 = vpack.c.bf16 %v3473_v19, %v3469_v3  ;;  %v10072_v3 = vpack.c.bf16 %v3472_v53, %v3468_v54  ;;  %v6452_v19 = vpack.c.bf16 %v3479_v2, %v3475_v1  ;;  %v3485_v58 = vld [vmem:[#allocation8 + $0xb18] sm:$0xff]  ;;  %v3486_v54 = vld [vmem:[#allocation8 + $0xb20] sm:$0xff]  ;;  %v3484_v2 = vld [vmem:[#allocation8 + $0xb10] sm:$0xff] }
 0x583   : > { %5978 = vmatprep.mubr.msk.f32.mxu0 %vm2072_vm9, %v9550_v37  ;;  %6042 = vmatprep.mubr.msk.f32.mxu1 %vm2072_vm9, %v9550_v37 }
 0x584   : > { %6688 = vmatpush1.bf16.msra.mxu1 %v10044_v15  ;;  %6445 = vmatprep.subr.bf16.mxu0 %v6444_v35  ;;  %11991 = vst [vmem:[#allocation32_spill] sm:$0xff] %v10064_v24  ;;  %v3477_v35 = vld [vmem:[#allocation8 + $0xad8] sm:$0xff]  ;;  %11992 = vst [vmem:[#allocation33_spill] sm:$0xff] %v10072_v3  ;;  %v6454_v15 = vpack.c.bf16 %v3478_v14, %v3474_v38  ;;  %v3495_v38 = vld [vmem:[#allocation8 + $0xb68] sm:$0xff] }
 0x585   : > { %5979 = vmatmul.mubr.msk.f32.gmra.mrb[50].mxu0 %vm2072_vm9, %v9544_v32  ;;  %6673 = vmatprep.subr.bf16.mxu1 %v10048_v57  ;;  %v10076_v30 = vpack.c.bf16 %v3481_v9, %v3477_v35  ;;  %v3487_v57 = vld [vmem:[#allocation8 + $0xb28] sm:$0xff]  ;;  %v3488_v35 = vld [vmem:[#allocation8 + $0xb30] sm:$0xff] }
 0x586   : > { %6447 = vmatpush1.bf16.msra.mxu0 %v6446_v12  ;;  %6043 = vmatmul.mubr.msk.f32.gmra.mrb[50].mxu1 %vm2072_vm9, %v9544_v32  ;;  %v3476_v12 = vld [vmem:[#allocation8 + $0xad0] sm:$0xff]  ;;  %v6456_v1 = vpack.c.bf16 %v3487_v57, %v3483_v5  ;;  %v3491_v9 = vld [vmem:[#allocation8 + $0xb48] sm:$0xff]  ;;  %v3497_v57 = vld [vmem:[#allocation8 + $0xb78] sm:$0xff] }
 0x587   : > { %3821 = vmatprep.mubr.f32.mxu0 %v9576_v25  ;;  %4304 = vmatprep.mubr.f32.mxu1 %v9576_v25  ;;  %11993 = vst [vmem:[#allocation34_spill] sm:$0xff] %v10076_v30  ;;  %v10086_v53 = vpack.c.bf16 %v3480_v31, %v3476_v12  ;;  %v3490_v12 = vld [vmem:[#allocation8 + $0xb40] sm:$0xff] }
 0x588   : > { %6689 = vmatpush1.bf16.msra.mxu1 %v10058_v28  ;;  %6449 = vmatprep.subr.bf16.mxu0 %v6448_v17  ;;  %v3489_v28 = vld [vmem:[#allocation8 + $0xb38] sm:$0xff]  ;;  %v3482_v17 = vld [vmem:[#allocation8 + $0xb00] sm:$0xff] }
 0x589   : > { %3822 = vmatmul.mubr.f32.gmra.mrb[52].mxu0 %v9566_v42  ;;  %6674 = vmatprep.subr.bf16.mxu1 %v10064_v24  ;;  %11994 = vst [vmem:[#allocation35_spill] sm:$0xff] %v10086_v53  ;;  %v6458_v14 = vpack.c.bf16 %v3486_v54, %v3482_v17  ;;  %v3494_v31 = vld [vmem:[#allocation8 + $0xb60] sm:$0xff]  ;;  %v3496_v17 = vld [vmem:[#allocation8 + $0xb70] sm:$0xff]  ;;  %v3499_v54 = vld [vmem:[#allocation8 + $0xb88] sm:$0xff] }
 0x58a   : > { %6451 = vmatpush1.bf16.msra.mxu0 %v6450_v46  ;;  %4305 = vmatmul.mubr.f32.gmra.mrb[52].mxu1 %v9566_v42  ;;  %v10092_v46 = vpack.c.bf16 %v3489_v28, %v3485_v58  ;;  %v10100_v58 = vpack.c.bf16 %v3488_v35, %v3484_v2  ;;  %v6460_v28 = vpack.c.bf16 %v3495_v38, %v3491_v9  ;;  %v3501_v24 = vld [vmem:[#allocation8 + $0xb98] sm:$0xff]  ;;  %v3502_v2 = vld [vmem:[#allocation8 + $0xba0] sm:$0xff]  ;;  %v3500_v38 = vld [vmem:[#allocation8 + $0xb90] sm:$0xff] }
 0x58b   : > { %5980 = vmatprep.mubr.msk.f32.mxu0 %vm2072_vm9, %v9602_v62  ;;  %6044 = vmatprep.mubr.msk.f32.mxu1 %vm2072_vm9, %v9602_v62 }
 0x58c   : > { %6690 = vmatpush1.bf16.msra.mxu1 %v10072_v3  ;;  %6453 = vmatprep.subr.bf16.mxu0 %v6452_v19  ;;  %v3493_v19 = vld [vmem:[#allocation8 + $0xb58] sm:$0xff]  ;;  %v6462_v3 = vpack.c.bf16 %v3494_v31, %v3490_v12  ;;  %v3511_v12 = vld [vmem:[#allocation8 + $0xbe8] sm:$0xff] }
 0x58d   : > { %5981 = vmatmul.mubr.msk.f32.gmra.mrb[54].mxu0 %vm2072_vm9, %v9584_v27  ;;  %6675 = vmatprep.subr.bf16.mxu1 %v10076_v30  ;;  %v10104_v5 = vpack.c.bf16 %v3497_v57, %v3493_v19  ;;  %v3503_v30 = vld [vmem:[#allocation8 + $0xba8] sm:$0xff]  ;;  %v3504_v19 = vld [vmem:[#allocation8 + $0xbb0] sm:$0xff] }
 0x58e   : > { %6455 = vmatpush1.bf16.msra.mxu0 %v6454_v15  ;;  %6045 = vmatmul.mubr.msk.f32.gmra.mrb[54].mxu1 %vm2072_vm9, %v9584_v27  ;;  %v3492_v15 = vld [vmem:[#allocation8 + $0xb50] sm:$0xff]  ;;  %v6464_v9 = vpack.c.bf16 %v3503_v30, %v3499_v54  ;;  %v3507_v57 = vld [vmem:[#allocation8 + $0xbc8] sm:$0xff]  ;;  %v3513_v30 = vld [vmem:[#allocation8 + $0xbf8] sm:$0xff] }
 0x58f   : > { %3833 = vmatprep.mubr.f32.mxu0 %v9618_v60  ;;  %4316 = vmatprep.mubr.f32.mxu1 %v9618_v60  ;;  %11995 = vst [vmem:[#allocation36_spill] sm:$0xff] %v10104_v5  ;;  %v10114_v35 = vpack.c.bf16 %v3496_v17, %v3492_v15  ;;  %v3506_v15 = vld [vmem:[#allocation8 + $0xbc0] sm:$0xff]  ;;  %v3508_v54 = vld [vmem:[#allocation8 + $0xbd0] sm:$0xff] }
 0x590   : > { %6691 = vmatpush1.bf16.msra.mxu1 %v10086_v53  ;;  %6457 = vmatprep.subr.bf16.mxu0 %v6456_v1  ;;  %v3505_v53 = vld [vmem:[#allocation8 + $0xbb8] sm:$0xff]  ;;  %v3498_v1 = vld [vmem:[#allocation8 + $0xb80] sm:$0xff] }
 0x591   : > { %3834 = vmatmul.mubr.f32.gmra.mrb[56].mxu0 %v9606_v50  ;;  %6676 = vmatprep.subr.bf16.mxu1 %v10092_v46  ;;  %11996 = vst [vmem:[#allocation37_spill] sm:$0xff] %v10114_v35  ;;  %v6466_v31 = vpack.c.bf16 %v3502_v2, %v3498_v1  ;;  %v3510_v17 = vld [vmem:[#allocation8 + $0xbe0] sm:$0xff]  ;;  %v3512_v1 = vld [vmem:[#allocation8 + $0xbf0] sm:$0xff] }
 0x592   : > { %6459 = vmatpush1.bf16.msra.mxu0 %v6458_v14  ;;  %4317 = vmatmul.mubr.f32.gmra.mrb[56].mxu1 %v9606_v50  ;;  %v10120_v14 = vpack.c.bf16 %v3505_v53, %v3501_v24  ;;  %v10128_v24 = vpack.c.bf16 %v3504_v19, %v3500_v38  ;;  %v6468_v53 = vpack.c.bf16 %v3511_v12, %v3507_v57  ;;  %v3059_v19 = vrot.slane %v9618_v60, 1 }
 0x593   : > { %5982 = vmatprep.mubr.msk.f32.mxu0 %vm2072_vm9, %v9646_v41  ;;  %6046 = vmatprep.mubr.msk.f32.mxu1 %vm2072_vm9, %v9646_v41  ;;  %v6470_v2 = vpack.c.bf16 %v3510_v17, %v3506_v15  ;;  %v10145_v38 = vpack.c.bf16 %v3512_v1, %v3508_v54  ;;  %v3036_v57 = vrot.slane %v9350_v40, 1  ;;  %v3060_v12 = vrot.slane %v9628_v26, 1 }
 0x594   : > { %6692 = vmatpush1.bf16.msra.mxu1 %v10100_v58  ;;  %6461 = vmatprep.subr.bf16.mxu0 %v6460_v28  ;;  %v3509_v28 = vld [vmem:[#allocation8 + $0xbd8] sm:$0xff]  ;;  %v3038_v40 = vrot.slane %v9375_v0, 1  ;;  %v3062_v0 = vrot.slane %v9661_v7, 1  ;;  %v3045_v17 = vrot.slane %v9454_v45, 1  ;;  %v3049_v1 = vrot.slane %v9504_v22, 1 }
 0x595   : > { %5983 = vmatmul.mubr.msk.f32.gmra.mrb[58].mxu0 %vm2072_vm9, %v9628_v26  ;;  %6677 = vmatprep.subr.bf16.mxu1 %v10104_v5  ;;  %v3035_v5 = vrot.slane %v9688_v59, 1  ;;  %v3034_v59 = vrot.slane %v9670_v10, 1 }
 0x596   : > { %6463 = vmatpush1.bf16.msra.mxu0 %v6462_v3  ;;  %6047 = vmatmul.mubr.msk.f32.gmra.mrb[58].mxu1 %vm2072_vm9, %v9628_v26  ;;  %v10132_v3 = vpack.c.bf16 %v3513_v30, %v3509_v28  ;;  %v3058_v28 = vrot.slane %v9606_v50, 1  ;;  %v12013_v50 = vld [vmem:[#allocation36_spill] sm:$0xff] }
 0x597   : > { %3845 = vmatprep.mubr.f32.mxu0 %v9692_v47  ;;  %4328 = vmatprep.mubr.f32.mxu1 %v9692_v47 }
 0x598   : > { %6693 = vmatpush1.bf16.msra.mxu1 %v10114_v35  ;;  %6465 = vmatprep.subr.bf16.mxu0 %v6464_v9  ;;  %v3061_v35 = vrot.slane %v9646_v41, 1  ;;  %v3037_v9 = vrot.slane %v9356_v44, 1  ;;  %v3039_v41 = vrot.slane %v9381_v63, 1  ;;  %v3063_v63 = vrot.slane %v9692_v47, 1  ;;  %v12014_v60 = vld [vmem:[#allocation37_spill] sm:$0xff] }
 0x599   : > { %3846 = vmatmul.mubr.f32.gmra.mrb[60].mxu0 %v9661_v7  ;;  %6678 = vmatprep.subr.bf16.mxu1 %v10120_v14  ;;  %v3041_v47 = vrot.slane %v9407_v61, 1  ;;  %v3065_v61 = vrot.slane %v9694_v18, 1 }
 0x59a   : > { %6467 = vmatpush1.bf16.msra.mxu0 %v6466_v31  ;;  %4329 = vmatmul.mubr.f32.gmra.mrb[60].mxu1 %v9661_v7  ;;  %v10159_v44 = vsel %vm2111_vm1, %v3035_v5, %v3037_v9  ;;  %v10165_v10 = vsel %vm2111_vm1, %v3059_v19, %v3061_v35  ;;  %v10176_v31 = vsel %vm2111_vm1, %v3034_v59, %v3036_v57  ;;  %v3040_v7 = vrot.slane %v9404_v51, 1 }
 0x59b   : > { %5984 = vmatprep.mubr.msk.f32.mxu0 %vm2072_vm9, %v9694_v18  ;;  %6048 = vmatprep.mubr.msk.f32.mxu1 %vm2072_vm9, %v9694_v18  ;;  %v10183_v26 = vsel %vm2111_vm1, %v3037_v9, %v3039_v41  ;;  %v10200_v30 = vsel %vm2111_vm1, %v3061_v35, %v3063_v63  ;;  %v10217_v35 = vsel %vm2111_vm1, %v3039_v41, %v3041_v47  ;;  %v3043_v18 = vrot.slane %v9435_v55, 1  ;;  %v11999_v9 = vld [vmem:[#allocation21_spill] sm:$0xff] }
 0x59c   : > { %6694 = vmatpush1.bf16.msra.mxu1 %v10128_v24  ;;  %6469 = vmatprep.subr.bf16.mxu0 %v6468_v53  ;;  %v3064_v51 = vrot.slane %v9672_v4, 1  ;;  %v10232_v15 = vsel %vm2111_vm1, %v3063_v63, %v3065_v61  ;;  %v10238_v55 = vsel %vm2111_vm1, %v3038_v40, %v3040_v7  ;;  %v3051_v41 = vrot.slane %v9526_v8, 1 }
 0x59d   : > { %5985 = vmatmul.mubr.msk.f32.gmra.mrb[62].mxu0 %vm2072_vm9, %v9672_v4  ;;  %6679 = vmatprep.subr.bf16.mxu1 %v10132_v3  ;;  %v3053_v8 = vrot.slane %v9550_v37, 1 }
 0x59e   : > { %6471 = vmatpush1.bf16.msra.mxu0 %v6470_v2  ;;  %6049 = vmatmul.mubr.msk.f32.gmra.mrb[62].mxu1 %vm2072_vm9, %v9672_v4  ;;  %v10244_v4 = vsel %vm2111_vm1, %v3041_v47, %v3043_v18  ;;  %v10280_v53 = vsel %vm2111_vm1, %v3064_v51, %v3034_v59  ;;  %v11998_v2 = vld [vmem:[#allocation22_spill] sm:$0xff]  ;;  %v12002_v47 = vld [vmem:[#allocation25_spill] sm:$0xff] }
 0x59f   : > { %3922 = vmatprep.mubr.f32.mxu0 %v10159_v44  ;;  %4477 = vmatprep.mubr.f32.mxu1 %v10165_v10  ;;  %v3079_v37 = vsel %vm2111_vm1, %v3051_v41, %v3053_v8 }
 0x5a0   : > { %6695 = vmatpush1.bf16.msra.mxu1 %v10145_v38  ;;  %6601 = vmatprep.subr.bf16.mxu0 %v9924_v11  ;;  %v10191_v11 = vsel %vm2111_vm1, %v3058_v28, %v3060_v12 }
 0x5a1   : > { %3923 = vmatmul.mubr.f32.vlgmr.msra.gmra.mrb[32].mxu0 %v10176_v31 }
 0x5a2   : > { %6603 = vmatpush1.bf16.msra.mxu0 %v9933_v52  ;;  %5986 = vmatprep.mubr.msk.f32.mxu0 %vm2133_vm11, %v10183_v26  ;;  %v10209_v52 = vsel %vm2111_vm1, %v3036_v57, %v3038_v40  ;;  %v12000_v57 = vld [vmem:[#allocation23_spill] sm:$0xff]  ;;  %v10327_v40 = vsel %vm2111_vm1, %v3049_v1, %v3051_v41 }
 0x5a3   : > { %4478 = vmatmul.mubr.f32.vlgmr.msra.gmra.mrb[56].mxu1 %v10191_v11  ;;  %6605 = vmatprep.subr.bf16.mxu0 %v9936_v16  ;;  %v10223_v16 = vsel %vm2111_vm1, %v3060_v12, %v3062_v0  ;;  %v12001_v12 = vld [vmem:[#allocation24_spill] sm:$0xff] }
 0x5a4   : > { %6062 = vmatprep.mubr.msk.f32.mxu1 %vm2133_vm11, %v10200_v30 }
 0x5a5   : > { %5987 = vmatmul.mubr.msk.f32.gmra.mrb[34].mxu0 %vm2133_vm11, %v10209_v52 }
 0x5a6   : > { %6607 = vmatpush1.bf16.msra.mxu0 %v9946_v39  ;;  %3934 = vmatprep.mubr.f32.mxu0 %v10217_v35  ;;  %v3042_v39 = vrot.slane %v9423_v48, 1  ;;  %v10258_v48 = vsel %vm2111_vm1, %v3065_v61, %v3035_v5  ;;  %v10274_v5 = vsel %vm2111_vm1, %v3043_v18, %v3045_v17  ;;  %v12004_v18 = vld [vmem:[#allocation27_spill] sm:$0xff] }
 0x5a7   : > { %6063 = vmatmul.mubr.msk.f32.gmra.mrb[58].mxu1 %vm2133_vm11, %v10223_v16  ;;  %6609 = vmatprep.subr.bf16.mxu0 %v9952_v29  ;;  %v10250_v29 = vsel %vm2111_vm1, %v3062_v0, %v3064_v51  ;;  %v12003_v0 = vld [vmem:[#allocation26_spill] sm:$0xff]  ;;  %v12005_v51 = vld [vmem:[#allocation28_spill] sm:$0xff] }
 0x5a8   : > { %4489 = vmatprep.mubr.f32.mxu1 %v10232_v15  ;;  %v10266_v45 = vsel %vm2111_vm1, %v3040_v7, %v3042_v39  ;;  %v3055_v7 = vrot.slane %v9576_v25, 1  ;;  %v12007_v25 = vld [vmem:[#allocation30_spill] sm:$0xff] }
 0x5a9   : > { %3935 = vmatmul.mubr.f32.gmra.mrb[36].mxu0 %v10238_v55 }
 0x5aa   : > { %6611 = vmatpush1.bf16.msra.mxu0 %v9960_v49  ;;  %5988 = vmatprep.mubr.msk.f32.mxu0 %vm2133_vm11, %v10244_v4  ;;  %v3044_v49 = vrot.slane %v9447_v21, 1  ;;  %v11997_v21 = vld [vmem:[#allocation20_spill] sm:$0xff] }
 0x5ab   : > { %4490 = vmatmul.mubr.f32.gmra.mrb[60].mxu1 %v10250_v29  ;;  %6613 = vmatprep.subr.bf16.mxu0 %v9964_v33  ;;  %v3047_v33 = vrot.slane %v9482_v6, 1  ;;  %v3046_v6 = vrot.slane %v9468_v36, 1  ;;  %v3048_v36 = vrot.slane %v9498_v56, 1  ;;  %v3050_v56 = vrot.slane %v9517_v20, 1 }
 0x5ac   : > { %6064 = vmatprep.mubr.msk.f32.mxu1 %vm2133_vm11, %v10258_v48  ;;  %v10289_v54 = vsel %vm2111_vm1, %v3042_v39, %v3044_v49  ;;  %v3052_v20 = vrot.slane %v9544_v32, 1  ;;  %v3077_v32 = vsel %vm2111_vm1, %v3053_v8, %v3055_v7 }
 0x5ad   : > { %5989 = vmatmul.mubr.msk.f32.gmra.mrb[38].mxu0 %vm2133_vm11, %v10266_v45  ;;  %v10305_v59 = vsel %vm2111_vm1, %v3044_v49, %v3046_v6  ;;  %v10313_v22 = vsel %vm2111_vm1, %v3047_v33, %v3049_v1  ;;  %v10321_v63 = vsel %vm2111_vm1, %v3046_v6, %v3048_v36  ;;  %v10337_v61 = vsel %vm2111_vm1, %v3048_v36, %v3050_v56  ;;  %v12008_v1 = vld [vmem:[#allocation31_spill] sm:$0xff]  ;;  %v12011_v36 = vld [vmem:[#allocation34_spill] sm:$0xff] }
 0x5ae   : > { %6615 = vmatpush1.bf16.msra.mxu0 %v9974_v23  ;;  %3946 = vmatprep.mubr.f32.mxu0 %v10274_v5  ;;  %v10295_v23 = vsel %vm2111_vm1, %v3045_v17, %v3047_v33  ;;  %v3078_v39 = vsel %vm2111_vm1, %v3050_v56, %v3052_v20  ;;  %v3054_v17 = vrot.slane %v9566_v42, 1  ;;  %v3057_v49 = vrot.slane %v9602_v62, 1  ;;  %v12006_v33 = vld [vmem:[#allocation29_spill] sm:$0xff]  ;;  %v12009_v62 = vld [vmem:[#allocation32_spill] sm:$0xff] }
 0x5af   : > { %6065 = vmatmul.mubr.msk.f32.gmra.mrb[62].mxu1 %vm2133_vm11, %v10280_v53  ;;  %6617 = vmatprep.subr.bf16.mxu0 %v11997_v21  ;;  %v3056_v6 = vrot.slane %v9584_v27, 1  ;;  %v12016_v56 = vsub.s32 1, %v8726_v43 }
 0x5b0   : > { %v3076_v21 = vsel %vm2111_vm1, %v3052_v20, %v3054_v17  ;;  %v3075_v42 = vsel %vm2111_vm1, %v3055_v7, %v3057_v49  ;;  %v3073_v27 = vsel %vm2111_vm1, %v3057_v49, %v3059_v19 }
 0x5b1   : > { %3947 = vmatmul.mubr.f32.gmra.mrb[40].mxu0 %v10289_v54  ;;  %v3072_v41 = vsel %vm2111_vm1, %v3056_v6, %v3058_v28 }
 0x5b2   : > { %6619 = vmatpush1.bf16.msra.mxu0 %v11998_v2  ;;  %5990 = vmatprep.mubr.msk.f32.mxu0 %vm2133_vm11, %v10295_v23  ;;  %v3074_v2 = vsel %vm2111_vm1, %v3054_v17, %v3056_v6 }
 0x5b3   : > { %6621 = vmatprep.subr.bf16.mxu0 %v11999_v9  ;;  %v12010_v9 = vld [vmem:[#allocation33_spill] sm:$0xff] }
 0x5b5   : > { %5991 = vmatmul.mubr.msk.f32.gmra.mrb[42].mxu0 %vm2133_vm11, %v10305_v59 }
 0x5b6   : > { %6623 = vmatpush1.bf16.msra.mxu0 %v12000_v57  ;;  %3958 = vmatprep.mubr.f32.mxu0 %v10313_v22  ;;  %v12012_v57 = vld [vmem:[#allocation35_spill] sm:$0xff] }
 0x5b7   : > { %6625 = vmatprep.subr.bf16.mxu0 %v12001_v12  ;;  %v12015_v12 = vsub.s32 0, %v8726_v43 }
 0x5b9   : > { %3959 = vmatmul.mubr.f32.gmra.mrb[44].mxu0 %v10321_v63 }
 0x5ba   : > { %6627 = vmatpush1.bf16.msra.mxu0 %v12002_v47  ;;  %5992 = vmatprep.mubr.msk.f32.mxu0 %vm2133_vm11, %v10327_v40 }
 0x5bb   : > { %6629 = vmatprep.subr.bf16.mxu0 %v12003_v0 }
 0x5bd   : > { %5993 = vmatmul.mubr.msk.f32.gmra.mrb[46].mxu0 %vm2133_vm11, %v10337_v61 }
 0x5be   : > { %6631 = vmatpush1.bf16.msra.mxu0 %v12004_v18  ;;  %3970 = vmatprep.mubr.f32.mxu0 %v3079_v37 }
 0x5bf   : > { %6633 = vmatprep.subr.bf16.mxu0 %v12005_v51 }
 0x5c1   : > { %3971 = vmatmul.mubr.f32.gmra.mrb[48].mxu0 %v3078_v39 }
 0x5c2   : > { %6635 = vmatpush1.bf16.msra.mxu0 %v12006_v33  ;;  %5994 = vmatprep.mubr.msk.f32.mxu0 %vm2133_vm11, %v3077_v32 }
 0x5c3   : > { %6637 = vmatprep.subr.bf16.mxu0 %v12007_v25 }
 0x5c5   : > { %5995 = vmatmul.mubr.msk.f32.gmra.mrb[50].mxu0 %vm2133_vm11, %v3076_v21 }
 0x5c6   : > { %6639 = vmatpush1.bf16.msra.mxu0 %v12008_v1  ;;  %3982 = vmatprep.mubr.f32.mxu0 %v3075_v42 }
 0x5c7   : > { %6641 = vmatprep.subr.bf16.mxu0 %v12009_v62 }
 0x5c9   : > { %3983 = vmatmul.mubr.f32.gmra.mrb[52].mxu0 %v3074_v2 }
 0x5ca   : > { %6643 = vmatpush1.bf16.msra.mxu0 %v12010_v9  ;;  %5996 = vmatprep.mubr.msk.f32.mxu0 %vm2133_vm11, %v3073_v27 }
 0x5cb   : > { %6645 = vmatprep.subr.bf16.mxu0 %v12011_v36 }
 0x5cd   : > { %5997 = vmatmul.mubr.msk.f32.gmra.mrb[54].mxu0 %vm2133_vm11, %v3072_v41 }
 0x5ce   : > { %6647 = vmatpush1.bf16.msra.mxu0 %v12012_v57  ;;  %3994 = vmatprep.mubr.f32.mxu0 %v10165_v10 }
 0x5cf   : > { %6649 = vmatprep.subr.bf16.mxu0 %v10092_v46 }
 0x5d1   : > { %3995 = vmatmul.mubr.f32.gmra.mrb[56].mxu0 %v10191_v11 }
 0x5d2   : > { %6651 = vmatpush1.bf16.msra.mxu0 %v10100_v58  ;;  %5998 = vmatprep.mubr.msk.f32.mxu0 %vm2133_vm11, %v10200_v30 }
 0x5d3   : > { %6653 = vmatprep.subr.bf16.mxu0 %v12013_v50 }
 0x5d5   : > { %5999 = vmatmul.mubr.msk.f32.gmra.mrb[58].mxu0 %vm2133_vm11, %v10223_v16 }
 0x5d6   : > { %6655 = vmatpush1.bf16.msra.mxu0 %v12014_v60  ;;  %4006 = vmatprep.mubr.f32.mxu0 %v10232_v15 }
 0x5d7   : > { %6657 = vmatprep.subr.bf16.mxu0 %v10120_v14 }
 0x5d9   : > { %4007 = vmatmul.mubr.f32.gmra.mrb[60].mxu0 %v10250_v29 }
 0x5da   : > { %6659 = vmatpush1.bf16.msra.mxu0 %v10128_v24  ;;  %6000 = vmatprep.mubr.msk.f32.mxu0 %vm2133_vm11, %v10258_v48 }
 0x5db   : > { %6661 = vmatprep.subr.bf16.mxu0 %v10132_v3 }
 0x5dd   : > { %6001 = vmatmul.mubr.msk.f32.gmra.mrb[62].mxu0 %vm2133_vm11, %v10280_v53  ;;  %v3526_v53 = vsub.s32 2, %v8726_v43 }
 0x5de   : > { %6663 = vmatpush1.bf16.msra.mxu0 %v10145_v38  ;;  %4405 = vmatprep.mubr.f32.mxu0 %v10159_v44 }
 0x5e1   : > { %4406 = vmatmul.mubr.f32.vlgmr.msra.gmra.mrb[64].mxu0 %v10176_v31 }
 0x5e2   : > { %6050 = vmatprep.mubr.msk.f32.mxu0 %vm2133_vm11, %v10183_v26 }
 0x5e5   : > { %6051 = vmatmul.mubr.msk.f32.gmra.mrb[66].mxu0 %vm2133_vm11, %v10209_v52 }
 0x5e6   : > { %4417 = vmatprep.mubr.f32.mxu0 %v10217_v35 }
 0x5e9   : > { %4418 = vmatmul.mubr.f32.gmra.mrb[68].mxu0 %v10238_v55 }
 0x5ea   : > { %6052 = vmatprep.mubr.msk.f32.mxu0 %vm2133_vm11, %v10244_v4 }
 0x5ed   : > { %6053 = vmatmul.mubr.msk.f32.gmra.mrb[70].mxu0 %vm2133_vm11, %v10266_v45 }
 0x5ee   : > { %4429 = vmatprep.mubr.f32.mxu0 %v10274_v5 }
 0x5f1   : > { %4430 = vmatmul.mubr.f32.gmra.mrb[72].mxu0 %v10289_v54  ;;  %v3530_v54 = vsub.s32 3, %v8726_v43 }
 0x5f2   : > { %6054 = vmatprep.mubr.msk.f32.mxu0 %vm2133_vm11, %v10295_v23  ;;  %v3514_v23 = vld [vmem:[#allocation10] sm:$0xf] }
 0x5f5   : > { %6055 = vmatmul.mubr.msk.f32.gmra.mrb[74].mxu0 %vm2133_vm11, %v10305_v59  ;;  %v10466_v59 = vrot.slane %v3514_v23, %v3526_v53 }
 0x5f6   : > { %4441 = vmatprep.mubr.f32.mxu0 %v10313_v22  ;;  %v10468_v22 = vrot.slane %v3514_v23, %v3530_v54 }
 0x5f9   : > { %4442 = vmatmul.mubr.f32.gmra.mrb[76].mxu0 %v10321_v63  ;;  %v10472_v63 = vrot.slane %v3514_v23, %v12015_v12 }
 0x5fa   : > { %6056 = vmatprep.mubr.msk.f32.mxu0 %vm2133_vm11, %v10327_v40  ;;  %v10476_v40 = vrot.slane %v3514_v23, %v12016_v56 }
 0x5fd   : > { %6057 = vmatmul.mubr.msk.f32.gmra.mrb[78].mxu0 %vm2133_vm11, %v10337_v61 }
 0x5fe   : > { %4453 = vmatprep.mubr.f32.mxu0 %v3079_v37 }
 0x601   : > { %4454 = vmatmul.mubr.f32.gmra.mrb[80].mxu0 %v3078_v39 }
 0x602   : > { %6058 = vmatprep.mubr.msk.f32.mxu0 %vm2133_vm11, %v3077_v32 }
 0x605   : > { %6059 = vmatmul.mubr.msk.f32.gmra.mrb[82].mxu0 %vm2133_vm11, %v3076_v21 }
 0x606   : > { %4465 = vmatprep.mubr.f32.mxu0 %v3075_v42 }
 0x609   : > { %4466 = vmatmul.mubr.f32.gmra.mrb[84].mxu0 %v3074_v2 }
 0x60a   : > { %6060 = vmatprep.mubr.msk.f32.mxu0 %vm2133_vm11, %v3073_v27 }
 0x60d   : > { %6061 = vmatmul.mubr.msk.f32.gmra.mrb[86].mxu0 %vm2133_vm11, %v3072_v41 }
 0x635   : > { %v4246_v46 = vpop.f32.mrb[32].mxu1 }
 0x636   : > { %v4248_v58 = vpop.f32.mrb[33].mxu1  ;;  %v10479_v8 = vadd.f32 %v4246_v46, %v10466_v59 }
 0x637   : > { %v10482_v47 = vadd.f32 %v4248_v58, %v10468_v22 }
 0x639   : > { %v4252_v14 = vpop.f32.mrb[34].mxu1 }
 0x63a   : > { %v4254_v24 = vpop.f32.mrb[35].mxu1  ;;  %v10485_v0 = vadd.f32 %v4252_v14, %v10466_v59 }
 0x63b   : > { %v10488_v61 = vadd.f32 %v4254_v24, %v10468_v22 }
 0x63c   : > { %12017 = vst [vmem:[#allocation20_spill] sm:$0xff] %v10485_v0 }
 0x63d   : > { %v4258_v3 = vpop.f32.mrb[36].mxu1  ;;  %12018 = vst [vmem:[#allocation22_spill] sm:$0xff] %v10488_v61 }
 0x63e   : > { %v4260_v38 = vpop.f32.mrb[37].mxu1  ;;  %v10491_v20 = vadd.f32 %v4258_v3, %v10466_v59 }
 0x63f   : > { %v10494_v37 = vadd.f32 %v4260_v38, %v10468_v22 }
 0x640   : > { %12019 = vst [vmem:[#allocation21_spill] sm:$0xff] %v10491_v20 }
 0x641   : > { %v4264_v19 = vpop.f32.mrb[38].mxu1  ;;  %12020 = vst [vmem:[#allocation23_spill] sm:$0xff] %v10494_v37 }
 0x642   : > { %v4266_v44 = vpop.f32.mrb[39].mxu1  ;;  %v10497_v18 = vadd.f32 %v4264_v19, %v10466_v59 }
 0x643   : > { %v10500_v51 = vadd.f32 %v4266_v44, %v10468_v22 }
 0x644   : > { %12021 = vst [vmem:[#allocation24_spill] sm:$0xff] %v10497_v18 }
 0x645   : > { %v4270_v10 = vpop.f32.mrb[40].mxu1  ;;  %12022 = vst [vmem:[#allocation25_spill] sm:$0xff] %v10500_v51 }
 0x646   : > { %v4272_v31 = vpop.f32.mrb[41].mxu1  ;;  %v10503_v39 = vadd.f32 %v4270_v10, %v10466_v59 }
 0x647   : > { %v10507_v49 = vadd.f32 %v4272_v31, %v10468_v22 }
 0x648   : > { %12023 = vst [vmem:[#allocation26_spill] sm:$0xff] %v10503_v39 }
 0x649   : > { %v4276_v28 = vpop.f32.mrb[42].mxu1  ;;  %12024 = vst [vmem:[#allocation27_spill] sm:$0xff] %v10507_v49 }
 0x64a   : > { %v4278_v26 = vpop.f32.mrb[43].mxu1  ;;  %v10510_v33 = vadd.f32 %v4276_v28, %v10466_v59 }
 0x64b   : > { %v10513_v25 = vadd.f32 %v4278_v26, %v10468_v22 }
 0x64c   : > { %12025 = vst [vmem:[#allocation28_spill] sm:$0xff] %v10510_v33 }
 0x64d   : > { %v4282_v11 = vpop.f32.mrb[44].mxu1  ;;  %12026 = vst [vmem:[#allocation29_spill] sm:$0xff] %v10513_v25 }
 0x64e   : > { %v4284_v30 = vpop.f32.mrb[45].mxu1  ;;  %v10517_v42 = vadd.f32 %v4282_v11, %v10466_v59 }
 0x64f   : > { %v10520_v1 = vadd.f32 %v4284_v30, %v10468_v22 }
 0x650   : > { %12027 = vst [vmem:[#allocation30_spill] sm:$0xff] %v10517_v42 }
 0x651   : > { %v4288_v52 = vpop.f32.mrb[46].mxu1  ;;  %12028 = vst [vmem:[#allocation31_spill] sm:$0xff] %v10520_v1 }
 0x652   : > { %v4290_v35 = vpop.f32.mrb[47].mxu1  ;;  %v10526_v9 = vadd.f32 %v4288_v52, %v10466_v59 }
 0x653   : > { %v10529_v36 = vadd.f32 %v4290_v35, %v10468_v22 }
 0x654   : > { %12029 = vst [vmem:[#allocation32_spill] sm:$0xff] %v10526_v9 }
 0x655   : > { %v10448_v16 = vpop.f32.mrb[48].mxu1  ;;  %12030 = vst [vmem:[#allocation33_spill] sm:$0xff] %v10529_v36 }
 0x656   : > { %v10450_v15 = vpop.f32.mrb[49].mxu1 }
 0x659   : > { %v10452_v55 = vpop.f32.mrb[50].mxu1 }
 0x65a   : > { %v10454_v4 = vpop.f32.mrb[51].mxu1 }
 0x65d   : > { %v10456_v29 = vpop.f32.mrb[52].mxu1 }
 0x65e   : > { %v10458_v48 = vpop.f32.mrb[53].mxu1 }
 0x661   : > { %v10460_v45 = vpop.f32.mrb[54].mxu1 }
 0x662   : > { %v10462_v5 = vpop.f32.mrb[55].mxu1 }
 0x674   : > { %v3924_v7 = vpop.f32.mrb[32].mxu0 }
 0x675   : > { %v6728_v17 = vadd.f32 %v3924_v7, %v10472_v63  ;;  %v3926_v32 = vpop.f32.mrb[33].mxu0 }
 0x676   : > { %v4479_v21 = vpop.f32.mrb[56].mxu1  ;;  %v6729_v6 = vadd.f32 %v3926_v32, %v10476_v40 }
 0x677   : > { %v10522_v62 = vmax.f32 %v6728_v17, 0.0  ;;  %v6808_v2 = vadd.f32 %v4479_v21, %v10466_v59  ;;  %v4481_v27 = vpop.f32.mrb[57].mxu1 }
 0x678   : > { %v10531_v41 = vmax.f32 %v6729_v6, 0.0  ;;  %v6809_v57 = vadd.f32 %v4481_v27, %v10468_v22  ;;  %v3930_v50 = vpop.f32.mrb[34].mxu0 }
 0x679   : > { %v11912_v60 = vrot.slane %v10522_v62, 7  ;;  %v11911_v46 = vrot.slane %v10522_v62, 1  ;;  %v10536_v58 = vmax.f32 %v6808_v2, 0.0  ;;  %v6730_v14 = vadd.f32 %v3930_v50, %v10472_v63  ;;  %v3932_v24 = vpop.f32.mrb[35].mxu0 }
 0x67a   : > { %v11913_v3 = vrot.slane %v10531_v41, 7  ;;  %v11915_v38 = vrot.slane %v10531_v41, 1  ;;  %v10541_v19 = vmax.f32 %v6809_v57, 0.0  ;;  %v4485_v44 = vpop.f32.mrb[58].mxu1  ;;  %v6731_v10 = vadd.f32 %v3932_v24, %v10476_v40 }
 0x67b   : > { %12031 = vst [vmem:[#allocation34_spill] sm:$0xff] %v10536_v58  ;;  %v11916_v31 = vrot.slane %v10536_v58, 7  ;;  %v11920_v28 = vrot.slane %v10536_v58, 1  ;;  %v10546_v26 = vmax.f32 %v6730_v14, 0.0  ;;  %v6810_v11 = vadd.f32 %v4485_v44, %v10466_v59  ;;  %v4487_v30 = vpop.f32.mrb[59].mxu1 }
 0x67c   : > { %12032 = vst [vmem:[#allocation35_spill] sm:$0xff] %v10541_v19  ;;  %v10551_v53 = vmax.f32 %v6731_v10, 0.0  ;;  %v6811_v54 = vadd.f32 %v4487_v30, %v10468_v22  ;;  %v3936_v23 = vpop.f32.mrb[36].mxu0 }
 0x67d   : > { %v4570_v12 = vrot.slane %v10546_v26, 7  ;;  %v10558_v56 = vsel %vm2072_vm9, %v10546_v26, -inf  ;;  %v4890_v7 = vrot.slane %v10546_v26, 1  ;;  %v10561_v17 = vmax.f32 %v6810_v11, 0.0  ;;  %v3938_v32 = vpop.f32.mrb[37].mxu0 }
 0x67e   : > { %v11914_v21 = vrot.slane %v10551_v53, 7  ;;  %v10567_v6 = vsel %vm2072_vm9, %v10551_v53, -inf  ;;  %v11917_v2 = vrot.slane %v10551_v53, 1  ;;  %v10570_v27 = vmax.f32 %v6811_v54, 0.0  ;;  %v4491_v57 = vpop.f32.mrb[60].mxu1 }
 0x67f   : > { %v4686_v50 = vsel %vm2024_vm0, %v11912_v60, %v4570_v12  ;;  %v10580_v14 = vsel %vm2111_vm1, %v11911_v46, %v4890_v7  ;;  %v4620_v24 = vrot.slane %v10561_v17, 7  ;;  %v4812_v44 = vsel %vm2072_vm9, %v10561_v17, -inf  ;;  %v4493_v10 = vpop.f32.mrb[61].mxu1 }
 0x680   : > { %v4698_v11 = vsel %vm2046_vm10, %v4686_v50, -inf  ;;  %v4940_v30 = vrot.slane %v10561_v17, 1  ;;  %v4687_v54 = vsel %vm2024_vm0, %v11913_v3, %v11914_v21  ;;  %v10601_v46 = vsel %vm2111_vm1, %v11915_v38, %v11917_v2  ;;  %v3942_v60 = vpop.f32.mrb[38].mxu0 }
 0x681   : > { %v4826_v50 = vmax.f32 %v4698_v11, %v10558_v56  ;;  %v4640_v17 = vsel %vm2024_vm0, %v11916_v31, %v4620_v24  ;;  %v4699_v35 = vsel %vm2046_vm10, %v4687_v54, -inf  ;;  %v4621_v3 = vrot.slane %v10570_v27, 7  ;;  %v3944_v21 = vpop.f32.mrb[39].mxu0 }
 0x682   : > { %v4748_v52 = vsel %vm2046_vm10, %v4640_v17, -inf  ;;  %v10617_v38 = vsel %vm2111_vm1, %v11920_v28, %v4940_v30  ;;  %v4827_v56 = vmax.f32 %v4699_v35, %v10567_v6  ;;  %v10623_v11 = vsel %vm2072_vm9, %v10570_v27, -inf  ;;  %v4497_v54 = vpop.f32.mrb[62].mxu1 }
 0x683   : > { %12034 = vst [vmem:[#allocation36_spill] sm:$0xff] %v10617_v38  ;;  %v4876_v31 = vmax.f32 %v4748_v52, %v4812_v44  ;;  %v12035_v2 = vrot.slane %v10541_v19, 7  ;;  %v4941_v58 = vrot.slane %v10570_v27, 1  ;;  %v6732_v36 = vadd.f32 %v3936_v23, %v10472_v63  ;;  %v10631_v28 = vpop.f32.mrb[63].mxu1 }
 0x684   : > { %v6812_v6 = vadd.f32 %v4491_v57, %v10466_v59  ;;  %v6733_v38 = vadd.f32 %v3938_v32, %v10476_v40  ;;  %v6813_v52 = vadd.f32 %v4493_v10, %v10468_v22  ;;  %v10638_v44 = vpop.f32.mrb[40].mxu0  ;;  %v10654_v32 = vadd.f32 %v10448_v16, %v10466_v59 }
 0x685   : > { %v4641_v17 = vsel %vm2024_vm0, %v12035_v2, %v4621_v3  ;;  %v12036_v2 = vrot.slane %v10541_v19, 1  ;;  %v10647_v27 = vmax.f32 %v6732_v36, 0.0  ;;  %v10650_v1 = vpop.f32.mrb[41].mxu0 }
 0x686   : > { %v4749_v35 = vsel %vm2046_vm10, %v4641_v17, -inf  ;;  %v6734_v17 = vadd.f32 %v3942_v60, %v10472_v63  ;;  %12038 = vst [vmem:[#allocation18_spill] sm:$0xff] %v10654_v32  ;;  %v10656_v57 = vmax.f32 %v6812_v6, 0.0  ;;  %v10658_v10 = vmax.f32 %v6733_v38, 0.0 }
 0x687   : > { %v4877_v9 = vmax.f32 %v4749_v35, %v10623_v11  ;;  %v10645_v23 = vsel %vm2111_vm1, %v12036_v2, %v4941_v58  ;;  %v10660_v11 = vmax.f32 %v6813_v52, 0.0  ;;  %v4574_v35 = vrot.slane %v10647_v27, 7 }
 0x688   : > { %12037 = vst [vmem:[#allocation37_spill] sm:$0xff] %v10645_v23  ;;  %v4894_v2 = vrot.slane %v10647_v27, 1  ;;  %v10664_v36 = vmax.f32 %v6734_v17, 0.0  ;;  %v6814_v60 = vadd.f32 %v4497_v54, %v10466_v59  ;;  %v4624_v23 = vrot.slane %v10656_v57, 7  ;;  %v10671_v38 = vpop.f32.mrb[42].mxu0 }
 0x689   : > { %v4944_v19 = vrot.slane %v10656_v57, 1  ;;  %v4682_v52 = vsel %vm2024_vm0, %v4570_v12, %v4574_v35  ;;  %v10679_v42 = vpop.f32.mrb[43].mxu0  ;;  %v12054_v51 = vrot.slane %v10658_v10, 1 }
 0x68a   : > { %v5002_v32 = vsel %vm2111_vm1, %v4890_v7, %v4894_v2  ;;  %v4702_v33 = vsel %vm2043_vm8, %v4682_v52, -inf  ;;  %v4636_v16 = vsel %vm2024_vm0, %v4620_v24, %v4624_v23  ;;  %v12041_v24 = vrot.slane %v10551_v53, 7 }
 0x68b   : > { %v5018_v6 = vsel %vm2133_vm11, %v5002_v32, -inf  ;;  %v4956_v12 = vsel %vm2111_vm1, %v4940_v30, %v4944_v19  ;;  %v4830_v7 = vmax.f32 %v4702_v33, %v10647_v27  ;;  %v4752_v54 = vsel %vm2043_vm8, %v4636_v16, -inf }
 0x68c   : > { %v10690_v49 = vmax.f32 %v4826_v50, %v5018_v6  ;;  %v5068_v17 = vsel %vm2133_vm11, %v4956_v12, -inf  ;;  %v4880_v52 = vmax.f32 %v4752_v54, %v10656_v57  ;;  %v12040_v32 = vrot.slane %v10658_v10, 7  ;;  %v3960_v16 = vpop.f32.mrb[44].mxu0 }
 0x68d   : > { %v10697_v39 = vmax.f32 %v4876_v31, %v5068_v17  ;;  %v12042_v33 = vrot.slane %v10658_v10, 1  ;;  %v12043_v50 = vrot.slane %v10551_v53, 1  ;;  %v12044_v6 = vrot.slane %v10660_v11, 7  ;;  %v10720_v12 = vpop.f32.mrb[45].mxu0 }
 0x68e   : > { %v4683_v30 = vsel %vm2024_vm0, %v12041_v24, %v12040_v32  ;;  %v6735_v54 = vadd.f32 %v3944_v21, %v10476_v40  ;;  %v10724_v53 = vadd.f32 %v10450_v15, %v10468_v22  ;;  %v12047_v21 = vrot.slane %v10660_v11, 1 }
 0x68f   : > { %v5003_v27 = vsel %vm2111_vm1, %v12043_v50, %v12042_v33  ;;  %v4703_v57 = vsel %vm2043_vm8, %v4683_v30, -inf  ;;  %v4637_v17 = vsel %vm2024_vm0, %v4621_v3, %v12044_v6  ;;  %v10733_v33 = vadd.f32 %v10452_v55, %v10466_v59 }
 0x690   : > { %v5019_v31 = vsel %vm2133_vm11, %v5003_v27, -inf  ;;  %12045 = vst [vmem:[#allocation19_spill] sm:$0xff] %v10724_v53  ;;  %v4831_v32 = vmax.f32 %v4703_v57, %v10658_v10  ;;  %v4753_v30 = vsel %vm2043_vm8, %v4637_v17, -inf  ;;  %v4957_v50 = vsel %vm2111_vm1, %v4941_v58, %v12047_v21 }
 0x691   : > { %v10727_v24 = vmax.f32 %v4827_v56, %v5019_v31  ;;  %12046 = vst [vmem:[#allocation38_spill] sm:$0xff] %v10733_v33  ;;  %v4881_v3 = vmax.f32 %v4753_v30, %v10660_v11  ;;  %v4578_v15 = vrot.slane %v10664_v36, 7  ;;  %v10743_v56 = vadd.f32 %v10454_v4, %v10468_v22  ;;  %v10750_v31 = vpop.f32.mrb[46].mxu0 }
 0x692   : > { %v5069_v27 = vsel %vm2133_vm11, %v4957_v50, -inf  ;;  %v4898_v57 = vrot.slane %v10664_v36, 1  ;;  %v10748_v55 = vmax.f32 %v6814_v60, 0.0  ;;  %v10756_v17 = vmax.f32 %v6735_v54, 0.0  ;;  %v10760_v30 = vpop.f32.mrb[47].mxu0 }
 0x693   : > { %12048 = vst [vmem:[#allocation39_spill] sm:$0xff] %v10743_v56  ;;  %v10752_v6 = vmax.f32 %v4877_v9, %v5069_v27  ;;  %v4678_v58 = vsel %vm2024_vm0, %v4574_v35, %v4578_v15  ;;  %v6815_v4 = vadd.f32 %v10631_v28, %v10468_v22  ;;  %v4770_v60 = vsel %vm2072_vm9, %v10664_v36, -inf }
 0x694   : > { %v4706_v21 = vsel %vm2046_vm10, %v4678_v58, -inf  ;;  %v4998_v9 = vsel %vm2111_vm1, %v4894_v2, %v4898_v57  ;;  %v11923_v50 = vrot.slane %v10748_v55, 7  ;;  %v10773_v28 = vsel %vm2072_vm9, %v10748_v55, -inf }
 0x695   : > { %v4834_v35 = vmax.f32 %v4706_v21, %v4770_v60  ;;  %v5086_v54 = vmax.f32 %v4830_v7, %v4998_v9  ;;  %12049 = vst [vmem:[#allocation40_spill] sm:$0xff] %v10773_v28  ;;  %v11924_v27 = vrot.slane %v10748_v55, 1  ;;  %v4579_v36 = vrot.slane %v10756_v17, 7  ;;  %v10785_v21 = vpop.f32.mrb[48].mxu0 }
 0x696   : > { %v4632_v58 = vsel %vm2024_vm0, %v4624_v23, %v11923_v50  ;;  %v4771_v2 = vsel %vm2072_vm9, %v10756_v17, -inf  ;;  %v4899_v7 = vrot.slane %v10756_v17, 1  ;;  %v10795_v23 = vmax.f32 %v6815_v4, 0.0  ;;  %v10799_v56 = vpop.f32.mrb[49].mxu0 }
 0x697   : > { %v10789_v60 = vsel %vm2046_vm10, %v4632_v58, -inf  ;;  %v4952_v9 = vsel %vm2111_vm1, %v4944_v19, %v11924_v27  ;;  %v6736_v50 = vadd.f32 %v10638_v44, %v10472_v63  ;;  %v12053_v58 = vrot.slane %v10658_v10, 7 }
 0x698   : > { %12050 = vst [vmem:[#allocation41_spill] sm:$0xff] %v10789_v60  ;;  %12051 = vst [vmem:[#allocation42_spill] sm:$0xff] %v10795_v23  ;;  %v10803_v33 = vmax.f32 %v4880_v52, %v4952_v9  ;;  %v4999_v19 = vsel %vm2111_vm1, %v12054_v51, %v4899_v7  ;;  %v11925_v27 = vrot.slane %v10795_v23, 7  ;;  %v10819_v52 = vsel %vm2072_vm9, %v10795_v23, -inf  ;;  %v10824_v18 = vpop.f32.mrb[50].mxu0 }
 0x699   : > { %v4679_v53 = vsel %vm2024_vm0, %v12053_v58, %v4579_v36  ;;  %v5087_v4 = vmax.f32 %v4831_v32, %v4999_v19  ;;  %12055 = vst [vmem:[#allocation44_spill] sm:$0xff] %v10819_v52  ;;  %v11926_v17 = vrot.slane %v10795_v23, 1  ;;  %v4518_v58 = vmax.f32 %v6736_v50, 0.0  ;;  %v10837_v19 = vpop.f32.mrb[51].mxu0 }
 0x69a   : > { %12052 = vst [vmem:[#allocation43_spill] sm:$0xff] %v10803_v33  ;;  %v4707_v44 = vsel %vm2046_vm10, %v4679_v53, -inf  ;;  %v6737_v10 = vadd.f32 %v10650_v1, %v10476_v40  ;;  %v12056_v51 = vrot.slane %v10660_v11, 7  ;;  %v6738_v32 = vadd.f32 %v10671_v38, %v10472_v63 }
 0x69b   : > { %v4835_v9 = vmax.f32 %v4707_v44, %v4771_v2  ;;  %v6739_v2 = vadd.f32 %v10679_v42, %v10476_v40  ;;  %v6740_v50 = vadd.f32 %v3960_v16, %v10472_v63  ;;  %v12058_v44 = vrot.slane %v10660_v11, 1 }
 0x69c   : > { %v4633_v53 = vsel %vm2024_vm0, %v12056_v51, %v11925_v27  ;;  %v4582_v27 = vrot.slane %v4518_v58, 7  ;;  %v4902_v38 = vrot.slane %v4518_v58, 1  ;;  %v4519_v16 = vmax.f32 %v6737_v10, 0.0 }
 0x69d   : > { %v10841_v1 = vsel %vm2046_vm10, %v4633_v53, -inf  ;;  %v4953_v51 = vsel %vm2111_vm1, %v12058_v44, %v11926_v17  ;;  %v4522_v37 = vmax.f32 %v6738_v32, 0.0  ;;  %v10857_v61 = vmax.f32 %v6739_v2, 0.0  ;;  %v10861_v44 = vpop.f32.mrb[52].mxu0 }
 0x69e   : > { %12057 = vst [vmem:[#allocation45_spill] sm:$0xff] %v10841_v1  ;;  %v10851_v33 = vmax.f32 %v4881_v3, %v4953_v51  ;;  %v4674_v53 = vsel %vm2024_vm0, %v4578_v15, %v4582_v27  ;;  %v4994_v20 = vsel %vm2111_vm1, %v4898_v57, %v4902_v38  ;;  %v10859_v11 = vmax.f32 %v6740_v50, 0.0  ;;  %v10867_v51 = vpop.f32.mrb[53].mxu0 }
 0x69f   : > { %v4710_v17 = vsel %vm2043_vm8, %v4674_v53, -inf  ;;  %v5026_v3 = vsel %vm2133_vm11, %v4994_v20, -inf  ;;  %v4583_v10 = vrot.slane %v4519_v16, 7  ;;  %v4903_v32 = vrot.slane %v4519_v16, 1 }
 0x6a0   : > { %12059 = vst [vmem:[#allocation46_spill] sm:$0xff] %v10851_v33  ;;  %v4838_v15 = vmax.f32 %v4710_v17, %v4518_v58  ;;  %v5090_v42 = vmax.f32 %v4834_v35, %v5026_v3  ;;  %v4586_v33 = vrot.slane %v4522_v37, 7  ;;  %v4778_v57 = vsel %vm2072_vm9, %v4522_v37, -inf  ;;  %v10884_v3 = vpop.f32.mrb[54].mxu0 }
 0x6a1   : > { %v4675_v2 = vsel %vm2024_vm0, %v4579_v36, %v4583_v10  ;;  %v4995_v50 = vsel %vm2111_vm1, %v4899_v7, %v4903_v32  ;;  %v4906_v53 = vrot.slane %v4522_v37, 1  ;;  %v4587_v52 = vrot.slane %v10857_v61, 7  ;;  %v10888_v0 = vpop.f32.mrb[55].mxu0 }
 0x6a2   : > { %v5158_v20 = vsel %vm2072_vm9, %v5090_v42, -inf  ;;  %v4711_v17 = vsel %vm2043_vm8, %v4675_v2, -inf  ;;  %v5027_v35 = vsel %vm2133_vm11, %v4995_v50, -inf  ;;  %v4670_v58 = vsel %vm2024_vm0, %v4582_v27, %v4586_v33 }
 0x6a3   : > { %v5238_v36 = vmax.f32 %v5086_v54, %v5158_v20  ;;  %v4839_v1 = vmax.f32 %v4711_v17, %v4519_v16  ;;  %v5091_v7 = vmax.f32 %v4835_v9, %v5027_v35  ;;  %v4714_v37 = vsel %vm2046_vm10, %v4670_v58, -inf }
 0x6a4   : > { %v4842_v42 = vmax.f32 %v4714_v37, %v4778_v57  ;;  %v4990_v2 = vsel %vm2111_vm1, %v4902_v38, %v4906_v53  ;;  %v4671_v50 = vsel %vm2024_vm0, %v4583_v10, %v4587_v52  ;;  %v4779_v27 = vsel %vm2072_vm9, %v10857_v61, -inf  ;;  %v10903_v35 = vpop.f32.mrb[56].mxu0 }
 0x6a5   : > { %v5239_v28 = vrot.slane %v5238_v36, 4  ;;  %v5159_v54 = vsel %vm2072_vm9, %v5091_v7, -inf  ;;  %v5094_v9 = vmax.f32 %v4838_v15, %v4990_v2  ;;  %v4715_v16 = vsel %vm2046_vm10, %v4671_v50, -inf  ;;  %v10910_v7 = vpop.f32.mrb[57].mxu0 }
 0x6a6   : > { %v5245_v20 = vmax.f32 %v5087_v4, %v5159_v54  ;;  %v4843_v57 = vmax.f32 %v4715_v16, %v4779_v27  ;;  %v4907_v17 = vrot.slane %v10857_v61, 1  ;;  %v4590_v38 = vrot.slane %v10859_v11, 7 }
 0x6a7   : > { %v5240_v10 = vmax.f32 %v5238_v36, %v5239_v28  ;;  %v4910_v58 = vrot.slane %v10859_v11, 1  ;;  %v6741_v37 = vadd.f32 %v10720_v12, %v10476_v40  ;;  %v6742_v15 = vadd.f32 %v10750_v31, %v10472_v63 }
 0x6a8   : > { %v10914_v4 = vadd.f32 %v10456_v29, %v10466_v59  ;;  %v10918_v61 = vadd.f32 %v10458_v48, %v10468_v22  ;;  %v4991_v28 = vsel %vm2111_vm1, %v4903_v32, %v4907_v17  ;;  %v4666_v36 = vsel %vm2024_vm0, %v4586_v33, %v4590_v38  ;;  %v10933_v54 = vpop.f32.mrb[58].mxu0 }
 0x6a9   : > { %v5095_v12 = vmax.f32 %v4839_v1, %v4991_v28  ;;  %v4718_v31 = vsel %vm2043_vm8, %v4666_v36, -inf  ;;  %v4986_v2 = vsel %vm2111_vm1, %v4906_v53, %v4910_v58  ;;  %v6743_v29 = vadd.f32 %v10760_v30, %v10476_v40  ;;  %v10939_v53 = vpop.f32.mrb[59].mxu0 }
 0x6aa   : > { %12060 = vst [vmem:[#allocation47_spill] sm:$0xff] %v10914_v4  ;;  %12061 = vst [vmem:[#allocation48_spill] sm:$0xff] %v10918_v61  ;;  %v5246_v50 = vrot.slane %v5245_v20, 4  ;;  %v4846_v48 = vmax.f32 %v4718_v31, %v10859_v11  ;;  %v5034_v27 = vsel %vm2133_vm11, %v4986_v2, -inf  ;;  %v4527_v32 = vmax.f32 %v6741_v37, 0.0 }
 0x6ab   : > { %v10937_v33 = vadd.f32 %v10460_v45, %v10466_v59  ;;  %v5241_v1 = vrot.slane %v5240_v10, 2  ;;  %v5098_v16 = vmax.f32 %v4842_v42, %v5034_v27  ;;  %v4530_v28 = vmax.f32 %v6742_v15, 0.0 }
 0x6ac   : > { %v10943_v30 = vadd.f32 %v10462_v5, %v10468_v22  ;;  %v10948_v11 = vsel %vm2072_vm9, %v10690_v49, -inf  ;;  %v4591_v37 = vrot.slane %v4527_v32, 7  ;;  %v4911_v36 = vrot.slane %v4527_v32, 1  ;;  %v10963_v2 = vpop.f32.mrb[60].mxu0 }
 0x6ad   : > { %12062 = vst [vmem:[#allocation49_spill] sm:$0xff] %v10937_v33  ;;  %v10953_v45 = vsel %vm2072_vm9, %v10697_v39, -inf  ;;  %v5166_v59 = vsel %vm2072_vm9, %v5098_v16, -inf  ;;  %v4594_v42 = vrot.slane %v4530_v28, 7  ;;  %v10957_v15 = vmax.f32 %v6743_v29, 0.0 }
 0x6ae   : > { %12063 = vst [vmem:[#allocation50_spill] sm:$0xff] %v10943_v30  ;;  %12064 = vst [vmem:[#allocation51_spill] sm:$0xff] %v10953_v45  ;;  %v5247_v5 = vmax.f32 %v5245_v20, %v5246_v50  ;;  %v5266_v22 = vmax.f32 %v5094_v9, %v5166_v59  ;;  %v4667_v31 = vsel %vm2024_vm0, %v4587_v52, %v4591_v37  ;;  %v10971_v20 = vpop.f32.mrb[61].mxu0  ;;  %v4914_v59 = vrot.slane %v4530_v28, 1 }
 0x6af   : > { %v4987_v49 = vsel %vm2111_vm1, %v4907_v17, %v4911_v36  ;;  %v5242_v27 = vmax.f32 %v5240_v10, %v5241_v1  ;;  %v4719_v39 = vsel %vm2043_vm8, %v4667_v31, -inf  ;;  %v4662_v29 = vsel %vm2024_vm0, %v4590_v38, %v4594_v42 }
 0x6b0   : > { %v5035_v16 = vsel %vm2133_vm11, %v4987_v49, -inf  ;;  %v5267_v9 = vrot.slane %v5266_v22, 4  ;;  %v4847_v50 = vmax.f32 %v4719_v39, %v4527_v32  ;;  %v6744_v17 = vadd.f32 %v10785_v21, %v10472_v63  ;;  %v10982_v32 = vpop.f32.mrb[62].mxu0 }
 0x6b1   : > { %v5099_v52 = vmax.f32 %v4843_v57, %v5035_v16  ;;  %v4722_v10 = vsel %vm2046_vm10, %v4662_v29, -inf  ;;  %v4786_v1 = vsel %vm2072_vm9, %v4530_v28, -inf  ;;  %v4595_v31 = vrot.slane %v10957_v15, 7  ;;  %v10989_v28 = vpop.f32.mrb[63].mxu0 }
 0x6b2   : > { %v5248_v49 = vrot.slane %v5247_v5, 2  ;;  %v5268_v45 = vmax.f32 %v5266_v22, %v5267_v9  ;;  %v4850_v30 = vmax.f32 %v4722_v10, %v4786_v1  ;;  %v4982_v21 = vsel %vm2111_vm1, %v4910_v58, %v4914_v59 }
 0x6b3   : > { %v5167_v38 = vsel %vm2072_vm9, %v5099_v52, -inf  ;;  %v4663_v39 = vsel %vm2024_vm0, %v4591_v37, %v4595_v31  ;;  %v4915_v16 = vrot.slane %v10957_v15, 1  ;;  %v5102_v29 = vmax.f32 %v4846_v48, %v4982_v21 }
 0x6b4   : > { %v5273_v57 = vmax.f32 %v5095_v12, %v5167_v38  ;;  %v4723_v22 = vsel %vm2046_vm10, %v4663_v39, -inf  ;;  %v4787_v9 = vsel %vm2072_vm9, %v10957_v15, -inf  ;;  %v4534_v52 = vmax.f32 %v6744_v17, 0.0  ;;  %v11010_v38 = vpop.f32.mrb[64].mxu0 }
 0x6b5   : > { %v10999_v58 = vsel %vm2072_vm9, %v10727_v24, -inf  ;;  %v4851_v12 = vmax.f32 %v4723_v22, %v4787_v9  ;;  %v4983_v37 = vsel %vm2111_vm1, %v4911_v36, %v4915_v16  ;;  %v6745_v48 = vadd.f32 %v10799_v56, %v10476_v40  ;;  %v11016_v22 = vpop.f32.mrb[65].mxu0 }
 0x6b6   : > { %v11008_v10 = vsel %vm2072_vm9, %v10752_v6, -inf  ;;  %v5103_v1 = vmax.f32 %v4847_v50, %v4983_v37  ;;  %v4598_v15 = vrot.slane %v4534_v52, 7  ;;  %v4918_v17 = vrot.slane %v4534_v52, 1 }
 0x6b7   : > { %12065 = vst [vmem:[#allocation52_spill] sm:$0xff] %v11008_v10  ;;  %v5269_v21 = vrot.slane %v5268_v45, 2  ;;  %v4535_v24 = vmax.f32 %v6745_v48, 0.0  ;;  %v6746_v39 = vadd.f32 %v10824_v18, %v10472_v63  ;;  %v6747_v36 = vadd.f32 %v10837_v19, %v10476_v40 }
 0x6b8   : > { %v5243_v56 = vrot.slane %v5242_v27, 1  ;;  %v11018_v9 = vmax.f32 %v5247_v5, %v5248_v49  ;;  %v4658_v6 = vsel %vm2024_vm0, %v4594_v42, %v4598_v15  ;;  %v4978_v50 = vsel %vm2111_vm1, %v4914_v59, %v4918_v17  ;;  %v11030_v49 = vpop.f32.mrb[66].mxu0 }
 0x6b9   : > { %v5274_v37 = vrot.slane %v5273_v57, 4  ;;  %v4726_v48 = vsel %vm2043_vm8, %v4658_v6, -inf  ;;  %v5042_v18 = vsel %vm2133_vm11, %v4978_v50, -inf  ;;  %v4599_v10 = vrot.slane %v4535_v24, 7  ;;  %v11036_v6 = vpop.f32.mrb[67].mxu0 }
 0x6ba   : > { %v4854_v19 = vmax.f32 %v4726_v48, %v4534_v52  ;;  %v5106_v33 = vmax.f32 %v4850_v30, %v5042_v18  ;;  %v4919_v61 = vrot.slane %v4535_v24, 1  ;;  %v6748_v5 = vadd.f32 %v10861_v44, %v10472_v63  ;;  %12066 = vst [vmem:[#allocation53_spill] sm:$0xff] %v11036_v6 }
 0x6bb   : > { %v5270_v42 = vmax.f32 %v5268_v45, %v5269_v21  ;;  %v4659_v59 = vsel %vm2024_vm0, %v4595_v31, %v4599_v10  ;;  %v4538_v4 = vmax.f32 %v6746_v39, 0.0  ;;  %v11034_v60 = vmax.f32 %v6747_v36, 0.0 }
 0x6bc   : > { %v11038_v23 = vmax.f32 %v5242_v27, %v5243_v56  ;;  %v5174_v30 = vsel %vm2072_vm9, %v5106_v33, -inf  ;;  %v4727_v52 = vsel %vm2043_vm8, %v4659_v59, -inf  ;;  %v4979_v44 = vsel %vm2111_vm1, %v4915_v16, %v4919_v61  ;;  %v11051_v48 = vpop.f32.mrb[68].mxu0 }
 0x6bd   : > { %v5250_v45 = vrot.slane %v11018_v9, 1  ;;  %v5294_v21 = vmax.f32 %v5102_v29, %v5174_v30  ;;  %v4855_v31 = vmax.f32 %v4727_v52, %v4535_v24  ;;  %v5043_v39 = vsel %vm2133_vm11, %v4979_v44, -inf  ;;  %v11054_v16 = vpop.f32.mrb[69].mxu0 }
 0x6be   : > { %v5107_v36 = vmax.f32 %v4851_v12, %v5043_v39  ;;  %v4602_v50 = vrot.slane %v4538_v4, 7  ;;  %v4922_v27 = vrot.slane %v4538_v4, 1  ;;  %v11049_v56 = vmax.f32 %v6748_v5, 0.0  ;;  %12067 = vst [vmem:[#allocation54_spill] sm:$0xff] %v11054_v16 }
 0x6bf   : > { %v5271_v33 = vrot.slane %v5270_v42, 1  ;;  %v5275_v18 = vmax.f32 %v5273_v57, %v5274_v37  ;;  %v5295_v59 = vrot.slane %v5294_v21, 4  ;;  %v4603_v6 = vrot.slane %v11034_v60, 7 }
 0x6c0   : > { %v5175_v29 = vsel %vm2072_vm9, %v5107_v36, -inf  ;;  %v4654_v24 = vsel %vm2024_vm0, %v4598_v15, %v4602_v50  ;;  %v4974_v12 = vsel %vm2111_vm1, %v4918_v17, %v4922_v27  ;;  %v4923_v5 = vrot.slane %v11034_v60, 1  ;;  %v11072_v17 = vpop.f32.mrb[70].mxu0 }
 0x6c1   : > { %v5301_v30 = vmax.f32 %v5103_v1, %v5175_v29  ;;  %v4730_v57 = vsel %vm2046_vm10, %v4654_v24, -inf  ;;  %v4794_v37 = vsel %vm2072_vm9, %v4538_v4, -inf  ;;  %v5110_v52 = vmax.f32 %v4854_v19, %v4974_v12  ;;  %v11079_v29 = vpop.f32.mrb[71].mxu0 }
 0x6c2   : > { %v4858_v44 = vmax.f32 %v4730_v57, %v4794_v37  ;;  %v4655_v39 = vsel %vm2024_vm0, %v4599_v10, %v4603_v6  ;;  %v4975_v15 = vsel %vm2111_vm1, %v4919_v61, %v4923_v5  ;;  %v4606_v36 = vrot.slane %v11049_v56, 7  ;;  %12068 = vst [vmem:[#allocation55_spill] sm:$0xff] %v11079_v29 }
 0x6c3   : > { %v5296_v16 = vmax.f32 %v5294_v21, %v5295_v59  ;;  %v4731_v1 = vsel %vm2046_vm10, %v4655_v39, -inf  ;;  %v4795_v4 = vsel %vm2072_vm9, %v11034_v60, -inf  ;;  %v5111_v19 = vmax.f32 %v4855_v31, %v4975_v15 }
 0x6c4   : > { %v4859_v24 = vmax.f32 %v4731_v1, %v4795_v4  ;;  %v4650_v10 = vsel %vm2024_vm0, %v4602_v50, %v4606_v36  ;;  %v4926_v61 = vrot.slane %v11049_v56, 1  ;;  %v6749_v12 = vadd.f32 %v10867_v51, %v10476_v40  ;;  %v11095_v15 = vpop.f32.mrb[72].mxu0 }
 0x6c5   : > { %v5276_v21 = vrot.slane %v5275_v18, 2  ;;  %v5302_v59 = vrot.slane %v5301_v30, 4  ;;  %v4734_v57 = vsel %vm2043_vm8, %v4650_v10, -inf  ;;  %v6750_v60 = vadd.f32 %v10884_v3, %v10472_v63  ;;  %12069 = vst [vmem:[#allocation56_spill] sm:$0xff] %v11095_v15  ;;  %v11104_v3 = vpop.f32.mrb[73].mxu0 }
 0x6c6   : > { %v4862_v31 = vmax.f32 %v4734_v57, %v11049_v56  ;;  %v4970_v37 = vsel %vm2111_vm1, %v4922_v27, %v4926_v61  ;;  %v4543_v39 = vmax.f32 %v6749_v12, 0.0  ;;  %v6751_v50 = vadd.f32 %v10888_v0, %v10476_v40 }
 0x6c7   : > { %v11098_v51 = vmax.f32 %v11018_v9, %v5250_v45  ;;  %v5297_v1 = vrot.slane %v5296_v16, 2  ;;  %v5050_v4 = vsel %vm2133_vm11, %v4970_v37, -inf  ;;  %v11102_v10 = vmax.f32 %v6750_v60, 0.0 }
 0x6c8   : > { %v11106_v56 = vmax.f32 %v5270_v42, %v5271_v33  ;;  %v5114_v27 = vmax.f32 %v4858_v44, %v5050_v4  ;;  %v4607_v12 = vrot.slane %v4543_v39, 7  ;;  %v4927_v57 = vrot.slane %v4543_v39, 1  ;;  %v11118_v33 = vpop.f32.mrb[74].mxu0 }
 0x6c9   : > { %v11108_v29 = vmax.f32 %v5275_v18, %v5276_v21  ;;  %v5303_v0 = vmax.f32 %v5301_v30, %v5302_v59  ;;  %v4610_v15 = vrot.slane %v11102_v10, 7  ;;  %v4547_v9 = vmax.f32 %v6751_v50, 0.0  ;;  %12070 = vst [vmem:[#allocation57_spill] sm:$0xff] %v11118_v33  ;;  %v11126_v59 = vpop.f32.mrb[75].mxu0 }
 0x6ca   : > { %v5182_v45 = vsel %vm2072_vm9, %v5114_v27, -inf  ;;  %v4651_v60 = vsel %vm2024_vm0, %v4603_v6, %v4607_v12  ;;  %v4971_v37 = vsel %vm2111_vm1, %v4923_v5, %v4927_v57  ;;  %v4930_v42 = vrot.slane %v11102_v10, 1  ;;  %12071 = vst [vmem:[#allocation58_spill] sm:$0xff] %v11126_v59 }
 0x6cb   : > { %v11120_v44 = vmax.f32 %v5296_v16, %v5297_v1  ;;  %v5322_v18 = vmax.f32 %v5110_v52, %v5182_v45  ;;  %v4735_v30 = vsel %vm2043_vm8, %v4651_v60, -inf  ;;  %v5051_v21 = vsel %vm2133_vm11, %v4971_v37, -inf }
 0x6cc   : > { %v4863_v50 = vmax.f32 %v4735_v30, %v4543_v39  ;;  %v5115_v6 = vmax.f32 %v4859_v24, %v5051_v21  ;;  %v4646_v5 = vsel %vm2024_vm0, %v4606_v36, %v4610_v15  ;;  %v4966_v4 = vsel %vm2111_vm1, %v4926_v61, %v4930_v42  ;;  %v11139_v37 = vpop.f32.mrb[76].mxu0 }
 0x6cd   : > { %v5323_v27 = vrot.slane %v5322_v18, 4  ;;  %v4738_v16 = vsel %vm2046_vm10, %v4646_v5, -inf  ;;  %v4802_v52 = vsel %vm2072_vm9, %v11102_v10, -inf  ;;  %v5118_v1 = vmax.f32 %v4862_v31, %v4966_v4  ;;  %12072 = vst [vmem:[#allocation59_spill] sm:$0xff] %v11139_v37  ;;  %v11143_v5 = vpop.f32.mrb[77].mxu0 }
 0x6ce   : > { %v5304_v45 = vrot.slane %v5303_v0, 2  ;;  %v5183_v39 = vsel %vm2072_vm9, %v5115_v6, -inf  ;;  %v4866_v24 = vmax.f32 %v4738_v16, %v4802_v52  ;;  %v4611_v60 = vrot.slane %v4547_v9, 7  ;;  %12073 = vst [vmem:[#allocation60_spill] sm:$0xff] %v11143_v5 }
 0x6cf   : > { %v5324_v36 = vmax.f32 %v5322_v18, %v5323_v27  ;;  %v5329_v30 = vmax.f32 %v5111_v19, %v5183_v39  ;;  %v4931_v61 = vrot.slane %v4547_v9, 1  ;;  %v6752_v21 = vadd.f32 %v10903_v35, %v10472_v63 }
 0x6d0   : > { %v4647_v10 = vsel %vm2024_vm0, %v4607_v12, %v4611_v60  ;;  %v4803_v31 = vsel %vm2072_vm9, %v4547_v9, -inf  ;;  %v6753_v6 = vadd.f32 %v10910_v7, %v10476_v40  ;;  %v6754_v4 = vadd.f32 %v10933_v54, %v10472_v63  ;;  %v11161_v39 = vpop.f32.mrb[78].mxu0 }
 0x6d1   : > { %v5330_v18 = vrot.slane %v5329_v30, 4  ;;  %v4739_v19 = vsel %vm2046_vm10, %v4647_v10, -inf  ;;  %v4967_v35 = vsel %vm2111_vm1, %v4927_v57, %v4931_v61  ;;  %v6755_v27 = vadd.f32 %v10939_v53, %v10476_v40  ;;  %v11166_v10 = vpop.f32.mrb[79].mxu0 }
 0x6d2   : > { %v4867_v12 = vmax.f32 %v4739_v19, %v4803_v31  ;;  %v5119_v16 = vmax.f32 %v4863_v50, %v4967_v35  ;;  %v4550_v52 = vmax.f32 %v6752_v21, 0.0  ;;  %v11159_v9 = vmax.f32 %v6753_v6, 0.0 }
 0x6d3   : > { %v5325_v54 = vrot.slane %v5324_v36, 2  ;;  %v5331_v5 = vmax.f32 %v5329_v30, %v5330_v18  ;;  %v11164_v37 = vmax.f32 %v6754_v4, 0.0  ;;  %v5299_v50 = vrot.slane %v11120_v44, 1 }
 0x6d4   : > { %v4614_v59 = vrot.slane %v4550_v52, 7  ;;  %v4934_v57 = vrot.slane %v4550_v52, 1  ;;  %v4615_v33 = vrot.slane %v11159_v9, 7  ;;  %v4935_v53 = vrot.slane %v11159_v9, 1  ;;  %v11182_v35 = vpop.f32.mrb[80].mxu0 }
 0x6d5   : > { %v5305_v21 = vmax.f32 %v5303_v0, %v5304_v45  ;;  %v11172_v6 = vmax.f32 %v6755_v27, 0.0  ;;  %12074 = vst [vmem:[#allocation61_spill] sm:$0xff] %v11182_v35  ;;  %v5326_v7 = vmax.f32 %v5324_v36, %v5325_v54  ;;  %v5332_v0 = vrot.slane %v5331_v5, 2 }
 0x6d6   : > { %v4642_v30 = vsel %vm2024_vm0, %v4610_v15, %v4614_v59  ;;  %v4962_v4 = vsel %vm2111_vm1, %v4930_v42, %v4934_v57  ;;  %v4643_v18 = vsel %vm2024_vm0, %v4611_v60, %v4615_v33  ;;  %v4963_v19 = vsel %vm2111_vm1, %v4931_v61, %v4935_v53  ;;  %v11188_v15 = vpop.f32.mrb[81].mxu0 }
 0x6d7   : > { %v4742_v45 = vsel %vm2043_vm8, %v4642_v30, -inf  ;;  %v5058_v27 = vsel %vm2133_vm11, %v4962_v4, -inf  ;;  %12075 = vst [vmem:[#allocation62_spill] sm:$0xff] %v11188_v15  ;;  %v4743_v60 = vsel %vm2043_vm8, %v4643_v18, -inf  ;;  %v5059_v61 = vsel %vm2133_vm11, %v4963_v19, -inf }
 0x6d8   : > { %v4870_v31 = vmax.f32 %v4742_v45, %v4550_v52  ;;  %v5122_v42 = vmax.f32 %v4866_v24, %v5058_v27  ;;  %v4871_v35 = vmax.f32 %v4743_v60, %v11159_v9  ;;  %v5123_v36 = vmax.f32 %v4867_v12, %v5059_v61  ;;  %v11208_v12 = vpop.f32.mrb[82].mxu0 }
 0x6d9   : > { %v12076_v54 = vrot.slane %v11164_v37, 7  ;;  %v4810_v4 = vsel %vm2072_vm9, %v11164_v37, -inf  ;;  %v4938_v18 = vrot.slane %v11164_v37, 1  ;;  %v4619_v9 = vrot.slane %v11172_v6, 7  ;;  %12077 = vst [vmem:[#allocation63_spill] sm:$0xff] %v11208_v12  ;;  %v11212_v60 = vpop.f32.mrb[83].mxu0 }
 0x6da   : > { %v5190_v24 = vsel %vm2072_vm9, %v5122_v42, -inf  ;;  %v5333_v19 = vmax.f32 %v5331_v5, %v5332_v0  ;;  %12078 = vst [vmem:[#allocation64_spill] sm:$0xff] %v11212_v60  ;;  %v4939_v0 = vrot.slane %v11172_v6, 1 }
 0x6db   : > { %v4638_v30 = vsel %vm2024_vm0, %v4614_v59, %v12076_v54  ;;  %v5350_v45 = vmax.f32 %v5118_v1, %v5190_v24  ;;  %v5191_v59 = vsel %vm2072_vm9, %v5123_v36, -inf  ;;  %v4958_v42 = vsel %vm2111_vm1, %v4934_v57, %v4938_v18 }
 0x6dc   : > { %v4746_v52 = vsel %vm2046_vm10, %v4638_v30, -inf  ;;  %v5357_v61 = vmax.f32 %v5119_v16, %v5191_v59  ;;  %v4639_v54 = vsel %vm2024_vm0, %v4615_v33, %v4619_v9  ;;  %v4811_v30 = vsel %vm2072_vm9, %v11172_v6, -inf  ;;  %v11228_v33 = vpop.f32.mrb[84].mxu0 }
 0x6dd   : > { %v4874_v27 = vmax.f32 %v4746_v52, %v4810_v4  ;;  %v5351_v12 = vrot.slane %v5350_v45, 4  ;;  %v5126_v5 = vmax.f32 %v4870_v31, %v4958_v42  ;;  %v4747_v1 = vsel %vm2046_vm10, %v4639_v54, -inf  ;;  %12079 = vst [vmem:[#allocation65_spill] sm:$0xff] %v11228_v33  ;;  %v11234_v42 = vpop.f32.mrb[85].mxu0 }
 0x6de   : > { %v5306_v36 = vrot.slane %v5305_v21, 1  ;;  %v4875_v4 = vmax.f32 %v4747_v1, %v4811_v30  ;;  %v6756_v16 = vadd.f32 %v10963_v2, %v10472_v63  ;;  %v6757_v57 = vadd.f32 %v10971_v20, %v10476_v40  ;;  %12080 = vst [vmem:[#allocation66_spill] sm:$0xff] %v11234_v42 }
 0x6df   : > { %v5327_v24 = vrot.slane %v5326_v7, 1  ;;  %v5358_v52 = vrot.slane %v5357_v61, 4  ;;  %v4959_v31 = vsel %vm2111_vm1, %v4935_v53, %v4939_v0  ;;  %v6758_v59 = vadd.f32 %v10982_v32, %v10472_v63 }
 0x6e0   : > { %v5334_v6 = vrot.slane %v5333_v19, 1  ;;  %v5127_v54 = vmax.f32 %v4871_v35, %v4959_v31  ;;  %v4558_v30 = vmax.f32 %v6756_v16, 0.0  ;;  %v11236_v1 = vmax.f32 %v6757_v57, 0.0  ;;  %v11249_v35 = vpop.f32.mrb[86].mxu0 }
 0x6e1   : > { %v12081_v2 = vrot.slane %v11108_v29, 1  ;;  %v11244_v33 = vmax.f32 %v11120_v44, %v5299_v50  ;;  %v5352_v60 = vmax.f32 %v5350_v45, %v5351_v12  ;;  %v4562_v53 = vmax.f32 %v6758_v59, 0.0 }
 0x6e2   : > { %v11246_v15 = vmax.f32 %v5305_v21, %v5306_v36  ;;  %v4622_v63 = vrot.slane %v4558_v30, 7  ;;  %v4942_v32 = vrot.slane %v4558_v30, 1  ;;  %v4623_v42 = vrot.slane %v11236_v1, 7 }
 0x6e3   : > { %v11241_v20 = vmax.f32 %v11108_v29, %v12081_v2  ;;  %v11251_v16 = vmax.f32 %v5326_v7, %v5327_v24  ;;  %v5359_v57 = vmax.f32 %v5357_v61, %v5358_v52  ;;  %v4943_v31 = vrot.slane %v11236_v1, 1  ;;  %v11254_v2 = vpop.f32.mrb[87].mxu0 }
 0x6e4   : > { %v4626_v29 = vrot.slane %v4562_v53, 7  ;;  %v11256_v44 = vmax.f32 %v5333_v19, %v5334_v6  ;;  %v12082_v50 = vrot.slane %v11164_v37, 7  ;;  %v4954_v12 = vsel %vm2111_vm1, %v4938_v18, %v4942_v32 }
 0x6e5   : > { %v4635_v7 = vsel %vm2024_vm0, %v4619_v9, %v4623_v42  ;;  %v5353_v45 = vrot.slane %v5352_v60, 2  ;;  %v5066_v36 = vsel %vm2133_vm11, %v4954_v12, -inf  ;;  %v6759_v18 = vadd.f32 %v10989_v28, %v10476_v40 }
 0x6e6   : > { %v4634_v21 = vsel %vm2024_vm0, %v12082_v50, %v4622_v63  ;;  %v11272_v19 = vsel %vm2043_vm8, %v4635_v7, -inf  ;;  %v5130_v24 = vmax.f32 %v4874_v27, %v5066_v36  ;;  %v5360_v9 = vrot.slane %v5359_v57, 2 }
 0x6e7   : > { %v4750_v61 = vsel %vm2043_vm8, %v4634_v21, -inf  ;;  %v4879_v52 = vmax.f32 %v11272_v19, %v11236_v1  ;;  %v4955_v59 = vsel %vm2111_vm1, %v4939_v0, %v4943_v31  ;;  %v4630_v6 = vsel %vm2024_vm0, %v4622_v63, %v4626_v29 }
 0x6e8   : > { %v4878_v37 = vmax.f32 %v4750_v61, %v4558_v30  ;;  %v12083_v50 = vrot.slane %v10522_v62, 7  ;;  %v5198_v30 = vsel %vm2072_vm9, %v5130_v24, -inf  ;;  %v5067_v40 = vsel %vm2133_vm11, %v4955_v59, -inf }
 0x6e9   : > { %v4818_v0 = vsel %vm2072_vm9, %v4562_v53, -inf  ;;  %v5378_v21 = vmax.f32 %v5126_v5, %v5198_v30  ;;  %v5131_v12 = vmax.f32 %v4875_v4, %v5067_v40  ;;  %v4754_v63 = vsel %vm2046_vm10, %v4630_v6, -inf }
 0x6ea   : > { %v4690_v27 = vsel %vm2024_vm0, %v4626_v29, %v12083_v50  ;;  %v4882_v29 = vmax.f32 %v4754_v63, %v4818_v0  ;;  %v4946_v61 = vrot.slane %v4562_v53, 1  ;;  %v4563_v36 = vmax.f32 %v6759_v18, 0.0 }
 0x6eb   : > { %v4694_v28 = vsel %vm2043_vm8, %v4690_v27, -inf  ;;  %v6761_v24 = vadd.f32 %v10479_v8, %v11010_v38  ;;  %v5379_v59 = vrot.slane %v5378_v21, 4  ;;  %v5199_v50 = vsel %vm2072_vm9, %v5131_v12, -inf }
 0x6ec   : > { %v4822_v7 = vmax.f32 %v4694_v28, %v10522_v62  ;;  %v6763_v5 = vadd.f32 %v10482_v47, %v11016_v22  ;;  %v5385_v4 = vmax.f32 %v5127_v54, %v5199_v50  ;;  %v4950_v6 = vsel %vm2111_vm1, %v4942_v32, %v4946_v61 }
 0x6ed   : > { %v12084_v30 = vrot.slane %v10522_v62, 1  ;;  %v4627_v18 = vrot.slane %v4563_v36, 7  ;;  %v5354_v8 = vmax.f32 %v5352_v60, %v5353_v45  ;;  %v5134_v40 = vmax.f32 %v4878_v37, %v4950_v6 }
 0x6ee   : > { %v5078_v27 = vmax.f32 %v4822_v7, %v10580_v14  ;;  %v5380_v28 = vmax.f32 %v5378_v21, %v5379_v59  ;;  %v12085_v22 = vrot.slane %v10531_v41, 7  ;;  %v5386_v54 = vrot.slane %v5385_v4, 4 }
 0x6ef   : > { %v5010_v53 = vsel %vm2111_vm1, %v4946_v61, %v12084_v30  ;;  %v4631_v47 = vsel %vm2024_vm0, %v4623_v42, %v4627_v18  ;;  %v4819_v42 = vsel %vm2072_vm9, %v4563_v36, -inf  ;;  %v11330_v21 = vmax.f32 %v5359_v57, %v5360_v9 }
 0x6f0   : > { %v5074_v38 = vsel %vm2133_vm11, %v5010_v53, -inf  ;;  %v5210_v14 = vmax.f32 %v5078_v27, %v10948_v11  ;;  %v4691_v62 = vsel %vm2024_vm0, %v4627_v18, %v12085_v22  ;;  %v4755_v45 = vsel %vm2046_vm10, %v4631_v47, -inf }
 0x6f1   : > { %v5138_v0 = vmax.f32 %v4882_v29, %v5074_v38  ;;  %v4695_v60 = vsel %vm2043_vm8, %v4691_v62, -inf  ;;  %v4883_v7 = vmax.f32 %v4755_v45, %v4819_v42  ;;  %v5355_v29 = vrot.slane %v5354_v8, 1 }
 0x6f2   : > { %v5211_v32 = vrot.slane %v5210_v14, 4  ;;  %v4823_v37 = vmax.f32 %v4695_v60, %v10531_v41  ;;  %v4947_v61 = vrot.slane %v4563_v36, 1  ;;  %v5381_v50 = vrot.slane %v5380_v28, 2 }
 0x6f3   : > { %v5206_v11 = vsel %vm2072_vm9, %v5138_v0, -inf  ;;  %v5387_v27 = vmax.f32 %v5385_v4, %v5386_v54  ;;  %v11333_v30 = vmax.f32 %v6761_v24, 0.0  ;;  %v12086_v57 = vrot.slane %v10531_v41, 1 }
 0x6f4   : > { %v5212_v12 = vmax.f32 %v5210_v14, %v5211_v32  ;;  %v5406_v63 = vmax.f32 %v5134_v40, %v5206_v11  ;;  %v5079_v59 = vmax.f32 %v4823_v37, %v10601_v46  ;;  %v4951_v53 = vsel %vm2111_vm1, %v4943_v31, %v4947_v61  ;;  %v12089_v37 = vld [vmem:[#allocation42_spill] sm:$0xff] }
 0x6f5   : > { %v5011_v9 = vsel %vm2111_vm1, %v4947_v61, %v12086_v57  ;;  %v11344_v36 = vmax.f32 %v6763_v5, 0.0  ;;  %v5362_v46 = vrot.slane %v11330_v21, 1  ;;  %v11349_v40 = vmax.f32 %v5354_v8, %v5355_v29 }
 0x6f6   : > { %v5213_v6 = vrot.slane %v5212_v12, 2  ;;  %v5217_v18 = vmax.f32 %v5079_v59, %v10999_v58  ;;  %v5407_v38 = vrot.slane %v5406_v63, 4  ;;  %v5075_v24 = vsel %vm2133_vm11, %v5011_v9, -inf }
 0x6f7   : > { %v5135_v41 = vmax.f32 %v4879_v52, %v4951_v53  ;;  %v5139_v31 = vmax.f32 %v4883_v7, %v5075_v24  ;;  %v5382_v0 = vmax.f32 %v5380_v28, %v5381_v50  ;;  %v4568_v58 = vrot.slane %v11333_v30, 7 }
 0x6f8   : > { %v5214_v4 = vmax.f32 %v5212_v12, %v5213_v6  ;;  %v5218_v14 = vrot.slane %v5217_v18, 4  ;;  %v4888_v5 = vrot.slane %v11333_v30, 1  ;;  %v5388_v22 = vrot.slane %v5387_v27, 2 }
 0x6f9   : > { %v5207_v62 = vsel %vm2072_vm9, %v5139_v31, -inf  ;;  %v4569_v8 = vrot.slane %v11344_v36, 7  ;;  %v5408_v60 = vmax.f32 %v5406_v63, %v5407_v38  ;;  %v12087_v1 = vrot.slane %v10748_v55, 7 }
 0x6fa   : > { %v5215_v47 = vrot.slane %v5214_v4, 1  ;;  %v5219_v54 = vmax.f32 %v5217_v18, %v5218_v14  ;;  %v5413_v45 = vmax.f32 %v5135_v41, %v5207_v62  ;;  %v12088_v11 = vrot.slane %v10748_v55, 1  ;;  %v12091_v18 = vld [vmem:[#allocation41_spill] sm:$0xff] }
 0x6fb   : > { %v4692_v19 = vsel %vm2024_vm0, %v12087_v1, %v4568_v58  ;;  %v12090_v12 = vrot.slane %v12089_v37, 7  ;;  %v5383_v7 = vrot.slane %v5382_v0, 1  ;;  %v5409_v57 = vrot.slane %v5408_v60, 2  ;;  %v12095_v14 = vld [vmem:[#allocation53_spill] sm:$0xff] }
 0x6fc   : > { %v5216_v32 = vmax.f32 %v5214_v4, %v5215_v47  ;;  %v5220_v52 = vrot.slane %v5219_v54, 2  ;;  %v4696_v28 = vsel %vm2043_vm8, %v4692_v19, -inf  ;;  %v5012_v42 = vsel %vm2111_vm1, %v12088_v11, %v4888_v5  ;;  %v12092_v4 = vld [vmem:[#allocation40_spill] sm:$0xff]  ;;  %v12096_v47 = vld [vmem:[#allocation22_spill] sm:$0xff] }
 0x6fd   : > { %v4693_v63 = vsel %vm2024_vm0, %v12090_v12, %v4569_v8  ;;  %v5414_v61 = vrot.slane %v5413_v45, 4  ;;  %v4824_v59 = vmax.f32 %v4696_v28, %v11333_v30  ;;  %v5076_v6 = vsel %vm2133_vm11, %v5012_v42, -inf  ;;  %v12098_v19 = vld [vmem:[#allocation54_spill] sm:$0xff]  ;;  %v12100_v42 = vld [vmem:[#allocation43_spill] sm:$0xff] }
 0x6fe   : > { %v5467_v29 = vsel %vm5466_vm12, %v11038_v23, %v5216_v32  ;;  %v5221_v55 = vmax.f32 %v5219_v54, %v5220_v52  ;;  %v4697_v53 = vsel %vm2043_vm8, %v4693_v63, -inf  ;;  %v12093_v38 = vmax.f32 %v12091_v18, %v12092_v4  ;;  %v12099_v52 = vld [vmem:[#allocation23_spill] sm:$0xff]  ;;  %v12102_v18 = vld [vmem:[#allocation45_spill] sm:$0xff]  ;;  %v12103_v4 = vld [vmem:[#allocation44_spill] sm:$0xff] }
 0x6ff   : > { %v11378_v50 = vsel %vm5468_vm13, %v11106_v56, %v5467_v29  ;;  %v5415_v9 = vmax.f32 %v5413_v45, %v5414_v61  ;;  %v4825_v24 = vmax.f32 %v4697_v53, %v11344_v36  ;;  %v4889_v41 = vrot.slane %v11344_v36, 1  ;;  %v12094_v56 = vld [vmem:[#allocation20_spill] sm:$0xff]  ;;  %v12097_v45 = vld [vmem:[#allocation21_spill] sm:$0xff] }
 0x700   : > { %v5140_v23 = vmax.f32 %v12093_v38, %v5076_v6  ;;  %v5222_v30 = vrot.slane %v5221_v55, 1  ;;  %v6765_v31 = vadd.f32 %v12094_v56, %v11030_v49  ;;  %v6767_v62 = vadd.f32 %v12096_v47, %v12095_v14 }
 0x701   : > { %v5416_v54 = vrot.slane %v5415_v9, 2  ;;  %v6769_v1 = vadd.f32 %v12097_v45, %v11051_v48  ;;  %v6771_v28 = vadd.f32 %v12099_v52, %v12098_v19  ;;  %v12101_v36 = vrot.slane %v12089_v37, 1 }
 0x702   : > { %v5208_v32 = vsel %vm2072_vm9, %v5140_v23, -inf  ;;  %v5223_v11 = vmax.f32 %v5221_v55, %v5222_v30  ;;  %v4508_v63 = vmax.f32 %v6765_v31, 0.0  ;;  %v11405_v29 = vmax.f32 %v11330_v21, %v5362_v46 }
 0x703   : > { %v5420_v12 = vmax.f32 %v12100_v42, %v5208_v32  ;;  %v5013_v49 = vsel %vm2111_vm1, %v12101_v36, %v4889_v41  ;;  %v5389_v61 = vmax.f32 %v5387_v27, %v5388_v22  ;;  %v4509_v48 = vmax.f32 %v6767_v62, 0.0  ;;  %v12106_v36 = vld [vmem:[#allocation24_spill] sm:$0xff] }
 0x704   : > { %v5077_v6 = vsel %vm2133_vm11, %v5013_v49, -inf  ;;  %v11409_v53 = vmax.f32 %v5382_v0, %v5383_v7  ;;  %v5480_v55 = vsel %vm5466_vm12, %v11098_v51, %v5223_v11  ;;  %v12104_v37 = vmax.f32 %v12102_v18, %v12103_v4  ;;  %v12105_v7 = vld [vmem:[#allocation46_spill] sm:$0xff] }
 0x705   : > { %v4572_v23 = vrot.slane %v4508_v63, 7  ;;  %v5410_v30 = vmax.f32 %v5408_v60, %v5409_v57  ;;  %v5417_v56 = vmax.f32 %v5415_v9, %v5416_v54  ;;  %v11418_v21 = vsel %vm5468_vm13, %v11241_v20, %v5480_v55 }
 0x706   : > { %v5141_v38 = vmax.f32 %v12104_v37, %v5077_v6  ;;  %v4892_v27 = vrot.slane %v4508_v63, 1  ;;  %v4573_v22 = vrot.slane %v4509_v48, 7  ;;  %v4512_v51 = vmax.f32 %v6769_v1, 0.0 }
 0x707   : > { %v4688_v0 = vsel %vm2024_vm0, %v4568_v58, %v4572_v23  ;;  %v4764_v57 = vsel %vm2072_vm9, %v4508_v63, -inf  ;;  %v5390_v9 = vrot.slane %v5389_v61, 1  ;;  %v5421_v62 = vrot.slane %v5420_v12, 4 }
 0x708   : > { %v5209_v46 = vsel %vm2072_vm9, %v5141_v38, -inf  ;;  %v4700_v60 = vsel %vm2046_vm10, %v4688_v0, -inf  ;;  %v5008_v20 = vsel %vm2111_vm1, %v4888_v5, %v4892_v27  ;;  %v4689_v58 = vsel %vm2024_vm0, %v4569_v8, %v4573_v22 }
 0x709   : > { %v11425_v31 = vmax.f32 %v12105_v7, %v5209_v46  ;;  %v4828_v14 = vmax.f32 %v4700_v60, %v4764_v57  ;;  %v5080_v47 = vmax.f32 %v4824_v59, %v5008_v20  ;;  %v4701_v54 = vsel %vm2046_vm10, %v4689_v58, -inf  ;;  %v12110_v60 = vld [vmem:[#allocation26_spill] sm:$0xff] }
 0x70a   : > { %v4765_v32 = vsel %vm2072_vm9, %v4509_v48, -inf  ;;  %v4893_v45 = vrot.slane %v4509_v48, 1  ;;  %v5411_v1 = vrot.slane %v5410_v30, 1  ;;  %v4576_v52 = vrot.slane %v4512_v51, 7 }
 0x70b   : > { %v4829_v19 = vmax.f32 %v4701_v54, %v4765_v32  ;;  %v4896_v11 = vrot.slane %v4512_v51, 1  ;;  %v5418_v42 = vrot.slane %v5417_v56, 1  ;;  %v4513_v59 = vmax.f32 %v6771_v28, 0.0 }
 0x70c   : > { %v5009_v5 = vsel %vm2111_vm1, %v4889_v41, %v4893_v45  ;;  %v6773_v8 = vadd.f32 %v12106_v36, %v11072_v17  ;;  %v11443_v49 = vmax.f32 %v5389_v61, %v5390_v9  ;;  %v4684_v6 = vsel %vm2024_vm0, %v4572_v23, %v4576_v52 }
 0x70d   : > { %v5081_v63 = vmax.f32 %v4825_v24, %v5009_v5  ;;  %v5004_v48 = vsel %vm2111_vm1, %v4892_v27, %v4896_v11  ;;  %v11449_v55 = vmax.f32 %v5420_v12, %v5421_v62  ;;  %v4704_v18 = vsel %vm2043_vm8, %v4684_v6, -inf  ;;  %v12107_v12 = vld [vmem:[#allocation55_spill] sm:$0xff]  ;;  %v12108_v27 = vld [vmem:[#allocation25_spill] sm:$0xff] }
 0x70e   : > { %v5020_v41 = vsel %vm2133_vm11, %v5004_v48, -inf  ;;  %v4577_v28 = vrot.slane %v4513_v59, 7  ;;  %v11455_v4 = vmax.f32 %v5410_v30, %v5411_v1  ;;  %v4832_v17 = vmax.f32 %v4704_v18, %v4512_v51  ;;  %v12109_v51 = vld [vmem:[#allocation56_spill] sm:$0xff] }
 0x70f   : > { %v5084_v61 = vmax.f32 %v4828_v14, %v5020_v41  ;;  %v4897_v24 = vrot.slane %v4513_v59, 1  ;;  %v11457_v37 = vmax.f32 %v5417_v56, %v5418_v42  ;;  %v4516_v23 = vmax.f32 %v6773_v8, 0.0 }
 0x710   : > { %v4685_v38 = vsel %vm2024_vm0, %v4573_v22, %v4577_v28  ;;  %v6775_v46 = vadd.f32 %v12108_v27, %v12107_v12  ;;  %v6777_v56 = vadd.f32 %v12110_v60, %v12109_v51  ;;  %v5423_v57 = vrot.slane %v11449_v55, 2 }
 0x711   : > { %v5152_v0 = vsel %vm2072_vm9, %v5084_v61, -inf  ;;  %v4705_v7 = vsel %vm2043_vm8, %v4685_v38, -inf  ;;  %v5005_v30 = vsel %vm2111_vm1, %v4893_v45, %v4897_v24  ;;  %v5428_v14 = vrot.slane %v11425_v31, 4 }
 0x712   : > { %v5224_v20 = vmax.f32 %v5080_v47, %v5152_v0  ;;  %v4833_v22 = vmax.f32 %v4705_v7, %v4513_v59  ;;  %v5021_v9 = vsel %vm2133_vm11, %v5005_v30, -inf  ;;  %v4580_v62 = vrot.slane %v4516_v23, 7  ;;  %v12113_v0 = vld [vmem:[#allocation28_spill] sm:$0xff] }
 0x713   : > { %v5085_v58 = vmax.f32 %v4829_v19, %v5021_v9  ;;  %v4900_v54 = vrot.slane %v4516_v23, 1  ;;  %v4772_v1 = vsel %vm2072_vm9, %v4516_v23, -inf  ;;  %v4517_v45 = vmax.f32 %v6775_v46, 0.0  ;;  %v12111_v19 = vld [vmem:[#allocation27_spill] sm:$0xff] }
 0x714   : > { %v5225_v32 = vrot.slane %v5224_v20, 4  ;;  %v11477_v42 = vmax.f32 %v6777_v56, 0.0  ;;  %v4680_v47 = vsel %vm2024_vm0, %v4576_v52, %v4580_v62  ;;  %v6779_v36 = vadd.f32 %v12111_v19, %v11104_v3 }
 0x715   : > { %v5153_v5 = vsel %vm2072_vm9, %v5085_v58, -inf  ;;  %v5000_v59 = vsel %vm2111_vm1, %v4896_v11, %v4900_v54  ;;  %v4708_v48 = vsel %vm2046_vm10, %v4680_v47, -inf  ;;  %v4581_v61 = vrot.slane %v4517_v45, 7 }
 0x716   : > { %v5226_v8 = vmax.f32 %v5224_v20, %v5225_v32  ;;  %v5231_v6 = vmax.f32 %v5081_v63, %v5153_v5  ;;  %v5088_v18 = vmax.f32 %v4832_v17, %v5000_v59  ;;  %v4836_v41 = vmax.f32 %v4708_v48, %v4772_v1  ;;  %v12112_v17 = vld [vmem:[#allocation57_spill] sm:$0xff] }
 0x717   : > { %v4773_v38 = vsel %vm2072_vm9, %v4517_v45, -inf  ;;  %v4901_v23 = vrot.slane %v4517_v45, 1  ;;  %v4584_v27 = vrot.slane %v11477_v42, 7  ;;  %v4904_v11 = vrot.slane %v11477_v42, 1 }
 0x718   : > { %v5227_v12 = vrot.slane %v5226_v8, 2  ;;  %v5232_v52 = vrot.slane %v5231_v6, 4  ;;  %v4681_v3 = vsel %vm2024_vm0, %v4577_v28, %v4581_v61  ;;  %v4521_v46 = vmax.f32 %v6779_v36, 0.0 }
 0x719   : > { %v5001_v63 = vsel %vm2111_vm1, %v4897_v24, %v4901_v23  ;;  %v6781_v7 = vadd.f32 %v12113_v0, %v12112_v17  ;;  %v4709_v60 = vsel %vm2046_vm10, %v4681_v3, -inf  ;;  %v4676_v9 = vsel %vm2024_vm0, %v4580_v62, %v4584_v27 }
 0x71a   : > { %v5228_v30 = vmax.f32 %v5226_v8, %v5227_v12  ;;  %v5233_v51 = vmax.f32 %v5231_v6, %v5232_v52  ;;  %v5089_v56 = vmax.f32 %v4833_v22, %v5001_v63  ;;  %v4837_v20 = vmax.f32 %v4709_v60, %v4773_v38  ;;  %v12117_v60 = vld [vmem:[#allocation30_spill] sm:$0xff] }
 0x71b   : > { %v4996_v28 = vsel %vm2111_vm1, %v4900_v54, %v4904_v11  ;;  %v4585_v58 = vrot.slane %v4521_v46, 7  ;;  %v4712_v1 = vsel %vm2043_vm8, %v4676_v9, -inf  ;;  %v4905_v59 = vrot.slane %v4521_v46, 1 }
 0x71c   : > { %v5229_v32 = vrot.slane %v5228_v30, 1  ;;  %v5234_v24 = vrot.slane %v5233_v51, 2  ;;  %v5028_v45 = vsel %vm2133_vm11, %v4996_v28, -inf  ;;  %v4840_v5 = vmax.f32 %v4712_v1, %v11477_v42  ;;  %v12114_v42 = vld [vmem:[#allocation58_spill] sm:$0xff] }
 0x71d   : > { %v5092_v47 = vmax.f32 %v4836_v41, %v5028_v45  ;;  %v4677_v22 = vsel %vm2024_vm0, %v4581_v61, %v4585_v58  ;;  %v4524_v36 = vmax.f32 %v6781_v7, 0.0  ;;  %v4997_v48 = vsel %vm2111_vm1, %v4901_v23, %v4905_v59  ;;  %v12115_v41 = vld [vmem:[#allocation29_spill] sm:$0xff] }
 0x71e   : > { %v11512_v62 = vmax.f32 %v5228_v30, %v5229_v32  ;;  %v5235_v19 = vmax.f32 %v5233_v51, %v5234_v24  ;;  %v4713_v54 = vsel %vm2043_vm8, %v4677_v22, -inf  ;;  %v6783_v38 = vadd.f32 %v12115_v41, %v12114_v42  ;;  %v12116_v51 = vld [vmem:[#allocation59_spill] sm:$0xff]  ;;  %v12118_v42 = vld [vmem:[#allocation60_spill] sm:$0xff] }
 0x71f   : > { %v5160_v8 = vsel %vm2072_vm9, %v5092_v47, -inf  ;;  %v4841_v6 = vmax.f32 %v4713_v54, %v4521_v46  ;;  %v5029_v52 = vsel %vm2133_vm11, %v4997_v48, -inf  ;;  %v4588_v3 = vrot.slane %v4524_v36, 7 }
 0x720   : > { %v5236_v12 = vrot.slane %v5235_v19, 1  ;;  %v5252_v61 = vmax.f32 %v5088_v18, %v5160_v8  ;;  %v5093_v63 = vmax.f32 %v4837_v20, %v5029_v52  ;;  %v4780_v17 = vsel %vm2072_vm9, %v4524_v36, -inf }
 0x721   : > { %v4908_v0 = vrot.slane %v4524_v36, 1  ;;  %v4525_v7 = vmax.f32 %v6783_v38, 0.0  ;;  %v4672_v23 = vsel %vm2024_vm0, %v4584_v27, %v4588_v3  ;;  %v6785_v9 = vadd.f32 %v12117_v60, %v12116_v51  ;;  %v12121_v51 = vld [vmem:[#allocation33_spill] sm:$0xff] }
 0x722   : > { %v11526_v30 = vmax.f32 %v5235_v19, %v5236_v12  ;;  %v5253_v46 = vrot.slane %v5252_v61, 4  ;;  %v5161_v18 = vsel %vm2072_vm9, %v5093_v63, -inf  ;;  %v4716_v20 = vsel %vm2046_vm10, %v4672_v23, -inf }
 0x723   : > { %v4992_v28 = vsel %vm2111_vm1, %v4904_v11, %v4908_v0  ;;  %v4589_v32 = vrot.slane %v4525_v7, 7  ;;  %v5259_v1 = vmax.f32 %v5089_v56, %v5161_v18  ;;  %v4844_v45 = vmax.f32 %v4716_v20, %v4780_v17  ;;  %v12119_v11 = vld [vmem:[#allocation31_spill] sm:$0xff] }
 0x724   : > { %v5254_v24 = vmax.f32 %v5252_v61, %v5253_v46  ;;  %v5096_v47 = vmax.f32 %v4840_v5, %v4992_v28  ;;  %v4781_v22 = vsel %vm2072_vm9, %v4525_v7, -inf  ;;  %v4909_v19 = vrot.slane %v4525_v7, 1  ;;  %v12120_v46 = vld [vmem:[#allocation32_spill] sm:$0xff] }
 0x725   : > { %v4673_v27 = vsel %vm2024_vm0, %v4585_v58, %v4589_v32  ;;  %v4528_v54 = vmax.f32 %v6785_v9, 0.0  ;;  %v5260_v8 = vrot.slane %v5259_v1, 4  ;;  %v6787_v41 = vadd.f32 %v12119_v11, %v12118_v42 }
 0x726   : > { %v5255_v36 = vrot.slane %v5254_v24, 2  ;;  %v4717_v48 = vsel %vm2046_vm10, %v4673_v27, -inf  ;;  %v4993_v56 = vsel %vm2111_vm1, %v4905_v59, %v4909_v19  ;;  %v6789_v23 = vadd.f32 %v12120_v46, %v11161_v39 }
 0x727   : > { %v4845_v38 = vmax.f32 %v4717_v48, %v4781_v22  ;;  %v4592_v5 = vrot.slane %v4528_v54, 7  ;;  %v4912_v12 = vrot.slane %v4528_v54, 1  ;;  %v5261_v61 = vmax.f32 %v5259_v1, %v5260_v8  ;;  %v12122_v8 = vld [vmem:[#allocation61_spill] sm:$0xff]  ;;  %v12123_v48 = vld [vmem:[#allocation18_spill] sm:$0xff] }
 0x728   : > { %v5256_v58 = vmax.f32 %v5254_v24, %v5255_v36  ;;  %v5097_v52 = vmax.f32 %v4841_v6, %v4993_v56  ;;  %v4529_v63 = vmax.f32 %v6787_v41, 0.0  ;;  %v6791_v60 = vadd.f32 %v12121_v51, %v11166_v10 }
 0x729   : > { %v4668_v17 = vsel %vm2024_vm0, %v4588_v3, %v4592_v5  ;;  %v4988_v7 = vsel %vm2111_vm1, %v4908_v0, %v4912_v12  ;;  %v5262_v59 = vrot.slane %v5261_v61, 2  ;;  %v4532_v27 = vmax.f32 %v6789_v23, 0.0 }
 0x72a   : > { %v5257_v9 = vrot.slane %v5256_v58, 1  ;;  %v4720_v18 = vsel %vm2043_vm8, %v4668_v17, -inf  ;;  %v5036_v6 = vsel %vm2133_vm11, %v4988_v7, -inf  ;;  %v4593_v3 = vrot.slane %v4529_v63, 7 }
 0x72b   : > { %v4848_v20 = vmax.f32 %v4720_v18, %v4528_v54  ;;  %v5100_v28 = vmax.f32 %v4844_v45, %v5036_v6  ;;  %v4913_v24 = vrot.slane %v4529_v63, 1  ;;  %v5263_v0 = vmax.f32 %v5261_v61, %v5262_v59 }
 0x72c   : > { %v5258_v1 = vmax.f32 %v5256_v58, %v5257_v9  ;;  %v11560_v22 = vmax.f32 %v6791_v60, 0.0  ;;  %v4669_v10 = vsel %vm2024_vm0, %v4589_v32, %v4593_v3  ;;  %v6793_v54 = vadd.f32 %v12123_v48, %v12122_v8  ;;  %v12127_v48 = vld [vmem:[#allocation38_spill] sm:$0xff] }
 0x72d   : > { %v5168_v39 = vsel %vm2072_vm9, %v5100_v28, -inf  ;;  %v4989_v36 = vsel %vm2111_vm1, %v4909_v19, %v4913_v24  ;;  %v5264_v42 = vrot.slane %v5263_v0, 1  ;;  %v4721_v41 = vsel %vm2043_vm8, %v4669_v10, -inf }
 0x72e   : > { %v5487_v45 = vsel %vm5466_vm12, %v5258_v1, %v11512_v62  ;;  %v5280_v11 = vmax.f32 %v5096_v47, %v5168_v39  ;;  %v4849_v56 = vmax.f32 %v4721_v41, %v4529_v63  ;;  %v5037_v58 = vsel %vm2133_vm11, %v4989_v36, -inf  ;;  %v12124_v36 = vld [vmem:[#allocation62_spill] sm:$0xff] }
 0x72f   : > { %v4596_v61 = vrot.slane %v4532_v27, 7  ;;  %v4788_v32 = vsel %vm2072_vm9, %v4532_v27, -inf  ;;  %v5265_v19 = vmax.f32 %v5263_v0, %v5264_v42  ;;  %v5101_v7 = vmax.f32 %v4845_v38, %v5037_v58 }
 0x730   : > { %v5281_v17 = vrot.slane %v5280_v11, 4  ;;  %v4916_v46 = vrot.slane %v4532_v27, 1  ;;  %v4597_v47 = vrot.slane %v11560_v22, 7  ;;  %v4789_v63 = vsel %vm2072_vm9, %v11560_v22, -inf }
 0x731   : > { %v4664_v62 = vsel %vm2024_vm0, %v4592_v5, %v4596_v61  ;;  %v4917_v23 = vrot.slane %v11560_v22, 1  ;;  %v5494_v51 = vsel %vm5466_vm12, %v5265_v19, %v11526_v30  ;;  %v5169_v9 = vsel %vm2072_vm9, %v5101_v7, -inf  ;;  %v12130_v7 = vld [vmem:[#allocation65_spill] sm:$0xff] }
 0x732   : > { %v5282_v60 = vmax.f32 %v5280_v11, %v5281_v17  ;;  %v4724_v38 = vsel %vm2046_vm10, %v4664_v62, -inf  ;;  %v5287_v59 = vmax.f32 %v5097_v52, %v5169_v9  ;;  %v4984_v18 = vsel %vm2111_vm1, %v4912_v12, %v4916_v46  ;;  %v12131_v62 = vld [vmem:[#allocation47_spill] sm:$0xff] }
 0x733   : > { %v4852_v5 = vmax.f32 %v4724_v38, %v4788_v32  ;;  %v4665_v6 = vsel %vm2024_vm0, %v4593_v3, %v4597_v47  ;;  %v5104_v1 = vmax.f32 %v4848_v20, %v4984_v18  ;;  %v4985_v0 = vsel %vm2111_vm1, %v4913_v24, %v4917_v23  ;;  %v12125_v3 = vld [vmem:[#allocation19_spill] sm:$0xff]  ;;  %v12128_v24 = vld [vmem:[#allocation64_spill] sm:$0xff] }
 0x734   : > { %v5283_v28 = vrot.slane %v5282_v60, 2  ;;  %v4725_v30 = vsel %vm2046_vm10, %v4665_v6, -inf  ;;  %v5288_v27 = vrot.slane %v5287_v59, 4  ;;  %v5105_v39 = vmax.f32 %v4849_v56, %v4985_v0  ;;  %v12126_v20 = vld [vmem:[#allocation63_spill] sm:$0xff] }
 0x735   : > { %v4853_v22 = vmax.f32 %v4725_v30, %v4789_v63  ;;  %v4536_v10 = vmax.f32 %v6793_v54, 0.0  ;;  %v11602_v52 = vmax.f32 %v11449_v55, %v5423_v57  ;;  %v6795_v8 = vadd.f32 %v12125_v3, %v12124_v36  ;;  %v12129_v32 = vld [vmem:[#allocation39_spill] sm:$0xff] }
 0x736   : > { %v5284_v12 = vmax.f32 %v5282_v60, %v5283_v28  ;;  %v6797_v42 = vadd.f32 %v12127_v48, %v12126_v20  ;;  %v5289_v11 = vmax.f32 %v5287_v59, %v5288_v27  ;;  %v6799_v19 = vadd.f32 %v12129_v32, %v12128_v24 }
 0x737   : > { %v4600_v41 = vrot.slane %v4536_v10, 7  ;;  %v4920_v58 = vrot.slane %v4536_v10, 1  ;;  %v4537_v54 = vmax.f32 %v6795_v8, 0.0  ;;  %v6801_v55 = vadd.f32 %v12131_v62, %v12130_v7 }
 0x738   : > { %v5285_v56 = vrot.slane %v5284_v12, 1  ;;  %v4540_v17 = vmax.f32 %v6797_v42, 0.0  ;;  %v5290_v57 = vrot.slane %v5289_v11, 2  ;;  %v11616_v9 = vmax.f32 %v6799_v19, 0.0 }
 0x739   : > { %v4660_v63 = vsel %vm2024_vm0, %v4596_v61, %v4600_v41  ;;  %v4980_v60 = vsel %vm2111_vm1, %v4916_v46, %v4920_v58  ;;  %v4601_v6 = vrot.slane %v4537_v54, 7  ;;  %v4921_v27 = vrot.slane %v4537_v54, 1 }
 0x73a   : > { %v5286_v38 = vmax.f32 %v5284_v12, %v5285_v56  ;;  %v4728_v59 = vsel %vm2043_vm8, %v4660_v63, -inf  ;;  %v5044_v18 = vsel %vm2133_vm11, %v4980_v60, -inf  ;;  %v5291_v28 = vmax.f32 %v5289_v11, %v5290_v57 }
 0x73b   : > { %v4856_v30 = vmax.f32 %v4728_v59, %v4536_v10  ;;  %v5108_v0 = vmax.f32 %v4852_v5, %v5044_v18  ;;  %v4661_v61 = vsel %vm2024_vm0, %v4597_v47, %v4601_v6  ;;  %v4604_v46 = vrot.slane %v4540_v17, 7  ;;  %v12132_v59 = vld [vmem:[#allocation66_spill] sm:$0xff]  ;;  %v12133_v18 = vld [vmem:[#allocation48_spill] sm:$0xff] }
 0x73c   : > { %v11623_v36 = vsel %vm5468_vm13, %v5286_v38, %v5487_v45  ;;  %v4796_v12 = vsel %vm2072_vm9, %v4540_v17, -inf  ;;  %v5292_v3 = vrot.slane %v5291_v28, 1  ;;  %v4729_v20 = vsel %vm2043_vm8, %v4661_v61, -inf }
 0x73d   : > { %v5176_v8 = vsel %vm2072_vm9, %v5108_v0, -inf  ;;  %v4981_v5 = vsel %vm2111_vm1, %v4917_v23, %v4921_v27  ;;  %v4857_v45 = vmax.f32 %v4729_v20, %v4537_v54  ;;  %v4656_v47 = vsel %vm2024_vm0, %v4600_v41, %v4604_v46 }
 0x73e   : > { %v5308_v10 = vmax.f32 %v5104_v1, %v5176_v8  ;;  %v5045_v48 = vsel %vm2133_vm11, %v4981_v5, -inf  ;;  %v5293_v42 = vmax.f32 %v5291_v28, %v5292_v3  ;;  %v4732_v24 = vsel %vm2046_vm10, %v4656_v47, -inf }
 0x73f   : > { %v5109_v11 = vmax.f32 %v4853_v22, %v5045_v48  ;;  %v4924_v32 = vrot.slane %v4540_v17, 1  ;;  %v4860_v56 = vmax.f32 %v4732_v24, %v4796_v12  ;;  %v4605_v7 = vrot.slane %v11616_v9, 7 }
 0x740   : > { %v5309_v19 = vrot.slane %v5308_v10, 4  ;;  %v4797_v23 = vsel %vm2072_vm9, %v11616_v9, -inf  ;;  %v5495_v1 = vsel %vm5468_vm13, %v5293_v42, %v5494_v51  ;;  %v4925_v41 = vrot.slane %v11616_v9, 1 }
 0x741   : > { %v5177_v54 = vsel %vm2072_vm9, %v5109_v11, -inf  ;;  %v4976_v22 = vsel %vm2111_vm1, %v4920_v58, %v4924_v32  ;;  %v4657_v63 = vsel %vm2024_vm0, %v4601_v6, %v4605_v7  ;;  %v4544_v38 = vmax.f32 %v6801_v55, 0.0  ;;  %v12134_v6 = vld [vmem:[#allocation49_spill] sm:$0xff] }
 0x742   : > { %v5310_v62 = vmax.f32 %v5308_v10, %v5309_v19  ;;  %v5315_v17 = vmax.f32 %v5105_v39, %v5177_v54  ;;  %v5112_v57 = vmax.f32 %v4856_v30, %v4976_v22  ;;  %v4733_v60 = vsel %vm2046_vm10, %v4657_v63, -inf  ;;  %v12135_v63 = vld [vmem:[#allocation50_spill] sm:$0xff] }
 0x743   : > { %v4977_v51 = vsel %vm2111_vm1, %v4921_v27, %v4925_v41  ;;  %v6803_v28 = vadd.f32 %v12133_v18, %v12132_v59  ;;  %v4861_v61 = vmax.f32 %v4733_v60, %v4797_v23  ;;  %v4608_v12 = vrot.slane %v4544_v38, 7 }
 0x744   : > { %v5311_v0 = vrot.slane %v5310_v62, 2  ;;  %v5316_v58 = vrot.slane %v5315_v17, 4  ;;  %v5113_v9 = vmax.f32 %v4857_v45, %v4977_v51  ;;  %v4928_v39 = vrot.slane %v4544_v38, 1 }
 0x745   : > { %v11659_v30 = vmax.f32 %v6803_v28, 0.0  ;;  %v6805_v3 = vadd.f32 %v12134_v6, %v11249_v35  ;;  %v11666_v8 = vmax.f32 %v11425_v31, %v5428_v14  ;;  %v4652_v20 = vsel %vm2024_vm0, %v4604_v46, %v4608_v12 }
 0x746   : > { %v5312_v55 = vmax.f32 %v5310_v62, %v5311_v0  ;;  %v5317_v27 = vmax.f32 %v5315_v17, %v5316_v58  ;;  %v4972_v5 = vsel %vm2111_vm1, %v4924_v32, %v4928_v39  ;;  %v4736_v47 = vsel %vm2043_vm8, %v4652_v20, -inf }
 0x747   : > { %v4609_v10 = vrot.slane %v11659_v30, 7  ;;  %v4929_v45 = vrot.slane %v11659_v30, 1  ;;  %v5052_v31 = vsel %vm2133_vm11, %v4972_v5, -inf  ;;  %v4864_v14 = vmax.f32 %v4736_v47, %v4544_v38 }
 0x748   : > { %v5313_v48 = vrot.slane %v5312_v55, 1  ;;  %v5318_v35 = vrot.slane %v5317_v27, 2  ;;  %v5116_v42 = vmax.f32 %v4860_v56, %v5052_v31  ;;  %v4548_v22 = vmax.f32 %v6805_v3, 0.0 }
 0x749   : > { %v4653_v46 = vsel %vm2024_vm0, %v4605_v7, %v4609_v10  ;;  %v4973_v11 = vsel %vm2111_vm1, %v4925_v41, %v4929_v45  ;;  %v6807_v60 = vadd.f32 %v12135_v63, %v11254_v2 }
 0x74a   : > { %v5314_v24 = vmax.f32 %v5312_v55, %v5313_v48  ;;  %v5319_v32 = vmax.f32 %v5317_v27, %v5318_v35  ;;  %v11686_v19 = vsel %vm2043_vm8, %v4653_v46, -inf  ;;  %v5053_v23 = vsel %vm2133_vm11, %v4973_v11, -inf }
 0x74b   : > { %v5184_v56 = vsel %vm2072_vm9, %v5116_v42, -inf  ;;  %v4865_v7 = vmax.f32 %v11686_v19, %v11659_v30  ;;  %v5117_v54 = vmax.f32 %v4861_v61, %v5053_v23  ;;  %v4612_v38 = vrot.slane %v4548_v22, 7 }
 0x74c   : > { %v11696_v41 = vsel %vm5470_vm14, %v5314_v24, %v11623_v36  ;;  %v5320_v62 = vrot.slane %v5319_v32, 1  ;;  %v5336_v17 = vmax.f32 %v5112_v57, %v5184_v56  ;;  %v4804_v59 = vsel %vm2072_vm9, %v4548_v22, -inf  ;;  %v12136_v36 = vld [vmem:[#allocation34_spill] sm:$0xff] }
 0x74d   : > { %v5185_v51 = vsel %vm2072_vm9, %v5117_v54, -inf  ;;  %v4932_v18 = vrot.slane %v4548_v22, 1  ;;  %v4549_v61 = vmax.f32 %v6807_v60, 0.0  ;;  %v12137_v6 = vrot.slane %v12136_v36, 7  ;;  %v12139_v54 = vld [vmem:[#allocation36_spill] sm:$0xff] }
 0x74e   : > { %v5321_v28 = vmax.f32 %v5319_v32, %v5320_v62  ;;  %v5337_v0 = vrot.slane %v5336_v17, 4  ;;  %v5343_v58 = vmax.f32 %v5113_v9, %v5185_v51  ;;  %v4648_v2 = vsel %vm2024_vm0, %v4608_v12, %v4612_v38 }
 0x74f   : > { %v4644_v57 = vsel %vm2024_vm0, %v4612_v38, %v12137_v6  ;;  %v12138_v3 = vrot.slane %v12136_v36, 1  ;;  %v4968_v27 = vsel %vm2111_vm1, %v4928_v39, %v4932_v18  ;;  %v4740_v48 = vsel %vm2046_vm10, %v4648_v2, -inf }
 0x750   : > { %v5496_v9 = vsel %vm5470_vm14, %v5321_v28, %v5495_v1  ;;  %v5338_v20 = vmax.f32 %v5336_v17, %v5337_v0  ;;  %v5344_v5 = vrot.slane %v5343_v58, 4  ;;  %v4744_v35 = vsel %vm2043_vm8, %v4644_v57, -inf  ;;  %v12143_v28 = vld [vmem:[#allocation51_spill] sm:$0xff] }
 0x751   : > { %v4964_v55 = vsel %vm2111_vm1, %v4932_v18, %v12138_v3  ;;  %v4868_v12 = vmax.f32 %v4740_v48, %v4804_v59  ;;  %v5120_v31 = vmax.f32 %v4864_v14, %v4968_v27  ;;  %v4872_v39 = vmax.f32 %v4744_v35, %v12136_v36  ;;  %v12140_v14 = vld [vmem:[#allocation35_spill] sm:$0xff]  ;;  %v12144_v27 = vld [vmem:[#allocation37_spill] sm:$0xff]  ;;  %v12145_v48 = vld [vmem:[#allocation52_spill] sm:$0xff] }
 0x752   : > { %v5060_v47 = vsel %vm2133_vm11, %v4964_v55, -inf  ;;  %v5339_v42 = vrot.slane %v5338_v20, 2  ;;  %v5345_v46 = vmax.f32 %v5343_v58, %v5344_v5  ;;  %v4613_v11 = vrot.slane %v4549_v61, 7 }
 0x753   : > { %v5124_v1 = vmax.f32 %v4868_v12, %v5060_v47  ;;  %v4805_v24 = vsel %vm2072_vm9, %v4549_v61, -inf  ;;  %v4933_v32 = vrot.slane %v4549_v61, 1  ;;  %v5471_v19 = vsel %vm5470_vm14, %v11244_v33, %v11378_v50 }
 0x754   : > { %v5340_v23 = vmax.f32 %v5338_v20, %v5339_v42  ;;  %v5346_v56 = vrot.slane %v5345_v46, 2  ;;  %v5128_v22 = vmax.f32 %v4872_v39, %v12139_v54  ;;  %v12141_v62 = vrot.slane %v12140_v14, 7 }
 0x755   : > { %v5192_v63 = vsel %vm2072_vm9, %v5124_v1, -inf  ;;  %v4649_v60 = vsel %vm2024_vm0, %v4609_v10, %v4613_v11  ;;  %v12142_v33 = vrot.slane %v12140_v14, 1  ;;  %v4969_v25 = vsel %vm2111_vm1, %v4929_v45, %v4933_v32 }
 0x756   : > { %v4645_v17 = vsel %vm2024_vm0, %v4613_v11, %v12141_v62  ;;  %v5341_v38 = vrot.slane %v5340_v23, 1  ;;  %v5347_v59 = vmax.f32 %v5345_v46, %v5346_v56  ;;  %v5364_v18 = vmax.f32 %v5120_v31, %v5192_v63 }
 0x757   : > { %v4745_v51 = vsel %vm2043_vm8, %v4645_v17, -inf  ;;  %v4965_v50 = vsel %vm2111_vm1, %v4933_v32, %v12142_v33  ;;  %v5392_v0 = vmax.f32 %v5128_v22, %v12143_v28  ;;  %v4741_v58 = vsel %vm2046_vm10, %v4649_v60, -inf }
 0x758   : > { %v4873_v10 = vmax.f32 %v4745_v51, %v12140_v14  ;;  %v5061_v61 = vsel %vm2133_vm11, %v4965_v50, -inf  ;;  %v5342_v36 = vmax.f32 %v5340_v23, %v5341_v38  ;;  %v5348_v6 = vrot.slane %v5347_v59, 1 }
 0x759   : > { %v5365_v57 = vrot.slane %v5364_v18, 4  ;;  %v5393_v2 = vrot.slane %v5392_v0, 4  ;;  %v4869_v3 = vmax.f32 %v4741_v58, %v4805_v24  ;;  %v5121_v55 = vmax.f32 %v4865_v7, %v4969_v25 }
 0x75a   : > { %v5129_v20 = vmax.f32 %v4873_v10, %v12144_v27  ;;  %v5473_v26 = vsel %vm5472_vm15, %v11251_v16, %v5471_v19  ;;  %v5349_v30 = vmax.f32 %v5347_v59, %v5348_v6  ;;  %v5490_v34 = vsel %vm5472_vm15, %v5342_v36, %v11696_v41 }
 0x75b   : > { %v5366_v5 = vmax.f32 %v5364_v18, %v5365_v57  ;;  %v5394_v43 = vmax.f32 %v5392_v0, %v5393_v2  ;;  %v5125_v45 = vmax.f32 %v4869_v3, %v5061_v61  ;;  %v5475_v12 = vsel %vm5474_vm2, %v11349_v40, %v5473_v26 }
 0x75c   : > { %v5399_v35 = vmax.f32 %v5129_v20, %v12145_v48  ;;  %vm5476_vm0 = vcmask 1046534   ;;  %v5497_v31 = vsel %vm5472_vm15, %v5349_v30, %v5496_v9  ;;  %vm5478_vm1 = vcmask 1047559  }
 0x75d   : > { %v5367_v7 = vrot.slane %v5366_v5, 2  ;;  %v5395_v47 = vrot.slane %v5394_v43, 2  ;;  %v5477_v16 = vsel %vm5476_vm0, %v11409_v53, %v5475_v12  ;;  %v5193_v42 = vsel %vm2072_vm9, %v5125_v45, -inf }
 0x75e   : > { %v5400_v46 = vrot.slane %v5399_v35, 4  ;;  %v5482_v41 = vsel %vm5470_vm14, %v11246_v15, %v11418_v21  ;;  %v5371_v40 = vmax.f32 %v5121_v55, %v5193_v42  ;;  %v5479_v1 = vsel %vm5478_vm1, %v11455_v4, %v5477_v16 }
 0x75f   : > { %v5368_v39 = vmax.f32 %v5366_v5, %v5367_v7  ;;  %v5396_v11 = vmax.f32 %v5394_v43, %v5395_v47  ;;  %v5425_v9 = vrot.slane %v11602_v52, 1  ;;  %v5430_v24 = vrot.slane %v11666_v8, 2  ;;  %5505 = vst [vmem:[%s11779_s10] sm:$0xff] %v5479_v1 }
 0x760   : > { %v5401_v53 = vmax.f32 %v5399_v35, %v5400_v46  ;;  %v5483_v13 = vsel %vm5472_vm15, %v11256_v44, %v5482_v41  ;;  %v5372_v32 = vrot.slane %v5371_v40, 4 }
 0x761   : > { %v5369_v15 = vrot.slane %v5368_v39, 1  ;;  %v5397_v21 = vrot.slane %v5396_v11, 1  ;;  %v5484_v19 = vsel %vm5474_vm2, %v11405_v29, %v5483_v13  ;;  %v5426_v62 = vmax.f32 %v11602_v52, %v5425_v9 }
 0x762   : > { %v5402_v4 = vrot.slane %v5401_v53, 2  ;;  %v5485_v23 = vsel %vm5476_vm0, %v11443_v49, %v5484_v19  ;;  %v5373_v54 = vmax.f32 %v5371_v40, %v5372_v32  ;;  %v5431_v17 = vmax.f32 %v11666_v8, %v5430_v24 }
 0x763   : > { %v5370_v56 = vmax.f32 %v5368_v39, %v5369_v15  ;;  %v5486_v44 = vsel %vm5478_vm1, %v11457_v37, %v5485_v23  ;;  %v5398_v22 = vmax.f32 %v5396_v11, %v5397_v21 }
 0x764   : > { %v5403_v14 = vmax.f32 %v5401_v53, %v5402_v4  ;;  %5506 = vst [vmem:[%s11779_s10 + $0x8] sm:$0xff] %v5486_v44  ;;  %v5374_v63 = vrot.slane %v5373_v54, 2  ;;  %v5432_v33 = vrot.slane %v5431_v17, 1 }
 0x765   : > { %v5491_v29 = vsel %vm5474_vm2, %v5370_v56, %v5490_v34 }
 0x766   : > { %v5492_v60 = vsel %vm5476_vm0, %v5398_v22, %v5491_v29  ;;  %v5375_v49 = vmax.f32 %v5373_v54, %v5374_v63  ;;  %v5404_v37 = vrot.slane %v5403_v14, 1  ;;  %v5433_v8 = vmax.f32 %v5431_v17, %v5432_v33 }
 0x767   : > { %v5493_v51 = vsel %vm5478_vm1, %v5426_v62, %v5492_v60 }
 0x768   : > { %5507 = vst [vmem:[%s11779_s10 + $0x10] sm:$0xff] %v5493_v51  ;;  %v5376_v50 = vrot.slane %v5375_v49, 1  ;;  %v5405_v52 = vmax.f32 %v5403_v14, %v5404_v37 }
 0x76a   : > { %v5377_v38 = vmax.f32 %v5375_v49, %v5376_v50 }
 0x76c   : > { %v5498_v59 = vsel %vm5474_vm2, %v5377_v38, %v5497_v31 }
 0x76d   : > { %v5499_v18 = vsel %vm5476_vm0, %v5405_v52, %v5498_v59 }
 0x76e   : > { %v5500_v28 = vsel %vm5478_vm1, %v5433_v8, %v5499_v18 }
 0x76f   : > { %5508 = vst [vmem:[%s11779_s10 + $0x18] sm:$0xff] %v5500_v28 }
 0x770   : > { %7314 = shalt.err (!%p7311_p5)
}
 0x771   : > { %s7315_s16 = scalar_lea.hbm %s11802_s13, 512  ;;  %s7319_s12 = scalar_lea.hbm %s11854_s6, 1024 }
 0x772   : > { %p7316_p0 = scmp.ne.s32.totalorder %s11802_s13, %s7315_s16  ;;  %p7320_p10 = scmp.lt.u32.totalorder %s11802_s13, %s11854_s6 }
 0x773   : > { %p7321_p12 = scmp.lt.u32.totalorder %s7319_s12, %s7315_s16  ;;  %p7323_p2 = scmp.lt.u32.totalorder %s7315_s16, %s11802_s13 }
 0x774   : > { %p7317_p6 = pnand %p7316_p0, %p12146_p3 }
 0x775   : > { %p7322_p1 = por %p7321_p12, %p7320_p10 }
 0x776   : > { %p7318_p9 = pneg %p7317_p6 }
 0x777   : > { %p7324_p4 = por %p7323_p2, %p7322_p1 }
 0x779   : > { %p7325_p7 = pnand %p7324_p4, %p7318_p9 }
 0x77b   : > { %7328 = shalt.err (!%p7325_p7)
}
 0x77c   : > { %6972 = dma.vmem_to_hbm [thread:$0]  (%p12146_p3), %s11804_s4, 512, %s11802_s13, %s5510_s25  }
 0x77d PF: > { %p7004_p8 = scmp.ge.s32.totalorder %s7375_s24, 2  ;;  %s5536_s11 = sand.u32 1, %s7363_s21  }
 0x77e   : > { %p12147_p11 = scmp.ne.s32.totalorder %s11938_s8, 0  ;;  %s5537_s14 = scalar_lea.sflag [#allocation4], %s5536_s11 }
 0x780   : > { %p6991_p13 = pnand %p7004_p8, %p12147_p11 }
 0x782   : > { %7358 = dma.done.wait (!%p6991_p13), %s5537_s14, 512  }
 0x783   : > { %7360 = vsyncadd (!%p6991_p13), %s5537_s14, 4294966784  ;;  %s12148_s17 = sld [smem:[#allocation16_spill]]  ;;  %s12149_s23 = sld [smem:[#allocation17_spill]] }
 0x784   : > { %p19_p5 = scmp.ge.s32.totalorder %s7458_s27, 4   ;;  %s12150_s21 = smov %s7367_s22 }
 0x785   : > { %s12152_s24 = smov %s7458_s27 }
 0x786   :  { %21 = sbr.rel (!%p19_p5) target bundleno = 9 (0x9), region = 100 }
 0x789   : > { %s12151_s22 = smov %s12148_s17 }
 0x78d   :  { %5542 = vsyncpa [#allocation3], 1 }
 0x78e   :  { %5544 = vsyncpa [#allocation3 + $0x1], 1 }
 0x78f   :  { %5545 = vsyncpa [#allocation6], 1 }
 0x790   :  { %5546 = vsyncpa [#allocation9], 1 }
 0x791   :  { %5547 = vsyncpa [#allocation4], 1 }
 0x792   :  { %5549 = vsyncpa [#allocation4 + $0x1], 1 }

</bundles_post_ra>
